<compile_context>
chip_gen: v7x
topology: tpu7x:2x2x1
jax: 0.10.0
libtpu: 0.0.40
codegen_flags: <defaults>
</compile_context>

<pallas_src>
import functools

import jax
import jax.numpy as jnp
from jax import lax
from jax.experimental import pallas as pl
from jax.experimental.pallas import tpu as pltpu


_VMEM_LIMIT = 32 * 1024 * 1024      # scoped-VMEM cap; safe on v5e/v6e/v7x (>= 64 MiB/TC)


def _round_up(x, m):
    return ((x + m - 1) // m) * m


# ---------------------------------------------------------------------------
# Pallas kernels
# ---------------------------------------------------------------------------

def _conv_relu_pool_kernel(p00_ref, p01_ref, p10_ref, p11_ref, w_ref, b_ref,
                           o_ref, *, ho, ws, use_mxu):
    """Fused 3x3 conv (pad=1) + bias + ReLU + 2x2 max-pool; im2col built in VMEM.

    p{ph}{pw}: (NB, HB, WB, Cin) bf16 parity planes of the padded input:
               p[ph][pw][n, i, j, c] == x_padded[n, 2*i + ph, 2*j + pw, c].
    w_ref:     (9*Cin, Cout) bf16, rows ordered (kh, kw, cin).
    b_ref:     (1, Cout) f32.
    o_ref:     (NB, Ho*Ws, Cout) bf16 pooled output (Ws >= Wo columns; the
               extra columns are dummy work sliced off by the wrapper).
    """
    planes = {
        (0, 0): p00_ref[...].astype(jnp.float32),
        (0, 1): p01_ref[...].astype(jnp.float32),
        (1, 0): p10_ref[...].astype(jnp.float32),
        (1, 1): p11_ref[...].astype(jnp.float32),
    }
    nb = p00_ref.shape[0]
    cin = p00_ref.shape[-1]
    cout = w_ref.shape[-1]
    s = nb * ho * ws

    w = w_ref[...].astype(jnp.float32)
    b = b_ref[...]

    def slab(dh, dw, kh, kw):
        # Rows 2*i + dh + kh, cols 2*j + dw + kw of the padded input for
        # i in [0, Ho), j in [0, Ws): a plain offset slice of one parity plane.
        rh, rw = dh + kh, dw + kw
        pln = planes[(rh % 2, rw % 2)]
        sl = pln[:, rh // 2:rh // 2 + ho, rw // 2:rw // 2 + ws, :]
        return sl.reshape(s, cin)

    # One long GEMM / FMA stream per (kh, kw): the four pooling taps are
    # stacked along rows and share a single accumulator.
    acc = jnp.zeros((4 * s, cout), jnp.float32)
    for k in range(9):
        kh, kw = k // 3, k % 3
        lhs = jnp.concatenate(
            [slab(dh, dw, kh, kw) for dh in (0, 1) for dw in (0, 1)], axis=0)
        wk = w[k * cin:(k + 1) * cin, :]
        if use_mxu:
            acc = acc + jnp.dot(lhs, wk, preferred_element_type=jnp.float32)
        else:
            # Cin == 1: degenerate K -> skip the MXU, broadcast-FMA on the VPU.
            acc = acc + lhs * wk

    # 2x2 max-pool over the four taps, then bias + ReLU (hoisted after the max:
    # exact because the bias is tap-invariant and ReLU is monotone).
    pooled = jnp.max(acc.reshape(4, s, cout), axis=0)
    out = jnp.maximum(pooled + b, 0.0)
    o_ref[...] = out.reshape(nb, ho * ws, cout).astype(o_ref.dtype)


def _mlp_head_kernel(x_ref, w1_ref, b1_ref, w2_ref, b2_ref, o_ref):
    """fc2(relu(fc1(x))) fused; bf16 MXU operands, f32 accumulation/output."""
    h = jnp.dot(x_ref[...], w1_ref[...], preferred_element_type=jnp.float32)
    h = jnp.maximum(h + b1_ref[...], 0.0)
    o = jnp.dot(h.astype(w2_ref.dtype), w2_ref[...],
                preferred_element_type=jnp.float32) + b2_ref[...]
    o_ref[...] = o.astype(o_ref.dtype)


# ---------------------------------------------------------------------------
# pallas_call wrappers
# ---------------------------------------------------------------------------

def conv3x3_relu_pool(x, w_mat, bias, *, images_per_step=None):
    """3x3 conv (padding=1) + ReLU + 2x2 max-pool, one Pallas kernel invocation
    per group of images.

    x: (B, H, W, Cin); w_mat: (9*Cin, Cout) bf16, (kh, kw, cin) row order;
    bias: (Cout,) f32.  Returns (B, H//2, W//2, Cout) bfloat16.
    """
    B, H, W, cin = x.shape
    cout = w_mat.shape[1]
    assert H % 2 == 0 and W % 2 == 0
    ho, wo = H // 2, W // 2
    ws = _round_up(wo, 8)           # slab width, sublane-aligned
    hb = ho + 1                     # parity-plane height (padded rows 0 .. 2*Ho+1)
    wb = ws + 1                     # parity-plane width  (cols 0 .. Ws)

    nb = images_per_step if images_per_step is not None else (1 if B < 8 else 4)
    b_pad = _round_up(B, nb)
    steps = b_pad // nb

    # conv padding=1 plus batch padding, then a 2x2 space-to-depth "parity
    # split" (pure XLA data movement, ~1x the activation bytes):
    #   planes[ph, pw][b, i, j, c] = x_padded[b, 2*i + ph, 2*j + pw, c]
    xp = jnp.pad(x, ((0, b_pad - B), (1, 1), (1, 1), (0, 0)))
    xq = xp.reshape(b_pad, (H + 2) // 2, 2, (W + 2) // 2, 2, cin)
    xq = xq.transpose(0, 2, 4, 1, 3, 5)                       # (B, ph, pw, HB0, WB0, Cin)
    xq = jnp.pad(xq, ((0, 0), (0, 0), (0, 0),
                      (0, hb - (H + 2) // 2), (0, wb - (W + 2) // 2), (0, 0)))
    xq = xq.astype(jnp.bfloat16)
    planes = [xq[:, ph, pw] for ph in (0, 1) for pw in (0, 1)]  # 4 x (b_pad, hb, wb, cin)

    plane_spec = pl.BlockSpec((nb, hb, wb, cin), lambda n: (n, 0, 0, 0))
    out = pl.pallas_call(
        functools.partial(_conv_relu_pool_kernel, ho=ho, ws=ws, use_mxu=(cin > 1)),
        out_shape=jax.ShapeDtypeStruct((b_pad, ho * ws, cout), jnp.bfloat16),
        grid=(steps,),
        in_specs=[plane_spec, plane_spec, plane_spec, plane_spec,
                  pl.BlockSpec((9 * cin, cout), lambda n: (0, 0)),   # weights resident
                  pl.BlockSpec((1, cout), lambda n: (0, 0))],        # bias resident
        out_specs=pl.BlockSpec((nb, ho * ws, cout), lambda n: (n, 0, 0)),
        compiler_params=pltpu.CompilerParams(
            dimension_semantics=("parallel",),
            vmem_limit_bytes=_VMEM_LIMIT),
    )(*planes, w_mat, bias.reshape(1, cout).astype(jnp.float32))

    return out.reshape(b_pad, ho, ws, cout)[:B, :, :wo, :]


def mlp_head(x, w1, b1, w2, b2, *, max_tile=256):
    """fc2(relu(fc1(x))), tiled over batch rows with resident bf16 weights.

    x: (B, K); w1: (K, H) bf16; w2: (H, N) bf16 (N lane-padded to 128).
    Returns (B, N) float32.
    """
    B, K = x.shape
    hdim = w1.shape[1]
    n = w2.shape[1]

    # tile multiple of 16 (bf16 sublane packing); aim for >=2 steps when B is large
    tb = max(16, min(max_tile, _round_up(pl.cdiv(B, 2), 16)))
    b_pad = _round_up(B, tb)
    xb = jnp.pad(x.astype(jnp.bfloat16), ((0, b_pad - B), (0, 0)))

    out = pl.pallas_call(
        _mlp_head_kernel,
        out_shape=jax.ShapeDtypeStruct((b_pad, n), jnp.float32),
        grid=(b_pad // tb,),
        in_specs=[pl.BlockSpec((tb, K), lambda i: (i, 0)),
                  pl.BlockSpec((K, hdim), lambda i: (0, 0)),
                  pl.BlockSpec((1, hdim), lambda i: (0, 0)),
                  pl.BlockSpec((hdim, n), lambda i: (0, 0)),
                  pl.BlockSpec((1, n), lambda i: (0, 0))],
        out_specs=pl.BlockSpec((tb, n), lambda i: (i, 0)),
        compiler_params=pltpu.CompilerParams(
            dimension_semantics=("parallel",),
            vmem_limit_bytes=_VMEM_LIMIT),
    )(xb, w1, b1.reshape(1, hdim).astype(jnp.float32),
      w2, b2.reshape(1, n).astype(jnp.float32))
    return out[:B]


# ---------------------------------------------------------------------------
# Parameters (deterministic, PyTorch-default-style uniform init)
# ---------------------------------------------------------------------------

def init_torch_params(key):
    """PyTorch-layout float32 parameters."""
    ks = jax.random.split(key, 8)

    def u(k, shape, fan_in):
        bound = 1.0 / jnp.sqrt(float(fan_in))
        return jax.random.uniform(k, shape, jnp.float32, -bound, bound)

    return {
        "conv1_w": u(ks[0], (32, 1, 3, 3), 1 * 9),           # (Cout, Cin, kh, kw)
        "conv1_b": u(ks[1], (32,), 1 * 9),
        "conv2_w": u(ks[2], (64, 32, 3, 3), 32 * 9),
        "conv2_b": u(ks[3], (64,), 32 * 9),
        "fc1_w": u(ks[4], (128, 64 * 7 * 7), 64 * 7 * 7),    # (out, in), (c, h, w) cols
        "fc1_b": u(ks[5], (128,), 64 * 7 * 7),
        "fc2_w": u(ks[6], (10, 128), 128),
        "fc2_b": u(ks[7], (10,), 128),
    }


def prepare_params(tp):
    """Convert PyTorch-layout params to kernel-ready layouts (done once)."""
    # conv (Cout, Cin, 3, 3) -> (9*Cin, Cout) with (kh, kw, cin) row order.
    conv1_wm = jnp.transpose(tp["conv1_w"], (2, 3, 1, 0)).reshape(9 * 1, 32)
    conv2_wm = jnp.transpose(tp["conv2_w"], (2, 3, 1, 0)).reshape(9 * 32, 64)
    # fc1 columns permuted ONCE from PyTorch (c, h, w) order to NHWC (h, w, c)
    # order, so the forward pass flattens conv2's output without a transpose.
    fc1_wm = jnp.transpose(tp["fc1_w"].reshape(128, 64, 7, 7),
                           (2, 3, 1, 0)).reshape(64 * 7 * 7, 128)
    # fc2 lane-padded from 10 to 128 output columns (lane-dense stores).
    fc2_wm = jnp.zeros((128, 128), jnp.float32).at[:, :10].set(tp["fc2_w"].T)
    fc2_b = jnp.zeros((128,), jnp.float32).at[:10].set(tp["fc2_b"])
    return {
        "conv1_wm": conv1_wm.astype(jnp.bfloat16),
        "conv1_b": tp["conv1_b"],
        "conv2_wm": conv2_wm.astype(jnp.bfloat16),
        "conv2_b": tp["conv2_b"],
        "fc1_wm": fc1_wm.astype(jnp.bfloat16),
        "fc1_b": tp["fc1_b"],
        "fc2_wm": fc2_wm.astype(jnp.bfloat16),
        "fc2_b": fc2_b,
    }


# ---------------------------------------------------------------------------
# Forward pass (matches DefendedTargetModel.forward in eval mode)
# ---------------------------------------------------------------------------

@jax.jit
def defended_target_model_forward(params, x_nchw):
    # TODO(synk): training-mode stochastic Dropout2d/Dropout (pltpu PRNG) not implemented;
    # both dropouts are inference-mode identities here.
    x = jnp.transpose(x_nchw, (0, 2, 3, 1))                   # NCHW -> NHWC, (B, 28, 28, 1)
    B = x.shape[0]

    y1 = conv3x3_relu_pool(x, params["conv1_wm"], params["conv1_b"])    # (B, 14, 14, 32)
    y2 = conv3x3_relu_pool(y1, params["conv2_wm"], params["conv2_b"])   # (B, 7, 7, 64)

    flat = y2.reshape(B, 7 * 7 * 64)        # NHWC flatten; fc1 columns pre-permuted to match
    logits = mlp_head(flat, params["fc1_wm"], params["fc1_b"],
                      params["fc2_wm"], params["fc2_b"])                # (B, 128)
    return logits[:, :10]


# ---------------------------------------------------------------------------
# Pure-JAX f32 reference (for correctness checking)
# ---------------------------------------------------------------------------

def _reference_forward(tp, x_nchw):
    def conv(x, w, b):
        y = lax.conv_general_dilated(x, w, (1, 1), ((1, 1), (1, 1)),
                                     dimension_numbers=("NCHW", "OIHW", "NCHW"))
        return jax.nn.relu(y + b[None, :, None, None])

    def pool(x):
        return lax.reduce_window(x, -jnp.inf, lax.max,
                                 (1, 1, 2, 2), (1, 1, 2, 2), "VALID")

    h = pool(conv(x_nchw, tp["conv1_w"], tp["conv1_b"]))
    h = pool(conv(h, tp["conv2_w"], tp["conv2_b"]))
    h = h.reshape(h.shape[0], -1)                             # (B, 64*7*7), (c, h, w) order
    h = jax.nn.relu(h @ tp["fc1_w"].T + tp["fc1_b"])
    return h @ tp["fc2_w"].T + tp["fc2_b"]


if __name__ == "__main__":
    key = jax.random.PRNGKey(0)
    pkey, xkey = jax.random.split(key)
    torch_params = init_torch_params(pkey)
    params = prepare_params(torch_params)

    x = jax.random.normal(xkey, (2, 1, 28, 28), jnp.float32)  # MNIST-sized input

    out = defended_target_model_forward(params, x)
    out = jax.block_until_ready(out)

    ref = _reference_forward(torch_params, x)
    assert out.shape == (2, 10)
    assert bool(jnp.all(jnp.isfinite(out)))
    assert bool(jnp.allclose(out, ref, atol=3e-2)), (
        "max abs err vs f32 reference: %f" % float(jnp.max(jnp.abs(out - ref))))
    print("KERNEL_OK")
</pallas_src>

<mosaic_0001>
module attributes {stable_mosaic.version = 11 : i64} {
  func.func @_conv_relu_pool_kernel(%arg0: i32, %arg1: memref<1x15x17x1xbf16, #tpu.memory_space<vmem>>, %arg2: memref<1x15x17x1xbf16, #tpu.memory_space<vmem>>, %arg3: memref<1x15x17x1xbf16, #tpu.memory_space<vmem>>, %arg4: memref<1x15x17x1xbf16, #tpu.memory_space<vmem>>, %arg5: memref<9x32xbf16, #tpu.memory_space<vmem>>, %arg6: memref<1x32xf32, #tpu.memory_space<vmem>>, %arg7: memref<1x224x32xbf16, #tpu.memory_space<vmem>>) attributes {dimension_semantics = [#tpu.dimension_semantics<parallel>], iteration_bounds = array<i64: 2>, scalar_prefetch = 0 : i64, scratch_operands = 0 : i64, tpu.core_type = #tpu.core_type<tc>, window_params = [{transform_indices = @transform_0, window_bounds = array<i64: 1, 15, 17, 1>}, {transform_indices = @transform_1, window_bounds = array<i64: 1, 15, 17, 1>}, {transform_indices = @transform_2, window_bounds = array<i64: 1, 15, 17, 1>}, {transform_indices = @transform_3, window_bounds = array<i64: 1, 15, 17, 1>}, {pipeline_mode = #tpu.pipeline_mode<synchronous>, transform_indices = @transform_4, window_bounds = array<i64: 9, 32>}, {pipeline_mode = #tpu.pipeline_mode<synchronous>, transform_indices = @transform_5, window_bounds = array<i64: 1, 32>}, {transform_indices = @transform_6, window_bounds = array<i64: 1, 224, 32>}]} {
    %c0 = arith.constant 0 : index
    %c0_0 = arith.constant 0 : index
    %c0_1 = arith.constant 0 : index
    %c0_2 = arith.constant 0 : index
    %0 = vector.load %arg1[%c0, %c0_0, %c0_1, %c0_2] : memref<1x15x17x1xbf16, #tpu.memory_space<vmem>>, vector<1x15x17x1xbf16>
    %1 = arith.extf %0 : vector<1x15x17x1xbf16> to vector<1x15x17x1xf32>
    %c0_3 = arith.constant 0 : index
    %c0_4 = arith.constant 0 : index
    %c0_5 = arith.constant 0 : index
    %c0_6 = arith.constant 0 : index
    %2 = vector.load %arg2[%c0_3, %c0_4, %c0_5, %c0_6] : memref<1x15x17x1xbf16, #tpu.memory_space<vmem>>, vector<1x15x17x1xbf16>
    %3 = arith.extf %2 : vector<1x15x17x1xbf16> to vector<1x15x17x1xf32>
    %c0_7 = arith.constant 0 : index
    %c0_8 = arith.constant 0 : index
    %c0_9 = arith.constant 0 : index
    %c0_10 = arith.constant 0 : index
    %4 = vector.load %arg3[%c0_7, %c0_8, %c0_9, %c0_10] : memref<1x15x17x1xbf16, #tpu.memory_space<vmem>>, vector<1x15x17x1xbf16>
    %5 = arith.extf %4 : vector<1x15x17x1xbf16> to vector<1x15x17x1xf32>
    %c0_11 = arith.constant 0 : index
    %c0_12 = arith.constant 0 : index
    %c0_13 = arith.constant 0 : index
    %c0_14 = arith.constant 0 : index
    %6 = vector.load %arg4[%c0_11, %c0_12, %c0_13, %c0_14] : memref<1x15x17x1xbf16, #tpu.memory_space<vmem>>, vector<1x15x17x1xbf16>
    %7 = arith.extf %6 : vector<1x15x17x1xbf16> to vector<1x15x17x1xf32>
    %c0_15 = arith.constant 0 : index
    %c0_16 = arith.constant 0 : index
    %8 = vector.load %arg5[%c0_15, %c0_16] : memref<9x32xbf16, #tpu.memory_space<vmem>>, vector<9x32xbf16>
    %9 = arith.extf %8 : vector<9x32xbf16> to vector<9x32xf32>
    %c0_17 = arith.constant 0 : index
    %c0_18 = arith.constant 0 : index
    %10 = vector.load %arg6[%c0_17, %c0_18] : memref<1x32xf32, #tpu.memory_space<vmem>>, vector<1x32xf32>
    %cst = arith.constant 0.000000e+00 : f32
    %11 = vector.broadcast %cst : f32 to vector<896x32xf32>
    %12 = vector.extract_strided_slice %1 {offsets = [0, 0, 0, 0], sizes = [1, 14, 16, 1], strides = [1, 1, 1, 1]} : vector<1x15x17x1xf32> to vector<1x14x16x1xf32>
    %13 = vector.shape_cast %12 : vector<1x14x16x1xf32> to vector<224x1xf32>
    %14 = vector.extract_strided_slice %3 {offsets = [0, 0, 0, 0], sizes = [1, 14, 16, 1], strides = [1, 1, 1, 1]} : vector<1x15x17x1xf32> to vector<1x14x16x1xf32>
    %15 = vector.shape_cast %14 : vector<1x14x16x1xf32> to vector<224x1xf32>
    %16 = vector.extract_strided_slice %5 {offsets = [0, 0, 0, 0], sizes = [1, 14, 16, 1], strides = [1, 1, 1, 1]} : vector<1x15x17x1xf32> to vector<1x14x16x1xf32>
    %17 = vector.shape_cast %16 : vector<1x14x16x1xf32> to vector<224x1xf32>
    %18 = vector.extract_strided_slice %7 {offsets = [0, 0, 0, 0], sizes = [1, 14, 16, 1], strides = [1, 1, 1, 1]} : vector<1x15x17x1xf32> to vector<1x14x16x1xf32>
    %19 = vector.shape_cast %18 : vector<1x14x16x1xf32> to vector<224x1xf32>
    %20 = tpu.concatenate %13, %15, %17, %19 in 0 : vector<224x1xf32>, vector<224x1xf32>, vector<224x1xf32>, vector<224x1xf32> -> vector<896x1xf32>
    %21 = vector.extract_strided_slice %9 {offsets = [0, 0], sizes = [1, 32], strides = [1, 1]} : vector<9x32xf32> to vector<1x32xf32>
    %22 = vector.broadcast %20 : vector<896x1xf32> to vector<896x32xf32>
    %23 = vector.broadcast %21 : vector<1x32xf32> to vector<896x32xf32>
    %24 = arith.mulf %22, %23 : vector<896x32xf32>
    %25 = arith.addf %11, %24 : vector<896x32xf32>
    %26 = vector.extract_strided_slice %3 {offsets = [0, 0, 0, 0], sizes = [1, 14, 16, 1], strides = [1, 1, 1, 1]} : vector<1x15x17x1xf32> to vector<1x14x16x1xf32>
    %27 = vector.shape_cast %26 : vector<1x14x16x1xf32> to vector<224x1xf32>
    %28 = vector.extract_strided_slice %1 {offsets = [0, 0, 1, 0], sizes = [1, 14, 16, 1], strides = [1, 1, 1, 1]} : vector<1x15x17x1xf32> to vector<1x14x16x1xf32>
    %29 = vector.shape_cast %28 : vector<1x14x16x1xf32> to vector<224x1xf32>
    %30 = vector.extract_strided_slice %7 {offsets = [0, 0, 0, 0], sizes = [1, 14, 16, 1], strides = [1, 1, 1, 1]} : vector<1x15x17x1xf32> to vector<1x14x16x1xf32>
    %31 = vector.shape_cast %30 : vector<1x14x16x1xf32> to vector<224x1xf32>
    %32 = vector.extract_strided_slice %5 {offsets = [0, 0, 1, 0], sizes = [1, 14, 16, 1], strides = [1, 1, 1, 1]} : vector<1x15x17x1xf32> to vector<1x14x16x1xf32>
    %33 = vector.shape_cast %32 : vector<1x14x16x1xf32> to vector<224x1xf32>
    %34 = tpu.concatenate %27, %29, %31, %33 in 0 : vector<224x1xf32>, vector<224x1xf32>, vector<224x1xf32>, vector<224x1xf32> -> vector<896x1xf32>
    %35 = vector.extract_strided_slice %9 {offsets = [1, 0], sizes = [1, 32], strides = [1, 1]} : vector<9x32xf32> to vector<1x32xf32>
    %36 = vector.broadcast %34 : vector<896x1xf32> to vector<896x32xf32>
    %37 = vector.broadcast %35 : vector<1x32xf32> to vector<896x32xf32>
    %38 = arith.mulf %36, %37 : vector<896x32xf32>
    %39 = arith.addf %25, %38 : vector<896x32xf32>
    %40 = vector.extract_strided_slice %1 {offsets = [0, 0, 1, 0], sizes = [1, 14, 16, 1], strides = [1, 1, 1, 1]} : vector<1x15x17x1xf32> to vector<1x14x16x1xf32>
    %41 = vector.shape_cast %40 : vector<1x14x16x1xf32> to vector<224x1xf32>
    %42 = vector.extract_strided_slice %3 {offsets = [0, 0, 1, 0], sizes = [1, 14, 16, 1], strides = [1, 1, 1, 1]} : vector<1x15x17x1xf32> to vector<1x14x16x1xf32>
    %43 = vector.shape_cast %42 : vector<1x14x16x1xf32> to vector<224x1xf32>
    %44 = vector.extract_strided_slice %5 {offsets = [0, 0, 1, 0], sizes = [1, 14, 16, 1], strides = [1, 1, 1, 1]} : vector<1x15x17x1xf32> to vector<1x14x16x1xf32>
    %45 = vector.shape_cast %44 : vector<1x14x16x1xf32> to vector<224x1xf32>
    %46 = vector.extract_strided_slice %7 {offsets = [0, 0, 1, 0], sizes = [1, 14, 16, 1], strides = [1, 1, 1, 1]} : vector<1x15x17x1xf32> to vector<1x14x16x1xf32>
    %47 = vector.shape_cast %46 : vector<1x14x16x1xf32> to vector<224x1xf32>
    %48 = tpu.concatenate %41, %43, %45, %47 in 0 : vector<224x1xf32>, vector<224x1xf32>, vector<224x1xf32>, vector<224x1xf32> -> vector<896x1xf32>
    %49 = vector.extract_strided_slice %9 {offsets = [2, 0], sizes = [1, 32], strides = [1, 1]} : vector<9x32xf32> to vector<1x32xf32>
    %50 = vector.broadcast %48 : vector<896x1xf32> to vector<896x32xf32>
    %51 = vector.broadcast %49 : vector<1x32xf32> to vector<896x32xf32>
    %52 = arith.mulf %50, %51 : vector<896x32xf32>
    %53 = arith.addf %39, %52 : vector<896x32xf32>
    %54 = vector.extract_strided_slice %5 {offsets = [0, 0, 0, 0], sizes = [1, 14, 16, 1], strides = [1, 1, 1, 1]} : vector<1x15x17x1xf32> to vector<1x14x16x1xf32>
    %55 = vector.shape_cast %54 : vector<1x14x16x1xf32> to vector<224x1xf32>
    %56 = vector.extract_strided_slice %7 {offsets = [0, 0, 0, 0], sizes = [1, 14, 16, 1], strides = [1, 1, 1, 1]} : vector<1x15x17x1xf32> to vector<1x14x16x1xf32>
    %57 = vector.shape_cast %56 : vector<1x14x16x1xf32> to vector<224x1xf32>
    %58 = vector.extract_strided_slice %1 {offsets = [0, 1, 0, 0], sizes = [1, 14, 16, 1], strides = [1, 1, 1, 1]} : vector<1x15x17x1xf32> to vector<1x14x16x1xf32>
    %59 = vector.shape_cast %58 : vector<1x14x16x1xf32> to vector<224x1xf32>
    %60 = vector.extract_strided_slice %3 {offsets = [0, 1, 0, 0], sizes = [1, 14, 16, 1], strides = [1, 1, 1, 1]} : vector<1x15x17x1xf32> to vector<1x14x16x1xf32>
    %61 = vector.shape_cast %60 : vector<1x14x16x1xf32> to vector<224x1xf32>
    %62 = tpu.concatenate %55, %57, %59, %61 in 0 : vector<224x1xf32>, vector<224x1xf32>, vector<224x1xf32>, vector<224x1xf32> -> vector<896x1xf32>
    %63 = vector.extract_strided_slice %9 {offsets = [3, 0], sizes = [1, 32], strides = [1, 1]} : vector<9x32xf32> to vector<1x32xf32>
    %64 = vector.broadcast %62 : vector<896x1xf32> to vector<896x32xf32>
    %65 = vector.broadcast %63 : vector<1x32xf32> to vector<896x32xf32>
    %66 = arith.mulf %64, %65 : vector<896x32xf32>
    %67 = arith.addf %53, %66 : vector<896x32xf32>
    %68 = vector.extract_strided_slice %7 {offsets = [0, 0, 0, 0], sizes = [1, 14, 16, 1], strides = [1, 1, 1, 1]} : vector<1x15x17x1xf32> to vector<1x14x16x1xf32>
    %69 = vector.shape_cast %68 : vector<1x14x16x1xf32> to vector<224x1xf32>
    %70 = vector.extract_strided_slice %5 {offsets = [0, 0, 1, 0], sizes = [1, 14, 16, 1], strides = [1, 1, 1, 1]} : vector<1x15x17x1xf32> to vector<1x14x16x1xf32>
    %71 = vector.shape_cast %70 : vector<1x14x16x1xf32> to vector<224x1xf32>
    %72 = vector.extract_strided_slice %3 {offsets = [0, 1, 0, 0], sizes = [1, 14, 16, 1], strides = [1, 1, 1, 1]} : vector<1x15x17x1xf32> to vector<1x14x16x1xf32>
    %73 = vector.shape_cast %72 : vector<1x14x16x1xf32> to vector<224x1xf32>
    %74 = vector.extract_strided_slice %1 {offsets = [0, 1, 1, 0], sizes = [1, 14, 16, 1], strides = [1, 1, 1, 1]} : vector<1x15x17x1xf32> to vector<1x14x16x1xf32>
    %75 = vector.shape_cast %74 : vector<1x14x16x1xf32> to vector<224x1xf32>
    %76 = tpu.concatenate %69, %71, %73, %75 in 0 : vector<224x1xf32>, vector<224x1xf32>, vector<224x1xf32>, vector<224x1xf32> -> vector<896x1xf32>
    %77 = vector.extract_strided_slice %9 {offsets = [4, 0], sizes = [1, 32], strides = [1, 1]} : vector<9x32xf32> to vector<1x32xf32>
    %78 = vector.broadcast %76 : vector<896x1xf32> to vector<896x32xf32>
    %79 = vector.broadcast %77 : vector<1x32xf32> to vector<896x32xf32>
    %80 = arith.mulf %78, %79 : vector<896x32xf32>
    %81 = arith.addf %67, %80 : vector<896x32xf32>
    %82 = vector.extract_strided_slice %5 {offsets = [0, 0, 1, 0], sizes = [1, 14, 16, 1], strides = [1, 1, 1, 1]} : vector<1x15x17x1xf32> to vector<1x14x16x1xf32>
    %83 = vector.shape_cast %82 : vector<1x14x16x1xf32> to vector<224x1xf32>
    %84 = vector.extract_strided_slice %7 {offsets = [0, 0, 1, 0], sizes = [1, 14, 16, 1], strides = [1, 1, 1, 1]} : vector<1x15x17x1xf32> to vector<1x14x16x1xf32>
    %85 = vector.shape_cast %84 : vector<1x14x16x1xf32> to vector<224x1xf32>
    %86 = vector.extract_strided_slice %1 {offsets = [0, 1, 1, 0], sizes = [1, 14, 16, 1], strides = [1, 1, 1, 1]} : vector<1x15x17x1xf32> to vector<1x14x16x1xf32>
    %87 = vector.shape_cast %86 : vector<1x14x16x1xf32> to vector<224x1xf32>
    %88 = vector.extract_strided_slice %3 {offsets = [0, 1, 1, 0], sizes = [1, 14, 16, 1], strides = [1, 1, 1, 1]} : vector<1x15x17x1xf32> to vector<1x14x16x1xf32>
    %89 = vector.shape_cast %88 : vector<1x14x16x1xf32> to vector<224x1xf32>
    %90 = tpu.concatenate %83, %85, %87, %89 in 0 : vector<224x1xf32>, vector<224x1xf32>, vector<224x1xf32>, vector<224x1xf32> -> vector<896x1xf32>
    %91 = vector.extract_strided_slice %9 {offsets = [5, 0], sizes = [1, 32], strides = [1, 1]} : vector<9x32xf32> to vector<1x32xf32>
    %92 = vector.broadcast %90 : vector<896x1xf32> to vector<896x32xf32>
    %93 = vector.broadcast %91 : vector<1x32xf32> to vector<896x32xf32>
    %94 = arith.mulf %92, %93 : vector<896x32xf32>
    %95 = arith.addf %81, %94 : vector<896x32xf32>
    %96 = vector.extract_strided_slice %1 {offsets = [0, 1, 0, 0], sizes = [1, 14, 16, 1], strides = [1, 1, 1, 1]} : vector<1x15x17x1xf32> to vector<1x14x16x1xf32>
    %97 = vector.shape_cast %96 : vector<1x14x16x1xf32> to vector<224x1xf32>
    %98 = vector.extract_strided_slice %3 {offsets = [0, 1, 0, 0], sizes = [1, 14, 16, 1], strides = [1, 1, 1, 1]} : vector<1x15x17x1xf32> to vector<1x14x16x1xf32>
    %99 = vector.shape_cast %98 : vector<1x14x16x1xf32> to vector<224x1xf32>
    %100 = vector.extract_strided_slice %5 {offsets = [0, 1, 0, 0], sizes = [1, 14, 16, 1], strides = [1, 1, 1, 1]} : vector<1x15x17x1xf32> to vector<1x14x16x1xf32>
    %101 = vector.shape_cast %100 : vector<1x14x16x1xf32> to vector<224x1xf32>
    %102 = vector.extract_strided_slice %7 {offsets = [0, 1, 0, 0], sizes = [1, 14, 16, 1], strides = [1, 1, 1, 1]} : vector<1x15x17x1xf32> to vector<1x14x16x1xf32>
    %103 = vector.shape_cast %102 : vector<1x14x16x1xf32> to vector<224x1xf32>
    %104 = tpu.concatenate %97, %99, %101, %103 in 0 : vector<224x1xf32>, vector<224x1xf32>, vector<224x1xf32>, vector<224x1xf32> -> vector<896x1xf32>
    %105 = vector.extract_strided_slice %9 {offsets = [6, 0], sizes = [1, 32], strides = [1, 1]} : vector<9x32xf32> to vector<1x32xf32>
    %106 = vector.broadcast %104 : vector<896x1xf32> to vector<896x32xf32>
    %107 = vector.broadcast %105 : vector<1x32xf32> to vector<896x32xf32>
    %108 = arith.mulf %106, %107 : vector<896x32xf32>
    %109 = arith.addf %95, %108 : vector<896x32xf32>
    %110 = vector.extract_strided_slice %3 {offsets = [0, 1, 0, 0], sizes = [1, 14, 16, 1], strides = [1, 1, 1, 1]} : vector<1x15x17x1xf32> to vector<1x14x16x1xf32>
    %111 = vector.shape_cast %110 : vector<1x14x16x1xf32> to vector<224x1xf32>
    %112 = vector.extract_strided_slice %1 {offsets = [0, 1, 1, 0], sizes = [1, 14, 16, 1], strides = [1, 1, 1, 1]} : vector<1x15x17x1xf32> to vector<1x14x16x1xf32>
    %113 = vector.shape_cast %112 : vector<1x14x16x1xf32> to vector<224x1xf32>
    %114 = vector.extract_strided_slice %7 {offsets = [0, 1, 0, 0], sizes = [1, 14, 16, 1], strides = [1, 1, 1, 1]} : vector<1x15x17x1xf32> to vector<1x14x16x1xf32>
    %115 = vector.shape_cast %114 : vector<1x14x16x1xf32> to vector<224x1xf32>
    %116 = vector.extract_strided_slice %5 {offsets = [0, 1, 1, 0], sizes = [1, 14, 16, 1], strides = [1, 1, 1, 1]} : vector<1x15x17x1xf32> to vector<1x14x16x1xf32>
    %117 = vector.shape_cast %116 : vector<1x14x16x1xf32> to vector<224x1xf32>
    %118 = tpu.concatenate %111, %113, %115, %117 in 0 : vector<224x1xf32>, vector<224x1xf32>, vector<224x1xf32>, vector<224x1xf32> -> vector<896x1xf32>
    %119 = vector.extract_strided_slice %9 {offsets = [7, 0], sizes = [1, 32], strides = [1, 1]} : vector<9x32xf32> to vector<1x32xf32>
    %120 = vector.broadcast %118 : vector<896x1xf32> to vector<896x32xf32>
    %121 = vector.broadcast %119 : vector<1x32xf32> to vector<896x32xf32>
    %122 = arith.mulf %120, %121 : vector<896x32xf32>
    %123 = arith.addf %109, %122 : vector<896x32xf32>
    %124 = vector.extract_strided_slice %1 {offsets = [0, 1, 1, 0], sizes = [1, 14, 16, 1], strides = [1, 1, 1, 1]} : vector<1x15x17x1xf32> to vector<1x14x16x1xf32>
    %125 = vector.shape_cast %124 : vector<1x14x16x1xf32> to vector<224x1xf32>
    %126 = vector.extract_strided_slice %3 {offsets = [0, 1, 1, 0], sizes = [1, 14, 16, 1], strides = [1, 1, 1, 1]} : vector<1x15x17x1xf32> to vector<1x14x16x1xf32>
    %127 = vector.shape_cast %126 : vector<1x14x16x1xf32> to vector<224x1xf32>
    %128 = vector.extract_strided_slice %5 {offsets = [0, 1, 1, 0], sizes = [1, 14, 16, 1], strides = [1, 1, 1, 1]} : vector<1x15x17x1xf32> to vector<1x14x16x1xf32>
    %129 = vector.shape_cast %128 : vector<1x14x16x1xf32> to vector<224x1xf32>
    %130 = vector.extract_strided_slice %7 {offsets = [0, 1, 1, 0], sizes = [1, 14, 16, 1], strides = [1, 1, 1, 1]} : vector<1x15x17x1xf32> to vector<1x14x16x1xf32>
    %131 = vector.shape_cast %130 : vector<1x14x16x1xf32> to vector<224x1xf32>
    %132 = tpu.concatenate %125, %127, %129, %131 in 0 : vector<224x1xf32>, vector<224x1xf32>, vector<224x1xf32>, vector<224x1xf32> -> vector<896x1xf32>
    %133 = vector.extract_strided_slice %9 {offsets = [8, 0], sizes = [1, 32], strides = [1, 1]} : vector<9x32xf32> to vector<1x32xf32>
    %134 = vector.broadcast %132 : vector<896x1xf32> to vector<896x32xf32>
    %135 = vector.broadcast %133 : vector<1x32xf32> to vector<896x32xf32>
    %136 = arith.mulf %134, %135 : vector<896x32xf32>
    %137 = arith.addf %123, %136 : vector<896x32xf32>
    %138 = vector.shape_cast %137 : vector<896x32xf32> to vector<4x224x32xf32>
    %cst_19 = arith.constant dense<0xFF800000> : vector<224x32xf32>
    %139 = vector.multi_reduction <maximumf>, %138, %cst_19 [0] : vector<4x224x32xf32> to vector<224x32xf32>
    %140 = vector.broadcast %10 : vector<1x32xf32> to vector<224x32xf32>
    %141 = arith.addf %139, %140 : vector<224x32xf32>
    %cst_20 = arith.constant 0.000000e+00 : f32
    %142 = vector.broadcast %cst_20 : f32 to vector<224x32xf32>
    %143 = arith.maximumf %141, %142 : vector<224x32xf32>
    %144 = vector.shape_cast %143 : vector<224x32xf32> to vector<1x224x32xf32>
    %145 = arith.truncf %144 : vector<1x224x32xf32> to vector<1x224x32xbf16>
    %c0_21 = arith.constant 0 : index
    %c0_22 = arith.constant 0 : index
    %c0_23 = arith.constant 0 : index
    %146 = vector.load %arg7[%c0_21, %c0_22, %c0_23] : memref<1x224x32xbf16, #tpu.memory_space<vmem>>, vector<1x224x32xbf16>
    tpu.vector_store %arg7[%c0_21, %c0_22, %c0_23], %145 {strides = array<i32>} : memref<1x224x32xbf16, #tpu.memory_space<vmem>>, vector<1x224x32xbf16>,
    return
  }
  func.func @transform_0(%arg0: i32) -> (i32, i32, i32, i32) {
    %c0_i32 = arith.constant 0 : i32
    %c0_i32_0 = arith.constant 0 : i32
    %c0_i32_1 = arith.constant 0 : i32
    %c0_i32_2 = arith.constant 0 : i32
    return %arg0, %c0_i32, %c0_i32_0, %c0_i32_1 : i32, i32, i32, i32
  }
  func.func @transform_1(%arg0: i32) -> (i32, i32, i32, i32) {
    %c0_i32 = arith.constant 0 : i32
    %c0_i32_0 = arith.constant 0 : i32
    %c0_i32_1 = arith.constant 0 : i32
    %c0_i32_2 = arith.constant 0 : i32
    return %arg0, %c0_i32, %c0_i32_0, %c0_i32_1 : i32, i32, i32, i32
  }
  func.func @transform_2(%arg0: i32) -> (i32, i32, i32, i32) {
    %c0_i32 = arith.constant 0 : i32
    %c0_i32_0 = arith.constant 0 : i32
    %c0_i32_1 = arith.constant 0 : i32
    %c0_i32_2 = arith.constant 0 : i32
    return %arg0, %c0_i32, %c0_i32_0, %c0_i32_1 : i32, i32, i32, i32
  }
  func.func @transform_3(%arg0: i32) -> (i32, i32, i32, i32) {
    %c0_i32 = arith.constant 0 : i32
    %c0_i32_0 = arith.constant 0 : i32
    %c0_i32_1 = arith.constant 0 : i32
    %c0_i32_2 = arith.constant 0 : i32
    return %arg0, %c0_i32, %c0_i32_0, %c0_i32_1 : i32, i32, i32, i32
  }
  func.func @transform_4(%arg0: i32) -> (i32, i32) {
    %c0_i32 = arith.constant 0 : i32
    %c0_i32_0 = arith.constant 0 : i32
    %c0_i32_1 = arith.constant 0 : i32
    return %c0_i32, %c0_i32_0 : i32, i32
  }
  func.func @transform_5(%arg0: i32) -> (i32, i32) {
    %c0_i32 = arith.constant 0 : i32
    %c0_i32_0 = arith.constant 0 : i32
    %c0_i32_1 = arith.constant 0 : i32
    return %c0_i32, %c0_i32_0 : i32, i32
  }
  func.func @transform_6(%arg0: i32) -> (i32, i32, i32) {
    %c0_i32 = arith.constant 0 : i32
    %c0_i32_0 = arith.constant 0 : i32
    %c0_i32_1 = arith.constant 0 : i32
    return %arg0, %c0_i32, %c0_i32_0 : i32, i32, i32
  }
}

module attributes {stable_mosaic.version = 11 : i64} {
  func.func @_conv_relu_pool_kernel(%arg0: i32, %arg1: memref<1x8x9x32xbf16, #tpu.memory_space<vmem>>, %arg2: memref<1x8x9x32xbf16, #tpu.memory_space<vmem>>, %arg3: memref<1x8x9x32xbf16, #tpu.memory_space<vmem>>, %arg4: memref<1x8x9x32xbf16, #tpu.memory_space<vmem>>, %arg5: memref<288x64xbf16, #tpu.memory_space<vmem>>, %arg6: memref<1x64xf32, #tpu.memory_space<vmem>>, %arg7: memref<1x56x64xbf16, #tpu.memory_space<vmem>>) attributes {dimension_semantics = [#tpu.dimension_semantics<parallel>], iteration_bounds = array<i64: 2>, scalar_prefetch = 0 : i64, scratch_operands = 0 : i64, tpu.core_type = #tpu.core_type<tc>, window_params = [{transform_indices = @transform_0, window_bounds = array<i64: 1, 8, 9, 32>}, {transform_indices = @transform_1, window_bounds = array<i64: 1, 8, 9, 32>}, {transform_indices = @transform_2, window_bounds = array<i64: 1, 8, 9, 32>}, {transform_indices = @transform_3, window_bounds = array<i64: 1, 8, 9, 32>}, {pipeline_mode = #tpu.pipeline_mode<synchronous>, transform_indices = @transform_4, window_bounds = array<i64: 288, 64>}, {pipeline_mode = #tpu.pipeline_mode<synchronous>, transform_indices = @transform_5, window_bounds = array<i64: 1, 64>}, {transform_indices = @transform_6, window_bounds = array<i64: 1, 56, 64>}]} {
    %c0 = arith.constant 0 : index
    %c0_0 = arith.constant 0 : index
    %c0_1 = arith.constant 0 : index
    %c0_2 = arith.constant 0 : index
    %0 = vector.load %arg1[%c0, %c0_0, %c0_1, %c0_2] : memref<1x8x9x32xbf16, #tpu.memory_space<vmem>>, vector<1x8x9x32xbf16>
    %1 = arith.extf %0 : vector<1x8x9x32xbf16> to vector<1x8x9x32xf32>
    %c0_3 = arith.constant 0 : index
    %c0_4 = arith.constant 0 : index
    %c0_5 = arith.constant 0 : index
    %c0_6 = arith.constant 0 : index
    %2 = vector.load %arg2[%c0_3, %c0_4, %c0_5, %c0_6] : memref<1x8x9x32xbf16, #tpu.memory_space<vmem>>, vector<1x8x9x32xbf16>
    %3 = arith.extf %2 : vector<1x8x9x32xbf16> to vector<1x8x9x32xf32>
    %c0_7 = arith.constant 0 : index
    %c0_8 = arith.constant 0 : index
    %c0_9 = arith.constant 0 : index
    %c0_10 = arith.constant 0 : index
    %4 = vector.load %arg3[%c0_7, %c0_8, %c0_9, %c0_10] : memref<1x8x9x32xbf16, #tpu.memory_space<vmem>>, vector<1x8x9x32xbf16>
    %5 = arith.extf %4 : vector<1x8x9x32xbf16> to vector<1x8x9x32xf32>
    %c0_11 = arith.constant 0 : index
    %c0_12 = arith.constant 0 : index
    %c0_13 = arith.constant 0 : index
    %c0_14 = arith.constant 0 : index
    %6 = vector.load %arg4[%c0_11, %c0_12, %c0_13, %c0_14] : memref<1x8x9x32xbf16, #tpu.memory_space<vmem>>, vector<1x8x9x32xbf16>
    %7 = arith.extf %6 : vector<1x8x9x32xbf16> to vector<1x8x9x32xf32>
    %c0_15 = arith.constant 0 : index
    %c0_16 = arith.constant 0 : index
    %8 = vector.load %arg5[%c0_15, %c0_16] : memref<288x64xbf16, #tpu.memory_space<vmem>>, vector<288x64xbf16>
    %9 = arith.extf %8 : vector<288x64xbf16> to vector<288x64xf32>
    %c0_17 = arith.constant 0 : index
    %c0_18 = arith.constant 0 : index
    %10 = vector.load %arg6[%c0_17, %c0_18] : memref<1x64xf32, #tpu.memory_space<vmem>>, vector<1x64xf32>
    %cst = arith.constant 0.000000e+00 : f32
    %11 = vector.broadcast %cst : f32 to vector<224x64xf32>
    %12 = vector.extract_strided_slice %1 {offsets = [0, 0, 0, 0], sizes = [1, 7, 8, 32], strides = [1, 1, 1, 1]} : vector<1x8x9x32xf32> to vector<1x7x8x32xf32>
    %13 = vector.shape_cast %12 : vector<1x7x8x32xf32> to vector<56x32xf32>
    %14 = vector.extract_strided_slice %3 {offsets = [0, 0, 0, 0], sizes = [1, 7, 8, 32], strides = [1, 1, 1, 1]} : vector<1x8x9x32xf32> to vector<1x7x8x32xf32>
    %15 = vector.shape_cast %14 : vector<1x7x8x32xf32> to vector<56x32xf32>
    %16 = vector.extract_strided_slice %5 {offsets = [0, 0, 0, 0], sizes = [1, 7, 8, 32], strides = [1, 1, 1, 1]} : vector<1x8x9x32xf32> to vector<1x7x8x32xf32>
    %17 = vector.shape_cast %16 : vector<1x7x8x32xf32> to vector<56x32xf32>
    %18 = vector.extract_strided_slice %7 {offsets = [0, 0, 0, 0], sizes = [1, 7, 8, 32], strides = [1, 1, 1, 1]} : vector<1x8x9x32xf32> to vector<1x7x8x32xf32>
    %19 = vector.shape_cast %18 : vector<1x7x8x32xf32> to vector<56x32xf32>
    %20 = tpu.concatenate %13, %15, %17, %19 in 0 : vector<56x32xf32>, vector<56x32xf32>, vector<56x32xf32>, vector<56x32xf32> -> vector<224x32xf32>
    %21 = vector.extract_strided_slice %9 {offsets = [0, 0], sizes = [32, 64], strides = [1, 1]} : vector<288x64xf32> to vector<32x64xf32>
    %cst_19 = arith.constant dense<0.000000e+00> : vector<224x64xf32>
    %22 = tpu.matmul %20, %21, %cst_19 {dimension_numbers = #tpu.dot_dimension_numbers<[1], [0], [0], [1], [0, 0, 1, 1], [], []>} : vector<224x32xf32>, vector<32x64xf32>, vector<224x64xf32> -> vector<224x64xf32>
    %23 = arith.addf %11, %22 : vector<224x64xf32>
    %24 = vector.extract_strided_slice %3 {offsets = [0, 0, 0, 0], sizes = [1, 7, 8, 32], strides = [1, 1, 1, 1]} : vector<1x8x9x32xf32> to vector<1x7x8x32xf32>
    %25 = vector.shape_cast %24 : vector<1x7x8x32xf32> to vector<56x32xf32>
    %26 = vector.extract_strided_slice %1 {offsets = [0, 0, 1, 0], sizes = [1, 7, 8, 32], strides = [1, 1, 1, 1]} : vector<1x8x9x32xf32> to vector<1x7x8x32xf32>
    %27 = vector.shape_cast %26 : vector<1x7x8x32xf32> to vector<56x32xf32>
    %28 = vector.extract_strided_slice %7 {offsets = [0, 0, 0, 0], sizes = [1, 7, 8, 32], strides = [1, 1, 1, 1]} : vector<1x8x9x32xf32> to vector<1x7x8x32xf32>
    %29 = vector.shape_cast %28 : vector<1x7x8x32xf32> to vector<56x32xf32>
    %30 = vector.extract_strided_slice %5 {offsets = [0, 0, 1, 0], sizes = [1, 7, 8, 32], strides = [1, 1, 1, 1]} : vector<1x8x9x32xf32> to vector<1x7x8x32xf32>
    %31 = vector.shape_cast %30 : vector<1x7x8x32xf32> to vector<56x32xf32>
    %32 = tpu.concatenate %25, %27, %29, %31 in 0 : vector<56x32xf32>, vector<56x32xf32>, vector<56x32xf32>, vector<56x32xf32> -> vector<224x32xf32>
    %33 = vector.extract_strided_slice %9 {offsets = [32, 0], sizes = [32, 64], strides = [1, 1]} : vector<288x64xf32> to vector<32x64xf32>
    %cst_20 = arith.constant dense<0.000000e+00> : vector<224x64xf32>
    %34 = tpu.matmul %32, %33, %cst_20 {dimension_numbers = #tpu.dot_dimension_numbers<[1], [0], [0], [1], [0, 0, 1, 1], [], []>} : vector<224x32xf32>, vector<32x64xf32>, vector<224x64xf32> -> vector<224x64xf32>
    %35 = arith.addf %23, %34 : vector<224x64xf32>
    %36 = vector.extract_strided_slice %1 {offsets = [0, 0, 1, 0], sizes = [1, 7, 8, 32], strides = [1, 1, 1, 1]} : vector<1x8x9x32xf32> to vector<1x7x8x32xf32>
    %37 = vector.shape_cast %36 : vector<1x7x8x32xf32> to vector<56x32xf32>
    %38 = vector.extract_strided_slice %3 {offsets = [0, 0, 1, 0], sizes = [1, 7, 8, 32], strides = [1, 1, 1, 1]} : vector<1x8x9x32xf32> to vector<1x7x8x32xf32>
    %39 = vector.shape_cast %38 : vector<1x7x8x32xf32> to vector<56x32xf32>
    %40 = vector.extract_strided_slice %5 {offsets = [0, 0, 1, 0], sizes = [1, 7, 8, 32], strides = [1, 1, 1, 1]} : vector<1x8x9x32xf32> to vector<1x7x8x32xf32>
    %41 = vector.shape_cast %40 : vector<1x7x8x32xf32> to vector<56x32xf32>
    %42 = vector.extract_strided_slice %7 {offsets = [0, 0, 1, 0], sizes = [1, 7, 8, 32], strides = [1, 1, 1, 1]} : vector<1x8x9x32xf32> to vector<1x7x8x32xf32>
    %43 = vector.shape_cast %42 : vector<1x7x8x32xf32> to vector<56x32xf32>
    %44 = tpu.concatenate %37, %39, %41, %43 in 0 : vector<56x32xf32>, vector<56x32xf32>, vector<56x32xf32>, vector<56x32xf32> -> vector<224x32xf32>
    %45 = vector.extract_strided_slice %9 {offsets = [64, 0], sizes = [32, 64], strides = [1, 1]} : vector<288x64xf32> to vector<32x64xf32>
    %cst_21 = arith.constant dense<0.000000e+00> : vector<224x64xf32>
    %46 = tpu.matmul %44, %45, %cst_21 {dimension_numbers = #tpu.dot_dimension_numbers<[1], [0], [0], [1], [0, 0, 1, 1], [], []>} : vector<224x32xf32>, vector<32x64xf32>, vector<224x64xf32> -> vector<224x64xf32>
    %47 = arith.addf %35, %46 : vector<224x64xf32>
    %48 = vector.extract_strided_slice %5 {offsets = [0, 0, 0, 0], sizes = [1, 7, 8, 32], strides = [1, 1, 1, 1]} : vector<1x8x9x32xf32> to vector<1x7x8x32xf32>
    %49 = vector.shape_cast %48 : vector<1x7x8x32xf32> to vector<56x32xf32>
    %50 = vector.extract_strided_slice %7 {offsets = [0, 0, 0, 0], sizes = [1, 7, 8, 32], strides = [1, 1, 1, 1]} : vector<1x8x9x32xf32> to vector<1x7x8x32xf32>
    %51 = vector.shape_cast %50 : vector<1x7x8x32xf32> to vector<56x32xf32>
    %52 = vector.extract_strided_slice %1 {offsets = [0, 1, 0, 0], sizes = [1, 7, 8, 32], strides = [1, 1, 1, 1]} : vector<1x8x9x32xf32> to vector<1x7x8x32xf32>
    %53 = vector.shape_cast %52 : vector<1x7x8x32xf32> to vector<56x32xf32>
    %54 = vector.extract_strided_slice %3 {offsets = [0, 1, 0, 0], sizes = [1, 7, 8, 32], strides = [1, 1, 1, 1]} : vector<1x8x9x32xf32> to vector<1x7x8x32xf32>
    %55 = vector.shape_cast %54 : vector<1x7x8x32xf32> to vector<56x32xf32>
    %56 = tpu.concatenate %49, %51, %53, %55 in 0 : vector<56x32xf32>, vector<56x32xf32>, vector<56x32xf32>, vector<56x32xf32> -> vector<224x32xf32>
    %57 = vector.extract_strided_slice %9 {offsets = [96, 0], sizes = [32, 64], strides = [1, 1]} : vector<288x64xf32> to vector<32x64xf32>
    %cst_22 = arith.constant dense<0.000000e+00> : vector<224x64xf32>
    %58 = tpu.matmul %56, %57, %cst_22 {dimension_numbers = #tpu.dot_dimension_numbers<[1], [0], [0], [1], [0, 0, 1, 1], [], []>} : vector<224x32xf32>, vector<32x64xf32>, vector<224x64xf32> -> vector<224x64xf32>
    %59 = arith.addf %47, %58 : vector<224x64xf32>
    %60 = vector.extract_strided_slice %7 {offsets = [0, 0, 0, 0], sizes = [1, 7, 8, 32], strides = [1, 1, 1, 1]} : vector<1x8x9x32xf32> to vector<1x7x8x32xf32>
    %61 = vector.shape_cast %60 : vector<1x7x8x32xf32> to vector<56x32xf32>
    %62 = vector.extract_strided_slice %5 {offsets = [0, 0, 1, 0], sizes = [1, 7, 8, 32], strides = [1, 1, 1, 1]} : vector<1x8x9x32xf32> to vector<1x7x8x32xf32>
    %63 = vector.shape_cast %62 : vector<1x7x8x32xf32> to vector<56x32xf32>
    %64 = vector.extract_strided_slice %3 {offsets = [0, 1, 0, 0], sizes = [1, 7, 8, 32], strides = [1, 1, 1, 1]} : vector<1x8x9x32xf32> to vector<1x7x8x32xf32>
    %65 = vector.shape_cast %64 : vector<1x7x8x32xf32> to vector<56x32xf32>
    %66 = vector.extract_strided_slice %1 {offsets = [0, 1, 1, 0], sizes = [1, 7, 8, 32], strides = [1, 1, 1, 1]} : vector<1x8x9x32xf32> to vector<1x7x8x32xf32>
    %67 = vector.shape_cast %66 : vector<1x7x8x32xf32> to vector<56x32xf32>
    %68 = tpu.concatenate %61, %63, %65, %67 in 0 : vector<56x32xf32>, vector<56x32xf32>, vector<56x32xf32>, vector<56x32xf32> -> vector<224x32xf32>
    %69 = vector.extract_strided_slice %9 {offsets = [128, 0], sizes = [32, 64], strides = [1, 1]} : vector<288x64xf32> to vector<32x64xf32>
    %cst_23 = arith.constant dense<0.000000e+00> : vector<224x64xf32>
    %70 = tpu.matmul %68, %69, %cst_23 {dimension_numbers = #tpu.dot_dimension_numbers<[1], [0], [0], [1], [0, 0, 1, 1], [], []>} : vector<224x32xf32>, vector<32x64xf32>, vector<224x64xf32> -> vector<224x64xf32>
    %71 = arith.addf %59, %70 : vector<224x64xf32>
    %72 = vector.extract_strided_slice %5 {offsets = [0, 0, 1, 0], sizes = [1, 7, 8, 32], strides = [1, 1, 1, 1]} : vector<1x8x9x32xf32> to vector<1x7x8x32xf32>
    %73 = vector.shape_cast %72 : vector<1x7x8x32xf32> to vector<56x32xf32>
    %74 = vector.extract_strided_slice %7 {offsets = [0, 0, 1, 0], sizes = [1, 7, 8, 32], strides = [1, 1, 1, 1]} : vector<1x8x9x32xf32> to vector<1x7x8x32xf32>
    %75 = vector.shape_cast %74 : vector<1x7x8x32xf32> to vector<56x32xf32>
    %76 = vector.extract_strided_slice %1 {offsets = [0, 1, 1, 0], sizes = [1, 7, 8, 32], strides = [1, 1, 1, 1]} : vector<1x8x9x32xf32> to vector<1x7x8x32xf32>
    %77 = vector.shape_cast %76 : vector<1x7x8x32xf32> to vector<56x32xf32>
    %78 = vector.extract_strided_slice %3 {offsets = [0, 1, 1, 0], sizes = [1, 7, 8, 32], strides = [1, 1, 1, 1]} : vector<1x8x9x32xf32> to vector<1x7x8x32xf32>
    %79 = vector.shape_cast %78 : vector<1x7x8x32xf32> to vector<56x32xf32>
    %80 = tpu.concatenate %73, %75, %77, %79 in 0 : vector<56x32xf32>, vector<56x32xf32>, vector<56x32xf32>, vector<56x32xf32> -> vector<224x32xf32>
    %81 = vector.extract_strided_slice %9 {offsets = [160, 0], sizes = [32, 64], strides = [1, 1]} : vector<288x64xf32> to vector<32x64xf32>
    %cst_24 = arith.constant dense<0.000000e+00> : vector<224x64xf32>
    %82 = tpu.matmul %80, %81, %cst_24 {dimension_numbers = #tpu.dot_dimension_numbers<[1], [0], [0], [1], [0, 0, 1, 1], [], []>} : vector<224x32xf32>, vector<32x64xf32>, vector<224x64xf32> -> vector<224x64xf32>
    %83 = arith.addf %71, %82 : vector<224x64xf32>
    %84 = vector.extract_strided_slice %1 {offsets = [0, 1, 0, 0], sizes = [1, 7, 8, 32], strides = [1, 1, 1, 1]} : vector<1x8x9x32xf32> to vector<1x7x8x32xf32>
    %85 = vector.shape_cast %84 : vector<1x7x8x32xf32> to vector<56x32xf32>
    %86 = vector.extract_strided_slice %3 {offsets = [0, 1, 0, 0], sizes = [1, 7, 8, 32], strides = [1, 1, 1, 1]} : vector<1x8x9x32xf32> to vector<1x7x8x32xf32>
    %87 = vector.shape_cast %86 : vector<1x7x8x32xf32> to vector<56x32xf32>
    %88 = vector.extract_strided_slice %5 {offsets = [0, 1, 0, 0], sizes = [1, 7, 8, 32], strides = [1, 1, 1, 1]} : vector<1x8x9x32xf32> to vector<1x7x8x32xf32>
    %89 = vector.shape_cast %88 : vector<1x7x8x32xf32> to vector<56x32xf32>
    %90 = vector.extract_strided_slice %7 {offsets = [0, 1, 0, 0], sizes = [1, 7, 8, 32], strides = [1, 1, 1, 1]} : vector<1x8x9x32xf32> to vector<1x7x8x32xf32>
    %91 = vector.shape_cast %90 : vector<1x7x8x32xf32> to vector<56x32xf32>
    %92 = tpu.concatenate %85, %87, %89, %91 in 0 : vector<56x32xf32>, vector<56x32xf32>, vector<56x32xf32>, vector<56x32xf32> -> vector<224x32xf32>
    %93 = vector.extract_strided_slice %9 {offsets = [192, 0], sizes = [32, 64], strides = [1, 1]} : vector<288x64xf32> to vector<32x64xf32>
    %cst_25 = arith.constant dense<0.000000e+00> : vector<224x64xf32>
    %94 = tpu.matmul %92, %93, %cst_25 {dimension_numbers = #tpu.dot_dimension_numbers<[1], [0], [0], [1], [0, 0, 1, 1], [], []>} : vector<224x32xf32>, vector<32x64xf32>, vector<224x64xf32> -> vector<224x64xf32>
    %95 = arith.addf %83, %94 : vector<224x64xf32>
    %96 = vector.extract_strided_slice %3 {offsets = [0, 1, 0, 0], sizes = [1, 7, 8, 32], strides = [1, 1, 1, 1]} : vector<1x8x9x32xf32> to vector<1x7x8x32xf32>
    %97 = vector.shape_cast %96 : vector<1x7x8x32xf32> to vector<56x32xf32>
    %98 = vector.extract_strided_slice %1 {offsets = [0, 1, 1, 0], sizes = [1, 7, 8, 32], strides = [1, 1, 1, 1]} : vector<1x8x9x32xf32> to vector<1x7x8x32xf32>
    %99 = vector.shape_cast %98 : vector<1x7x8x32xf32> to vector<56x32xf32>
    %100 = vector.extract_strided_slice %7 {offsets = [0, 1, 0, 0], sizes = [1, 7, 8, 32], strides = [1, 1, 1, 1]} : vector<1x8x9x32xf32> to vector<1x7x8x32xf32>
    %101 = vector.shape_cast %100 : vector<1x7x8x32xf32> to vector<56x32xf32>
    %102 = vector.extract_strided_slice %5 {offsets = [0, 1, 1, 0], sizes = [1, 7, 8, 32], strides = [1, 1, 1, 1]} : vector<1x8x9x32xf32> to vector<1x7x8x32xf32>
    %103 = vector.shape_cast %102 : vector<1x7x8x32xf32> to vector<56x32xf32>
    %104 = tpu.concatenate %97, %99, %101, %103 in 0 : vector<56x32xf32>, vector<56x32xf32>, vector<56x32xf32>, vector<56x32xf32> -> vector<224x32xf32>
    %105 = vector.extract_strided_slice %9 {offsets = [224, 0], sizes = [32, 64], strides = [1, 1]} : vector<288x64xf32> to vector<32x64xf32>
    %cst_26 = arith.constant dense<0.000000e+00> : vector<224x64xf32>
    %106 = tpu.matmul %104, %105, %cst_26 {dimension_numbers = #tpu.dot_dimension_numbers<[1], [0], [0], [1], [0, 0, 1, 1], [], []>} : vector<224x32xf32>, vector<32x64xf32>, vector<224x64xf32> -> vector<224x64xf32>
    %107 = arith.addf %95, %106 : vector<224x64xf32>
    %108 = vector.extract_strided_slice %1 {offsets = [0, 1, 1, 0], sizes = [1, 7, 8, 32], strides = [1, 1, 1, 1]} : vector<1x8x9x32xf32> to vector<1x7x8x32xf32>
    %109 = vector.shape_cast %108 : vector<1x7x8x32xf32> to vector<56x32xf32>
    %110 = vector.extract_strided_slice %3 {offsets = [0, 1, 1, 0], sizes = [1, 7, 8, 32], strides = [1, 1, 1, 1]} : vector<1x8x9x32xf32> to vector<1x7x8x32xf32>
    %111 = vector.shape_cast %110 : vector<1x7x8x32xf32> to vector<56x32xf32>
    %112 = vector.extract_strided_slice %5 {offsets = [0, 1, 1, 0], sizes = [1, 7, 8, 32], strides = [1, 1, 1, 1]} : vector<1x8x9x32xf32> to vector<1x7x8x32xf32>
    %113 = vector.shape_cast %112 : vector<1x7x8x32xf32> to vector<56x32xf32>
    %114 = vector.extract_strided_slice %7 {offsets = [0, 1, 1, 0], sizes = [1, 7, 8, 32], strides = [1, 1, 1, 1]} : vector<1x8x9x32xf32> to vector<1x7x8x32xf32>
    %115 = vector.shape_cast %114 : vector<1x7x8x32xf32> to vector<56x32xf32>
    %116 = tpu.concatenate %109, %111, %113, %115 in 0 : vector<56x32xf32>, vector<56x32xf32>, vector<56x32xf32>, vector<56x32xf32> -> vector<224x32xf32>
    %117 = vector.extract_strided_slice %9 {offsets = [256, 0], sizes = [32, 64], strides = [1, 1]} : vector<288x64xf32> to vector<32x64xf32>
    %cst_27 = arith.constant dense<0.000000e+00> : vector<224x64xf32>
    %118 = tpu.matmul %116, %117, %cst_27 {dimension_numbers = #tpu.dot_dimension_numbers<[1], [0], [0], [1], [0, 0, 1, 1], [], []>} : vector<224x32xf32>, vector<32x64xf32>, vector<224x64xf32> -> vector<224x64xf32>
    %119 = arith.addf %107, %118 : vector<224x64xf32>
    %120 = vector.shape_cast %119 : vector<224x64xf32> to vector<4x56x64xf32>
    %cst_28 = arith.constant dense<0xFF800000> : vector<56x64xf32>
    %121 = vector.multi_reduction <maximumf>, %120, %cst_28 [0] : vector<4x56x64xf32> to vector<56x64xf32>
    %122 = vector.broadcast %10 : vector<1x64xf32> to vector<56x64xf32>
    %123 = arith.addf %121, %122 : vector<56x64xf32>
    %cst_29 = arith.constant 0.000000e+00 : f32
    %124 = vector.broadcast %cst_29 : f32 to vector<56x64xf32>
    %125 = arith.maximumf %123, %124 : vector<56x64xf32>
    %126 = vector.shape_cast %125 : vector<56x64xf32> to vector<1x56x64xf32>
    %127 = arith.truncf %126 : vector<1x56x64xf32> to vector<1x56x64xbf16>
    %c0_30 = arith.constant 0 : index
    %c0_31 = arith.constant 0 : index
    %c0_32 = arith.constant 0 : index
    %128 = vector.load %arg7[%c0_30, %c0_31, %c0_32] : memref<1x56x64xbf16, #tpu.memory_space<vmem>>, vector<1x56x64xbf16>
    tpu.vector_store %arg7[%c0_30, %c0_31, %c0_32], %127 {strides = array<i32>} : memref<1x56x64xbf16, #tpu.memory_space<vmem>>, vector<1x56x64xbf16>,
    return
  }
  func.func @transform_0(%arg0: i32) -> (i32, i32, i32, i32) {
    %c0_i32 = arith.constant 0 : i32
    %c0_i32_0 = arith.constant 0 : i32
    %c0_i32_1 = arith.constant 0 : i32
    %c0_i32_2 = arith.constant 0 : i32
    return %arg0, %c0_i32, %c0_i32_0, %c0_i32_1 : i32, i32, i32, i32
  }
  func.func @transform_1(%arg0: i32) -> (i32, i32, i32, i32) {
    %c0_i32 = arith.constant 0 : i32
    %c0_i32_0 = arith.constant 0 : i32
    %c0_i32_1 = arith.constant 0 : i32
    %c0_i32_2 = arith.constant 0 : i32
    return %arg0, %c0_i32, %c0_i32_0, %c0_i32_1 : i32, i32, i32, i32
  }
  func.func @transform_2(%arg0: i32) -> (i32, i32, i32, i32) {
    %c0_i32 = arith.constant 0 : i32
    %c0_i32_0 = arith.constant 0 : i32
    %c0_i32_1 = arith.constant 0 : i32
    %c0_i32_2 = arith.constant 0 : i32
    return %arg0, %c0_i32, %c0_i32_0, %c0_i32_1 : i32, i32, i32, i32
  }
  func.func @transform_3(%arg0: i32) -> (i32, i32, i32, i32) {
    %c0_i32 = arith.constant 0 : i32
    %c0_i32_0 = arith.constant 0 : i32
    %c0_i32_1 = arith.constant 0 : i32
    %c0_i32_2 = arith.constant 0 : i32
    return %arg0, %c0_i32, %c0_i32_0, %c0_i32_1 : i32, i32, i32, i32
  }
  func.func @transform_4(%arg0: i32) -> (i32, i32) {
    %c0_i32 = arith.constant 0 : i32
    %c0_i32_0 = arith.constant 0 : i32
    %c0_i32_1 = arith.constant 0 : i32
    return %c0_i32, %c0_i32_0 : i32, i32
  }
  func.func @transform_5(%arg0: i32) -> (i32, i32) {
    %c0_i32 = arith.constant 0 : i32
    %c0_i32_0 = arith.constant 0 : i32
    %c0_i32_1 = arith.constant 0 : i32
    return %c0_i32, %c0_i32_0 : i32, i32
  }
  func.func @transform_6(%arg0: i32) -> (i32, i32, i32) {
    %c0_i32 = arith.constant 0 : i32
    %c0_i32_0 = arith.constant 0 : i32
    %c0_i32_1 = arith.constant 0 : i32
    return %arg0, %c0_i32, %c0_i32_0 : i32, i32, i32
  }
}

module attributes {stable_mosaic.version = 11 : i64} {
  func.func @_mlp_head_kernel(%arg0: i32, %arg1: memref<16x3136xbf16, #tpu.memory_space<vmem>>, %arg2: memref<3136x128xbf16, #tpu.memory_space<vmem>>, %arg3: memref<1x128xf32, #tpu.memory_space<vmem>>, %arg4: memref<128x128xbf16, #tpu.memory_space<vmem>>, %arg5: memref<1x128xf32, #tpu.memory_space<vmem>>, %arg6: memref<16x128xf32, #tpu.memory_space<vmem>>) attributes {dimension_semantics = [#tpu.dimension_semantics<parallel>], iteration_bounds = array<i64: 1>, scalar_prefetch = 0 : i64, scratch_operands = 0 : i64, tpu.core_type = #tpu.core_type<tc>, window_params = [{transform_indices = @transform_0, window_bounds = array<i64: 16, 3136>}, {pipeline_mode = #tpu.pipeline_mode<synchronous>, transform_indices = @transform_1, window_bounds = array<i64: 3136, 128>}, {pipeline_mode = #tpu.pipeline_mode<synchronous>, transform_indices = @transform_2, window_bounds = array<i64: 1, 128>}, {pipeline_mode = #tpu.pipeline_mode<synchronous>, transform_indices = @transform_3, window_bounds = array<i64: 128, 128>}, {pipeline_mode = #tpu.pipeline_mode<synchronous>, transform_indices = @transform_4, window_bounds = array<i64: 1, 128>}, {transform_indices = @transform_5, window_bounds = array<i64: 16, 128>}]} {
    %c0 = arith.constant 0 : index
    %c0_0 = arith.constant 0 : index
    %0 = vector.load %arg1[%c0, %c0_0] : memref<16x3136xbf16, #tpu.memory_space<vmem>>, vector<16x3136xbf16>
    %c0_1 = arith.constant 0 : index
    %c0_2 = arith.constant 0 : index
    %1 = vector.load %arg2[%c0_1, %c0_2] : memref<3136x128xbf16, #tpu.memory_space<vmem>>, vector<3136x128xbf16>
    %cst = arith.constant dense<0.000000e+00> : vector<16x128xf32>
    %2 = tpu.matmul %0, %1, %cst {dimension_numbers = #tpu.dot_dimension_numbers<[1], [0], [0], [1], [0, 0, 1, 1], [], []>} : vector<16x3136xbf16>, vector<3136x128xbf16>, vector<16x128xf32> -> vector<16x128xf32>
    %c0_3 = arith.constant 0 : index
    %c0_4 = arith.constant 0 : index
    %3 = vector.load %arg3[%c0_3, %c0_4] : memref<1x128xf32, #tpu.memory_space<vmem>>, vector<1x128xf32>
    %4 = vector.broadcast %3 : vector<1x128xf32> to vector<16x128xf32>
    %5 = arith.addf %2, %4 : vector<16x128xf32>
    %cst_5 = arith.constant 0.000000e+00 : f32
    %6 = vector.broadcast %cst_5 : f32 to vector<16x128xf32>
    %7 = arith.maximumf %5, %6 : vector<16x128xf32>
    %8 = arith.truncf %7 : vector<16x128xf32> to vector<16x128xbf16>
    %c0_6 = arith.constant 0 : index
    %c0_7 = arith.constant 0 : index
    %9 = vector.load %arg4[%c0_6, %c0_7] : memref<128x128xbf16, #tpu.memory_space<vmem>>, vector<128x128xbf16>
    %cst_8 = arith.constant dense<0.000000e+00> : vector<16x128xf32>
    %10 = tpu.matmul %8, %9, %cst_8 {dimension_numbers = #tpu.dot_dimension_numbers<[1], [0], [0], [1], [0, 0, 1, 1], [], []>} : vector<16x128xbf16>, vector<128x128xbf16>, vector<16x128xf32> -> vector<16x128xf32>
    %c0_9 = arith.constant 0 : index
    %c0_10 = arith.constant 0 : index
    %11 = vector.load %arg5[%c0_9, %c0_10] : memref<1x128xf32, #tpu.memory_space<vmem>>, vector<1x128xf32>
    %12 = vector.broadcast %11 : vector<1x128xf32> to vector<16x128xf32>
    %13 = arith.addf %10, %12 : vector<16x128xf32>
    %c0_11 = arith.constant 0 : index
    %c0_12 = arith.constant 0 : index
    %14 = vector.load %arg6[%c0_11, %c0_12] : memref<16x128xf32, #tpu.memory_space<vmem>>, vector<16x128xf32>
    tpu.vector_store %arg6[%c0_11, %c0_12], %13 {strides = array<i32>} : memref<16x128xf32, #tpu.memory_space<vmem>>, vector<16x128xf32>,
    return
  }
  func.func @transform_0(%arg0: i32) -> (i32, i32) {
    %c0_i32 = arith.constant 0 : i32
    %c0_i32_0 = arith.constant 0 : i32
    return %arg0, %c0_i32 : i32, i32
  }
  func.func @transform_1(%arg0: i32) -> (i32, i32) {
    %c0_i32 = arith.constant 0 : i32
    %c0_i32_0 = arith.constant 0 : i32
    %c0_i32_1 = arith.constant 0 : i32
    return %c0_i32, %c0_i32_0 : i32, i32
  }
  func.func @transform_2(%arg0: i32) -> (i32, i32) {
    %c0_i32 = arith.constant 0 : i32
    %c0_i32_0 = arith.constant 0 : i32
    %c0_i32_1 = arith.constant 0 : i32
    return %c0_i32, %c0_i32_0 : i32, i32
  }
  func.func @transform_3(%arg0: i32) -> (i32, i32) {
    %c0_i32 = arith.constant 0 : i32
    %c0_i32_0 = arith.constant 0 : i32
    %c0_i32_1 = arith.constant 0 : i32
    return %c0_i32, %c0_i32_0 : i32, i32
  }
  func.func @transform_4(%arg0: i32) -> (i32, i32) {
    %c0_i32 = arith.constant 0 : i32
    %c0_i32_0 = arith.constant 0 : i32
    %c0_i32_1 = arith.constant 0 : i32
    return %c0_i32, %c0_i32_0 : i32, i32
  }
  func.func @transform_5(%arg0: i32) -> (i32, i32) {
    %c0_i32 = arith.constant 0 : i32
    %c0_i32_0 = arith.constant 0 : i32
    return %arg0, %c0_i32 : i32, i32
  }
}

</mosaic_0001>

<bundles_post_ra>
// kernel: defended_target_model_forward.4
= control target key start
LH: loop header
LB: loop body
LE: loop exit
PB: predicated region body
PF: predicated region fallthrough
CT: control target
= control target key end

     0   :  { %s4508_s21 = smov 0   ;;  %s5437_s0 = inlined_call_operand.vmem [shape: bf16[2,8,9,32], index: 0, kind: input, shape index: {}]   ;;  %s5438_s1 = inlined_call_operand.vmem [shape: bf16[2,8,9,32], index: 1, kind: input, shape index: {}]   ;;  %s5439_s2 = inlined_call_operand.vmem [shape: bf16[2,8,9,32], index: 2, kind: input, shape index: {}]   ;;  %s5440_s3 = inlined_call_operand.vmem [shape: bf16[2,8,9,32], index: 3, kind: input, shape index: {}]   ;;  %s5441_s4 = inlined_call_operand.vmem [shape: bf16[288,64], index: 4, kind: input, shape index: {}]   ;;  %s5442_s5 = inlined_call_operand.vmem [shape: f32[1,64], index: 5, kind: input, shape index: {}]   ;;  %s5443_s6 = inlined_call_operand.vmem [shape: bf16[2,56,64], index: 6, kind: output, shape index: {}]  }
   0x1 LB: > { %s3042_s22 = sadd.s32 4294967295, %s4471_s21   ;;  %p3046_p0 = scmp.ge.s32.totalorder %s4471_s21, 1  ;;  %s4471_s21 = sphi %s4508_s21, %s16_s21  }
   0x2   : > { %p242_p1 = scmp.lt.s32.totalorder %s4471_s21, 3 }
   0x4   : > { %p243_p2 = pnand %p3046_p0, %p242_p1 }
   0x6   : > { %246 = sbr.rel (%p243_p2) target bundleno = 496 (0x1f0), region = 44 }
   0xd   : > { %v3402_v0 = vld [vmem:[%s5441_s4 + $0x10] sm:$0xff]   ;;  %v4522_v1 = vld [vmem:[%s5441_s4 + $0x40] sm:$0xff]   ;;  %v3403_v2 = vld [vmem:[%s5441_s4 + $0x18] sm:$0xff]   ;;  %p287_p3 = scmp.lt.s32.totalorder %s3042_s22, 1  ;;  %vm584_vm0 = vcmask 261120   ;;  %vm527_vm1 = vcmask 1046528  }
   0xe   : > { %4157 = vmatprep.subr.bf16.mxu1 %v3402_v0  ;;  %4189 = vmatprep.subr.bf16.mxu0 %v4522_v1  ;;  %v4531_v3 = vld [vmem:[%s5441_s4 + $0x48] sm:$0xff]   ;;  %v3330_v4 = vld [vmem:[%s5441_s4] sm:$0xff]   ;;  %v3410_v5 = vld [vmem:[%s5441_s4 + $0x50] sm:$0xff]   ;;  %vm2844_vm2 = vcmask 523264   ;;  %vm2943_vm3 = vcmask 519168  }
   0xf   : > { %5465 = vst [vmem:[#allocation2_spill] sm:$0xff] %v4531_v3  ;;  %4159 = vmatpush3.bf16.msra.mxu1 %v3402_v0  ;;  %4191 = vmatpush3.bf16.msra.mxu0 %v4522_v1  ;;  %s5488_s22 = smov (!%p287_p3, %s3042_s22), 1  ;;  %v3411_v21 = vld [vmem:[%s5441_s4 + $0x58] sm:$0xff]   ;;  %v3401_v35 = vld [vmem:[%s5441_s4 + $0x8] sm:$0xff]   ;;  %v4657_v58 = vld [vmem:[%s5441_s4 + $0x60] sm:$0xff]  }
  0x10   : > { %4161 = vmatprep.subr.bf16.mxu1 %v3403_v2  ;;  %4193 = vmatprep.subr.bf16.mxu0 %v4531_v3  ;;  %s3318_s7 = sshll.u32 %s5488_s22, 6  ;;  %v4662_v59 = vld [vmem:[%s5441_s4 + $0x20] sm:$0xff]   ;;  %s4456_s30 = smul.u32 28, %s5488_s22 }
  0x11   : > { %s4547_s14 = scalar_lea.vmem %s5438_s1, %s3318_s7  ;;  %s4552_s17 = scalar_lea.vmem %s5440_s3, %s3318_s7 }
  0x12   : > { %v344_v6 = vld [vmem:[%s4547_s14] ss:$8 sps:$4 sm:$0xff]   ;;  %v348_v8 = vld [vmem:[%s4547_s14 + $0x10] ss:$8 sps:$4 sm:$0xff]   ;;  %s4561_s20 = scalar_lea.vmem %s5437_s0, %s3318_s7  ;;  %s4566_s25 = scalar_lea.vmem %s5439_s2, %s3318_s7 }
  0x13   : > { %4163 = vmatpush3.bf16.msra.mxu1 %v3403_v2  ;;  %4195 = vmatpush3.bf16.msra.mxu0 %v4531_v3  ;;  %v408_v7 = vld [vmem:[%s4552_s17] ss:$8 sps:$4 sm:$0xff]   ;;  %v4568_v9 = vunpack.c.l.bf16 %v344_v6  ;;  %v4572_v11 = vunpack.c.h.bf16 %v344_v6  ;;  %v412_v13 = vld [vmem:[%s4552_s17 + $0x10] ss:$8 sps:$4 sm:$0xff]   ;;  %v4579_v16 = vunpack.c.l.bf16 %v348_v8  ;;  %v4583_v18 = vunpack.c.h.bf16 %v348_v8  ;;  %v313_v26 = vld [vmem:[%s4561_s20 + $0x4] sm:$0x1]  ;;  %s5412_s9 = scalar_lea.vmem %s5443_s6, %s4456_s30 }
  0x14   : > { %4165 = vmatprep.subr.bf16.mxu1 %v3330_v4  ;;  %v4570_v10 = vunpack.c.l.bf16 %v408_v7  ;;  %4197 = vmatprep.subr.bf16.mxu0 %v3410_v5  ;;  %v4574_v12 = vunpack.c.h.bf16 %v408_v7  ;;  %v352_v14 = vld [vmem:[%s4547_s14 + $0x20] ss:$8 sps:$4 sm:$0xff]   ;;  %v4581_v17 = vunpack.c.l.bf16 %v412_v13  ;;  %v356_v19 = vld [vmem:[%s4547_s14 + $0x30] sm:$0xf]  ;;  %v4596_v22 = vunpack.c.h.bf16 %v412_v13  ;;  %v377_v28 = vld [vmem:[%s4566_s25 + $0x4] sm:$0x1] }
  0x15   : > { %v416_v15 = vld [vmem:[%s4552_s17 + $0x20] ss:$8 sps:$4 sm:$0xff]   ;;  %3714 = vmatprep.mubr.msk.f32.mxu1 %vm584_vm0, %v4568_v9  ;;  %v4598_v23 = vunpack.c.l.bf16 %v352_v14  ;;  %v4602_v25 = vunpack.c.h.bf16 %v352_v14  ;;  %v4613_v30 = vunpack.c.l.bf16 %v356_v19  ;;  %v329_v32 = vunpack.c.l.bf16 %v313_v26  ;;  %v315_v33 = vld [vmem:[%s4561_s20 + $0xc] sm:$0x1]  ;;  %v420_v36 = vld [vmem:[%s4552_s17 + $0x30] sm:$0xf] }
  0x16   : > { %v4587_v20 = vld [vmem:[%s4561_s20] ss:$8 sps:$4 sm:$0xff]   ;;  %3914 = vmatprep.mubr.msk.f32.mxu0 %vm584_vm0, %v4570_v10  ;;  %v4600_v24 = vunpack.c.l.bf16 %v416_v15  ;;  %3715 = vmatmul.mubr.msk.f32.vlgmr.msra.gmra.mrb[0].mxu1 %vm584_vm0, %v4572_v11  ;;  %v4611_v29 = vunpack.c.h.bf16 %v416_v15  ;;  %v379_v34 = vld [vmem:[%s4566_s25 + $0xc] sm:$0x1]  ;;  %v393_v38 = vunpack.c.l.bf16 %v377_v28  ;;  %v331_v40 = vunpack.c.l.bf16 %v315_v33  ;;  %v316_v41 = vld [vmem:[%s4561_s20 + $0x10] ss:$8 sps:$4 sm:$0xff]  }
  0x17   : > { %v376_v27 = vld [vmem:[%s4566_s25] ss:$8 sps:$4 sm:$0xff]   ;;  %3915 = vmatmul.mubr.msk.f32.vlgmr.msra.gmra.mrb[0].mxu0 %vm584_vm0, %v4574_v12  ;;  %v5444_v31 = vunpack.c.l.bf16 %v4587_v20  ;;  %4167 = vmatpush3.bf16.msra.mxu1 %v3330_v4  ;;  %v4625_v39 = vunpack.c.h.bf16 %v4587_v20  ;;  %v529_v43 = vrot.slane %v329_v32, 1  ;;  %v395_v45 = vunpack.c.l.bf16 %v379_v34  ;;  %v317_v46 = vld [vmem:[%s4561_s20 + $0x14] sm:$0x1] }
  0x18   : > { %4199 = vmatpush3.bf16.msra.mxu0 %v3410_v5  ;;  %v4622_v37 = vunpack.c.l.bf16 %v376_v27  ;;  %3717 = vmatprep.mubr.msk.f32.mxu1 %vm584_vm0, %v4579_v16  ;;  %v4634_v44 = vunpack.c.h.bf16 %v376_v27  ;;  %v380_v47 = vld [vmem:[%s4566_s25 + $0x10] ss:$8 sps:$4 sm:$0xff]   ;;  %v564_v49 = vrot.slane %v393_v38, 1  ;;  %v532_v51 = vrot.slane %v331_v40, 1  ;;  %v381_v52 = vld [vmem:[%s4566_s25 + $0x14] sm:$0x1] }
  0x19   : > { %3917 = vmatprep.mubr.msk.f32.mxu0 %vm584_vm0, %v4581_v17  ;;  %v528_v42 = vrot.slane %v5444_v31, 1  ;;  %4201 = vmatprep.subr.bf16.mxu0 %v3411_v21  ;;  %v531_v50 = vrot.slane %v4625_v39, 1  ;;  %v4645_v53 = vunpack.c.l.bf16 %v420_v36  ;;  %v4651_v56 = vunpack.c.l.bf16 %v316_v41  ;;  %v319_v57 = vld [vmem:[%s4561_s20 + $0x1c] sm:$0x1]  ;;  %v320_v2 = vld [vmem:[%s4561_s20 + $0x20] ss:$8 sps:$4 sm:$0xff]  }
  0x1a   : > { %v563_v48 = vrot.slane %v4622_v37, 1  ;;  %4169 = vmatprep.subr.bf16.mxu1 %v3401_v35  ;;  %3718 = vmatmul.mubr.msk.f32.gmra.mrb[2].mxu1 %vm584_vm0, %v4583_v18  ;;  %v566_v55 = vrot.slane %v4634_v44, 1  ;;  %v567_v61 = vrot.slane %v395_v45, 1  ;;  %v333_v62 = vunpack.c.l.bf16 %v317_v46  ;;  %v383_v0 = vld [vmem:[%s4566_s25 + $0x1c] sm:$0x1] }
  0x1b   : > { %3918 = vmatmul.mubr.msk.f32.gmra.mrb[2].mxu0 %vm584_vm0, %v4596_v22  ;;  %v4648_v54 = vsel %vm527_vm1, %v528_v42, %v529_v43  ;;  %3720 = vmatprep.mubr.msk.f32.mxu1 %vm584_vm0, %v4598_v23  ;;  %v4671_v63 = vunpack.c.l.bf16 %v380_v47  ;;  %v4676_v4 = vsel %vm527_vm1, %v531_v50, %v532_v51  ;;  %v534_v5 = vrot.slane %v4651_v56, 1  ;;  %v321_v8 = vld [vmem:[%s4561_s20 + $0x24] sm:$0x1]  ;;  %v384_v26 = vld [vmem:[%s4566_s25 + $0x20] ss:$8 sps:$4 sm:$0xff]  }
  0x1c   : > { %3920 = vmatprep.mubr.msk.f32.mxu0 %vm584_vm0, %v4600_v24  ;;  %v4669_v60 = vsel %vm527_vm1, %v563_v48, %v564_v49  ;;  %4203 = vmatpush3.bf16.msra.mxu0 %v3411_v21  ;;  %v397_v6 = vunpack.c.l.bf16 %v381_v52  ;;  %v4679_v7 = vunpack.c.h.bf16 %v316_v41  ;;  %v535_v13 = vrot.slane %v333_v62, 1  ;;  %v385_v33 = vld [vmem:[%s4566_s25 + $0x24] sm:$0x1]  ;;  %v323_v40 = vld [vmem:[%s4561_s20 + $0x2c] sm:$0x1] }
  0x1d   : > { %4171 = vmatpush3.bf16.msra.mxu1 %v3401_v35  ;;  %v569_v14 = vrot.slane %v4671_v63, 1  ;;  %v335_v15 = vunpack.c.l.bf16 %v319_v57  ;;  %v4683_v19 = vunpack.c.h.bf16 %v380_v47  ;;  %4205 = vmatprep.subr.bf16.mxu0 %v4657_v58  ;;  %v399_v28 = vunpack.c.l.bf16 %v383_v0  ;;  %v387_v46 = vld [vmem:[%s4566_s25 + $0x2c] sm:$0x1]  ;;  %v4721_v51 = vld [vmem:[%s4561_s20 + $0x30] ss:$8 sps:$4 sm:$0xff]  }
  0x1e   : > { %4173 = vmatprep.subr.bf16.mxu1 %v4662_v59  ;;  %3721 = vmatmul.mubr.msk.f32.gmra.mrb[4].mxu1 %vm584_vm0, %v4602_v25  ;;  %v570_v21 = vrot.slane %v397_v6, 1  ;;  %v537_v27 = vrot.slane %v4679_v7, 1  ;;  %v4693_v32 = vunpack.c.l.bf16 %v320_v2  ;;  %v4701_v34 = vsel %vm527_vm1, %v566_v55, %v567_v61  ;;  %v325_v52 = vld [vmem:[%s4561_s20 + $0x34] sm:$0x1]  ;;  %v4732_v0 = vld [vmem:[%s4566_s25 + $0x30] ss:$8 sps:$4 sm:$0xff]  }
  0x1f   : > { %3921 = vmatmul.mubr.msk.f32.gmra.mrb[4].mxu0 %vm584_vm0, %v4611_v29  ;;  %3723 = vmatprep.mubr.msk.f32.mxu1 %vm584_vm0, %v4613_v30  ;;  %v538_v35 = vrot.slane %v335_v15, 1  ;;  %v572_v36 = vrot.slane %v4683_v19, 1  ;;  %v337_v38 = vunpack.c.l.bf16 %v321_v8  ;;  %v4706_v41 = vsel %vm527_vm1, %v534_v5, %v535_v13  ;;  %v389_v5 = vld [vmem:[%s4566_s25 + $0x34] sm:$0x1] }
  0x20   : > { %3923 = vmatprep.mubr.msk.f32.mxu0 %vm584_vm0, %v4645_v53  ;;  %v4709_v42 = vsel %vm527_vm1, %v569_v14, %v570_v21  ;;  %v573_v43 = vrot.slane %v399_v28, 1  ;;  %v4711_v45 = vunpack.c.l.bf16 %v384_v26  ;;  %v540_v48 = vrot.slane %v4693_v32, 1  ;;  %v421_v3 = vld [vmem:[%s4552_s17 + $0x34] sm:$0x1] }
  0x21   : > { %v4715_v47 = vsel %vm527_vm1, %v537_v27, %v538_v35  ;;  %v401_v49 = vunpack.c.l.bf16 %v385_v33  ;;  %v4718_v50 = vunpack.c.h.bf16 %v320_v2  ;;  %v541_v55 = vrot.slane %v337_v38, 1 }
  0x22   : > { %3724 = vmatmul.mubr.msk.f32.gmra.mrb[6].mxu1 %vm584_vm0, %v4648_v54  ;;  %v575_v57 = vrot.slane %v4711_v45, 1  ;;  %v339_v61 = vunpack.c.l.bf16 %v323_v40  ;;  %v4729_v62 = vunpack.c.h.bf16 %v384_v26  ;;  %v4740_v2 = vsel %vm527_vm1, %v572_v36, %v573_v43 }
  0x23   : > { %3924 = vmatmul.mubr.msk.f32.gmra.mrb[6].mxu0 %vm584_vm0, %v4669_v60  ;;  %3726 = vmatprep.mubr.msk.f32.mxu1 %vm584_vm0, %v4676_v4  ;;  %v576_v6 = vrot.slane %v401_v49, 1  ;;  %v543_v8 = vrot.slane %v4718_v50, 1  ;;  %v403_v13 = vunpack.c.l.bf16 %v387_v46  ;;  %v4745_v26 = vunpack.c.l.bf16 %v4721_v51 }
  0x24   : > { %3926 = vmatprep.mubr.msk.f32.mxu0 %vm584_vm0, %v4701_v34  ;;  %v544_v14 = vrot.slane %v339_v61, 1  ;;  %v578_v15 = vrot.slane %v4729_v62, 1  ;;  %v341_v21 = vunpack.c.l.bf16 %v325_v52  ;;  %v4748_v28 = vunpack.c.l.bf16 %v4732_v0  ;;  %v411_v61 = vld [vmem:[%s4552_s17 + $0xc] sm:$0x1] }
  0x25   : > { %v579_v27 = vrot.slane %v403_v13, 1  ;;  %v405_v33 = vunpack.c.l.bf16 %v389_v5  ;;  %v4755_v35 = vsel %vm527_vm1, %v540_v48, %v541_v55  ;;  %v4758_v36 = vsel %vm527_vm1, %v575_v57, %v576_v6  ;;  %v409_v57 = vld [vmem:[%s4552_s17 + $0x4] sm:$0x1]  ;;  %v3413_v5 = vld [vmem:[%s5441_s4 + $0x68] sm:$0xff]   ;;  %v413_v13 = vld [vmem:[%s4552_s17 + $0x14] sm:$0x1] }
  0x26   : > { %3727 = vmatmul.mubr.msk.f32.gmra.mrb[8].mxu1 %vm584_vm0, %v4706_v41  ;;  %v546_v38 = vrot.slane %v4745_v26, 1  ;;  %v547_v40 = vrot.slane %v341_v21, 1  ;;  %v581_v43 = vrot.slane %v4748_v28, 1  ;;  %v4767_v48 = vsel %vm527_vm1, %v543_v8, %v544_v14  ;;  %v415_v14 = vld [vmem:[%s4552_s17 + $0x1c] sm:$0x1] }
  0x27   : > { %3927 = vmatmul.mubr.msk.f32.gmra.mrb[8].mxu0 %vm584_vm0, %v4709_v42  ;;  %3729 = vmatprep.mubr.msk.f32.mxu1 %vm584_vm0, %v4715_v47  ;;  %v582_v46 = vrot.slane %v405_v33, 1  ;;  %v4770_v49 = vsel %vm527_vm1, %v578_v15, %v579_v27  ;;  %v425_v6 = vunpack.c.l.bf16 %v409_v57  ;;  %v427_v8 = vunpack.c.l.bf16 %v411_v61 }
  0x28   : > { %3929 = vmatprep.mubr.msk.f32.mxu0 %vm584_vm0, %v4740_v2  ;;  %5466 = vst [vmem:[#allocation3_spill] sm:$0xff] %v4770_v49  ;;  %v4781_v52 = vsel %vm527_vm1, %v546_v38, %v547_v40  ;;  %v1128_v15 = vrot.slane %v4570_v10, 1  ;;  %v429_v27 = vunpack.c.l.bf16 %v413_v13  ;;  %v1131_v33 = vrot.slane %v4574_v12, 1 }
  0x29   : > { %v4784_v55 = vsel %vm527_vm1, %v581_v43, %v582_v46  ;;  %v1129_v21 = vrot.slane %v425_v6, 1  ;;  %v1132_v38 = vrot.slane %v427_v8, 1  ;;  %v431_v40 = vunpack.c.l.bf16 %v415_v14  ;;  %v417_v43 = vld [vmem:[%s4552_s17 + $0x24] sm:$0x1]  ;;  %v419_v46 = vld [vmem:[%s4552_s17 + $0x2c] sm:$0x1] }
  0x2a   : > { %3730 = vmatmul.mubr.msk.f32.gmra.mrb[10].mxu1 %vm584_vm0, %v4755_v35  ;;  %5467 = vst [vmem:[#allocation4_spill] sm:$0xff] %v4784_v55  ;;  %v1134_v61 = vrot.slane %v4581_v17, 1  ;;  %v433_v6 = vunpack.c.l.bf16 %v417_v43  ;;  %v1137_v13 = vrot.slane %v4596_v22, 1  ;;  %v435_v31 = vunpack.c.l.bf16 %v419_v46 }
  0x2b   : > { %3930 = vmatmul.mubr.msk.f32.gmra.mrb[10].mxu0 %vm584_vm0, %v4758_v36  ;;  %3732 = vmatprep.mubr.msk.f32.mxu1 %vm584_vm0, %v4767_v48  ;;  %v4837_v57 = vsel %vm527_vm1, %v1128_v15, %v1129_v21  ;;  %v4841_v8 = vsel %vm527_vm1, %v1131_v33, %v1132_v38  ;;  %v1138_v14 = vrot.slane %v431_v40, 1  ;;  %v1140_v21 = vrot.slane %v4600_v24, 1 }
  0x2c   : > { %3932 = vmatprep.mubr.msk.f32.mxu0 %vm584_vm0, %v4770_v49  ;;  %5468 = vst [vmem:[#allocation5_spill] sm:$0xff] %v4837_v57  ;;  %5469 = vst [vmem:[#allocation6_spill] sm:$0xff] %v4841_v8  ;;  %v437_v33 = vunpack.c.l.bf16 %v421_v3  ;;  %v1143_v40 = vrot.slane %v4611_v29, 1  ;;  %v1144_v43 = vrot.slane %v435_v31, 1  ;;  %v1146_v46 = vrot.slane %v4645_v53, 1 }
  0x2d   : > { %v4858_v38 = vsel %vm527_vm1, %v1137_v13, %v1138_v14  ;;  %v5475_v13 = vunpack.c.l.bf16 %v4587_v20  ;;  %v4898_v14 = vunpack.c.h.bf16 %v4721_v51 }
  0x2e   : > { %3733 = vmatmul.mubr.msk.f32.gmra.mrb[12].mxu1 %vm584_vm0, %v4781_v52  ;;  %5471 = vst [vmem:[#allocation8_spill] sm:$0xff] %v4858_v38  ;;  %v1147_v31 = vrot.slane %v437_v33, 1  ;;  %v349_v33 = vld [vmem:[%s4547_s14 + $0x14] sm:$0x1] }
  0x2f   : > { %3933 = vmatmul.mubr.msk.f32.gmra.mrb[12].mxu0 %vm584_vm0, %v4784_v55  ;;  %3735 = vmatprep.mubr.msk.f32.mxu1 %vm584_vm0, %v4570_v10  ;;  %v1650_v51 = vrot.slane %v4898_v14, 1 }
  0x30   : > { %3964 = vmatprep.mubr.msk.f32.mxu0 %vm584_vm0, %v4669_v60 }
  0x32   : > { %3736 = vmatmul.mubr.msk.f32.gmra.mrb[14].mxu1 %vm584_vm0, %v4574_v12 }
  0x33   : > { %3965 = vmatmul.mubr.msk.f32.vlgmr.msra.gmra.mrb[0].mxu0 %vm584_vm0, %v4701_v34  ;;  %3738 = vmatprep.mubr.msk.f32.mxu1 %vm584_vm0, %v4581_v17 }
  0x34   : > { %4207 = vmatpush3.bf16.msra.mxu0 %v4657_v58  ;;  %3967 = vmatprep.mubr.msk.f32.mxu0 %vm584_vm0, %v4709_v42  ;;  %v4817_v58 = vld [vmem:[%s5441_s4 + $0x70] sm:$0xff]  }
  0x35   : > { %4209 = vmatprep.subr.bf16.mxu0 %v3413_v5 }
  0x36   : > { %3739 = vmatmul.mubr.msk.f32.gmra.mrb[16].mxu1 %vm584_vm0, %v4596_v22 }
  0x37   : > { %3968 = vmatmul.mubr.msk.f32.gmra.mrb[2].mxu0 %vm584_vm0, %v4740_v2  ;;  %3741 = vmatprep.mubr.msk.f32.mxu1 %vm584_vm0, %v4600_v24 }
  0x38   : > { %3970 = vmatprep.mubr.msk.f32.mxu0 %vm584_vm0, %v4758_v36  ;;  %4211 = vmatpush3.bf16.msra.mxu0 %v3413_v5  ;;  %v1135_v5 = vrot.slane %v429_v27, 1  ;;  %v1141_v27 = vrot.slane %v433_v6, 1  ;;  %v327_v6 = vld [vmem:[%s4561_s20 + $0x3c] sm:$0x1] }
  0x39   : > { %4213 = vmatprep.subr.bf16.mxu0 %v4817_v58 }
  0x3a   : > { %3742 = vmatmul.mubr.msk.f32.gmra.mrb[18].mxu1 %vm584_vm0, %v4611_v29  ;;  %v4854_v15 = vsel %vm527_vm1, %v1134_v61, %v1135_v5  ;;  %v4870_v3 = vsel %vm527_vm1, %v1140_v21, %v1141_v27  ;;  %v4874_v61 = vsel %vm527_vm1, %v1143_v40, %v1144_v43  ;;  %v4885_v5 = vsel %vm527_vm1, %v1146_v46, %v1147_v31  ;;  %v347_v27 = vld [vmem:[%s4547_s14 + $0xc] sm:$0x1]  ;;  %v351_v31 = vld [vmem:[%s4547_s14 + $0x1c] sm:$0x1] }
  0x3b   : > { %3971 = vmatmul.mubr.msk.f32.gmra.mrb[4].mxu0 %vm584_vm0, %v4770_v49  ;;  %3744 = vmatprep.mubr.msk.f32.mxu1 %vm584_vm0, %v4645_v53  ;;  %5470 = vst [vmem:[#allocation7_spill] sm:$0xff] %v4854_v15  ;;  %5472 = vst [vmem:[#allocation9_spill] sm:$0xff] %v4870_v3  ;;  %v343_v21 = vunpack.c.l.bf16 %v327_v6  ;;  %v3405_v40 = vld [vmem:[%s5441_s4 + $0x28] sm:$0xff]   ;;  %v363_v20 = vunpack.c.l.bf16 %v347_v27  ;;  %v365_v46 = vunpack.c.l.bf16 %v349_v33  ;;  %v391_v6 = vld [vmem:[%s4566_s25 + $0x3c] sm:$0x1]  ;;  %v367_v33 = vunpack.c.l.bf16 %v351_v31 }
  0x3c   : > { %3973 = vmatprep.mubr.msk.f32.mxu0 %vm584_vm0, %v4784_v55  ;;  %5473 = vst [vmem:[#allocation10_spill] sm:$0xff] %v4874_v61  ;;  %5474 = vst [vmem:[#allocation11_spill] sm:$0xff] %v4885_v5 }
  0x3d   : > { %v1651_v43 = vrot.slane %v343_v21, 1  ;;  %v4927_v21 = vld [vmem:[%s5441_s4 + $0x30] sm:$0xff]   ;;  %v1104_v27 = vrot.slane %v363_v20, 1 }
  0x3e   : > { %3745 = vmatmul.mubr.msk.f32.gmra.mrb[20].mxu1 %vm584_vm0, %v4669_v60 }
  0x3f   : > { %3974 = vmatmul.mubr.msk.f32.gmra.mrb[6].mxu0 %vm584_vm0, %v4837_v57  ;;  %3747 = vmatprep.mubr.msk.f32.mxu1 %vm584_vm0, %v4701_v34 }
  0x40   : > { %3976 = vmatprep.mubr.msk.f32.mxu0 %vm584_vm0, %v4841_v8  ;;  %v1107_v8 = vrot.slane %v365_v46, 1  ;;  %v1112_v46 = vrot.slane %v4598_v23, 1 }
  0x42   : > { %3748 = vmatmul.mubr.msk.f32.gmra.mrb[22].mxu1 %vm584_vm0, %v4709_v42 }
  0x43   : > { %3977 = vmatmul.mubr.msk.f32.gmra.mrb[8].mxu0 %vm584_vm0, %v4854_v15  ;;  %3750 = vmatprep.mubr.msk.f32.mxu1 %vm584_vm0, %v4740_v2  ;;  %v1106_v15 = vrot.slane %v4579_v16, 1 }
  0x44   : > { %3979 = vmatprep.mubr.msk.f32.mxu0 %vm584_vm0, %v4858_v38  ;;  %v4936_v38 = vsel %vm527_vm1, %v1650_v51, %v1651_v43  ;;  %v1110_v51 = vrot.slane %v367_v33, 1 }
  0x45   : > { %v4958_v43 = vsel %vm527_vm1, %v1106_v15, %v1107_v8 }
  0x46   : > { %3751 = vmatmul.mubr.msk.f32.gmra.mrb[24].mxu1 %vm584_vm0, %v4758_v36 }
  0x47   : > { %3980 = vmatmul.mubr.msk.f32.gmra.mrb[10].mxu0 %vm584_vm0, %v4870_v3  ;;  %3753 = vmatprep.mubr.msk.f32.mxu1 %vm584_vm0, %v4770_v49  ;;  %v357_v49 = vld [vmem:[%s4547_s14 + $0x34] sm:$0x1] }
  0x48   : > { %3982 = vmatprep.mubr.msk.f32.mxu0 %vm584_vm0, %v4874_v61  ;;  %v407_v61 = vunpack.c.l.bf16 %v391_v6 }
  0x4a   : > { %3754 = vmatmul.mubr.msk.f32.gmra.mrb[26].mxu1 %vm584_vm0, %v4784_v55  ;;  %v2368_v3 = vrot.slane %v407_v61, 1  ;;  %v355_v55 = vld [vmem:[%s4547_s14 + $0x2c] sm:$0x1] }
  0x4b   : > { %3983 = vmatmul.mubr.msk.f32.gmra.mrb[12].mxu0 %vm584_vm0, %v4885_v5  ;;  %3764 = vmatprep.mubr.msk.f32.mxu1 %vm584_vm0, %v5475_v13  ;;  %v353_v13 = vld [vmem:[%s4547_s14 + $0x24] sm:$0x1]  ;;  %v5464_v5 = vunpack.c.h.bf16 %v4732_v0 }
  0x4c   : > { %3985 = vmatprep.mubr.msk.f32.mxu0 %vm584_vm0, %v4676_v4  ;;  %v369_v57 = vunpack.c.l.bf16 %v353_v13  ;;  %v373_v13 = vunpack.c.l.bf16 %v357_v49 }
  0x4d   : > { %v2367_v6 = vrot.slane %v5464_v5, 1  ;;  %v359_v5 = vld [vmem:[%s4547_s14 + $0x3c] sm:$0x1] }
  0x4e   : > { %3765 = vmatmul.mubr.msk.f32.vlgmr.msra.gmra.mrb[0].mxu1 %vm584_vm0, %v4625_v39  ;;  %v1113_v31 = vrot.slane %v369_v57, 1  ;;  %v375_v8 = vunpack.c.l.bf16 %v359_v5  ;;  %v1119_v33 = vrot.slane %v373_v13, 1  ;;  %v5034_v13 = vld [vmem:[%s5441_s4 + $0x80] sm:$0xff]  }
  0x4f   : > { %3986 = vmatmul.mubr.msk.f32.gmra.mrb[14].mxu0 %vm584_vm0, %v4706_v41  ;;  %4175 = vmatpush3.bf16.msra.mxu1 %v4662_v59  ;;  %v1103_v59 = vrot.slane %v4572_v11, 1  ;;  %v4943_v20 = vsel %vm527_vm1, %v2367_v6, %v2368_v3  ;;  %v371_v3 = vunpack.c.l.bf16 %v355_v55  ;;  %v358_v6 = vld [vmem:[%s4547_s14 + $0x38] sm:$0xf] }
  0x50   : > { %3767 = vmatprep.mubr.msk.f32.mxu1 %vm584_vm0, %v4651_v56  ;;  %3988 = vmatprep.mubr.msk.f32.mxu0 %vm584_vm0, %v4715_v47  ;;  %v4975_v57 = vunpack.c.l.bf16 %v358_v6  ;;  %v4978_v15 = vsel %vm527_vm1, %v1112_v46, %v1113_v31  ;;  %v3415_v31 = vld [vmem:[%s5441_s4 + $0x78] sm:$0xff]  }
  0x51   : > { %4177 = vmatprep.subr.bf16.mxu1 %v3405_v40  ;;  %v4954_v61 = vsel %vm527_vm1, %v1103_v59, %v1104_v27  ;;  %v1115_v59 = vrot.slane %v4602_v25, 1  ;;  %v1116_v49 = vrot.slane %v371_v3, 1  ;;  %v1118_v27 = vrot.slane %v4613_v30, 1  ;;  %v3407_v6 = vld [vmem:[%s5441_s4 + $0x38] sm:$0xff]  }
  0x52   : > { %3768 = vmatmul.mubr.msk.f32.gmra.mrb[2].mxu1 %vm584_vm0, %v4679_v7 }
  0x53   : > { %3989 = vmatmul.mubr.msk.f32.gmra.mrb[16].mxu0 %vm584_vm0, %v4755_v35  ;;  %3770 = vmatprep.mubr.msk.f32.mxu1 %vm584_vm0, %v4693_v32  ;;  %v4990_v5 = vsel %vm527_vm1, %v1115_v59, %v1116_v49  ;;  %v4994_v3 = vsel %vm527_vm1, %v1118_v27, %v1119_v33  ;;  %v5476_v49 = vunpack.c.h.bf16 %v4732_v0  ;;  %v422_v0 = vld [vmem:[%s4552_s17 + $0x38] sm:$0xf]  ;;  %v3417_v27 = vld [vmem:[%s5441_s4 + $0x88] sm:$0xff]   ;;  %v5478_v33 = vld [vmem:[#allocation4_spill] sm:$0xff] }
  0x54   : > { %3991 = vmatprep.mubr.msk.f32.mxu0 %vm584_vm0, %v4767_v48  ;;  %4179 = vmatpush3.bf16.msra.mxu1 %v3405_v40  ;;  %v1109_v40 = vrot.slane %v4583_v18, 1 }
  0x55   : > { %4181 = vmatprep.subr.bf16.mxu1 %v4927_v21 }
  0x56   : > { %3771 = vmatmul.mubr.msk.f32.gmra.mrb[4].mxu1 %vm584_vm0, %v4718_v50  ;;  %v4973_v55 = vsel %vm527_vm1, %v1109_v40, %v1110_v51  ;;  %v1889_v40 = vrot.slane %v4975_v57, 1  ;;  %v1890_v51 = vrot.slane %v375_v8, 1  ;;  %v5134_v8 = vunpack.c.l.bf16 %v422_v0 }
  0x57   : > { %3992 = vmatmul.mubr.msk.f32.gmra.mrb[18].mxu0 %vm584_vm0, %v4781_v52  ;;  %3773 = vmatprep.mubr.msk.f32.mxu1 %vm584_vm0, %v4745_v26 }
  0x58   : > { %3994 = vmatprep.mubr.msk.f32.mxu0 %vm584_vm0, %v4936_v38  ;;  %v5005_v46 = vsel %vm527_vm1, %v1889_v40, %v1890_v51  ;;  %v5479_v40 = vld [vmem:[#allocation5_spill] sm:$0xff]  ;;  %v5480_v51 = vld [vmem:[#allocation6_spill] sm:$0xff] }
  0x5a   : > { %3774 = vmatmul.mubr.msk.f32.gmra.mrb[6].mxu1 %vm584_vm0, %v4568_v9 }
  0x5b   : > { %3995 = vmatmul.mubr.msk.f32.gmra.mrb[20].mxu0 %vm584_vm0, %v4954_v61  ;;  %3776 = vmatprep.mubr.msk.f32.mxu1 %vm584_vm0, %v4572_v11 }
  0x5c   : > { %3997 = vmatprep.mubr.msk.f32.mxu0 %vm584_vm0, %v4958_v43 }
  0x5e   : > { %3777 = vmatmul.mubr.msk.f32.gmra.mrb[8].mxu1 %vm584_vm0, %v4579_v16 }
  0x5f   : > { %3998 = vmatmul.mubr.msk.f32.gmra.mrb[22].mxu0 %vm584_vm0, %v4973_v55  ;;  %3779 = vmatprep.mubr.msk.f32.mxu1 %vm584_vm0, %v4583_v18 }
  0x60   : > { %4000 = vmatprep.mubr.msk.f32.mxu0 %vm584_vm0, %v4978_v15 }
  0x62   : > { %3780 = vmatmul.mubr.msk.f32.gmra.mrb[10].mxu1 %vm584_vm0, %v4598_v23 }
  0x63   : > { %4001 = vmatmul.mubr.msk.f32.gmra.mrb[24].mxu0 %vm584_vm0, %v4990_v5  ;;  %3782 = vmatprep.mubr.msk.f32.mxu1 %vm584_vm0, %v4602_v25 }
  0x64   : > { %4003 = vmatprep.mubr.msk.f32.mxu0 %vm584_vm0, %v4994_v3 }
  0x66   : > { %3783 = vmatmul.mubr.msk.f32.gmra.mrb[12].mxu1 %vm584_vm0, %v4613_v30 }
  0x67   : > { %4004 = vmatmul.mubr.msk.f32.gmra.mrb[26].mxu0 %vm584_vm0, %v5005_v46  ;;  %3785 = vmatprep.mubr.msk.f32.mxu1 %vm584_vm0, %v4622_v37 }
  0x68   : > { %4014 = vmatprep.mubr.msk.f32.mxu0 %vm584_vm0, %v4625_v39 }
  0x6a   : > { %3786 = vmatmul.mubr.msk.f32.gmra.mrb[14].mxu1 %vm584_vm0, %v4634_v44 }
  0x6b   : > { %4015 = vmatmul.mubr.msk.f32.vlgmr.msra.gmra.mrb[0].mxu0 %vm584_vm0, %v4651_v56  ;;  %3788 = vmatprep.mubr.msk.f32.mxu1 %vm584_vm0, %v4671_v63 }
  0x6c   : > { %4215 = vmatpush3.bf16.msra.mxu0 %v4817_v58  ;;  %4017 = vmatprep.mubr.msk.f32.mxu0 %vm584_vm0, %v4679_v7  ;;  %v345_v58 = vld [vmem:[%s4547_s14 + $0x4] sm:$0x1] }
  0x6d   : > { %4217 = vmatprep.subr.bf16.mxu0 %v3415_v31 }
  0x6e   : > { %3789 = vmatmul.mubr.msk.f32.gmra.mrb[16].mxu1 %vm584_vm0, %v4683_v19 }
  0x6f   : > { %4018 = vmatmul.mubr.msk.f32.gmra.mrb[2].mxu0 %vm584_vm0, %v4693_v32  ;;  %3791 = vmatprep.mubr.msk.f32.mxu1 %vm584_vm0, %v4711_v45 }
  0x70   : > { %4020 = vmatprep.mubr.msk.f32.mxu0 %vm584_vm0, %v4718_v50  ;;  %4219 = vmatpush3.bf16.msra.mxu0 %v3415_v31  ;;  %v5481_v31 = vld [vmem:[#allocation7_spill] sm:$0xff] }
  0x71   : > { %4221 = vmatprep.subr.bf16.mxu0 %v5034_v13 }
  0x72   : > { %3792 = vmatmul.mubr.msk.f32.gmra.mrb[18].mxu1 %vm584_vm0, %v4729_v62 }
  0x73   : > { %4021 = vmatmul.mubr.msk.f32.gmra.mrb[4].mxu0 %vm584_vm0, %v4745_v26  ;;  %3794 = vmatprep.mubr.msk.f32.mxu1 %vm584_vm0, %v4748_v28 }
  0x74   : > { %4023 = vmatprep.mubr.msk.f32.mxu0 %vm584_vm0, %v4898_v14 }
  0x76   : > { %3795 = vmatmul.mubr.msk.f32.gmra.mrb[20].mxu1 %vm584_vm0, %v4570_v10 }
  0x77   : > { %4024 = vmatmul.mubr.msk.f32.gmra.mrb[6].mxu0 %vm584_vm0, %v4572_v11  ;;  %3797 = vmatprep.mubr.msk.f32.mxu1 %vm584_vm0, %v4574_v12 }
  0x78   : > { %4026 = vmatprep.mubr.msk.f32.mxu0 %vm584_vm0, %v4579_v16 }
  0x7a   : > { %3798 = vmatmul.mubr.msk.f32.gmra.mrb[22].mxu1 %vm584_vm0, %v4581_v17 }
  0x7b   : > { %4027 = vmatmul.mubr.msk.f32.gmra.mrb[8].mxu0 %vm584_vm0, %v4583_v18  ;;  %3800 = vmatprep.mubr.msk.f32.mxu1 %vm584_vm0, %v4596_v22 }
  0x7c   : > { %4029 = vmatprep.mubr.msk.f32.mxu0 %vm584_vm0, %v4598_v23 }
  0x7e   : > { %3801 = vmatmul.mubr.msk.f32.gmra.mrb[24].mxu1 %vm584_vm0, %v4600_v24 }
  0x7f   : > { %4030 = vmatmul.mubr.msk.f32.gmra.mrb[10].mxu0 %vm584_vm0, %v4602_v25  ;;  %3803 = vmatprep.mubr.msk.f32.mxu1 %vm584_vm0, %v4611_v29 }
  0x80   : > { %4032 = vmatprep.mubr.msk.f32.mxu0 %vm584_vm0, %v4613_v30 }
  0x82   : > { %3804 = vmatmul.mubr.msk.f32.gmra.mrb[26].mxu1 %vm584_vm0, %v4645_v53 }
  0x83   : > { %4033 = vmatmul.mubr.msk.f32.gmra.mrb[12].mxu0 %vm584_vm0, %v4975_v57  ;;  %3814 = vmatprep.mubr.msk.f32.mxu1 %vm584_vm0, %v4648_v54  ;;  %v361_v54 = vunpack.c.l.bf16 %v345_v58  ;;  %v5483_v58 = vld [vmem:[#allocation9_spill] sm:$0xff] }
  0x84   : > { %4035 = vmatprep.mubr.msk.f32.mxu0 %vm584_vm0, %v4634_v44 }
  0x85   : > { %v1101_v59 = vrot.slane %v361_v54, 1  ;;  %v5485_v54 = vld [vmem:[#allocation11_spill] sm:$0xff] }
  0x86   : > { %3815 = vmatmul.mubr.msk.f32.vlgmr.msra.gmra.mrb[0].mxu1 %vm584_vm0, %v4676_v4 }
  0x87   : > { %4036 = vmatmul.mubr.msk.f32.gmra.mrb[14].mxu0 %vm584_vm0, %v4671_v63  ;;  %4183 = vmatpush3.bf16.msra.mxu1 %v4927_v21  ;;  %v1100_v21 = vrot.slane %v4568_v9, 1 }
  0x88   : > { %3817 = vmatprep.mubr.msk.f32.mxu1 %vm584_vm0, %v4706_v41  ;;  %4038 = vmatprep.mubr.msk.f32.mxu0 %vm584_vm0, %v4683_v19 }
  0x89   : > { %4185 = vmatprep.subr.bf16.mxu1 %v3407_v6  ;;  %v1102_v9 = vsel %vm527_vm1, %v1100_v21, %v1101_v59  ;;  %v5486_v21 = vld [vmem:[#allocation2_spill] sm:$0xff] }
  0x8a   : > { %3818 = vmatmul.mubr.msk.f32.gmra.mrb[2].mxu1 %vm584_vm0, %v4715_v47 }
  0x8b   : > { %4039 = vmatmul.mubr.msk.f32.gmra.mrb[16].mxu0 %vm584_vm0, %v4711_v45  ;;  %3820 = vmatprep.mubr.msk.f32.mxu1 %vm584_vm0, %v4755_v35 }
  0x8c   : > { %4041 = vmatprep.mubr.msk.f32.mxu0 %vm584_vm0, %v4729_v62  ;;  %4187 = vmatpush3.bf16.msra.mxu1 %v3407_v6  ;;  %v5484_v6 = vld [vmem:[#allocation10_spill] sm:$0xff] }
  0x8d   : > { %4228 = vmatprep.subr.bf16.mxu1 %v4522_v1 }
  0x8e   : > { %3821 = vmatmul.mubr.msk.f32.gmra.mrb[4].mxu1 %vm584_vm0, %v4767_v48 }
  0x8f   : > { %4042 = vmatmul.mubr.msk.f32.gmra.mrb[18].mxu0 %vm584_vm0, %v4748_v28  ;;  %3823 = vmatprep.mubr.msk.f32.mxu1 %vm584_vm0, %v4781_v52 }
  0x90   : > { %4044 = vmatprep.mubr.msk.f32.mxu0 %vm584_vm0, %v5476_v49 }
  0x92   : > { %3824 = vmatmul.mubr.msk.f32.gmra.mrb[6].mxu1 %vm584_vm0, %v1102_v9 }
  0x93   : > { %4045 = vmatmul.mubr.msk.f32.gmra.mrb[20].mxu0 %vm584_vm0, %v4574_v12  ;;  %3826 = vmatprep.mubr.msk.f32.mxu1 %vm584_vm0, %v4954_v61 }
  0x94   : > { %4047 = vmatprep.mubr.msk.f32.mxu0 %vm584_vm0, %v4581_v17 }
  0x96   : > { %3827 = vmatmul.mubr.msk.f32.gmra.mrb[8].mxu1 %vm584_vm0, %v4958_v43 }
  0x97   : > { %4048 = vmatmul.mubr.msk.f32.gmra.mrb[22].mxu0 %vm584_vm0, %v4596_v22  ;;  %3829 = vmatprep.mubr.msk.f32.mxu1 %vm584_vm0, %v4973_v55 }
  0x98   : > { %4050 = vmatprep.mubr.msk.f32.mxu0 %vm584_vm0, %v4600_v24 }
  0x9a   : > { %3830 = vmatmul.mubr.msk.f32.gmra.mrb[10].mxu1 %vm584_vm0, %v4978_v15 }
  0x9b   : > { %4051 = vmatmul.mubr.msk.f32.gmra.mrb[24].mxu0 %vm584_vm0, %v4611_v29  ;;  %3832 = vmatprep.mubr.msk.f32.mxu1 %vm584_vm0, %v4990_v5 }
  0x9c   : > { %4053 = vmatprep.mubr.msk.f32.mxu0 %vm584_vm0, %v4645_v53 }
  0x9e   : > { %3833 = vmatmul.mubr.msk.f32.gmra.mrb[12].mxu1 %vm584_vm0, %v4994_v3 }
  0x9f   : > { %4054 = vmatmul.mubr.msk.f32.gmra.mrb[26].mxu0 %vm584_vm0, %v5134_v8  ;;  %3835 = vmatprep.mubr.msk.f32.mxu1 %vm584_vm0, %v4669_v60  ;;  %v5477_v60 = vld [vmem:[#allocation3_spill] sm:$0xff] }
  0xa0   : > { %4064 = vmatprep.mubr.msk.f32.mxu0 %vm584_vm0, %v4572_v11 }
  0xa2   : > { %3836 = vmatmul.mubr.msk.f32.gmra.mrb[14].mxu1 %vm584_vm0, %v4701_v34 }
  0xa3   : > { %4065 = vmatmul.mubr.msk.f32.vlgmr.msra.gmra.mrb[0].mxu0 %vm584_vm0, %v4579_v16  ;;  %3838 = vmatprep.mubr.msk.f32.mxu1 %vm584_vm0, %v4709_v42 }
  0xa4   : > { %4223 = vmatpush3.bf16.msra.mxu0 %v5034_v13  ;;  %4067 = vmatprep.mubr.msk.f32.mxu0 %vm584_vm0, %v4583_v18  ;;  %v5482_v13 = vld [vmem:[#allocation8_spill] sm:$0xff] }
  0xa5   : > { %4225 = vmatprep.subr.bf16.mxu0 %v3417_v27 }
  0xa6   : > { %3839 = vmatmul.mubr.msk.f32.gmra.mrb[16].mxu1 %vm584_vm0, %v4740_v2 }
  0xa7   : > { %4068 = vmatmul.mubr.msk.f32.gmra.mrb[2].mxu0 %vm584_vm0, %v4598_v23  ;;  %3841 = vmatprep.mubr.msk.f32.mxu1 %vm584_vm0, %v4758_v36 }
  0xa8   : > { %4070 = vmatprep.mubr.msk.f32.mxu0 %vm584_vm0, %v4602_v25  ;;  %4227 = vmatpush3.bf16.msra.mxu0 %v3417_v27 }
  0xaa   : > { %3842 = vmatmul.mubr.msk.f32.gmra.mrb[18].mxu1 %vm584_vm0, %v5477_v60 }
  0xab   : > { %4071 = vmatmul.mubr.msk.f32.gmra.mrb[4].mxu0 %vm584_vm0, %v4613_v30  ;;  %3844 = vmatprep.mubr.msk.f32.mxu1 %vm584_vm0, %v5478_v33 }
  0xac   : > { %4073 = vmatprep.mubr.msk.f32.mxu0 %vm584_vm0, %v4975_v57 }
  0xae   : > { %3845 = vmatmul.mubr.msk.f32.gmra.mrb[20].mxu1 %vm584_vm0, %v5479_v40 }
  0xaf   : > { %4074 = vmatmul.mubr.msk.f32.gmra.mrb[6].mxu0 %vm584_vm0, %v4676_v4  ;;  %3847 = vmatprep.mubr.msk.f32.mxu1 %vm584_vm0, %v5480_v51 }
  0xb0   : > { %4076 = vmatprep.mubr.msk.f32.mxu0 %vm584_vm0, %v4706_v41 }
  0xb2   : > { %3848 = vmatmul.mubr.msk.f32.gmra.mrb[22].mxu1 %vm584_vm0, %v5481_v31 }
  0xb3   : > { %4077 = vmatmul.mubr.msk.f32.gmra.mrb[8].mxu0 %vm584_vm0, %v4715_v47  ;;  %3850 = vmatprep.mubr.msk.f32.mxu1 %vm584_vm0, %v5482_v13 }
  0xb4   : > { %4079 = vmatprep.mubr.msk.f32.mxu0 %vm584_vm0, %v4755_v35 }
  0xb6   : > { %3851 = vmatmul.mubr.msk.f32.gmra.mrb[24].mxu1 %vm584_vm0, %v5483_v58 }
  0xb7   : > { %4080 = vmatmul.mubr.msk.f32.gmra.mrb[10].mxu0 %vm584_vm0, %v4767_v48  ;;  %3853 = vmatprep.mubr.msk.f32.mxu1 %vm584_vm0, %v5484_v6 }
  0xb8   : > { %4082 = vmatprep.mubr.msk.f32.mxu0 %vm584_vm0, %v4781_v52 }
  0xba   : > { %3854 = vmatmul.mubr.msk.f32.gmra.mrb[26].mxu1 %vm584_vm0, %v5485_v54 }
  0xbb   : > { %4083 = vmatmul.mubr.msk.f32.gmra.mrb[12].mxu0 %vm584_vm0, %v4936_v38  ;;  %3864 = vmatprep.mubr.msk.f32.mxu1 %vm584_vm0, %v4622_v37 }
  0xbc   : > { %4085 = vmatprep.mubr.msk.f32.mxu0 %vm584_vm0, %v4574_v12 }
  0xbe   : > { %3865 = vmatmul.mubr.msk.f32.vlgmr.msra.gmra.mrb[0].mxu1 %vm584_vm0, %v4634_v44 }
  0xbf   : > { %4086 = vmatmul.mubr.msk.f32.gmra.mrb[14].mxu0 %vm584_vm0, %v4581_v17  ;;  %4230 = vmatpush3.bf16.msra.mxu1 %v4522_v1  ;;  %v423_v1 = vld [vmem:[%s4552_s17 + $0x3c] sm:$0x1] }
  0xc0   : > { %3867 = vmatprep.mubr.msk.f32.mxu1 %vm584_vm0, %v4671_v63  ;;  %4088 = vmatprep.mubr.msk.f32.mxu0 %vm584_vm0, %v4596_v22 }
  0xc1   : > { %4229 = vmatprep.subr.bf16.mxu1 %v5486_v21 }
  0xc2   : > { %3868 = vmatmul.mubr.msk.f32.gmra.mrb[2].mxu1 %vm584_vm0, %v4683_v19 }
  0xc3   : > { %4089 = vmatmul.mubr.msk.f32.gmra.mrb[16].mxu0 %vm584_vm0, %v4600_v24  ;;  %3870 = vmatprep.mubr.msk.f32.mxu1 %vm584_vm0, %v4711_v45 }
  0xc4   : > { %4091 = vmatprep.mubr.msk.f32.mxu0 %vm584_vm0, %v4611_v29  ;;  %4231 = vmatpush3.bf16.msra.mxu1 %v5486_v21 }
  0xc6   : > { %3871 = vmatmul.mubr.msk.f32.gmra.mrb[4].mxu1 %vm584_vm0, %v4729_v62 }
  0xc7   : > { %4092 = vmatmul.mubr.msk.f32.gmra.mrb[18].mxu0 %vm584_vm0, %v4645_v53  ;;  %3873 = vmatprep.mubr.msk.f32.mxu1 %vm584_vm0, %v4748_v28 }
  0xc8   : > { %4094 = vmatprep.mubr.msk.f32.mxu0 %vm584_vm0, %v5134_v8 }
  0xca   : > { %3874 = vmatmul.mubr.msk.f32.gmra.mrb[6].mxu1 %vm584_vm0, %v4570_v10  ;;  %v439_v10 = vunpack.c.l.bf16 %v423_v1 }
  0xcb   : > { %4095 = vmatmul.mubr.msk.f32.gmra.mrb[20].mxu0 %vm584_vm0, %v4701_v34  ;;  %3876 = vmatprep.mubr.msk.f32.mxu1 %vm584_vm0, %v4574_v12 }
  0xcc   : > { %4097 = vmatprep.mubr.msk.f32.mxu0 %vm584_vm0, %v4709_v42  ;;  %v2607_v12 = vrot.slane %v439_v10, 1 }
  0xce   : > { %3877 = vmatmul.mubr.msk.f32.gmra.mrb[8].mxu1 %vm584_vm0, %v4581_v17 }
  0xcf   : > { %4098 = vmatmul.mubr.msk.f32.gmra.mrb[22].mxu0 %vm584_vm0, %v4740_v2  ;;  %3879 = vmatprep.mubr.msk.f32.mxu1 %vm584_vm0, %v4596_v22 }
  0xd0   : > { %4100 = vmatprep.mubr.msk.f32.mxu0 %vm584_vm0, %v4758_v36 }
  0xd2   : > { %3880 = vmatmul.mubr.msk.f32.gmra.mrb[10].mxu1 %vm584_vm0, %v4600_v24 }
  0xd3   : > { %4101 = vmatmul.mubr.msk.f32.gmra.mrb[24].mxu0 %vm584_vm0, %v5477_v60  ;;  %3882 = vmatprep.mubr.msk.f32.mxu1 %vm584_vm0, %v4611_v29 }
  0xd4   : > { %4103 = vmatprep.mubr.msk.f32.mxu0 %vm584_vm0, %v5478_v33 }
  0xd6   : > { %3883 = vmatmul.mubr.msk.f32.gmra.mrb[12].mxu1 %vm584_vm0, %v4645_v53 }
  0xd7   : > { %4104 = vmatmul.mubr.msk.f32.gmra.mrb[26].mxu0 %vm584_vm0, %v4943_v20  ;;  %3885 = vmatprep.mubr.msk.f32.mxu1 %vm584_vm0, %v4625_v39 }
  0xd8   : > { %4114 = vmatprep.mubr.msk.f32.mxu0 %vm584_vm0, %v4676_v4 }
  0xda   : > { %3886 = vmatmul.mubr.msk.f32.gmra.mrb[14].mxu1 %vm584_vm0, %v4651_v56 }
  0xdb   : > { %4115 = vmatmul.mubr.msk.f32.vlgmr.msra.gmra.mrb[0].mxu0 %vm584_vm0, %v4706_v41  ;;  %3888 = vmatprep.mubr.msk.f32.mxu1 %vm584_vm0, %v4679_v7 }
  0xdc   : > { %4117 = vmatprep.mubr.msk.f32.mxu0 %vm584_vm0, %v4715_v47 }
  0xde   : > { %3889 = vmatmul.mubr.msk.f32.gmra.mrb[16].mxu1 %vm584_vm0, %v4693_v32 }
  0xdf   : > { %4118 = vmatmul.mubr.msk.f32.gmra.mrb[2].mxu0 %vm584_vm0, %v4755_v35  ;;  %3891 = vmatprep.mubr.msk.f32.mxu1 %vm584_vm0, %v4718_v50 }
  0xe0   : > { %4120 = vmatprep.mubr.msk.f32.mxu0 %vm584_vm0, %v4767_v48 }
  0xe2   : > { %3892 = vmatmul.mubr.msk.f32.gmra.mrb[18].mxu1 %vm584_vm0, %v4745_v26 }
  0xe3   : > { %4121 = vmatmul.mubr.msk.f32.gmra.mrb[4].mxu0 %vm584_vm0, %v4781_v52  ;;  %3894 = vmatprep.mubr.msk.f32.mxu1 %vm584_vm0, %v4898_v14 }
  0xe4   : > { %4123 = vmatprep.mubr.msk.f32.mxu0 %vm584_vm0, %v4936_v38 }
  0xe6   : > { %3895 = vmatmul.mubr.msk.f32.gmra.mrb[20].mxu1 %vm584_vm0, %v4572_v11 }
  0xe7   : > { %4124 = vmatmul.mubr.msk.f32.gmra.mrb[6].mxu0 %vm584_vm0, %v4954_v61  ;;  %3897 = vmatprep.mubr.msk.f32.mxu1 %vm584_vm0, %v4579_v16 }
  0xe8   : > { %4126 = vmatprep.mubr.msk.f32.mxu0 %vm584_vm0, %v4958_v43 }
  0xea   : > { %3898 = vmatmul.mubr.msk.f32.gmra.mrb[22].mxu1 %vm584_vm0, %v4583_v18 }
  0xeb   : > { %4127 = vmatmul.mubr.msk.f32.gmra.mrb[8].mxu0 %vm584_vm0, %v4973_v55  ;;  %3900 = vmatprep.mubr.msk.f32.mxu1 %vm584_vm0, %v4598_v23 }
  0xec   : > { %4129 = vmatprep.mubr.msk.f32.mxu0 %vm584_vm0, %v4978_v15 }
  0xee   : > { %3901 = vmatmul.mubr.msk.f32.gmra.mrb[24].mxu1 %vm584_vm0, %v4602_v25 }
  0xef   : > { %4130 = vmatmul.mubr.msk.f32.gmra.mrb[10].mxu0 %vm584_vm0, %v4990_v5  ;;  %3903 = vmatprep.mubr.msk.f32.mxu1 %vm584_vm0, %v4613_v30 }
  0xf0   : > { %4132 = vmatprep.mubr.msk.f32.mxu0 %vm584_vm0, %v4994_v3 }
  0xf2   : > { %3904 = vmatmul.mubr.msk.f32.gmra.mrb[26].mxu1 %vm584_vm0, %v4975_v57 }
  0xf3   : > { %4133 = vmatmul.mubr.msk.f32.gmra.mrb[12].mxu0 %vm584_vm0, %v5005_v46  ;;  %3935 = vmatprep.mubr.msk.f32.mxu1 %vm584_vm0, %v4572_v11  ;;  %v2606_v11 = vrot.slane %v5134_v8, 1 }
  0xf4   : > { %4135 = vmatprep.mubr.msk.f32.mxu0 %vm584_vm0, %v4701_v34 }
  0xf6   : > { %3936 = vmatmul.mubr.msk.f32.vlgmr.msra.gmra.mrb[14].mxu1 %vm584_vm0, %v4579_v16  ;;  %v2608_v16 = vsel %vm527_vm1, %v2606_v11, %v2607_v12 }
  0xf7   : > { %4136 = vmatmul.mubr.msk.f32.gmra.mrb[14].mxu0 %vm584_vm0, %v4709_v42  ;;  %3938 = vmatprep.mubr.msk.f32.mxu1 %vm584_vm0, %v4583_v18 }
  0xf8   : > { %4138 = vmatprep.mubr.msk.f32.mxu0 %vm584_vm0, %v4740_v2 }
  0xfa   : > { %3939 = vmatmul.mubr.msk.f32.gmra.mrb[16].mxu1 %vm584_vm0, %v4598_v23 }
  0xfb   : > { %4139 = vmatmul.mubr.msk.f32.gmra.mrb[16].mxu0 %vm584_vm0, %v4758_v36  ;;  %3941 = vmatprep.mubr.msk.f32.mxu1 %vm584_vm0, %v4602_v25 }
  0xfc   : > { %4141 = vmatprep.mubr.msk.f32.mxu0 %vm584_vm0, %v5477_v60 }
  0xfe   : > { %3942 = vmatmul.mubr.msk.f32.gmra.mrb[18].mxu1 %vm584_vm0, %v4613_v30 }
  0xff   : > { %4142 = vmatmul.mubr.msk.f32.gmra.mrb[18].mxu0 %vm584_vm0, %v5478_v33  ;;  %3944 = vmatprep.mubr.msk.f32.mxu1 %vm584_vm0, %v4975_v57 }
 0x100   : > { %4144 = vmatprep.mubr.msk.f32.mxu0 %vm584_vm0, %v4943_v20 }
 0x102   : > { %3945 = vmatmul.mubr.msk.f32.gmra.mrb[20].mxu1 %vm584_vm0, %v4676_v4 }
 0x103   : > { %4145 = vmatmul.mubr.msk.f32.gmra.mrb[20].mxu0 %vm584_vm0, %v5480_v51  ;;  %3947 = vmatprep.mubr.msk.f32.mxu1 %vm584_vm0, %v4706_v41 }
 0x104   : > { %4147 = vmatprep.mubr.msk.f32.mxu0 %vm584_vm0, %v5481_v31 }
 0x106   : > { %3948 = vmatmul.mubr.msk.f32.gmra.mrb[22].mxu1 %vm584_vm0, %v4715_v47 }
 0x107   : > { %4148 = vmatmul.mubr.msk.f32.gmra.mrb[22].mxu0 %vm584_vm0, %v5482_v13  ;;  %3950 = vmatprep.mubr.msk.f32.mxu1 %vm584_vm0, %v4755_v35 }
 0x108   : > { %4150 = vmatprep.mubr.msk.f32.mxu0 %vm584_vm0, %v5483_v58 }
 0x10a   : > { %3951 = vmatmul.mubr.msk.f32.gmra.mrb[24].mxu1 %vm584_vm0, %v4767_v48 }
 0x10b   : > { %4151 = vmatmul.mubr.msk.f32.gmra.mrb[24].mxu0 %vm584_vm0, %v5484_v6  ;;  %3953 = vmatprep.mubr.msk.f32.mxu1 %vm584_vm0, %v4781_v52 }
 0x10c   : > { %4153 = vmatprep.mubr.msk.f32.mxu0 %vm584_vm0, %v5485_v54 }
 0x10e   : > { %3954 = vmatmul.mubr.msk.f32.gmra.mrb[26].mxu1 %vm584_vm0, %v4936_v38 }
 0x10f   : > { %4154 = vmatmul.mubr.msk.f32.gmra.mrb[26].mxu0 %vm584_vm0, %v2608_v16 }
 0x191   : > { %v3866_v17 = vpop.f32.mrb[0].mxu1 }
 0x192   : > { %v1482_v18 = vpop.f32.mrb[1].mxu1 }
 0x195   : > { %v3869_v22 = vpop.f32.mrb[2].mxu1 }
 0x196   : > { %v1492_v23 = vpop.f32.mrb[3].mxu1 }
 0x199   : > { %v3872_v24 = vpop.f32.mrb[4].mxu1 }
 0x19a   : > { %v1502_v25 = vpop.f32.mrb[5].mxu1 }
 0x19d   : > { %v3875_v29 = vpop.f32.mrb[6].mxu1 }
 0x19e   : > { %v1512_v30 = vpop.f32.mrb[7].mxu1 }
 0x1a1   : > { %v3878_v37 = vpop.f32.mrb[8].mxu1 }
 0x1a2   : > { %v1522_v39 = vpop.f32.mrb[9].mxu1 }
 0x1a5   : > { %v3881_v44 = vpop.f32.mrb[10].mxu1 }
 0x1a6   : > { %v1532_v53 = vpop.f32.mrb[11].mxu1 }
 0x1a9   : > { %v3884_v56 = vpop.f32.mrb[12].mxu1 }
 0x1aa   : > { %v1542_v63 = vpop.f32.mrb[13].mxu1 }
 0x1ae   : > { %v4116_v4 = vpop.f32.mrb[0].mxu0 }
 0x1af   : > { %v4232_v7 = vadd.f32 %v4116_v4, %v3866_v17  ;;  %v2677_v19 = vpop.f32.mrb[1].mxu0 }
 0x1b0   : > { %v4233_v32 = vadd.f32 %v2677_v19, %v1482_v18 }
 0x1b1   : > { %v2852_v15 = vsel %vm2844_vm2, %v4232_v7, -inf }
 0x1b2   : > { %v4119_v34 = vpop.f32.mrb[2].mxu0  ;;  %v2845_v48 = vsel %vm2844_vm2, %v4233_v32, -inf }
 0x1b3   : > { %v4234_v41 = vadd.f32 %v4119_v34, %v3869_v22  ;;  %v2687_v42 = vpop.f32.mrb[3].mxu0 }
 0x1b4   : > { %v4235_v45 = vadd.f32 %v2687_v42, %v1492_v23 }
 0x1b5   : > { %v2866_v60 = vsel %vm2844_vm2, %v4234_v41, -inf }
 0x1b6   : > { %v4122_v47 = vpop.f32.mrb[4].mxu0  ;;  %v2859_v55 = vsel %vm2844_vm2, %v4235_v45, -inf }
 0x1b7   : > { %v4236_v50 = vadd.f32 %v4122_v47, %v3872_v24  ;;  %v2697_v62 = vpop.f32.mrb[5].mxu0 }
 0x1b8   : > { %v4237_v2 = vadd.f32 %v2697_v62, %v1502_v25 }
 0x1b9   : > { %v2880_v1 = vsel %vm2844_vm2, %v4236_v50, -inf }
 0x1ba   : > { %v4125_v26 = vpop.f32.mrb[6].mxu0  ;;  %v2873_v8 = vsel %vm2844_vm2, %v4237_v2, -inf }
 0x1bb   : > { %v4238_v28 = vadd.f32 %v4125_v26, %v3875_v29  ;;  %v2707_v35 = vpop.f32.mrb[7].mxu0 }
 0x1bc   : > { %v4239_v36 = vadd.f32 %v2707_v35, %v1512_v30 }
 0x1bd   : > { %v2846_v52 = vsel %vm2844_vm2, %v4238_v28, -inf }
 0x1be   : > { %v2847_v38 = vmax.f32 %v2845_v48, %v2846_v52  ;;  %v4128_v14 = vpop.f32.mrb[8].mxu0  ;;  %v2887_v54 = vsel %vm2844_vm2, %v4239_v36, -inf }
 0x1bf   : > { %v4240_v20 = vadd.f32 %v4128_v14, %v3878_v37  ;;  %v2717_v61 = vpop.f32.mrb[9].mxu0 }
 0x1c0   : > { %v4241_v43 = vadd.f32 %v2717_v61, %v1522_v39  ;;  %v3308_v61 = vld [vmem:[%s5442_s5] ss:$0 sm:$0xff] }
 0x1c1   : > { %v2860_v57 = vsel %vm2844_vm2, %v4240_v20, -inf }
 0x1c2   : > { %v2861_v5 = vmax.f32 %v2859_v55, %v2860_v57  ;;  %v2853_v3 = vsel %vm2844_vm2, %v4241_v43, -inf  ;;  %v4131_v46 = vpop.f32.mrb[10].mxu0 }
 0x1c3   : > { %v2854_v59 = vmax.f32 %v2852_v15, %v2853_v3  ;;  %v4242_v49 = vadd.f32 %v4131_v46, %v3881_v44  ;;  %v2727_v9 = vpop.f32.mrb[11].mxu0 }
 0x1c4   : > { %v4243_v0 = vadd.f32 %v2727_v9, %v1532_v53 }
 0x1c5   : > { %v2874_v27 = vsel %vm2844_vm2, %v4242_v49, -inf }
 0x1c6   : > { %v2875_v33 = vmax.f32 %v2873_v8, %v2874_v27  ;;  %v2867_v40 = vsel %vm2844_vm2, %v4243_v0, -inf  ;;  %v4134_v51 = vpop.f32.mrb[12].mxu0 }
 0x1c7   : > { %v2868_v31 = vmax.f32 %v2866_v60, %v2867_v40  ;;  %v4244_v13 = vadd.f32 %v4134_v51, %v3884_v56  ;;  %v2737_v58 = vpop.f32.mrb[13].mxu0 }
 0x1c8   : > { %v4245_v6 = vadd.f32 %v2737_v58, %v1542_v63 }
 0x1c9   : > { %v2888_v21 = vsel %vm2844_vm2, %v4244_v13, -inf  ;;  %v3937_v12 = vpop.f32.mrb[14].mxu1 }
 0x1ca   : > { %v2889_v10 = vmax.f32 %v2887_v54, %v2888_v21  ;;  %v2881_v11 = vsel %vm2844_vm2, %v4245_v6, -inf  ;;  %v4137_v16 = vpop.f32.mrb[14].mxu0  ;;  %v1791_v22 = vpop.f32.mrb[15].mxu1 }
 0x1cb   : > { %v2882_v17 = vmax.f32 %v2880_v1, %v2881_v11  ;;  %v4246_v18 = vadd.f32 %v4137_v16, %v3937_v12  ;;  %v2747_v23 = vpop.f32.mrb[15].mxu0 }
 0x1cc   : > { %v4247_v24 = vadd.f32 %v2747_v23, %v1791_v22 }
 0x1cd   : > { %v2855_v25 = vsel %vm2844_vm2, %v4246_v18, -inf  ;;  %v3940_v37 = vpop.f32.mrb[16].mxu1 }
 0x1ce   : > { %v2856_v29 = vmax.f32 %v2854_v59, %v2855_v25  ;;  %v2848_v30 = vsel %vm2844_vm2, %v4247_v24, -inf  ;;  %v4140_v39 = vpop.f32.mrb[16].mxu0  ;;  %v1801_v56 = vpop.f32.mrb[17].mxu1 }
 0x1cf   : > { %v2849_v44 = vmax.f32 %v2847_v38, %v2848_v30  ;;  %v4248_v53 = vadd.f32 %v4140_v39, %v3940_v37  ;;  %v2757_v63 = vpop.f32.mrb[17].mxu0 }
 0x1d0   : > { %v4249_v4 = vadd.f32 %v2757_v63, %v1801_v56 }
 0x1d1   : > { %v2869_v7 = vsel %vm2844_vm2, %v4248_v53, -inf  ;;  %v3943_v34 = vpop.f32.mrb[18].mxu1 }
 0x1d2   : > { %v5394_v19 = vmax.f32 %v2868_v31, %v2869_v7  ;;  %v2862_v32 = vsel %vm2844_vm2, %v4249_v4, -inf  ;;  %v4143_v41 = vpop.f32.mrb[18].mxu0  ;;  %v1811_v47 = vpop.f32.mrb[19].mxu1 }
 0x1d3   : > { %v2863_v42 = vmax.f32 %v2861_v5, %v2862_v32  ;;  %v4250_v45 = vadd.f32 %v4143_v41, %v3943_v34  ;;  %v2767_v50 = vpop.f32.mrb[19].mxu0 }
 0x1d4   : > { %v4251_v62 = vadd.f32 %v2767_v50, %v1811_v47 }
 0x1d5   : > { %v2883_v2 = vsel %vm2844_vm2, %v4250_v45, -inf  ;;  %v3946_v35 = vpop.f32.mrb[20].mxu1 }
 0x1d6   : > { %v5398_v26 = vmax.f32 %v2882_v17, %v2883_v2  ;;  %v2876_v28 = vsel %vm2844_vm2, %v4251_v62, -inf  ;;  %v4146_v36 = vpop.f32.mrb[20].mxu0  ;;  %v1821_v38 = vpop.f32.mrb[21].mxu1 }
 0x1d7   : > { %v2877_v48 = vmax.f32 %v2875_v33, %v2876_v28  ;;  %v4252_v52 = vadd.f32 %v4146_v36, %v3946_v35  ;;  %v2777_v14 = vpop.f32.mrb[21].mxu0 }
 0x1d8   : > { %v4253_v20 = vadd.f32 %v2777_v14, %v1821_v38 }
 0x1d9   : > { %v2850_v43 = vsel %vm2844_vm2, %v4252_v52, -inf  ;;  %v3949_v15 = vpop.f32.mrb[22].mxu1 }
 0x1da   : > { %v2851_v55 = vmax.f32 %v2849_v44, %v2850_v43  ;;  %v2890_v57 = vsel %vm2844_vm2, %v4253_v20, -inf  ;;  %v4149_v5 = vpop.f32.mrb[22].mxu0  ;;  %v1831_v59 = vpop.f32.mrb[23].mxu1 }
 0x1db   : > { %v2891_v3 = vmax.f32 %v2889_v10, %v2890_v57  ;;  %v4254_v46 = vadd.f32 %v4149_v5, %v3949_v15  ;;  %v2787_v49 = vpop.f32.mrb[23].mxu0 }
 0x1dc   : > { %v2900_v9 = vadd.f32 %v3308_v61, %v2851_v55  ;;  %v4255_v0 = vadd.f32 %v2787_v49, %v1831_v59 }
 0x1dd   : > { %v2864_v8 = vsel %vm2844_vm2, %v4254_v46, -inf  ;;  %v3952_v40 = vpop.f32.mrb[24].mxu1 }
 0x1de   : > { %v2907_v27 = vmax.f32 %v2900_v9, 0.0  ;;  %v2865_v60 = vmax.f32 %v2863_v42, %v2864_v8  ;;  %v2857_v33 = vsel %vm2844_vm2, %v4255_v0, -inf  ;;  %v4152_v51 = vpop.f32.mrb[24].mxu0  ;;  %v1841_v58 = vpop.f32.mrb[25].mxu1 }
 0x1df   : > { %v2858_v31 = vmax.f32 %v2856_v29, %v2857_v33  ;;  %v4256_v13 = vadd.f32 %v4152_v51, %v3952_v40  ;;  %v2797_v6 = vpop.f32.mrb[25].mxu0 }
 0x1e0   : > { %v3322_v54 = vpack.c.bf16 %v2907_v27, %v2907_v27  ;;  %v2902_v21 = vadd.f32 %v3308_v61, %v2865_v60  ;;  %v4257_v1 = vadd.f32 %v2797_v6, %v1841_v58 }
 0x1e1   : > { %v2901_v10 = vadd.f32 %v3308_v61, %v2858_v31  ;;  %v2878_v11 = vsel %vm2844_vm2, %v4256_v13, -inf  ;;  %v3955_v18 = vpop.f32.mrb[26].mxu1 }
 0x1e2   : > { %2944 = vst.msk [vmem:[%s5412_s9] sm:$0xf] %vm2943_vm3, %v3322_v54  ;;  %v2909_v12 = vmax.f32 %v2902_v21, 0.0  ;;  %v2879_v16 = vmax.f32 %v2877_v48, %v2878_v11  ;;  %v2871_v17 = vsel %vm2844_vm2, %v4257_v1, -inf  ;;  %v4155_v22 = vpop.f32.mrb[26].mxu0  ;;  %v1851_v29 = vpop.f32.mrb[27].mxu1 }
 0x1e3   : > { %v2908_v23 = vmax.f32 %v2901_v10, 0.0  ;;  %v2872_v24 = vmax.f32 %v5394_v19, %v2871_v17  ;;  %v4258_v25 = vadd.f32 %v4155_v22, %v3955_v18  ;;  %v2807_v30 = vpop.f32.mrb[27].mxu0 }
 0x1e4   : > { %v3324_v37 = vpack.c.bf16 %v2909_v12, %v2909_v12  ;;  %v2904_v39 = vadd.f32 %v3308_v61, %v2879_v16  ;;  %v4259_v44 = vadd.f32 %v2807_v30, %v1851_v29 }
 0x1e5   : > { %v3323_v53 = vpack.c.bf16 %v2908_v23, %v2908_v23  ;;  %v2903_v56 = vadd.f32 %v3308_v61, %v2872_v24  ;;  %v2892_v63 = vsel %vm2844_vm2, %v4258_v25, -inf }
 0x1e6   : > { %2946 = vst.msk [vmem:[%s5412_s9 + $0x8] sm:$0xf] %vm2943_vm3, %v3324_v37  ;;  %v2911_v4 = vmax.f32 %v2904_v39, 0.0  ;;  %v2893_v7 = vmax.f32 %v2891_v3, %v2892_v63  ;;  %v2885_v19 = vsel %vm2844_vm2, %v4259_v44, -inf }
 0x1e7   : > { %2945 = vst.msk [vmem:[%s5412_s9 + $0x4] sm:$0xf] %vm2943_vm3, %v3323_v53  ;;  %v2910_v32 = vmax.f32 %v2903_v56, 0.0  ;;  %v2886_v34 = vmax.f32 %v5398_v26, %v2885_v19 }
 0x1e8   : > { %v3326_v41 = vpack.c.bf16 %v2911_v4, %v2911_v4  ;;  %v2906_v42 = vadd.f32 %v3308_v61, %v2893_v7 }
 0x1e9   : > { %v3325_v45 = vpack.c.bf16 %v2910_v32, %v2910_v32  ;;  %v2905_v47 = vadd.f32 %v3308_v61, %v2886_v34 }
 0x1ea   : > { %2948 = vst.msk [vmem:[%s5412_s9 + $0x10] sm:$0xf] %vm2943_vm3, %v3326_v41  ;;  %v2913_v50 = vmax.f32 %v2906_v42, 0.0 }
 0x1eb   : > { %2947 = vst.msk [vmem:[%s5412_s9 + $0xc] sm:$0xf] %vm2943_vm3, %v3325_v45  ;;  %v2912_v62 = vmax.f32 %v2905_v47, 0.0 }
 0x1ec   : > { %v3328_v2 = vpack.c.bf16 %v2913_v50, %v2913_v50 }
 0x1ed   : > { %v3327_v28 = vpack.c.bf16 %v2912_v62, %v2912_v62 }
 0x1ee   : > { %2950 = vst.msk [vmem:[%s5412_s9 + $0x18] sm:$0xf] %vm2943_vm3, %v3328_v2 }
 0x1ef   : > { %2949 = vst.msk [vmem:[%s5412_s9 + $0x14] sm:$0xf] %vm2943_vm3, %v3327_v28 }
 0x1f0 PF: > { %s16_s21 = sadd.s32 1, %s4471_s21  }
 0x1f1   : > { %p13_p4 = scmp.ge.s32.totalorder %s16_s21, 4  }
 0x1f3   :  { %15 = sbr.rel (!%p13_p4) target bundleno = 1 (0x1), region = 83 }

// kernel: defended_target_model_forward.3
= control target key start
LH: loop header
LB: loop body
LE: loop exit
PB: predicated region body
PF: predicated region fallthrough
CT: control target
= control target key end

     0   :  { %s5545_s21 = smov 0   ;;  %s10726_s0 = inlined_call_operand.vmem [shape: bf16[2,15,17,1], index: 0, kind: input, shape index: {}]   ;;  %s10727_s1 = inlined_call_operand.vmem [shape: bf16[2,15,17,1], index: 1, kind: input, shape index: {}]   ;;  %s10728_s2 = inlined_call_operand.vmem [shape: bf16[2,15,17,1], index: 2, kind: input, shape index: {}]   ;;  %s10729_s3 = inlined_call_operand.vmem [shape: bf16[2,15,17,1], index: 3, kind: input, shape index: {}]   ;;  %s10730_s4 = inlined_call_operand.vmem [shape: bf16[9,32], index: 4, kind: input, shape index: {}]   ;;  %s10731_s5 = inlined_call_operand.vmem [shape: f32[1,32], index: 5, kind: input, shape index: {}]   ;;  %s10732_s6 = inlined_call_operand.vmem [shape: bf16[2,224,32], index: 6, kind: output, shape index: {}]  }
   0x1 LB: > { %s4661_s22 = sadd.s32 4294967295, %s5507_s21   ;;  %p4665_p0 = scmp.ge.s32.totalorder %s5507_s21, 1  ;;  %s5507_s21 = sphi %s5545_s21, %s16_s21  }
   0x2   : > { %p242_p1 = scmp.lt.s32.totalorder %s5507_s21, 3 }
   0x4   : > { %p243_p2 = pnand %p4665_p0, %p242_p1 }
   0x6   : > { %246 = sbr.rel (%p243_p2) target bundleno = 828 (0x33c), region = 44 }
   0xd   : > { %p287_p3 = scmp.lt.s32.totalorder %s4661_s22, 1  ;;  %v5509_v0 = vmov 0   ;;  %vm1479_vm0 = vcmask 1046528   ;;  %vm4170_vm1 = vcmask 261120   ;;  %vm4541_vm2 = vcmask 257024  }
   0xe   : > { %4908 = vset.pattern.permute.xlu1 %v5509_v0  ;;  %4897 = vset.pattern.permute.xlu0 %v5509_v0 }
   0xf   : > { %s12591_s22 = smov (!%p287_p3, %s4661_s22), 1 }
  0x10   : > { %s5556_s23 = smul.u32 180, %s12591_s22 }
  0x11   : > { %s4887_s18 = smul.u32 112, %s12591_s22 }
  0x12   : > { %s5562_s26 = scalar_lea.vmem %s10726_s0, %s5556_s23  ;;  %s5612_s29 = scalar_lea.vmem %s10727_s1, %s5556_s23 }
  0x13   : > { %v4858_v1 = vld [vmem:[%s5562_s26 + $0x18] sm:$0xff]   ;;  %v4731_v2 = vld [vmem:[%s5562_s26] sm:$0xff]   ;;  %v315_v9 = vld [vmem:[%s5562_s26 + $0xc] sm:$0xff]   ;;  %s5718_s8 = scalar_lea.vmem %s10728_s2, %s5556_s23  ;;  %s5816_s11 = scalar_lea.vmem %s10729_s3, %s5556_s23 }
  0x14   : > { %v321_v3 = vld [vmem:[%s5562_s26 + $0x24] sm:$0xff]   ;;  %v4736_v5 = vunpack.c.l.bf16 %v4858_v1  ;;  %v4737_v6 = vunpack.c.h.bf16 %v4858_v1  ;;  %v4732_v7 = vunpack.c.l.bf16 %v4731_v2  ;;  %v4733_v8 = vunpack.c.h.bf16 %v4731_v2  ;;  %v327_v18 = vld [vmem:[%s5562_s26 + $0x3c] sm:$0xff]   ;;  %v4859_v19 = vld [vmem:[%s5562_s26 + $0x30] sm:$0xff]   ;;  %s9621_s22 = scalar_lea.vmem %s10732_s6, %s4887_s18 }
  0x15   : > { %v366_v10 = vunpack.c.l.bf16 %v321_v3  ;;  %v367_v11 = vunpack.c.h.bf16 %v321_v3  ;;  %v360_v12 = vunpack.c.l.bf16 %v315_v9  ;;  %v361_v13 = vunpack.c.h.bf16 %v315_v9  ;;  %v333_v24 = vld [vmem:[%s5562_s26 + $0x54] sm:$0xff]   ;;  %v4860_v25 = vld [vmem:[%s5562_s26 + $0x48] sm:$0xff]   ;;  %v4861_v43 = vld [vmem:[%s5562_s26 + $0x60] sm:$0xff]  }
  0x16   : > { %v5568_v14 = vrot.slane %v4737_v6, 1  ;;  %v4909_v15 = vpack.i.bf16 %v4737_v6, %v4736_v5  ;;  %v5570_v16 = vrot.slane %v4736_v5, 1  ;;  %v5572_v17 = vrot.slane %v4733_v8, 1  ;;  %v339_v42 = vld [vmem:[%s5562_s26 + $0x6c] sm:$0xff]   ;;  %v345_v48 = vld [vmem:[%s5562_s26 + $0x84] sm:$0xff]   ;;  %v4862_v49 = vld [vmem:[%s5562_s26 + $0x78] sm:$0xff]  }
  0x17   : > { %v4898_v20 = vpack.i.bf16 %v4733_v8, %v4732_v7  ;;  %v5576_v21 = vrot.slane %v4732_v7, 1  ;;  %v5578_v22 = vrot.slane %v367_v11, 1  ;;  %v4914_v23 = vpack.i.bf16 %v367_v11, %v366_v10  ;;  %v351_v2 = vld [vmem:[%s5562_s26 + $0x9c] sm:$0xff]   ;;  %v4863_v3 = vld [vmem:[%s5562_s26 + $0x90] sm:$0xff]  }
  0x18   : > { %4910 = vperm.xlu1 %4908, %v4909_v15   ;;  %v5582_v26 = vrot.slane %v366_v10, 1  ;;  %v5584_v27 = vrot.slane %v361_v13, 1  ;;  %v4903_v28 = vpack.i.bf16 %v361_v13, %v360_v12  ;;  %v5586_v29 = vrot.slane %v360_v12, 1  ;;  %v405_v9 = vld [vmem:[%s5612_s29 + $0xc] sm:$0xff]   ;;  %v4763_v10 = vld [vmem:[%s5612_s29] sm:$0xff]  }
  0x19   : > { %4899 = vperm.xlu0 %4897, %v4898_v20   ;;  %v372_v30 = vunpack.c.l.bf16 %v327_v18  ;;  %v373_v31 = vunpack.c.h.bf16 %v327_v18  ;;  %v4740_v32 = vunpack.c.l.bf16 %v4859_v19  ;;  %v4741_v33 = vunpack.c.h.bf16 %v4859_v19 }
  0x1a   : > { %v378_v34 = vunpack.c.l.bf16 %v333_v24  ;;  %v379_v35 = vunpack.c.h.bf16 %v333_v24  ;;  %v4744_v36 = vunpack.c.l.bf16 %v4860_v25  ;;  %v4745_v37 = vunpack.c.h.bf16 %v4860_v25 }
  0x1b   : > { %v5588_v38 = vrot.slane %v373_v31, 1  ;;  %v4924_v39 = vpack.i.bf16 %v373_v31, %v372_v30  ;;  %v5590_v40 = vrot.slane %v372_v30, 1  ;;  %v5592_v41 = vrot.slane %v4741_v33, 1 }
  0x1c   : > { %4915 = vperm.xlu1 %4908, %v4914_v23   ;;  %v4919_v44 = vpack.i.bf16 %v4741_v33, %v4740_v32  ;;  %v5596_v45 = vrot.slane %v4740_v32, 1  ;;  %v5598_v46 = vrot.slane %v379_v35, 1  ;;  %v4934_v47 = vpack.i.bf16 %v379_v35, %v378_v34  ;;  %v411_v35 = vld [vmem:[%s5612_s29 + $0x24] sm:$0xff]  }
  0x1d   : > { %4904 = vperm.xlu0 %4897, %v4903_v28   ;;  %v5602_v50 = vrot.slane %v378_v34, 1  ;;  %v5604_v51 = vrot.slane %v4745_v37, 1  ;;  %v4929_v52 = vpack.i.bf16 %v4745_v37, %v4744_v36  ;;  %v5606_v53 = vrot.slane %v4744_v36, 1  ;;  %v4865_v36 = vld [vmem:[%s5612_s29 + $0x18] sm:$0xff]  }
  0x1e   : > { %v384_v54 = vunpack.c.l.bf16 %v339_v42  ;;  %v385_v55 = vunpack.c.h.bf16 %v339_v42  ;;  %v4748_v56 = vunpack.c.l.bf16 %v4861_v43  ;;  %v4749_v57 = vunpack.c.h.bf16 %v4861_v43 }
  0x1f   : > { %v390_v58 = vunpack.c.l.bf16 %v345_v48  ;;  %v391_v59 = vunpack.c.h.bf16 %v345_v48  ;;  %v4752_v60 = vunpack.c.l.bf16 %v4862_v49  ;;  %v4753_v61 = vunpack.c.h.bf16 %v4862_v49 }
  0x20   : > { %4925 = vperm.xlu1 %4908, %v4924_v39   ;;  %v5614_v62 = vrot.slane %v385_v55, 1  ;;  %v4944_v63 = vpack.i.bf16 %v385_v55, %v384_v54  ;;  %v5616_v0 = vrot.slane %v384_v54, 1  ;;  %v5618_v1 = vrot.slane %v4749_v57, 1 }
  0x21   : > { %4920 = vperm.xlu0 %4897, %v4919_v44   ;;  %v4939_v5 = vpack.i.bf16 %v4749_v57, %v4748_v56  ;;  %v5622_v6 = vrot.slane %v4748_v56, 1  ;;  %v5624_v7 = vrot.slane %v391_v59, 1  ;;  %v4954_v8 = vpack.i.bf16 %v391_v59, %v390_v58  ;;  %v417_v44 = vld [vmem:[%s5612_s29 + $0x3c] sm:$0xff]  }
  0x22   : > { %v5628_v11 = vrot.slane %v390_v58, 1  ;;  %v5630_v12 = vrot.slane %v4753_v61, 1  ;;  %v4949_v13 = vpack.i.bf16 %v4753_v61, %v4752_v60  ;;  %v5632_v15 = vrot.slane %v4752_v60, 1 }
  0x23   : > { %v396_v18 = vunpack.c.l.bf16 %v351_v2  ;;  %v397_v19 = vunpack.c.h.bf16 %v351_v2  ;;  %v4756_v20 = vunpack.c.l.bf16 %v4863_v3  ;;  %v4757_v23 = vunpack.c.h.bf16 %v4863_v3 }
  0x24   : > { %4935 = vperm.xlu1 %4908, %v4934_v47   ;;  %v450_v24 = vunpack.c.l.bf16 %v405_v9  ;;  %v451_v25 = vunpack.c.h.bf16 %v405_v9  ;;  %v4764_v28 = vunpack.c.l.bf16 %v4763_v10  ;;  %v4765_v30 = vunpack.c.h.bf16 %v4763_v10  ;;  %v4866_v47 = vld [vmem:[%s5612_s29 + $0x30] sm:$0xff]  }
  0x25   : > { %4930 = vperm.xlu0 %4897, %v4929_v52   ;;  %v5634_v31 = vrot.slane %v397_v19, 1  ;;  %v4964_v32 = vpack.i.bf16 %v397_v19, %v396_v18  ;;  %v5636_v33 = vrot.slane %v396_v18, 1  ;;  %v5638_v34 = vrot.slane %v4757_v23, 1  ;;  %v4867_v19 = vld [vmem:[%s5612_s29 + $0x48] sm:$0xff]  }
  0x26   : > { %v4959_v37 = vpack.i.bf16 %v4757_v23, %v4756_v20  ;;  %v5642_v39 = vrot.slane %v4756_v20, 1  ;;  %v5644_v42 = vrot.slane %v451_v25, 1  ;;  %v5646_v43 = vpack.i.bf16 %v451_v25, %v450_v24  ;;  %v429_v25 = vld [vmem:[%s5612_s29 + $0x6c] sm:$0xff]  }
  0x27   : > { %v5650_v48 = vrot.slane %v450_v24, 1  ;;  %v5652_v49 = vrot.slane %v4765_v30, 1  ;;  %v5654_v52 = vpack.i.bf16 %v4765_v30, %v4764_v28  ;;  %v5656_v54 = vrot.slane %v4764_v28, 1  ;;  %v4868_v28 = vld [vmem:[%s5612_s29 + $0x60] sm:$0xff]  }
  0x28   : > { %11062 = vst [vmem:[#allocation2_spill] sm:$0xff] %v5644_v42  ;;  %4945 = vperm.xlu1 %4908, %v4944_v63   ;;  %v456_v55 = vunpack.c.l.bf16 %v411_v35  ;;  %v457_v56 = vunpack.c.h.bf16 %v411_v35  ;;  %v4768_v57 = vunpack.c.l.bf16 %v4865_v36  ;;  %v4769_v58 = vunpack.c.h.bf16 %v4865_v36  ;;  %v423_v63 = vld [vmem:[%s5612_s29 + $0x54] sm:$0xff]  }
  0x29   : > { %11063 = vst [vmem:[#allocation3_spill] sm:$0xff] %v5650_v48  ;;  %11064 = vst [vmem:[#allocation4_spill] sm:$0xff] %v5652_v49  ;;  %4940 = vperm.xlu0 %4897, %v4939_v5   ;;  %v462_v59 = vunpack.c.l.bf16 %v417_v44  ;;  %v463_v60 = vunpack.c.h.bf16 %v417_v44  ;;  %v4772_v61 = vunpack.c.l.bf16 %v4866_v47  ;;  %v4773_v2 = vunpack.c.h.bf16 %v4866_v47 }
  0x2a   : > { %11065 = vst [vmem:[#allocation5_spill] sm:$0xff] %v5656_v54  ;;  %v5658_v3 = vrot.slane %v457_v56, 1  ;;  %v5660_v9 = vpack.i.bf16 %v457_v56, %v456_v55  ;;  %v5662_v10 = vrot.slane %v456_v55, 1  ;;  %v5664_v18 = vrot.slane %v4769_v58, 1 }
  0x2b   : > { %v5668_v20 = vpack.i.bf16 %v4769_v58, %v4768_v57  ;;  %v5670_v23 = vrot.slane %v4768_v57, 1  ;;  %v5672_v5 = vrot.slane %v463_v60, 1  ;;  %v5674_v24 = vpack.i.bf16 %v463_v60, %v462_v59 }
  0x2c   : > { %11066 = vst [vmem:[#allocation6_spill] sm:$0xff] %v5658_v3  ;;  %11067 = vst [vmem:[#allocation7_spill] sm:$0xff] %v5662_v10  ;;  %4955 = vperm.xlu1 %4908, %v4954_v8   ;;  %v5678_v30 = vrot.slane %v462_v59, 1  ;;  %v5680_v35 = vrot.slane %v4773_v2, 1  ;;  %v5682_v36 = vpack.i.bf16 %v4773_v2, %v4772_v61  ;;  %v5684_v44 = vrot.slane %v4772_v61, 1 }
  0x2d   : > { %11068 = vst [vmem:[#allocation8_spill] sm:$0xff] %v5664_v18  ;;  %11069 = vst [vmem:[#allocation9_spill] sm:$0xff] %v5670_v23  ;;  %4950 = vperm.xlu0 %4897, %v4949_v13   ;;  %v468_v47 = vunpack.c.l.bf16 %v423_v63  ;;  %v469_v55 = vunpack.c.h.bf16 %v423_v63  ;;  %v4776_v56 = vunpack.c.l.bf16 %v4867_v19  ;;  %v4777_v57 = vunpack.c.h.bf16 %v4867_v19  ;;  %v435_v13 = vld [vmem:[%s5612_s29 + $0x84] sm:$0xff]  }
  0x2e   : > { %11070 = vst [vmem:[#allocation10_spill] sm:$0xff] %v5672_v5  ;;  %11071 = vst [vmem:[#allocation11_spill] sm:$0xff] %v5678_v30  ;;  %v474_v58 = vunpack.c.l.bf16 %v429_v25  ;;  %v475_v60 = vunpack.c.h.bf16 %v429_v25  ;;  %v4780_v8 = vunpack.c.l.bf16 %v4868_v28  ;;  %v4781_v59 = vunpack.c.h.bf16 %v4868_v28  ;;  %v441_v28 = vld [vmem:[%s5612_s29 + $0x9c] sm:$0xff]  }
  0x2f   : > { %11072 = vst [vmem:[#allocation12_spill] sm:$0xff] %v5680_v35  ;;  %11073 = vst [vmem:[#allocation13_spill] sm:$0xff] %v5684_v44  ;;  %v5686_v4 = vrot.slane %v469_v55, 1  ;;  %v5688_v35 = vpack.i.bf16 %v469_v55, %v468_v47  ;;  %v5690_v2 = vrot.slane %v468_v47, 1  ;;  %v5692_v61 = vrot.slane %v4777_v57, 1  ;;  %v4869_v44 = vld [vmem:[%s5612_s29 + $0x78] sm:$0xff]  }
  0x30   : > { %4965 = vperm.xlu1 %4908, %v4964_v32   ;;  %v5696_v63 = vpack.i.bf16 %v4777_v57, %v4776_v56  ;;  %v5698_v19 = vrot.slane %v4776_v56, 1  ;;  %v5700_v30 = vrot.slane %v475_v60, 1  ;;  %v5702_v25 = vpack.i.bf16 %v475_v60, %v474_v58 }
  0x31   : > { %11074 = vst [vmem:[#allocation14_spill] sm:$0xff] %v5686_v4  ;;  %11075 = vst [vmem:[#allocation15_spill] sm:$0xff] %v5690_v2  ;;  %v4870_v4 = vld [vmem:[%s5612_s29 + $0x90] sm:$0xff]   ;;  %4960 = vperm.xlu0 %4897, %v4959_v37   ;;  %v5706_v55 = vrot.slane %v474_v58, 1  ;;  %v5708_v47 = vrot.slane %v4781_v59, 1  ;;  %v5710_v2 = vpack.i.bf16 %v4781_v59, %v4780_v8  ;;  %v480_v32 = vunpack.c.l.bf16 %v435_v13 }
  0x32   : > { %11076 = vst [vmem:[#allocation16_spill] sm:$0xff] %v5692_v61  ;;  %11077 = vst [vmem:[#allocation17_spill] sm:$0xff] %v5698_v19  ;;  %v5712_v61 = vrot.slane %v4780_v8, 1  ;;  %v481_v56 = vunpack.c.h.bf16 %v435_v13  ;;  %v4784_v57 = vunpack.c.l.bf16 %v4869_v44  ;;  %v4785_v60 = vunpack.c.h.bf16 %v4869_v44  ;;  %v495_v19 = vld [vmem:[%s5718_s8 + $0xc] sm:$0xff]   ;;  %v4795_v13 = vld [vmem:[%s5718_s8] sm:$0xff]  }
  0x33   : > { %11078 = vst [vmem:[#allocation18_spill] sm:$0xff] %v5700_v30  ;;  %11079 = vst [vmem:[#allocation19_spill] sm:$0xff] %v5706_v55  ;;  %v486_v37 = vunpack.c.l.bf16 %v441_v28  ;;  %v487_v58 = vunpack.c.h.bf16 %v441_v28  ;;  %v4789_v59 = vunpack.c.h.bf16 %v4870_v4  ;;  %v5725_v55 = vrot.slane %v480_v32, 1 }
  0x34   : > { %11080 = vst [vmem:[#allocation20_spill] sm:$0xff] %v5708_v47  ;;  %11081 = vst [vmem:[#allocation21_spill] sm:$0xff] %v5712_v61  ;;  %v4788_v47 = vunpack.c.l.bf16 %v4870_v4  ;;  %4975 = vperm.xlu1 %4908, %v5646_v43   ;;  %v5721_v8 = vrot.slane %v481_v56, 1  ;;  %v5723_v61 = vpack.i.bf16 %v481_v56, %v480_v32  ;;  %v5727_v30 = vrot.slane %v4785_v60, 1  ;;  %v501_v43 = vld [vmem:[%s5718_s8 + $0x24] sm:$0xff]  }
  0x35   : > { %11083 = vst [vmem:[#allocation23_spill] sm:$0xff] %v5725_v55  ;;  %4970 = vperm.xlu0 %4897, %v5654_v52   ;;  %v5732_v44 = vpack.i.bf16 %v4785_v60, %v4784_v57  ;;  %v5734_v28 = vrot.slane %v4784_v57, 1  ;;  %v5736_v5 = vrot.slane %v487_v58, 1  ;;  %v5738_v4 = vpack.i.bf16 %v487_v58, %v486_v37 }
  0x36   : > { %11082 = vst [vmem:[#allocation22_spill] sm:$0xff] %v5721_v8  ;;  %11084 = vst [vmem:[#allocation24_spill] sm:$0xff] %v5727_v30  ;;  %v4872_v8 = vld [vmem:[%s5718_s8 + $0x18] sm:$0xff]   ;;  %v5742_v56 = vrot.slane %v486_v37, 1  ;;  %v5744_v32 = vrot.slane %v4789_v59, 1  ;;  %v5746_v55 = vpack.i.bf16 %v4789_v59, %v4788_v47  ;;  %v5748_v30 = vrot.slane %v4788_v47, 1 }
  0x37   : > { %11085 = vst [vmem:[#allocation25_spill] sm:$0xff] %v5734_v28  ;;  %11086 = vst [vmem:[#allocation26_spill] sm:$0xff] %v5736_v5  ;;  %v540_v52 = vunpack.c.l.bf16 %v495_v19  ;;  %v541_v60 = vunpack.c.h.bf16 %v495_v19  ;;  %v4796_v57 = vunpack.c.l.bf16 %v4795_v13  ;;  %v4797_v28 = vunpack.c.h.bf16 %v4795_v13  ;;  %v507_v19 = vld [vmem:[%s5718_s8 + $0x3c] sm:$0xff]   ;;  %v4873_v13 = vld [vmem:[%s5718_s8 + $0x30] sm:$0xff]  }
  0x38   : > { %11087 = vst [vmem:[#allocation27_spill] sm:$0xff] %v5742_v56  ;;  %11088 = vst [vmem:[#allocation28_spill] sm:$0xff] %v5744_v32  ;;  %4985 = vperm.xlu1 %4908, %v5660_v9   ;;  %v546_v58 = vunpack.c.l.bf16 %v501_v43  ;;  %v547_v5 = vunpack.c.h.bf16 %v501_v43  ;;  %v4800_v37 = vunpack.c.l.bf16 %v4872_v8  ;;  %v4801_v56 = vunpack.c.h.bf16 %v4872_v8  ;;  %v513_v8 = vld [vmem:[%s5718_s8 + $0x54] sm:$0xff]  }
  0x39   : > { %11089 = vst [vmem:[#allocation29_spill] sm:$0xff] %v5748_v30  ;;  %4980 = vperm.xlu0 %4897, %v5668_v20   ;;  %v5752_v59 = vrot.slane %v541_v60, 1  ;;  %v5754_v32 = vpack.i.bf16 %v541_v60, %v540_v52  ;;  %v5756_v47 = vrot.slane %v540_v52, 1  ;;  %v5758_v30 = vrot.slane %v4797_v28, 1  ;;  %v4874_v20 = vld [vmem:[%s5718_s8 + $0x48] sm:$0xff]  }
  0x3a   : > { %v5762_v23 = vpack.i.bf16 %v4797_v28, %v4796_v57  ;;  %v5764_v9 = vrot.slane %v4796_v57, 1  ;;  %v5766_v18 = vrot.slane %v547_v5, 1  ;;  %v5768_v43 = vpack.i.bf16 %v547_v5, %v546_v58 }
  0x3b   : > { %11090 = vst [vmem:[#allocation30_spill] sm:$0xff] %v5756_v47  ;;  %11091 = vst [vmem:[#allocation31_spill] sm:$0xff] %v5758_v30  ;;  %v5772_v10 = vrot.slane %v546_v58, 1  ;;  %v5774_v60 = vrot.slane %v4801_v56, 1  ;;  %v5776_v52 = vpack.i.bf16 %v4801_v56, %v4800_v37  ;;  %v5778_v3 = vrot.slane %v4800_v37, 1 }
  0x3c   : > { %11092 = vst [vmem:[#allocation32_spill] sm:$0xff] %v5764_v9  ;;  %11093 = vst [vmem:[#allocation33_spill] sm:$0xff] %v5766_v18  ;;  %4995 = vperm.xlu1 %4908, %v5674_v24   ;;  %v552_v28 = vunpack.c.l.bf16 %v507_v19  ;;  %v553_v57 = vunpack.c.h.bf16 %v507_v19  ;;  %v4804_v54 = vunpack.c.l.bf16 %v4873_v13  ;;  %v4805_v49 = vunpack.c.h.bf16 %v4873_v13  ;;  %v519_v24 = vld [vmem:[%s5718_s8 + $0x6c] sm:$0xff]   ;;  %v4875_v19 = vld [vmem:[%s5718_s8 + $0x60] sm:$0xff]  }
  0x3d   : > { %11094 = vst [vmem:[#allocation34_spill] sm:$0xff] %v5772_v10  ;;  %11095 = vst [vmem:[#allocation35_spill] sm:$0xff] %v5774_v60  ;;  %4990 = vperm.xlu0 %4897, %v5682_v36   ;;  %v558_v5 = vunpack.c.l.bf16 %v513_v8  ;;  %v559_v58 = vunpack.c.h.bf16 %v513_v8  ;;  %v4808_v48 = vunpack.c.l.bf16 %v4874_v20  ;;  %v4809_v42 = vunpack.c.h.bf16 %v4874_v20  ;;  %v525_v20 = vld [vmem:[%s5718_s8 + $0x84] sm:$0xff]   ;;  %v4876_v18 = vld [vmem:[%s5718_s8 + $0x78] sm:$0xff]  }
  0x3e   : > { %11096 = vst [vmem:[#allocation36_spill] sm:$0xff] %v5778_v3  ;;  %v5782_v56 = vrot.slane %v553_v57, 1  ;;  %v5784_v60 = vpack.i.bf16 %v553_v57, %v552_v28  ;;  %v5786_v37 = vrot.slane %v552_v28, 1  ;;  %v5788_v3 = vrot.slane %v4805_v49, 1 }
  0x3f   : > { %v5792_v10 = vpack.i.bf16 %v4805_v49, %v4804_v54  ;;  %v5794_v13 = vrot.slane %v4804_v54, 1  ;;  %v5796_v36 = vrot.slane %v559_v58, 1  ;;  %v5798_v8 = vpack.i.bf16 %v559_v58, %v558_v5 }
  0x40   : > { %11097 = vst [vmem:[#allocation37_spill] sm:$0xff] %v5782_v56  ;;  %11098 = vst [vmem:[#allocation38_spill] sm:$0xff] %v5786_v37  ;;  %5005 = vperm.xlu1 %4908, %v5688_v35   ;;  %v5803_v57 = vrot.slane %v558_v5, 1  ;;  %v5805_v28 = vrot.slane %v4809_v42, 1  ;;  %v5809_v49 = vrot.slane %v4808_v48, 1  ;;  %v564_v54 = vunpack.c.l.bf16 %v519_v24 }
  0x41   : > { %11099 = vst [vmem:[#allocation39_spill] sm:$0xff] %v5788_v3  ;;  %11100 = vst [vmem:[#allocation40_spill] sm:$0xff] %v5794_v13  ;;  %v5807_v3 = vpack.i.bf16 %v4809_v42, %v4808_v48  ;;  %5000 = vperm.xlu0 %4897, %v5696_v63   ;;  %v4812_v58 = vunpack.c.l.bf16 %v4875_v19  ;;  %v4813_v13 = vunpack.c.h.bf16 %v4875_v19  ;;  %v570_v35 = vunpack.c.l.bf16 %v525_v20  ;;  %v531_v19 = vld [vmem:[%s5718_s8 + $0x9c] sm:$0xff]  }
  0x42   : > { %11101 = vst [vmem:[#allocation41_spill] sm:$0xff] %v5796_v36  ;;  %11102 = vst [vmem:[#allocation42_spill] sm:$0xff] %v5803_v57  ;;  %v565_v36 = vunpack.c.h.bf16 %v519_v24  ;;  %v571_v42 = vunpack.c.h.bf16 %v525_v20  ;;  %v4816_v5 = vunpack.c.l.bf16 %v4876_v18  ;;  %v5822_v63 = vrot.slane %v564_v54, 1  ;;  %v4877_v57 = vld [vmem:[%s5718_s8 + $0x90] sm:$0xff]  }
  0x43   : > { %11103 = vst [vmem:[#allocation43_spill] sm:$0xff] %v5805_v28  ;;  %11104 = vst [vmem:[#allocation44_spill] sm:$0xff] %v5809_v49  ;;  %v4817_v28 = vunpack.c.h.bf16 %v4876_v18  ;;  %v5824_v24 = vrot.slane %v4813_v13, 1  ;;  %v5829_v37 = vpack.i.bf16 %v4813_v13, %v4812_v58  ;;  %v5831_v56 = vrot.slane %v4812_v58, 1  ;;  %v585_v18 = vld [vmem:[%s5816_s11 + $0xc] sm:$0xff]  }
  0x44   : > { %v5818_v48 = vrot.slane %v565_v36, 1  ;;  %v5820_v49 = vpack.i.bf16 %v565_v36, %v564_v54  ;;  %11106 = vst [vmem:[#allocation46_spill] sm:$0xff] %v5822_v63  ;;  %5015 = vperm.xlu1 %4908, %v5702_v25   ;;  %v5833_v9 = vrot.slane %v571_v42, 1  ;;  %v5835_v20 = vpack.i.bf16 %v571_v42, %v570_v35 }
  0x45   : > { %11107 = vst [vmem:[#allocation47_spill] sm:$0xff] %v5824_v24  ;;  %11108 = vst [vmem:[#allocation48_spill] sm:$0xff] %v5831_v56  ;;  %5010 = vperm.xlu0 %4897, %v5710_v2   ;;  %v5840_v36 = vrot.slane %v570_v35, 1  ;;  %v5842_v54 = vrot.slane %v4817_v28, 1  ;;  %v5844_v24 = vpack.i.bf16 %v4817_v28, %v4816_v5  ;;  %v5846_v25 = vrot.slane %v4816_v5, 1 }
  0x46   : > { %11105 = vst [vmem:[#allocation45_spill] sm:$0xff] %v5818_v48  ;;  %11109 = vst [vmem:[#allocation49_spill] sm:$0xff] %v5833_v9  ;;  %v4827_v48 = vld [vmem:[%s5816_s11] sm:$0xff]   ;;  %v576_v13 = vunpack.c.l.bf16 %v531_v19  ;;  %v577_v58 = vunpack.c.h.bf16 %v531_v19  ;;  %v4820_v56 = vunpack.c.l.bf16 %v4877_v57  ;;  %v4821_v9 = vunpack.c.h.bf16 %v4877_v57  ;;  %v4879_v19 = vld [vmem:[%s5816_s11 + $0x18] sm:$0xff]  }
  0x47   : > { %11110 = vst [vmem:[#allocation50_spill] sm:$0xff] %v5840_v36  ;;  %11111 = vst [vmem:[#allocation51_spill] sm:$0xff] %v5842_v54  ;;  %v630_v42 = vunpack.c.l.bf16 %v585_v18  ;;  %v631_v63 = vunpack.c.h.bf16 %v585_v18  ;;  %v4828_v30 = vunpack.c.l.bf16 %v4827_v48  ;;  %v4829_v2 = vunpack.c.h.bf16 %v4827_v48 }
  0x48   : > { %11112 = vst [vmem:[#allocation52_spill] sm:$0xff] %v5846_v25  ;;  %5025 = vperm.xlu1 %4908, %v5723_v61   ;;  %v5849_v35 = vrot.slane %v577_v58, 1  ;;  %v5851_v54 = vpack.i.bf16 %v577_v58, %v576_v13  ;;  %v5853_v28 = vrot.slane %v576_v13, 1  ;;  %v5855_v5 = vrot.slane %v4821_v9, 1  ;;  %v591_v25 = vld [vmem:[%s5816_s11 + $0x24] sm:$0xff]   ;;  %v597_v61 = vld [vmem:[%s5816_s11 + $0x3c] sm:$0xff]  }
  0x49   : > { %5020 = vperm.xlu0 %4897, %v5732_v44   ;;  %v5860_v57 = vpack.i.bf16 %v4821_v9, %v4820_v56  ;;  %v5862_v18 = vrot.slane %v4820_v56, 1  ;;  %v5864_v36 = vrot.slane %v631_v63, 1  ;;  %v5866_v48 = vpack.i.bf16 %v631_v63, %v630_v42 }
  0x4a   : > { %11113 = vst [vmem:[#allocation53_spill] sm:$0xff] %v5849_v35  ;;  %11114 = vst [vmem:[#allocation54_spill] sm:$0xff] %v5853_v28  ;;  %v4880_v35 = vld [vmem:[%s5816_s11 + $0x30] sm:$0xff]   ;;  %v5870_v58 = vrot.slane %v630_v42, 1  ;;  %v5872_v13 = vrot.slane %v4829_v2, 1  ;;  %v5874_v28 = vpack.i.bf16 %v4829_v2, %v4828_v30  ;;  %v636_v44 = vunpack.c.l.bf16 %v591_v25 }
  0x4b   : > { %11115 = vst [vmem:[#allocation55_spill] sm:$0xff] %v5855_v5  ;;  %11116 = vst [vmem:[#allocation56_spill] sm:$0xff] %v5862_v18  ;;  %v5876_v5 = vrot.slane %v4828_v30, 1  ;;  %v637_v9 = vunpack.c.h.bf16 %v591_v25  ;;  %v4832_v56 = vunpack.c.l.bf16 %v4879_v19  ;;  %v4833_v18 = vunpack.c.h.bf16 %v4879_v19  ;;  %v603_v25 = vld [vmem:[%s5816_s11 + $0x54] sm:$0xff]   ;;  %v4881_v19 = vld [vmem:[%s5816_s11 + $0x48] sm:$0xff]  }
  0x4c   : > { %11117 = vst [vmem:[#allocation57_spill] sm:$0xff] %v5864_v36  ;;  %11118 = vst [vmem:[#allocation58_spill] sm:$0xff] %v5866_v48  ;;  %5035 = vperm.xlu1 %4908, %v5738_v4   ;;  %v642_v63 = vunpack.c.l.bf16 %v597_v61  ;;  %v643_v36 = vunpack.c.h.bf16 %v597_v61  ;;  %v4836_v42 = vunpack.c.l.bf16 %v4880_v35  ;;  %v5884_v30 = vrot.slane %v636_v44, 1 }
  0x4d   : > { %11119 = vst [vmem:[#allocation59_spill] sm:$0xff] %v5870_v58  ;;  %11120 = vst [vmem:[#allocation60_spill] sm:$0xff] %v5872_v13  ;;  %v4837_v58 = vunpack.c.h.bf16 %v4880_v35  ;;  %5030 = vperm.xlu0 %4897, %v5746_v55   ;;  %v5880_v2 = vrot.slane %v637_v9, 1  ;;  %v5882_v13 = vpack.i.bf16 %v637_v9, %v636_v44  ;;  %v5892_v4 = vrot.slane %v4832_v56, 1  ;;  %v609_v35 = vld [vmem:[%s5816_s11 + $0x6c] sm:$0xff]   ;;  %v4882_v55 = vld [vmem:[%s5816_s11 + $0x60] sm:$0xff]  }
  0x4e   : > { %11121 = vst [vmem:[#allocation61_spill] sm:$0xff] %v5874_v28  ;;  %11122 = vst [vmem:[#allocation62_spill] sm:$0xff] %v5876_v5  ;;  %v5886_v5 = vrot.slane %v4833_v18, 1  ;;  %v5890_v28 = vpack.i.bf16 %v4833_v18, %v4832_v56  ;;  %v5894_v48 = vrot.slane %v643_v36, 1  ;;  %v5896_v61 = vpack.i.bf16 %v643_v36, %v642_v63 }
  0x4f   : > { %11123 = vst [vmem:[#allocation63_spill] sm:$0xff] %v5880_v2  ;;  %11124 = vst [vmem:[#allocation64_spill] sm:$0xff] %v5884_v30  ;;  %v5900_v47 = vrot.slane %v642_v63, 1  ;;  %v5902_v9 = vrot.slane %v4837_v58, 1  ;;  %v5904_v44 = vpack.i.bf16 %v4837_v58, %v4836_v42  ;;  %v5906_v30 = vrot.slane %v4836_v42, 1 }
  0x50   : > { %11125 = vst [vmem:[#allocation65_spill] sm:$0xff] %v5886_v5  ;;  %11126 = vst [vmem:[#allocation66_spill] sm:$0xff] %v5892_v4  ;;  %5045 = vperm.xlu1 %4908, %v5754_v32   ;;  %v648_v18 = vunpack.c.l.bf16 %v603_v25  ;;  %v649_v56 = vunpack.c.h.bf16 %v603_v25  ;;  %v4841_v36 = vunpack.c.h.bf16 %v4881_v19  ;;  %v654_v63 = vunpack.c.l.bf16 %v609_v35  ;;  %v615_v32 = vld [vmem:[%s5816_s11 + $0x84] sm:$0xff]   ;;  %v4883_v25 = vld [vmem:[%s5816_s11 + $0x78] sm:$0xff]  }
  0x51   : > { %11127 = vst [vmem:[#allocation67_spill] sm:$0xff] %v5894_v48  ;;  %11128 = vst [vmem:[#allocation68_spill] sm:$0xff] %v5900_v47  ;;  %v4840_v48 = vunpack.c.l.bf16 %v4881_v19  ;;  %5040 = vperm.xlu0 %4897, %v5762_v23   ;;  %v655_v47 = vunpack.c.h.bf16 %v609_v35  ;;  %v4845_v58 = vunpack.c.h.bf16 %v4882_v55  ;;  %v621_v35 = vld [vmem:[%s5816_s11 + $0x9c] sm:$0xff]  }
  0x52   : > { %11129 = vst [vmem:[#allocation69_spill] sm:$0xff] %v5902_v9  ;;  %11130 = vst [vmem:[#allocation70_spill] sm:$0xff] %v5904_v44  ;;  %v4844_v9 = vunpack.c.l.bf16 %v4882_v55  ;;  %v5910_v4 = vrot.slane %v649_v56, 1  ;;  %v5912_v42 = vpack.i.bf16 %v649_v56, %v648_v18  ;;  %v5916_v5 = vrot.slane %v4841_v36, 1  ;;  %v4884_v55 = vld [vmem:[%s5816_s11 + $0x90] sm:$0xff]  }
  0x53   : > { %11131 = vst [vmem:[#allocation71_spill] sm:$0xff] %v5906_v30  ;;  %v5914_v30 = vrot.slane %v648_v18, 1  ;;  %v5920_v2 = vpack.i.bf16 %v4841_v36, %v4840_v48  ;;  %v5922_v19 = vrot.slane %v4840_v48, 1  ;;  %v5924_v23 = vrot.slane %v655_v47, 1 }
  0x54   : > { %11132 = vst [vmem:[#allocation72_spill] sm:$0xff] %v5910_v4  ;;  %11134 = vst [vmem:[#allocation74_spill] sm:$0xff] %v5916_v5  ;;  %v5926_v44 = vpack.i.bf16 %v655_v47, %v654_v63  ;;  %5055 = vperm.xlu1 %4908, %v5768_v43   ;;  %v5931_v56 = vrot.slane %v654_v63, 1  ;;  %v5933_v18 = vrot.slane %v4845_v58, 1  ;;  %v5935_v5 = vpack.i.bf16 %v4845_v58, %v4844_v9 }
  0x55   : > { %11133 = vst [vmem:[#allocation73_spill] sm:$0xff] %v5914_v30  ;;  %11135 = vst [vmem:[#allocation75_spill] sm:$0xff] %v5922_v19  ;;  %v5937_v36 = vrot.slane %v4844_v9, 1  ;;  %5050 = vperm.xlu0 %4897, %v5776_v52   ;;  %v660_v48 = vunpack.c.l.bf16 %v615_v32  ;;  %v4848_v47 = vunpack.c.l.bf16 %v4883_v25  ;;  %v4849_v19 = vunpack.c.h.bf16 %v4883_v25  ;;  %v314_v52 = vld [vmem:[%s5562_s26 + $0x8] sm:$0x1] }
  0x56   : > { %11136 = vst [vmem:[#allocation76_spill] sm:$0xff] %v5924_v23  ;;  %11137 = vst [vmem:[#allocation77_spill] sm:$0xff] %v5926_v44  ;;  %v661_v23 = vunpack.c.h.bf16 %v615_v32  ;;  %v666_v30 = vunpack.c.l.bf16 %v621_v35  ;;  %v667_v4 = vunpack.c.h.bf16 %v621_v35  ;;  %v4852_v43 = vunpack.c.l.bf16 %v4884_v55 }
  0x57   : > { %11138 = vst [vmem:[#allocation78_spill] sm:$0xff] %v5931_v56  ;;  %11139 = vst [vmem:[#allocation79_spill] sm:$0xff] %v5933_v18  ;;  %v4853_v63 = vunpack.c.h.bf16 %v4884_v55  ;;  %v317_v56 = vld [vmem:[%s5562_s26 + $0x14] sm:$0x1]  ;;  %v5945_v9 = vrot.slane %v660_v48, 1  ;;  %v5951_v32 = vpack.i.bf16 %v4849_v19, %v4848_v47  ;;  %v5953_v25 = vrot.slane %v4848_v47, 1 }
  0x58   : > { %11140 = vst [vmem:[#allocation80_spill] sm:$0xff] %v5937_v36  ;;  %v5941_v44 = vrot.slane %v661_v23, 1  ;;  %v5943_v58 = vpack.i.bf16 %v661_v23, %v660_v48  ;;  %v5947_v36 = vrot.slane %v4849_v19, 1  ;;  %5065 = vperm.xlu1 %4908, %v5784_v60   ;;  %v5955_v35 = vrot.slane %v667_v4, 1  ;;  %v320_v23 = vld [vmem:[%s5562_s26 + $0x20] sm:$0x1] }
  0x59   : > { %11142 = vst [vmem:[#allocation82_spill] sm:$0xff] %v5945_v9  ;;  %11144 = vst [vmem:[#allocation84_spill] sm:$0xff] %v5953_v25  ;;  %v5957_v55 = vpack.i.bf16 %v667_v4, %v666_v30  ;;  %5060 = vperm.xlu0 %4897, %v5792_v10   ;;  %v5962_v48 = vrot.slane %v666_v30, 1  ;;  %v5966_v9 = vpack.i.bf16 %v4853_v63, %v4852_v43  ;;  %v5968_v60 = vrot.slane %v4852_v43, 1  ;;  %v329_v19 = vld [vmem:[%s5562_s26 + $0x44] sm:$0x1] }
  0x5a   : > { %11141 = vst [vmem:[#allocation81_spill] sm:$0xff] %v5941_v44  ;;  %11143 = vst [vmem:[#allocation83_spill] sm:$0xff] %v5947_v36  ;;  %v323_v44 = vld [vmem:[%s5562_s26 + $0x2c] sm:$0x1]  ;;  %v5964_v36 = vrot.slane %v4853_v63, 1  ;;  %v362_v47 = vunpack.c.l.bf16 %v317_v56  ;;  %v5974_v4 = vsel %vm1479_vm0, %v5586_v29, %v5584_v27  ;;  %v5979_v10 = vsel %vm1479_vm0, %v5576_v21, %v5572_v17  ;;  %v11170_v18 = vld [vmem:[#allocation37_spill] sm:$0xff] }
  0x5b   : > { %11145 = vst [vmem:[#allocation85_spill] sm:$0xff] %v5955_v35  ;;  %11146 = vst [vmem:[#allocation86_spill] sm:$0xff] %v5962_v48  ;;  %v359_v35 = vunpack.c.l.bf16 %v314_v52  ;;  %v326_v30 = vld [vmem:[%s5562_s26 + $0x38] sm:$0x1]  ;;  %v368_v48 = vunpack.c.l.bf16 %v323_v44  ;;  %v5985_v43 = vsel %vm1479_vm0, %v5582_v26, %v5578_v22  ;;  %v365_v63 = vunpack.c.l.bf16 %v320_v23  ;;  %v335_v29 = vld [vmem:[%s5562_s26 + $0x5c] sm:$0x1] }
  0x5c   : > { %11147 = vst [vmem:[#allocation87_spill] sm:$0xff] %v5964_v36  ;;  %11148 = vst [vmem:[#allocation88_spill] sm:$0xff] %v5968_v60  ;;  %v5990_v56 = vsel %vm1479_vm0, %v5570_v16, %v5568_v14  ;;  %5075 = vperm.xlu1 %4908, %v5798_v8   ;;  %v1488_v52 = vrot.slane %v362_v47, 1  ;;  %v374_v60 = vunpack.c.l.bf16 %v329_v19  ;;  %v5997_v44 = vsel %vm1479_vm0, %v5590_v40, %v5588_v38  ;;  %v11161_v47 = vld [vmem:[#allocation32_spill] sm:$0xff]  ;;  %v506_v25 = vld [vmem:[%s5718_s8 + $0x38] sm:$0x1] }
  0x5d   : > { %v1483_v21 = vrot.slane %v359_v35, 1  ;;  %5070 = vperm.xlu0 %4897, %v5807_v3   ;;  %v1498_v26 = vrot.slane %v368_v48, 1  ;;  %v1493_v23 = vrot.slane %v365_v63, 1  ;;  %v371_v36 = vunpack.c.l.bf16 %v326_v30  ;;  %v332_v3 = vld [vmem:[%s5562_s26 + $0x50] sm:$0x1] }
  0x5e   : > { %v6003_v16 = vsel %vm1479_vm0, %v5596_v45, %v5592_v41  ;;  %v6007_v8 = vsel %vm1479_vm0, %v5584_v27, %v1488_v52  ;;  %v1508_v40 = vrot.slane %v374_v60, 1  ;;  %v380_v19 = vunpack.c.l.bf16 %v335_v29  ;;  %v347_v29 = vld [vmem:[%s5562_s26 + $0x8c] sm:$0x1] }
  0x5f   : > { %v6011_v35 = vsel %vm1479_vm0, %v5572_v17, %v1483_v21  ;;  %v6020_v45 = vsel %vm1479_vm0, %v5578_v22, %v1498_v26  ;;  %v6024_v27 = vsel %vm1479_vm0, %v5568_v14, %v1493_v23  ;;  %v672_v17 = vld [vmem:[%s10730_s4] sm:$0xf]  ;;  %v1503_v63 = vrot.slane %v371_v36, 1  ;;  %v341_v14 = vld [vmem:[%s5562_s26 + $0x74] sm:$0x1] }
  0x60   : > { %5085 = vperm.xlu1 %4908, %v5820_v49   ;;  %v6036_v22 = vsel %vm1479_vm0, %v5588_v38, %v1508_v40  ;;  %v6045_v49 = vsel %vm1479_vm0, %v5602_v50, %v5598_v46  ;;  %v1518_v52 = vrot.slane %v380_v19, 1  ;;  %v377_v21 = vunpack.c.l.bf16 %v332_v3  ;;  %v338_v40 = vld [vmem:[%s5562_s26 + $0x68] sm:$0x1]  ;;  %v350_v50 = vld [vmem:[%s5562_s26 + $0x98] sm:$0x1] }
  0x61   : > { %5080 = vperm.xlu0 %4897, %v5829_v37   ;;  %v6049_v26 = vsel %vm1479_vm0, %v5592_v41, %v1503_v63  ;;  %v6054_v38 = vsel %vm1479_vm0, %v5606_v53, %v5604_v51  ;;  %v6056_v37 = vunpack.c.l.bf16 %v672_v17  ;;  %v11150_v36 = vlaneseq  ;;  %v503_v60 = vld [vmem:[%s5718_s8 + $0x2c] sm:$0x1] }
  0x62   : > { %v6066_v19 = vsel %vm1479_vm0, %v5598_v46, %v1518_v52  ;;  %v1513_v41 = vrot.slane %v377_v21, 1  ;;  %v386_v3 = vunpack.c.l.bf16 %v341_v14  ;;  %v383_v52 = vunpack.c.l.bf16 %v338_v40  ;;  %v344_v21 = vld [vmem:[%s5562_s26 + $0x80] sm:$0x1] }
  0x63   : > { %11149 = vst [vmem:[#allocation89_spill] sm:$0xff] %v6056_v37  ;;  %v6059_v23 = vshrl.u32 %v11150_v36, 7  ;;  %v395_v30 = vunpack.c.l.bf16 %v350_v50  ;;  %v11160_v50 = vld [vmem:[#allocation31_spill] sm:$0xff] }
  0x64   : > { %5095 = vperm.xlu1 %4908, %v5835_v20   ;;  %v6078_v46 = vsel %vm1479_vm0, %v5604_v51, %v1513_v41  ;;  %v6083_v20 = vsel %vm1479_vm0, %v5616_v0, %v5614_v62  ;;  %v1528_v14 = vrot.slane %v386_v3, 1  ;;  %v353_v0 = vld [vmem:[%s5562_s26 + $0xa4] sm:$0x1]  ;;  %v6107_v3 = vsel %vm1479_vm0, %v5622_v6, %v5618_v1  ;;  %v497_v6 = vld [vmem:[%s5718_s8 + $0x14] sm:$0x1] }
  0x65   : > { %11151 = vst [vmem:[#allocation90_spill] sm:$0xff] %v6059_v23  ;;  %v10773_v17 = vsub.s32 0, %v6059_v23  ;;  %v2728_v63 = vsub.s32 3, %v6059_v23  ;;  %v3460_v36 = vsub.s32 6, %v6059_v23  ;;  %5090 = vperm.xlu0 %4897, %v5844_v24   ;;  %v1523_v53 = vrot.slane %v383_v52, 1 }
  0x66   : > { %v6102_v40 = vsel %vm1479_vm0, %v5614_v62, %v1528_v14  ;;  %v389_v62 = vunpack.c.l.bf16 %v344_v21  ;;  %v6121_v14 = vsel %vm1479_vm0, %v5632_v15, %v5630_v12  ;;  %v398_v52 = vunpack.c.l.bf16 %v353_v0  ;;  %v494_v21 = vld [vmem:[%s5718_s8 + $0x8] sm:$0x1]  ;;  %v11158_v15 = vld [vmem:[#allocation58_spill] sm:$0xff] }
  0x67   : > { %v6091_v24 = vrot.slane %v6056_v37, %v10773_v17  ;;  %v6094_v51 = vrot.slane %v6056_v37, %v2728_v63  ;;  %v6097_v41 = vrot.slane %v6056_v37, %v3460_v36  ;;  %v392_v17 = vunpack.c.l.bf16 %v347_v29 }
  0x68   : > { %5105 = vperm.xlu1 %4908, %v5851_v54   ;;  %v6116_v36 = vsel %vm1479_vm0, %v5628_v11, %v5624_v7  ;;  %v6127_v54 = vsel %vm1479_vm0, %v5618_v1, %v1523_v53  ;;  %v6132_v11 = vsel %vm1479_vm0, %v5636_v33, %v5634_v31  ;;  %v1533_v63 = vrot.slane %v389_v62, 1  ;;  %v11156_v33 = vld [vmem:[#allocation30_spill] sm:$0xff] }
  0x69   : > { %11152 = vst [vmem:[#allocation91_spill] sm:$0xff] %v6091_v24  ;;  %11153 = vst [vmem:[#allocation92_spill] sm:$0xff] %v6094_v51  ;;  %5100 = vperm.xlu0 %4897, %v5860_v57   ;;  %v1538_v29 = vrot.slane %v392_v17, 1  ;;  %v6140_v57 = vsel %vm1479_vm0, %v5642_v39, %v5638_v34  ;;  %v1548_v53 = vrot.slane %v398_v52, 1  ;;  %v542_v17 = vunpack.c.l.bf16 %v497_v6  ;;  %v500_v6 = vld [vmem:[%s5718_s8 + $0x20] sm:$0x1] }
  0x6a   : > { %11154 = vst [vmem:[#allocation93_spill] sm:$0xff] %v6097_v41  ;;  %11155 = vst [vmem:[#allocation94_spill] sm:$0xff] %v6140_v57  ;;  %v6149_v0 = vsel %vm1479_vm0, %v11156_v33, %v5752_v59  ;;  %v6157_v39 = vsel %vm1479_vm0, %v5630_v12, %v1533_v63  ;;  %v539_v62 = vunpack.c.l.bf16 %v494_v21  ;;  %v6170_v12 = vsel %vm1479_vm0, %v11161_v47, %v11160_v50  ;;  %v509_v52 = vld [vmem:[%s5718_s8 + $0x44] sm:$0x1]  ;;  %v11164_v47 = vld [vmem:[#allocation33_spill] sm:$0xff] }
  0x6b   : > { %v6144_v1 = vsel %vm1479_vm0, %v5624_v7, %v1538_v29  ;;  %11157 = vst [vmem:[#allocation30_spill] sm:$0xff] %v6149_v0  ;;  %v1543_v7 = vrot.slane %v395_v30, 1  ;;  %v11159_v29 = vld [vmem:[#allocation61_spill] sm:$0xff]  ;;  %v1572_v33 = vrot.slane %v542_v17, 1  ;;  %11162 = vst [vmem:[#allocation58_spill] sm:$0xff] %v6170_v12  ;;  %v11165_v17 = vld [vmem:[#allocation34_spill] sm:$0xff]  ;;  %v545_v30 = vunpack.c.l.bf16 %v500_v6 }
  0x6c   : > { %5115 = vperm.xlu1 %4908, %v11158_v15   ;;  %v6165_v15 = vsel %vm1479_vm0, %v5634_v31, %v1548_v53  ;;  %v1567_v21 = vrot.slane %v539_v62, 1  ;;  %v6188_v48 = vsel %vm1479_vm0, %v11165_v17, %v11164_v47  ;;  %v11168_v62 = vld [vmem:[#allocation35_spill] sm:$0xff]  ;;  %v11171_v57 = vld [vmem:[#allocation38_spill] sm:$0xff]  ;;  %v11174_v0 = vld [vmem:[#allocation40_spill] sm:$0xff] }
  0x6d   : > { %5110 = vperm.xlu0 %4897, %v11159_v29   ;;  %v6176_v63 = vsel %vm1479_vm0, %v5638_v34, %v1543_v7  ;;  %v548_v29 = vunpack.c.l.bf16 %v503_v60  ;;  %v6183_v53 = vsel %vm1479_vm0, %v5752_v59, %v1572_v33  ;;  %11166 = vst [vmem:[#allocation31_spill] sm:$0xff] %v6188_v48  ;;  %v515_v34 = vld [vmem:[%s5718_s8 + $0x5c] sm:$0x1]  ;;  %v11169_v33 = vld [vmem:[#allocation36_spill] sm:$0xff]  ;;  %v1577_v17 = vrot.slane %v545_v30, 1 }
  0x6e   : > { %11163 = vst [vmem:[#allocation61_spill] sm:$0xff] %v6183_v53  ;;  %v6197_v7 = vsel %vm1479_vm0, %v11160_v50, %v1567_v21  ;;  %v6202_v31 = vsel %vm1479_vm0, %v11169_v33, %v11168_v62  ;;  %v6210_v60 = vsel %vm1479_vm0, %v11171_v57, %v11170_v18  ;;  %v512_v50 = vld [vmem:[%s5718_s8 + $0x50] sm:$0x1]  ;;  %v11173_v33 = vld [vmem:[#allocation39_spill] sm:$0xff]  ;;  %v560_v53 = vunpack.c.l.bf16 %v515_v34  ;;  %v521_v30 = vld [vmem:[%s5718_s8 + $0x74] sm:$0x1] }
  0x6f   : > { %11167 = vst [vmem:[#allocation32_spill] sm:$0xff] %v6197_v7  ;;  %v1582_v59 = vrot.slane %v548_v29, 1  ;;  %v551_v29 = vunpack.c.l.bf16 %v506_v25  ;;  %v6227_v57 = vsel %vm1479_vm0, %v11168_v62, %v1577_v17  ;;  %v11176_v12 = vld [vmem:[#allocation41_spill] sm:$0xff]  ;;  %v557_v7 = vunpack.c.l.bf16 %v512_v50  ;;  %v11180_v17 = vld [vmem:[#allocation43_spill] sm:$0xff] }
  0x70   : > { %5125 = vperm.xlu1 %4908, %v5882_v13   ;;  %v554_v13 = vunpack.c.l.bf16 %v509_v52  ;;  %v11179_v52 = vld [vmem:[#allocation70_spill] sm:$0xff]  ;;  %v566_v48 = vunpack.c.l.bf16 %v521_v30  ;;  %v11189_v30 = vld [vmem:[#allocation48_spill] sm:$0xff] }
  0x71   : > { %5120 = vperm.xlu0 %4897, %v5890_v28   ;;  %v6215_v21 = vsel %vm1479_vm0, %v11164_v47, %v1582_v59  ;;  %v6220_v28 = vsel %vm1479_vm0, %v11174_v0, %v11173_v33  ;;  %v11177_v47 = vld [vmem:[#allocation42_spill] sm:$0xff]  ;;  %v1587_v34 = vrot.slane %v551_v29, 1  ;;  %v1602_v59 = vrot.slane %v560_v53, 1  ;;  %v527_v29 = vld [vmem:[%s5718_s8 + $0x8c] sm:$0x1]  ;;  %v11185_v53 = vld [vmem:[#allocation45_spill] sm:$0xff] }
  0x72   : > { %11172 = vst [vmem:[#allocation33_spill] sm:$0xff] %v6215_v21  ;;  %11175 = vst [vmem:[#allocation34_spill] sm:$0xff] %v6220_v28  ;;  %v1592_v6 = vrot.slane %v554_v13, 1  ;;  %v6232_v25 = vsel %vm1479_vm0, %v11177_v47, %v11176_v12  ;;  %v11181_v13 = vld [vmem:[#allocation44_spill] sm:$0xff]  ;;  %v518_v21 = vld [vmem:[%s5718_s8 + $0x68] sm:$0x1] }
  0x73   : > { %11178 = vst [vmem:[#allocation35_spill] sm:$0xff] %v6232_v25  ;;  %v6245_v47 = vsel %vm1479_vm0, %v11181_v13, %v11180_v17  ;;  %v6253_v50 = vsel %vm1479_vm0, %v11173_v33, %v1587_v34  ;;  %v11186_v0 = vld [vmem:[#allocation46_spill] sm:$0xff]  ;;  %v572_v25 = vunpack.c.l.bf16 %v527_v29  ;;  %v530_v28 = vld [vmem:[%s5718_s8 + $0x98] sm:$0x1] }
  0x74   : > { %5135 = vperm.xlu1 %4908, %v5896_v61   ;;  %v6240_v62 = vsel %vm1479_vm0, %v11170_v18, %v1592_v6  ;;  %11182 = vst [vmem:[#allocation36_spill] sm:$0xff] %v6245_v47  ;;  %v1860_v61 = vsub.s32 1, %v6059_v23  ;;  %v6257_v18 = vsel %vm1479_vm0, %v11176_v12, %v1602_v59  ;;  %v1597_v6 = vrot.slane %v557_v7, 1  ;;  %v524_v34 = vld [vmem:[%s5718_s8 + $0x80] sm:$0x1] }
  0x75   : > { %5130 = vperm.xlu0 %4897, %v11179_v52   ;;  %11183 = vst [vmem:[#allocation37_spill] sm:$0xff] %v6257_v18  ;;  %v6270_v33 = vsel %vm1479_vm0, %v11186_v0, %v11185_v53  ;;  %v1612_v7 = vrot.slane %v566_v48, 1  ;;  %v563_v59 = vunpack.c.l.bf16 %v518_v21  ;;  %v11188_v52 = vld [vmem:[#allocation47_spill] sm:$0xff] }
  0x76   : > { %v6265_v13 = vrot.slane %v6056_v37, %v1860_v61  ;;  %11187 = vst [vmem:[#allocation39_spill] sm:$0xff] %v6270_v33  ;;  %v6276_v12 = vsel %vm1479_vm0, %v11180_v17, %v1597_v6  ;;  %v6281_v61 = vsel %vm1479_vm0, %v11189_v30, %v11188_v52  ;;  %v533_v17 = vld [vmem:[%s5718_s8 + $0xa4] sm:$0x1]  ;;  %v11192_v6 = vld [vmem:[#allocation49_spill] sm:$0xff] }
  0x77   : > { %11190 = vst [vmem:[#allocation40_spill] sm:$0xff] %v6281_v61  ;;  %v6291_v48 = vsel %vm1479_vm0, %v11185_v53, %v1612_v7  ;;  %v1607_v21 = vrot.slane %v563_v59, 1  ;;  %v11193_v30 = vld [vmem:[#allocation50_spill] sm:$0xff]  ;;  %v1622_v53 = vrot.slane %v572_v25, 1  ;;  %v11197_v7 = vld [vmem:[#allocation77_spill] sm:$0xff]  ;;  %v578_v33 = vunpack.c.l.bf16 %v533_v17  ;;  %v11210_v61 = vld [vmem:[#allocation3_spill] sm:$0xff] }
  0x78   : > { %11184 = vst [vmem:[#allocation38_spill] sm:$0xff] %v6265_v13  ;;  %5145 = vperm.xlu1 %4908, %v5912_v42   ;;  %v2970_v13 = vsub.s32 4, %v6059_v23  ;;  %v3702_v42 = vsub.s32 7, %v6059_v23  ;;  %11191 = vst [vmem:[#allocation41_spill] sm:$0xff] %v6291_v48  ;;  %v6296_v18 = vsel %vm1479_vm0, %v11193_v30, %v11192_v6  ;;  %v11200_v30 = vld [vmem:[#allocation52_spill] sm:$0xff] }
  0x79   : > { %5140 = vperm.xlu0 %4897, %v5920_v2   ;;  %11194 = vst [vmem:[#allocation42_spill] sm:$0xff] %v6296_v18  ;;  %v569_v2 = vunpack.c.l.bf16 %v524_v34  ;;  %v6310_v59 = vsel %vm1479_vm0, %v11188_v52, %v1607_v21  ;;  %v11199_v34 = vld [vmem:[#allocation51_spill] sm:$0xff]  ;;  %v407_v48 = vld [vmem:[%s5612_s29 + $0x14] sm:$0x1]  ;;  %v11203_v52 = vld [vmem:[#allocation53_spill] sm:$0xff]  ;;  %v1632_v25 = vrot.slane %v578_v33, 1 }
  0x7a   : > { %v6302_v29 = vrot.slane %v6056_v37, %v2970_v13  ;;  %v6305_v23 = vrot.slane %v6056_v37, %v3702_v42  ;;  %11198 = vst [vmem:[#allocation44_spill] sm:$0xff] %v6310_v59  ;;  %v6315_v47 = vsel %vm1479_vm0, %v11200_v30, %v11199_v34  ;;  %v6323_v13 = vsel %vm1479_vm0, %v11192_v6, %v1622_v53  ;;  %v11204_v42 = vld [vmem:[#allocation54_spill] sm:$0xff]  ;;  %v404_v30 = vld [vmem:[%s5612_s29 + $0x8] sm:$0x1]  ;;  %v413_v17 = vld [vmem:[%s5612_s29 + $0x2c] sm:$0x1] }
  0x7b   : > { %11201 = vst [vmem:[#allocation45_spill] sm:$0xff] %v6315_v47  ;;  %v1617_v0 = vrot.slane %v569_v2, 1  ;;  %11202 = vst [vmem:[#allocation46_spill] sm:$0xff] %v6323_v13  ;;  %v6328_v21 = vsel %vm1479_vm0, %v11204_v42, %v11203_v52  ;;  %v11207_v37 = vld [vmem:[#allocation55_spill] sm:$0xff]  ;;  %v11208_v6 = vld [vmem:[#allocation56_spill] sm:$0xff]  ;;  %v6354_v33 = vsel %vm1479_vm0, %v11203_v52, %v1632_v25 }
  0x7c   : > { %11195 = vst [vmem:[#allocation70_spill] sm:$0xff] %v6302_v29  ;;  %11196 = vst [vmem:[#allocation43_spill] sm:$0xff] %v6305_v23  ;;  %5155 = vperm.xlu1 %4908, %v11197_v7   ;;  %v575_v7 = vunpack.c.l.bf16 %v530_v28  ;;  %v6341_v53 = vsel %vm1479_vm0, %v11208_v6, %v11207_v37  ;;  %v452_v23 = vunpack.c.l.bf16 %v407_v48  ;;  %v11209_v29 = vld [vmem:[#allocation2_spill] sm:$0xff]  ;;  %v11214_v6 = vld [vmem:[#allocation5_spill] sm:$0xff]  ;;  %v458_v48 = vunpack.c.l.bf16 %v413_v17 }
  0x7d   : > { %5150 = vperm.xlu0 %4897, %v5935_v5   ;;  %11205 = vst [vmem:[#allocation47_spill] sm:$0xff] %v6328_v21  ;;  %v6336_v5 = vsel %vm1479_vm0, %v11199_v34, %v1617_v0  ;;  %v6348_v59 = vsel %vm1479_vm0, %v11210_v61, %v11209_v29  ;;  %v410_v2 = vld [vmem:[%s5612_s29 + $0x20] sm:$0x1]  ;;  %11212 = vst [vmem:[#allocation50_spill] sm:$0xff] %v6354_v33  ;;  %v449_v0 = vunpack.c.l.bf16 %v404_v30  ;;  %v11213_v34 = vld [vmem:[#allocation4_spill] sm:$0xff] }
  0x7e   : > { %11206 = vst [vmem:[#allocation48_spill] sm:$0xff] %v6336_v5  ;;  %v1627_v28 = vrot.slane %v575_v7, 1  ;;  %11211 = vst [vmem:[#allocation49_spill] sm:$0xff] %v6348_v59  ;;  %v6359_v42 = vsel %vm1479_vm0, %v11214_v6, %v11213_v34  ;;  %v419_v7 = vld [vmem:[%s5612_s29 + $0x44] sm:$0x1]  ;;  %v2108_v25 = vrot.slane %v452_v23, 1 }
  0x7f   : > { %11215 = vst [vmem:[#allocation77_spill] sm:$0xff] %v6359_v42  ;;  %v11216_v52 = vld [vmem:[#allocation6_spill] sm:$0xff]  ;;  %v11217_v30 = vld [vmem:[#allocation7_spill] sm:$0xff]  ;;  %v2103_v6 = vrot.slane %v449_v0, 1  ;;  %v2118_v5 = vrot.slane %v458_v48, 1 }
  0x80   : > { %5165 = vperm.xlu1 %4908, %v5943_v58   ;;  %v6367_v58 = vsel %vm1479_vm0, %v11207_v37, %v1627_v28  ;;  %v6372_v47 = vsel %vm1479_vm0, %v11217_v30, %v11216_v52  ;;  %v416_v18 = vld [vmem:[%s5612_s29 + $0x38] sm:$0x1]  ;;  %v6379_v61 = vsel %vm1479_vm0, %v11209_v29, %v2108_v25  ;;  %v11219_v37 = vld [vmem:[#allocation8_spill] sm:$0xff]  ;;  %v464_v30 = vunpack.c.l.bf16 %v419_v7  ;;  %v11222_v21 = vld [vmem:[#allocation10_spill] sm:$0xff] }
  0x81   : > { %5160 = vperm.xlu0 %4897, %v5951_v32   ;;  %11218 = vst [vmem:[#allocation51_spill] sm:$0xff] %v6372_v47  ;;  %v455_v32 = vunpack.c.l.bf16 %v410_v2  ;;  %v11220_v28 = vld [vmem:[#allocation9_spill] sm:$0xff]  ;;  %v11223_v33 = vld [vmem:[#allocation11_spill] sm:$0xff]  ;;  %v6397_v2 = vsel %vm1479_vm0, %v11213_v34, %v2103_v6  ;;  %v6401_v48 = vsel %vm1479_vm0, %v11216_v52, %v2118_v5  ;;  %v422_v25 = vld [vmem:[%s5612_s29 + $0x50] sm:$0x1]  ;;  %v461_v29 = vunpack.c.l.bf16 %v416_v18 }
  0x82   : > { %v6384_v23 = vsel %vm1479_vm0, %v11220_v28, %v11219_v37  ;;  %v6389_v13 = vsel %vm1479_vm0, %v11223_v33, %v11222_v21  ;;  %v425_v0 = vld [vmem:[%s5612_s29 + $0x5c] sm:$0x1]  ;;  %11224 = vst [vmem:[#allocation53_spill] sm:$0xff] %v6401_v48  ;;  %v2128_v28 = vrot.slane %v464_v30, 1  ;;  %v431_v17 = vld [vmem:[%s5612_s29 + $0x74] sm:$0x1] }
  0x83   : > { %11221 = vst [vmem:[#allocation52_spill] sm:$0xff] %v6384_v23  ;;  %v2113_v7 = vrot.slane %v455_v32, 1  ;;  %v11225_v5 = vld [vmem:[#allocation12_spill] sm:$0xff]  ;;  %v11226_v52 = vld [vmem:[#allocation13_spill] sm:$0xff]  ;;  %v11227_v32 = vld [vmem:[#allocation14_spill] sm:$0xff]  ;;  %v2123_v30 = vrot.slane %v461_v29, 1  ;;  %v476_v18 = vunpack.c.l.bf16 %v431_v17 }
  0x84   : > { %5175 = vperm.xlu1 %4908, %v5957_v55   ;;  %v6417_v6 = vsel %vm1479_vm0, %v11226_v52, %v11225_v5  ;;  %v11228_v59 = vld [vmem:[#allocation15_spill] sm:$0xff]  ;;  %v11229_v52 = vpack.i.bf16 %v6007_v8, %v5974_v4  ;;  %v11230_v47 = vld [vmem:[#allocation16_spill] sm:$0xff]  ;;  %v11231_v48 = vld [vmem:[#allocation17_spill] sm:$0xff] }
  0x85   : > { %5170 = vperm.xlu0 %4897, %v5966_v9   ;;  %v6412_v34 = vsel %vm1479_vm0, %v11219_v37, %v2113_v7  ;;  %v470_v9 = vunpack.c.l.bf16 %v425_v0  ;;  %v6422_v33 = vsel %vm1479_vm0, %v11228_v59, %v11227_v32  ;;  %v428_v55 = vld [vmem:[%s5612_s29 + $0x68] sm:$0x1]  ;;  %v6429_v37 = vsel %vm1479_vm0, %v11222_v21, %v2128_v28  ;;  %v437_v23 = vld [vmem:[%s5612_s29 + $0x8c] sm:$0x1]  ;;  %v11234_v29 = vld [vmem:[#allocation18_spill] sm:$0xff] }
  0x86   : > { %v467_v7 = vunpack.c.l.bf16 %v422_v25  ;;  %v6439_v42 = vsel %vm1479_vm0, %v11231_v48, %v11230_v47  ;;  %v11233_v21 = vpack.i.bf16 %v6011_v35, %v5979_v10  ;;  %v6447_v4 = vsel %vm1479_vm0, %v11225_v5, %v2123_v30  ;;  %v11235_v25 = vld [vmem:[#allocation19_spill] sm:$0xff]  ;;  %v434_v48 = vld [vmem:[%s5612_s29 + $0x80] sm:$0x1]  ;;  %v11237_v5 = vld [vmem:[#allocation20_spill] sm:$0xff] }
  0x87   : > { %v2138_v59 = vrot.slane %v470_v9, 1  ;;  %11232 = vst [vmem:[#allocation54_spill] sm:$0xff] %v6439_v42  ;;  %v6452_v28 = vsel %vm1479_vm0, %v11235_v25, %v11234_v29  ;;  %v473_v9 = vunpack.c.l.bf16 %v428_v55  ;;  %v2148_v35 = vrot.slane %v476_v18, 1  ;;  %v11238_v30 = vld [vmem:[#allocation21_spill] sm:$0xff]  ;;  %v443_v17 = vld [vmem:[%s5612_s29 + $0xa4] sm:$0x1] }
  0x88   : > { %5185 = vperm.xlu1 %4908, %v11229_v52   ;;  %v2133_v8 = vrot.slane %v467_v7, 1  ;;  %11236 = vst [vmem:[#allocation55_spill] sm:$0xff] %v6452_v28  ;;  %v6464_v7 = vsel %vm1479_vm0, %v11238_v30, %v11237_v5  ;;  %v482_v25 = vunpack.c.l.bf16 %v437_v23  ;;  %v11241_v30 = vld [vmem:[#allocation22_spill] sm:$0xff]  ;;  %v11242_v52 = vld [vmem:[#allocation23_spill] sm:$0xff]  ;;  %v440_v23 = vld [vmem:[%s5612_s29 + $0x98] sm:$0x1]  ;;  %v488_v42 = vunpack.c.l.bf16 %v443_v17 }
  0x89   : > { %5180 = vperm.xlu0 %4897, %v11233_v21   ;;  %v6459_v10 = vsel %vm1479_vm0, %v11227_v32, %v2138_v59  ;;  %11239 = vst [vmem:[#allocation56_spill] sm:$0xff] %v6464_v7  ;;  %v2143_v21 = vrot.slane %v473_v9, 1  ;;  %v11240_v32 = vpack.i.bf16 %v6020_v45, %v5985_v43  ;;  %v6480_v59 = vsel %vm1479_vm0, %v11234_v29, %v2148_v35  ;;  %v587_v9 = vld [vmem:[%s5816_s11 + $0x14] sm:$0x1]  ;;  %v11246_v18 = vld [vmem:[#allocation25_spill] sm:$0xff]  ;;  %v11256_v7 = vld [vmem:[#allocation59_spill] sm:$0xff] }
  0x8a   : > { %v6470_v55 = vsel %vm1479_vm0, %v11230_v47, %v2133_v8  ;;  %v6485_v47 = vsel %vm1479_vm0, %v11242_v52, %v11241_v30  ;;  %v479_v8 = vunpack.c.l.bf16 %v434_v48  ;;  %v11244_v43 = vpack.i.bf16 %v6024_v27, %v5990_v56  ;;  %v11247_v56 = vld [vmem:[#allocation26_spill] sm:$0xff]  ;;  %v11248_v27 = vld [vmem:[#allocation27_spill] sm:$0xff] }
  0x8b   : > { %11243 = vst [vmem:[#allocation2_spill] sm:$0xff] %v6485_v47  ;;  %v6496_v29 = vsel %vm1479_vm0, %v11237_v5, %v2143_v21  ;;  %v2158_v35 = vrot.slane %v482_v25, 1  ;;  %v584_v45 = vld [vmem:[%s5816_s11 + $0x8] sm:$0x1]  ;;  %v485_v21 = vunpack.c.l.bf16 %v440_v23  ;;  %v11251_v25 = vld [vmem:[#allocation28_spill] sm:$0xff]  ;;  %v632_v48 = vunpack.c.l.bf16 %v587_v9 }
  0x8c   : > { %5195 = vperm.xlu1 %4908, %v11240_v32   ;;  %v11245_v32 = vld [vmem:[#allocation24_spill] sm:$0xff]  ;;  %v2153_v0 = vrot.slane %v479_v8, 1  ;;  %v593_v8 = vld [vmem:[%s5816_s11 + $0x2c] sm:$0x1]  ;;  %v11254_v17 = vpack.i.bf16 %v6036_v22, %v5997_v44  ;;  %v2168_v23 = vrot.slane %v488_v42, 1  ;;  %v11258_v9 = vpack.i.bf16 %v6049_v26, %v6003_v16 }
  0x8d   : > { %5190 = vperm.xlu0 %4897, %v11244_v43   ;;  %v6501_v52 = vsel %vm1479_vm0, %v11246_v18, %v11245_v32  ;;  %v6508_v43 = vsel %vm1479_vm0, %v11248_v27, %v11247_v56  ;;  %v6513_v5 = vsel %vm1479_vm0, %v11241_v30, %v2158_v35  ;;  %v11252_v18 = vld [vmem:[#allocation29_spill] sm:$0xff]  ;;  %v2163_v22 = vrot.slane %v485_v21, 1  ;;  %v590_v47 = vld [vmem:[%s5816_s11 + $0x20] sm:$0x1]  ;;  %v11262_v26 = vld [vmem:[#allocation63_spill] sm:$0xff] }
  0x8e   : > { %11249 = vst [vmem:[#allocation3_spill] sm:$0xff] %v6508_v43  ;;  %11250 = vst [vmem:[#allocation4_spill] sm:$0xff] %v6513_v5  ;;  %v6518_v28 = vsel %vm1479_vm0, %v11252_v18, %v11251_v25  ;;  %v6528_v30 = vsel %vm1479_vm0, %v11245_v32, %v2153_v0  ;;  %v11255_v35 = vld [vmem:[#allocation57_spill] sm:$0xff]  ;;  %v629_v27 = vunpack.c.l.bf16 %v584_v45  ;;  %v6543_v42 = vsel %vm1479_vm0, %v11247_v56, %v2168_v23  ;;  %v11259_v0 = vld [vmem:[#allocation60_spill] sm:$0xff] }
  0x8f   : > { %11253 = vst [vmem:[#allocation5_spill] sm:$0xff] %v6518_v28  ;;  %v6533_v18 = vsel %vm1479_vm0, %v11256_v7, %v11255_v35  ;;  %v11260_v7 = vld [vmem:[#allocation62_spill] sm:$0xff]  ;;  %v638_v16 = vunpack.c.l.bf16 %v593_v8  ;;  %v11267_v8 = vpack.i.bf16 %v6066_v19, %v6045_v49  ;;  %v635_v43 = vunpack.c.l.bf16 %v590_v47  ;;  %v11270_v49 = vld [vmem:[#allocation65_spill] sm:$0xff]  ;;  %v11274_v45 = vld [vmem:[#allocation68_spill] sm:$0xff] }
  0x90   : > { %5205 = vperm.xlu1 %4908, %v11254_v17   ;;  %11257 = vst [vmem:[#allocation6_spill] sm:$0xff] %v6533_v18  ;;  %v2192_v17 = vrot.slane %v632_v48, 1  ;;  %v6548_v32 = vsel %vm1479_vm0, %v11260_v7, %v11259_v0  ;;  %v599_v21 = vld [vmem:[%s5816_s11 + $0x44] sm:$0x1]  ;;  %v6560_v48 = vsel %vm1479_vm0, %v11251_v25, %v2163_v22  ;;  %v2187_v23 = vrot.slane %v629_v27, 1 }
  0x91   : > { %5200 = vperm.xlu0 %4897, %v11258_v9   ;;  %11261 = vst [vmem:[#allocation7_spill] sm:$0xff] %v6548_v32  ;;  %v11263_v9 = vld [vmem:[#allocation64_spill] sm:$0xff]  ;;  %11265 = vst [vmem:[#allocation9_spill] sm:$0xff] %v6560_v48  ;;  %v596_v7 = vld [vmem:[%s5816_s11 + $0x38] sm:$0x1]  ;;  %v2202_v44 = vrot.slane %v638_v16, 1 }
  0x92   : > { %v6553_v5 = vsel %vm1479_vm0, %v11263_v9, %v11262_v26  ;;  %v6564_v56 = vsel %vm1479_vm0, %v11255_v35, %v2192_v17  ;;  %v6575_v25 = vld [vmem:[%s5816_s11 + $0x5c] sm:$0x1]  ;;  %v11268_v35 = vpack.i.bf16 %v6078_v46, %v6054_v38  ;;  %v6582_v27 = vsel %vm1479_vm0, %v11259_v0, %v2187_v23  ;;  %v11271_v19 = vld [vmem:[#allocation66_spill] sm:$0xff]  ;;  %v11278_v9 = vld [vmem:[#allocation71_spill] sm:$0xff] }
  0x93   : > { %11264 = vst [vmem:[#allocation8_spill] sm:$0xff] %v6553_v5  ;;  %11266 = vst [vmem:[#allocation10_spill] sm:$0xff] %v6564_v56  ;;  %v6587_v22 = vsel %vm1479_vm0, %v11271_v19, %v11270_v49  ;;  %v644_v17 = vunpack.c.l.bf16 %v599_v21  ;;  %v6598_v38 = vsel %vm1479_vm0, %v11262_v26, %v2202_v44  ;;  %v2197_v46 = vrot.slane %v635_v43, 1  ;;  %v11277_v21 = vld [vmem:[#allocation69_spill] sm:$0xff]  ;;  %v11323_v5 = vld [vmem:[#allocation76_spill] sm:$0xff] }
  0x94   : > { %5215 = vperm.xlu1 %4908, %v11267_v8   ;;  %11269 = vst [vmem:[#allocation11_spill] sm:$0xff] %v6582_v27  ;;  %11272 = vst [vmem:[#allocation12_spill] sm:$0xff] %v6587_v22  ;;  %v11273_v8 = vld [vmem:[#allocation67_spill] sm:$0xff]  ;;  %v641_v0 = vunpack.c.l.bf16 %v596_v7  ;;  %v6605_v18 = vsel %vm1479_vm0, %v11278_v9, %v11277_v21  ;;  %v11280_v44 = vpack.i.bf16 %v6102_v40, %v6083_v20  ;;  %v11391_v48 = vld [vmem:[#allocation45_spill] sm:$0xff] }
  0x95   : > { %5210 = vperm.xlu0 %4897, %v11268_v35   ;;  %v6592_v47 = vsel %vm1479_vm0, %v11274_v45, %v11273_v8  ;;  %11276 = vst [vmem:[#allocation14_spill] sm:$0xff] %v6598_v38  ;;  %v2212_v19 = vrot.slane %v644_v17, 1  ;;  %11279 = vst [vmem:[#allocation15_spill] sm:$0xff] %v6605_v18  ;;  %v650_v45 = vunpack.c.l.bf16 %v6575_v25  ;;  %v6613_v43 = vsel %vm1479_vm0, %v11270_v49, %v2197_v46  ;;  %v11324_v38 = vld [vmem:[#allocation78_spill] sm:$0xff] }
  0x96   : > { %11275 = vst [vmem:[#allocation13_spill] sm:$0xff] %v6592_v47  ;;  %11281 = vst [vmem:[#allocation16_spill] sm:$0xff] %v6613_v43  ;;  %v2207_v26 = vrot.slane %v641_v0, 1  ;;  %v11282_v9 = vpack.i.bf16 %v6127_v54, %v6107_v3  ;;  %v11290_v35 = vpack.i.bf16 %v6157_v39, %v6121_v14 }
  0x97   : > { %v4911_v23 = vpop.permute.xlu1 %4910 }
  0x98   : > { %v4913_v56 = vunpack.i.h.bf16 %v4911_v23  ;;  %v4912_v16 = vunpack.i.l.bf16 %v4911_v23  ;;  %v4900_v32 = vpop.permute.xlu0 %4899  ;;  %5225 = vperm.xlu1 %4908, %v11280_v44   ;;  %v6622_v23 = vsel %vm1479_vm0, %v11273_v8, %v2212_v19 }
  0x99   : > { %v4902_v7 = vunpack.i.h.bf16 %v4900_v32  ;;  %v4901_v17 = vunpack.i.l.bf16 %v4900_v32  ;;  %5220 = vperm.xlu0 %4897, %v11282_v9   ;;  %11283 = vst [vmem:[#allocation17_spill] sm:$0xff] %v6622_v23  ;;  %v11288_v9 = vpack.i.bf16 %v6144_v1, %v6116_v36  ;;  %v11291_v36 = vld [vmem:[#allocation72_spill] sm:$0xff]  ;;  %v11292_v1 = vld [vmem:[#allocation73_spill] sm:$0xff]  ;;  %v11305_v23 = vld [vmem:[#allocation74_spill] sm:$0xff] }
  0x9a   : > { %v6625_v20 = vmul.f32 %v4913_v56, %v6091_v24  ;;  %v6628_v40 = vmul.f32 %v4913_v56, %v6094_v51  ;;  %v6631_v49 = vmul.f32 %v4913_v56, %v6097_v41  ;;  %v6634_v32 = vmul.f32 %v4912_v16, %v6091_v24 }
  0x9b   : > { %v6637_v3 = vmul.f32 %v4912_v16, %v6094_v51  ;;  %v6640_v54 = vmul.f32 %v4912_v16, %v6097_v41  ;;  %v6643_v8 = vmul.f32 %v4902_v7, %v6091_v24  ;;  %v6646_v46 = vmul.f32 %v4901_v17, %v6091_v24  ;;  %v4916_v0 = vpop.permute.xlu1 %4915 }
  0x9c   : > { %11284 = vst [vmem:[#allocation18_spill] sm:$0xff] %v6628_v40  ;;  %11285 = vst [vmem:[#allocation19_spill] sm:$0xff] %v6631_v49  ;;  %v4918_v19 = vunpack.i.h.bf16 %v4916_v0  ;;  %v4917_v44 = vunpack.i.l.bf16 %v4916_v0  ;;  %v4905_v56 = vpop.permute.xlu0 %4904  ;;  %5235 = vperm.xlu1 %4908, %v11288_v9   ;;  %v6655_v16 = vsel %vm1479_vm0, %v11277_v21, %v2207_v26  ;;  %v6665_v9 = vsel %vm1479_vm0, %v11292_v1, %v11291_v36  ;;  %v602_v49 = vld [vmem:[%s5816_s11 + $0x50] sm:$0x1] }
  0x9d   : > { %11286 = vst [vmem:[#allocation20_spill] sm:$0xff] %v6637_v3  ;;  %11287 = vst [vmem:[#allocation21_spill] sm:$0xff] %v6640_v54  ;;  %v4907_v7 = vunpack.i.h.bf16 %v4905_v56  ;;  %v4906_v17 = vunpack.i.l.bf16 %v4905_v56  ;;  %5230 = vperm.xlu0 %4897, %v11290_v35   ;;  %v611_v54 = vld [vmem:[%s5816_s11 + $0x74] sm:$0x1]  ;;  %v647_v47 = vunpack.c.l.bf16 %v602_v49 }
  0x9e   : > { %11289 = vst [vmem:[#allocation22_spill] sm:$0xff] %v6655_v16  ;;  %11293 = vst [vmem:[#allocation23_spill] sm:$0xff] %v6665_v9  ;;  %v6668_v25 = vmul.f32 %v4918_v19, %v6091_v24  ;;  %v6671_v21 = vmul.f32 %v4918_v19, %v6094_v51  ;;  %v6674_v26 = vmul.f32 %v4918_v19, %v6097_v41  ;;  %v2222_v16 = vrot.slane %v650_v45, 1 }
  0x9f   : > { %v6677_v14 = vmul.f32 %v4917_v44, %v6091_v24  ;;  %v6680_v39 = vmul.f32 %v4917_v44, %v6094_v51  ;;  %v6683_v35 = vmul.f32 %v4917_v44, %v6097_v41  ;;  %v6686_v56 = vmul.f32 %v4907_v7, %v6091_v24  ;;  %v4926_v0 = vpop.permute.xlu1 %4925 }
  0xa0   : > { %11294 = vst [vmem:[#allocation24_spill] sm:$0xff] %v6671_v21  ;;  %11295 = vst [vmem:[#allocation25_spill] sm:$0xff] %v6674_v26  ;;  %v6689_v1 = vmul.f32 %v4907_v7, %v6094_v51  ;;  %v6694_v19 = vmul.f32 %v4907_v7, %v6097_v41  ;;  %v6697_v26 = vmul.f32 %v4906_v17, %v6091_v24  ;;  %v4927_v3 = vunpack.i.l.bf16 %v4926_v0  ;;  %v11303_v7 = vld [vmem:[#allocation94_spill] sm:$0xff] }
  0xa1   : > { %11296 = vst [vmem:[#allocation26_spill] sm:$0xff] %v6680_v39  ;;  %11297 = vst [vmem:[#allocation27_spill] sm:$0xff] %v6683_v35  ;;  %v6700_v39 = vmul.f32 %v4906_v17, %v6094_v51  ;;  %v6703_v44 = vmul.f32 %v4906_v17, %v6097_v41  ;;  %v4921_v35 = vpop.permute.xlu0 %4920  ;;  %v11302_v21 = vpack.i.bf16 %v6165_v15, %v6132_v11 }
  0xa2   : > { %11298 = vst [vmem:[#allocation28_spill] sm:$0xff] %v6689_v1  ;;  %11299 = vst [vmem:[#allocation29_spill] sm:$0xff] %v6694_v19  ;;  %v4928_v1 = vunpack.i.h.bf16 %v4926_v0  ;;  %v4923_v40 = vunpack.i.h.bf16 %v4921_v35  ;;  %v4922_v18 = vunpack.i.l.bf16 %v4921_v35  ;;  %v11304_v19 = vpack.i.bf16 %v6176_v63, %v11303_v7  ;;  %v11313_v35 = vld [vmem:[#allocation61_spill] sm:$0xff] }
  0xa3   : > { %11300 = vst [vmem:[#allocation57_spill] sm:$0xff] %v6700_v39  ;;  %11301 = vst [vmem:[#allocation59_spill] sm:$0xff] %v6703_v44  ;;  %5245 = vperm.xlu1 %4908, %v11302_v21   ;;  %v11306_v39 = vld [vmem:[#allocation75_spill] sm:$0xff]  ;;  %v656_v44 = vunpack.c.l.bf16 %v611_v54  ;;  %v6726_v63 = vmul.f32 %v4927_v3, %v6091_v24  ;;  %v4936_v45 = vpop.permute.xlu1 %4935  ;;  %v6729_v49 = vmul.f32 %v4927_v3, %v6094_v51 }
  0xa4   : > { %5240 = vperm.xlu0 %4897, %v11304_v19   ;;  %v6714_v17 = vsel %vm1479_vm0, %v11306_v39, %v11305_v23  ;;  %v6717_v22 = vmul.f32 %v4928_v1, %v6091_v24  ;;  %v6720_v11 = vmul.f32 %v4928_v1, %v6094_v51  ;;  %v6723_v15 = vmul.f32 %v4928_v1, %v6097_v41  ;;  %v11314_v1 = vld [vmem:[#allocation30_spill] sm:$0xff] }
  0xa5   : > { %11307 = vst [vmem:[#allocation60_spill] sm:$0xff] %v6714_v17  ;;  %11310 = vst [vmem:[#allocation64_spill] sm:$0xff] %v6729_v49  ;;  %v6732_v0 = vmul.f32 %v4927_v3, %v6097_v41  ;;  %v6735_v54 = vmul.f32 %v4923_v40, %v6091_v24  ;;  %v6738_v21 = vmul.f32 %v4923_v40, %v6094_v51  ;;  %v4931_v39 = vpop.permute.xlu0 %4930  ;;  %v11319_v49 = vld [vmem:[#allocation32_spill] sm:$0xff]  ;;  %v4938_v17 = vunpack.i.h.bf16 %v4936_v45 }
  0xa6   : > { %11308 = vst [vmem:[#allocation62_spill] sm:$0xff] %v6720_v11  ;;  %11309 = vst [vmem:[#allocation63_spill] sm:$0xff] %v6723_v15  ;;  %v11315_v19 = vpack.i.bf16 %v11313_v35, %v11314_v1  ;;  %v6744_v7 = vmul.f32 %v4923_v40, %v6097_v41  ;;  %v6747_v15 = vmul.f32 %v4922_v18, %v6091_v24  ;;  %v11320_v11 = vld [vmem:[#allocation58_spill] sm:$0xff]  ;;  %v4937_v43 = vunpack.i.l.bf16 %v4936_v45 }
  0xa7   : > { %11311 = vst [vmem:[#allocation65_spill] sm:$0xff] %v6732_v0  ;;  %11312 = vst [vmem:[#allocation66_spill] sm:$0xff] %v6738_v21  ;;  %v6750_v3 = vmul.f32 %v4922_v18, %v6094_v51  ;;  %v6753_v0 = vmul.f32 %v4922_v18, %v6097_v41  ;;  %v11321_v21 = vpack.i.bf16 %v11319_v49, %v11320_v11  ;;  %v4933_v35 = vunpack.i.h.bf16 %v4931_v39 }
  0xa8   : > { %5255 = vperm.xlu1 %4908, %v11315_v19   ;;  %11316 = vst [vmem:[#allocation67_spill] sm:$0xff] %v6744_v7  ;;  %v4932_v1 = vunpack.i.l.bf16 %v4931_v39  ;;  %v4946_v19 = vpop.permute.xlu1 %4945  ;;  %v6760_v40 = vsel %vm1479_vm0, %v11291_v36, %v2222_v16  ;;  %v2217_v7 = vrot.slane %v647_v47, 1  ;;  %v6767_v18 = vrot.slane %v656_v44, 1  ;;  %v11329_v36 = vld [vmem:[#allocation33_spill] sm:$0xff] }
  0xa9   : > { %11317 = vst [vmem:[#allocation68_spill] sm:$0xff] %v6750_v3  ;;  %11318 = vst [vmem:[#allocation69_spill] sm:$0xff] %v6753_v0  ;;  %5250 = vperm.xlu0 %4897, %v11321_v21   ;;  %v6765_v3 = vsel %vm1479_vm0, %v11324_v38, %v11323_v5  ;;  %v6770_v11 = vmul.f32 %v4938_v17, %v6091_v24  ;;  %v6773_v45 = vmul.f32 %v4938_v17, %v6094_v51  ;;  %v4941_v47 = vpop.permute.xlu0 %4940  ;;  %v11330_v21 = vld [vmem:[#allocation31_spill] sm:$0xff] }
  0xaa   : > { %11322 = vst [vmem:[#allocation71_spill] sm:$0xff] %v6760_v40  ;;  %11325 = vst [vmem:[#allocation72_spill] sm:$0xff] %v6765_v3  ;;  %v6776_v49 = vmul.f32 %v4938_v17, %v6097_v41  ;;  %v6779_v16 = vmul.f32 %v4937_v43, %v6091_v24  ;;  %v11331_v39 = vpack.i.bf16 %v11329_v36, %v11330_v21 }
  0xab   : > { %11326 = vst [vmem:[#allocation73_spill] sm:$0xff] %v6767_v18  ;;  %11327 = vst [vmem:[#allocation94_spill] sm:$0xff] %v6773_v45  ;;  %v6785_v38 = vmul.f32 %v4937_v43, %v6094_v51  ;;  %v6788_v44 = vmul.f32 %v4937_v43, %v6097_v41  ;;  %v6791_v0 = vmul.f32 %v4933_v35, %v6091_v24 }
  0xac   : > { %11328 = vst [vmem:[#allocation74_spill] sm:$0xff] %v6776_v49  ;;  %5265 = vperm.xlu1 %4908, %v11331_v39   ;;  %v6794_v17 = vmul.f32 %v4933_v35, %v6094_v51  ;;  %v11335_v49 = vpack.i.bf16 %v6227_v57, %v6202_v31  ;;  %v6800_v45 = vmul.f32 %v4933_v35, %v6097_v41  ;;  %v4948_v39 = vunpack.i.h.bf16 %v4946_v19  ;;  %v4956_v3 = vpop.permute.xlu1 %4955 }
  0xad   : > { %11332 = vst [vmem:[#allocation75_spill] sm:$0xff] %v6785_v38  ;;  %11333 = vst [vmem:[#allocation61_spill] sm:$0xff] %v6788_v44  ;;  %v6803_v36 = vmul.f32 %v4932_v1, %v6091_v24  ;;  %v6806_v21 = vmul.f32 %v4932_v1, %v6094_v51  ;;  %v6809_v43 = vmul.f32 %v4932_v1, %v6097_v41  ;;  %v4947_v44 = vunpack.i.l.bf16 %v4946_v19  ;;  %v4951_v57 = vpop.permute.xlu0 %4950 }
  0xae   : > { %11334 = vst [vmem:[#allocation30_spill] sm:$0xff] %v6794_v17  ;;  %5260 = vperm.xlu0 %4897, %v11335_v49   ;;  %11336 = vst [vmem:[#allocation32_spill] sm:$0xff] %v6800_v45  ;;  %v4943_v38 = vunpack.i.h.bf16 %v4941_v47  ;;  %v4942_v17 = vunpack.i.l.bf16 %v4941_v47  ;;  %v4958_v5 = vunpack.i.h.bf16 %v4956_v3  ;;  %v4957_v31 = vunpack.i.l.bf16 %v4956_v3 }
  0xaf   : > { %11337 = vst [vmem:[#allocation58_spill] sm:$0xff] %v6806_v21  ;;  %11338 = vst [vmem:[#allocation78_spill] sm:$0xff] %v6809_v43  ;;  %v11339_v35 = vpack.i.bf16 %v6240_v62, %v6210_v60  ;;  %v6818_v45 = vsel %vm1479_vm0, %v11305_v23, %v2217_v7  ;;  %v6821_v1 = vmul.f32 %v4948_v39, %v6091_v24  ;;  %v11343_v60 = vld [vmem:[#allocation34_spill] sm:$0xff]  ;;  %v4952_v21 = vunpack.i.l.bf16 %v4951_v57 }
  0xb0   : > { %11340 = vst [vmem:[#allocation33_spill] sm:$0xff] %v6818_v45  ;;  %v6824_v19 = vmul.f32 %v4948_v39, %v6094_v51  ;;  %v6827_v3 = vmul.f32 %v4948_v39, %v6097_v41  ;;  %v6830_v47 = vmul.f32 %v4947_v44, %v6091_v24  ;;  %v11344_v62 = vpack.i.bf16 %v6253_v50, %v11343_v60 }
  0xb1   : > { %5275 = vperm.xlu1 %4908, %v11339_v35   ;;  %v6836_v35 = vmul.f32 %v4947_v44, %v6094_v51  ;;  %v6839_v23 = vmul.f32 %v4947_v44, %v6097_v41  ;;  %v6842_v7 = vmul.f32 %v4943_v38, %v6091_v24  ;;  %v6845_v49 = vmul.f32 %v4943_v38, %v6094_v51  ;;  %v4966_v44 = vpop.permute.xlu1 %4965 }
  0xb2   : > { %11341 = vst [vmem:[#allocation31_spill] sm:$0xff] %v6824_v19  ;;  %11342 = vst [vmem:[#allocation95_spill] sm:$0xff] %v6827_v3  ;;  %5270 = vperm.xlu0 %4897, %v11344_v62   ;;  %v6848_v39 = vmul.f32 %v4943_v38, %v6097_v41  ;;  %v6851_v43 = vmul.f32 %v4942_v17, %v6091_v24  ;;  %v6854_v50 = vmul.f32 %v4942_v17, %v6094_v51  ;;  %v11354_v19 = vld [vmem:[#allocation35_spill] sm:$0xff] }
  0xb3   : > { %11345 = vst [vmem:[#allocation34_spill] sm:$0xff] %v6836_v35  ;;  %11346 = vst [vmem:[#allocation96_spill] sm:$0xff] %v6839_v23  ;;  %v6857_v60 = vmul.f32 %v4942_v17, %v6097_v41  ;;  %v6860_v62 = vmul.f32 %v4958_v5, %v6091_v24  ;;  %v6863_v3 = vmul.f32 %v4958_v5, %v6094_v51  ;;  %v11353_v35 = vld [vmem:[#allocation37_spill] sm:$0xff]  ;;  %v4967_v18 = vunpack.i.l.bf16 %v4966_v44 }
  0xb4   : > { %11347 = vst [vmem:[#allocation97_spill] sm:$0xff] %v6845_v49  ;;  %11348 = vst [vmem:[#allocation98_spill] sm:$0xff] %v6848_v39  ;;  %v6866_v23 = vmul.f32 %v4958_v5, %v6097_v41  ;;  %v6869_v38 = vmul.f32 %v4957_v31, %v6091_v24  ;;  %v4961_v39 = vpop.permute.xlu0 %4960  ;;  %v6875_v17 = vmul.f32 %v4957_v31, %v6094_v51  ;;  %v4953_v49 = vunpack.i.h.bf16 %v4951_v57 }
  0xb5   : > { %11349 = vst [vmem:[#allocation99_spill] sm:$0xff] %v6854_v50  ;;  %11350 = vst [vmem:[#allocation100_spill] sm:$0xff] %v6857_v60  ;;  %v11355_v50 = vpack.i.bf16 %v11353_v35, %v11354_v19  ;;  %v6878_v60 = vmul.f32 %v4957_v31, %v6097_v41  ;;  %v4963_v45 = vunpack.i.h.bf16 %v4961_v39  ;;  %v4962_v9 = vunpack.i.l.bf16 %v4961_v39  ;;  %v4976_v57 = vpop.permute.xlu1 %4975 }
  0xb6   : > { %11351 = vst [vmem:[#allocation101_spill] sm:$0xff] %v6863_v3  ;;  %11352 = vst [vmem:[#allocation102_spill] sm:$0xff] %v6866_v23  ;;  %v11358_v3 = vld [vmem:[#allocation36_spill] sm:$0xff]  ;;  %v4968_v23 = vunpack.i.h.bf16 %v4966_v44  ;;  %v6884_v40 = vmul.f32 %v4953_v49, %v6091_v24  ;;  %v6887_v19 = vmul.f32 %v4953_v49, %v6094_v51  ;;  %v6890_v35 = vmul.f32 %v4953_v49, %v6097_v41  ;;  %v11367_v49 = vld [vmem:[#allocation39_spill] sm:$0xff] }
  0xb7   : > { %5285 = vperm.xlu1 %4908, %v11355_v50   ;;  %11356 = vst [vmem:[#allocation37_spill] sm:$0xff] %v6875_v17  ;;  %11357 = vst [vmem:[#allocation35_spill] sm:$0xff] %v6878_v60  ;;  %v11359_v5 = vpack.i.bf16 %v6276_v12, %v11358_v3  ;;  %v6893_v31 = vmul.f32 %v4952_v21, %v6091_v24  ;;  %v6896_v12 = vmul.f32 %v4952_v21, %v6094_v51 }
  0xb8   : > { %11360 = vst [vmem:[#allocation36_spill] sm:$0xff] %v6887_v19  ;;  %11361 = vst [vmem:[#allocation103_spill] sm:$0xff] %v6890_v35  ;;  %v6899_v3 = vmul.f32 %v4952_v21, %v6097_v41  ;;  %v6902_v39 = vmul.f32 %v4968_v23, %v6091_v24  ;;  %v6905_v50 = vmul.f32 %v4968_v23, %v6094_v51  ;;  %v4971_v44 = vpop.permute.xlu0 %4970 }
  0xb9   : > { %5280 = vperm.xlu0 %4897, %v11359_v5   ;;  %11362 = vst [vmem:[#allocation104_spill] sm:$0xff] %v6896_v12  ;;  %v11366_v5 = vld [vmem:[#allocation41_spill] sm:$0xff]  ;;  %v6911_v60 = vmul.f32 %v4968_v23, %v6097_v41  ;;  %v6914_v17 = vmul.f32 %v4967_v18, %v6091_v24  ;;  %v6917_v21 = vmul.f32 %v4967_v18, %v6094_v51  ;;  %v11374_v12 = vld [vmem:[#allocation40_spill] sm:$0xff] }
  0xba   : > { %11363 = vst [vmem:[#allocation105_spill] sm:$0xff] %v6899_v3  ;;  %11364 = vst [vmem:[#allocation106_spill] sm:$0xff] %v6902_v39  ;;  %v11368_v35 = vpack.i.bf16 %v11366_v5, %v11367_v49  ;;  %v6920_v3 = vmul.f32 %v4967_v18, %v6097_v41  ;;  %v11373_v39 = vld [vmem:[#allocation44_spill] sm:$0xff]  ;;  %v6926_v19 = vmul.f32 %v4963_v45, %v6091_v24 }
  0xbb   : > { %11365 = vst [vmem:[#allocation107_spill] sm:$0xff] %v6905_v50  ;;  %11369 = vst [vmem:[#allocation41_spill] sm:$0xff] %v6911_v60  ;;  %v11375_v50 = vpack.i.bf16 %v11373_v39, %v11374_v12  ;;  %v6932_v23 = vmul.f32 %v4963_v45, %v6097_v41  ;;  %v6935_v5 = vmul.f32 %v4962_v9, %v6091_v24  ;;  %v6943_v12 = vunpack.i.h.bf16 %v4976_v57 }
  0xbc   : > { %5295 = vperm.xlu1 %4908, %v11368_v35   ;;  %11370 = vst [vmem:[#allocation39_spill] sm:$0xff] %v6914_v17  ;;  %11371 = vst [vmem:[#allocation108_spill] sm:$0xff] %v6917_v21  ;;  %v6929_v35 = vmul.f32 %v4963_v45, %v6094_v51  ;;  %v6938_v49 = vmul.f32 %v4962_v9, %v6094_v51  ;;  %v6941_v18 = vmul.f32 %v4962_v9, %v6097_v41  ;;  %v11384_v21 = vld [vmem:[#allocation46_spill] sm:$0xff] }
  0xbd   : > { %11372 = vst [vmem:[#allocation109_spill] sm:$0xff] %v6920_v3  ;;  %5290 = vperm.xlu0 %4897, %v11375_v50   ;;  %11377 = vst [vmem:[#allocation40_spill] sm:$0xff] %v6932_v23  ;;  %v6945_v39 = vunpack.i.l.bf16 %v4976_v57  ;;  %v4986_v50 = vpop.permute.xlu1 %4985  ;;  %v4973_v17 = vunpack.i.h.bf16 %v4971_v44  ;;  %v4972_v3 = vunpack.i.l.bf16 %v4971_v44  ;;  %v4981_v23 = vpop.permute.xlu0 %4980  ;;  %v11390_v44 = vld [vmem:[#allocation48_spill] sm:$0xff] }
  0xbe   : > { %11376 = vst [vmem:[#allocation44_spill] sm:$0xff] %v6929_v35  ;;  %11378 = vst [vmem:[#allocation110_spill] sm:$0xff] %v6938_v49  ;;  %v6947_v60 = vunpack.i.h.bf16 %v4986_v50  ;;  %v6949_v45 = vunpack.i.l.bf16 %v4986_v50  ;;  %v11385_v35 = vld [vmem:[#allocation42_spill] sm:$0xff]  ;;  %v6958_v57 = vunpack.i.h.bf16 %v4981_v23  ;;  %v6960_v28 = vunpack.i.l.bf16 %v4981_v23 }
  0xbf   : > { %11379 = vst [vmem:[#allocation111_spill] sm:$0xff] %v6941_v18  ;;  %11380 = vst [vmem:[#allocation112_spill] sm:$0xff] %v6943_v12  ;;  %v11386_v27 = vpack.i.bf16 %v11384_v21, %v11385_v35  ;;  %v11387_v49 = vld [vmem:[#allocation38_spill] sm:$0xff]  ;;  %v11392_v41 = vpack.i.bf16 %v11390_v44, %v11391_v48  ;;  %v6966_v50 = vmul.f32 %v4973_v17, %v6091_v24 }
  0xc0   : > { %11381 = vst [vmem:[#allocation113_spill] sm:$0xff] %v6945_v39  ;;  %11382 = vst [vmem:[#allocation114_spill] sm:$0xff] %v6947_v60  ;;  %v1865_v9 = vmul.f32 %v6943_v12, %v11387_v49  ;;  %v1864_v18 = vmul.f32 %v6945_v39, %v11387_v49  ;;  %v1863_v21 = vmul.f32 %v4973_v17, %v11387_v49 }
  0xc1   : > { %11383 = vst [vmem:[#allocation115_spill] sm:$0xff] %v6949_v45  ;;  %5305 = vperm.xlu1 %4908, %v11386_v27   ;;  %11388 = vst [vmem:[#allocation46_spill] sm:$0xff] %v6958_v57  ;;  %5300 = vperm.xlu0 %4897, %v11392_v41   ;;  %v6970_v27 = vmul.f32 %v4972_v3, %v6091_v24  ;;  %v1862_v35 = vmul.f32 %v4972_v3, %v11387_v49  ;;  %v11396_v41 = vld [vmem:[#allocation70_spill] sm:$0xff]  ;;  %v4996_v39 = vpop.permute.xlu1 %4995  ;;  %v11398_v3 = vld [vmem:[#allocation43_spill] sm:$0xff] }
  0xc2   : > { %11389 = vst [vmem:[#allocation42_spill] sm:$0xff] %v6960_v28  ;;  %v6974_v12 = vadd.f32 %v1864_v18, %v6697_v26  ;;  %v6977_v23 = vadd.f32 %v1865_v9, %v6686_v56  ;;  %v1869_v48 = vmul.f32 %v6947_v60, %v11387_v49  ;;  %v6983_v44 = vmul.f32 %v6947_v60, %v11396_v41  ;;  %v4991_v18 = vpop.permute.xlu0 %4990  ;;  %v11400_v9 = vld [vmem:[#allocation50_spill] sm:$0xff] }
  0xc3   : > { %11393 = vst [vmem:[#allocation48_spill] sm:$0xff] %v6970_v27  ;;  %v6986_v17 = vadd.f32 %v1862_v35, %v6646_v46  ;;  %v6989_v27 = vadd.f32 %v1863_v21, %v6643_v8  ;;  %v6993_v26 = vmul.f32 %v6947_v60, %v11398_v3  ;;  %v1868_v56 = vmul.f32 %v6949_v45, %v11387_v49 }
  0xc4   : > { %11394 = vst [vmem:[#allocation45_spill] sm:$0xff] %v6974_v12  ;;  %11395 = vst [vmem:[#allocation116_spill] sm:$0xff] %v6977_v23  ;;  %v11401_v23 = vld [vmem:[#allocation47_spill] sm:$0xff]  ;;  %v7005_v46 = vmul.f32 %v6949_v45, %v11396_v41  ;;  %v7009_v8 = vmul.f32 %v6949_v45, %v11398_v3  ;;  %v1867_v21 = vmul.f32 %v6958_v57, %v11387_v49 }
  0xc5   : > { %11397 = vst [vmem:[#allocation117_spill] sm:$0xff] %v6983_v44  ;;  %11399 = vst [vmem:[#allocation43_spill] sm:$0xff] %v6993_v26  ;;  %v11402_v12 = vpack.i.bf16 %v11400_v9, %v11401_v23  ;;  %v7001_v44 = vadd.f32 %v1869_v48, %v6668_v25  ;;  %v11405_v35 = vpack.i.bf16 %v6367_v58, %v6341_v53  ;;  %v7045_v26 = vunpack.i.l.bf16 %v4996_v39 }
  0xc6   : > { %11403 = vst [vmem:[#allocation50_spill] sm:$0xff] %v7005_v46  ;;  %11404 = vst [vmem:[#allocation47_spill] sm:$0xff] %v7009_v8  ;;  %v7021_v25 = vmul.f32 %v6958_v57, %v11396_v41  ;;  %v7025_v23 = vmul.f32 %v6958_v57, %v11398_v3  ;;  %v1866_v48 = vmul.f32 %v6960_v28, %v11387_v49  ;;  %v7047_v8 = vunpack.i.h.bf16 %v4991_v18  ;;  %v11529_v46 = vld [vmem:[#allocation8_spill] sm:$0xff] }
  0xc7   : > { %5315 = vperm.xlu1 %4908, %v11402_v12   ;;  %5310 = vperm.xlu0 %4897, %v11405_v35   ;;  %v7017_v12 = vadd.f32 %v1868_v56, %v6677_v14  ;;  %v7030_v9 = vadd.f32 %v1867_v21, %v6625_v20  ;;  %v7034_v53 = vmul.f32 %v6960_v28, %v11396_v41  ;;  %v7040_v14 = vunpack.i.h.bf16 %v4996_v39  ;;  %v5006_v56 = vpop.permute.xlu1 %5005  ;;  %v5001_v21 = vpop.permute.xlu0 %5000 }
  0xc8   : > { %11406 = vst [vmem:[#allocation118_spill] sm:$0xff] %v7021_v25  ;;  %11407 = vst [vmem:[#allocation119_spill] sm:$0xff] %v7025_v23  ;;  %v7038_v58 = vmul.f32 %v6960_v28, %v11398_v3  ;;  %v7043_v35 = vadd.f32 %v1866_v48, %v6634_v32  ;;  %v7049_v20 = vunpack.i.l.bf16 %v4991_v18  ;;  %v11414_v23 = vld [vmem:[#allocation49_spill] sm:$0xff]  ;;  %v7064_v39 = vunpack.i.h.bf16 %v5006_v56 }
  0xc9   : > { %11408 = vst [vmem:[#allocation120_spill] sm:$0xff] %v7034_v53  ;;  %11410 = vst [vmem:[#allocation122_spill] sm:$0xff] %v7040_v14  ;;  %v11415_v25 = vpack.i.bf16 %v6379_v61, %v11414_v23  ;;  %v7058_v53 = vmul.f32 %v7040_v14, %v11396_v41  ;;  %v7062_v32 = vmul.f32 %v7040_v14, %v11398_v3  ;;  %v11419_v18 = vld [vmem:[#allocation77_spill] sm:$0xff] }
  0xca   : > { %11409 = vst [vmem:[#allocation121_spill] sm:$0xff] %v7038_v58  ;;  %11411 = vst [vmem:[#allocation123_spill] sm:$0xff] %v7045_v26  ;;  %v1873_v58 = vmul.f32 %v7040_v14, %v11387_v49  ;;  %v11420_v48 = vpack.i.bf16 %v6397_v2, %v11419_v18  ;;  %v1872_v61 = vmul.f32 %v7045_v26, %v11387_v49 }
  0xcb   : > { %11412 = vst [vmem:[#allocation124_spill] sm:$0xff] %v7047_v8  ;;  %11413 = vst [vmem:[#allocation125_spill] sm:$0xff] %v7049_v20  ;;  %5325 = vperm.xlu1 %4908, %v11415_v25   ;;  %v7073_v25 = vmul.f32 %v7045_v26, %v11396_v41  ;;  %v7077_v23 = vmul.f32 %v7045_v26, %v11398_v3  ;;  %v7086_v2 = vmul.f32 %v7047_v8, %v11396_v41  ;;  %v5016_v57 = vpop.permute.xlu1 %5015 }
  0xcc   : > { %11416 = vst [vmem:[#allocation49_spill] sm:$0xff] %v7058_v53  ;;  %11417 = vst [vmem:[#allocation126_spill] sm:$0xff] %v7062_v32  ;;  %5320 = vperm.xlu0 %4897, %v11420_v48   ;;  %v1871_v32 = vmul.f32 %v7047_v8, %v11387_v49  ;;  %v7082_v14 = vadd.f32 %v1873_v58, %v6717_v22  ;;  %v7090_v18 = vmul.f32 %v7047_v8, %v11398_v3  ;;  %v11430_v8 = vld [vmem:[#allocation51_spill] sm:$0xff]  ;;  %v11528_v53 = vld [vmem:[#allocation14_spill] sm:$0xff] }
  0xcd   : > { %11418 = vst [vmem:[#allocation127_spill] sm:$0xff] %v7064_v39  ;;  %11421 = vst [vmem:[#allocation77_spill] sm:$0xff] %v7073_v25  ;;  %v1870_v48 = vmul.f32 %v7049_v20, %v11387_v49  ;;  %v7102_v22 = vmul.f32 %v7049_v20, %v11396_v41  ;;  %v7106_v58 = vmul.f32 %v7049_v20, %v11398_v3 }
  0xce   : > { %11422 = vst [vmem:[#allocation128_spill] sm:$0xff] %v7077_v23  ;;  %11423 = vst [vmem:[#allocation129_spill] sm:$0xff] %v7086_v2  ;;  %v7095_v23 = vadd.f32 %v1872_v61, %v6726_v63  ;;  %v7098_v26 = vadd.f32 %v1871_v32, %v6735_v54  ;;  %v5011_v2 = vpop.permute.xlu0 %5010  ;;  %v1877_v63 = vmul.f32 %v7064_v39, %v11387_v49  ;;  %v11435_v61 = vld [vmem:[#allocation52_spill] sm:$0xff] }
  0xcf   : > { %11424 = vst [vmem:[#allocation130_spill] sm:$0xff] %v7090_v18  ;;  %11427 = vst [vmem:[#allocation133_spill] sm:$0xff] %v7102_v22  ;;  %v11429_v18 = vld [vmem:[#allocation53_spill] sm:$0xff]  ;;  %v7112_v60 = vadd.f32 %v1870_v48, %v6747_v15  ;;  %v7118_v54 = vmul.f32 %v7064_v39, %v11396_v41  ;;  %v7122_v32 = vmul.f32 %v7064_v39, %v11398_v3  ;;  %v7131_v15 = vunpack.i.l.bf16 %v5001_v21  ;;  %v5026_v39 = vpop.permute.xlu1 %5025 }
  0xd0   : > { %11425 = vst [vmem:[#allocation131_spill] sm:$0xff] %v7095_v23  ;;  %11426 = vst [vmem:[#allocation132_spill] sm:$0xff] %v7098_v26  ;;  %v11431_v28 = vpack.i.bf16 %v11429_v18, %v11430_v8  ;;  %v7127_v8 = vunpack.i.l.bf16 %v5006_v56  ;;  %v7133_v18 = vunpack.i.h.bf16 %v5016_v57  ;;  %v7136_v48 = vadd.f32 %v1877_v63, %v6770_v11 }
  0xd1   : > { %11428 = vst [vmem:[#allocation134_spill] sm:$0xff] %v7106_v58  ;;  %11432 = vst [vmem:[#allocation53_spill] sm:$0xff] %v7112_v60  ;;  %v11436_v58 = vpack.i.bf16 %v6412_v34, %v11435_v61  ;;  %v7138_v22 = vunpack.i.l.bf16 %v5016_v57  ;;  %v7140_v20 = vunpack.i.h.bf16 %v5011_v2  ;;  %v1874_v61 = vmul.f32 %v7131_v15, %v11387_v49 }
  0xd2   : > { %5335 = vperm.xlu1 %4908, %v11431_v28   ;;  %11433 = vst [vmem:[#allocation51_spill] sm:$0xff] %v7118_v54  ;;  %11434 = vst [vmem:[#allocation135_spill] sm:$0xff] %v7122_v32  ;;  %v7129_v28 = vunpack.i.h.bf16 %v5001_v21  ;;  %v7142_v32 = vunpack.i.l.bf16 %v5011_v2  ;;  %v1876_v34 = vmul.f32 %v7127_v8, %v11387_v49  ;;  %v7148_v56 = vmul.f32 %v7127_v8, %v11396_v41  ;;  %v5021_v57 = vpop.permute.xlu0 %5020 }
  0xd3   : > { %5330 = vperm.xlu0 %4897, %v11436_v58   ;;  %11437 = vst [vmem:[#allocation52_spill] sm:$0xff] %v7127_v8  ;;  %11439 = vst [vmem:[#allocation137_spill] sm:$0xff] %v7131_v15  ;;  %v7152_v21 = vmul.f32 %v7127_v8, %v11398_v3  ;;  %v11447_v2 = vpack.i.bf16 %v6429_v37, %v6389_v13  ;;  %v11451_v8 = vpack.i.bf16 %v6447_v4, %v6417_v6 }
  0xd4   : > { %11438 = vst [vmem:[#allocation136_spill] sm:$0xff] %v7129_v28  ;;  %11440 = vst [vmem:[#allocation138_spill] sm:$0xff] %v7133_v18  ;;  %v1875_v11 = vmul.f32 %v7129_v28, %v11387_v49  ;;  %v7161_v58 = vmul.f32 %v7129_v28, %v11396_v41  ;;  %v7165_v63 = vmul.f32 %v7129_v28, %v11398_v3  ;;  %v11513_v28 = vld [vmem:[#allocation9_spill] sm:$0xff] }
  0xd5   : > { %11441 = vst [vmem:[#allocation139_spill] sm:$0xff] %v7136_v48  ;;  %11442 = vst [vmem:[#allocation140_spill] sm:$0xff] %v7138_v22  ;;  %v7177_v13 = vadd.f32 %v1876_v34, %v6779_v16  ;;  %v7193_v6 = vmul.f32 %v7133_v18, %v11396_v41  ;;  %v7197_v4 = vmul.f32 %v7133_v18, %v11398_v3  ;;  %v5036_v16 = vpop.permute.xlu1 %5035 }
  0xd6   : > { %11443 = vst [vmem:[#allocation141_spill] sm:$0xff] %v7140_v20  ;;  %11444 = vst [vmem:[#allocation142_spill] sm:$0xff] %v7142_v32  ;;  %5345 = vperm.xlu1 %4908, %v11447_v2   ;;  %v7180_v37 = vadd.f32 %v1875_v11, %v6791_v0  ;;  %v7184_v2 = vmul.f32 %v7131_v15, %v11398_v3  ;;  %v1880_v0 = vmul.f32 %v7138_v22, %v11387_v49 }
  0xd7   : > { %11445 = vst [vmem:[#allocation143_spill] sm:$0xff] %v7148_v56  ;;  %11446 = vst [vmem:[#allocation144_spill] sm:$0xff] %v7152_v21  ;;  %v7171_v21 = vmul.f32 %v7131_v15, %v11396_v41  ;;  %5340 = vperm.xlu0 %4897, %v11451_v8   ;;  %v7206_v34 = vmul.f32 %v7138_v22, %v11396_v41  ;;  %v1879_v11 = vmul.f32 %v7140_v20, %v11387_v49  ;;  %v11514_v15 = vld [vmem:[#allocation5_spill] sm:$0xff]  ;;  %v11522_v56 = vld [vmem:[#allocation7_spill] sm:$0xff] }
  0xd8   : > { %11448 = vst [vmem:[#allocation145_spill] sm:$0xff] %v7161_v58  ;;  %11449 = vst [vmem:[#allocation146_spill] sm:$0xff] %v7165_v63  ;;  %v1881_v63 = vmul.f32 %v7133_v18, %v11387_v49  ;;  %v7189_v58 = vadd.f32 %v1874_v61, %v6803_v36  ;;  %v7210_v36 = vmul.f32 %v7138_v22, %v11398_v3  ;;  %v5031_v61 = vpop.permute.xlu0 %5030  ;;  %v11511_v22 = vld [vmem:[#allocation93_spill] sm:$0xff] }
  0xd9   : > { %11450 = vst [vmem:[#allocation147_spill] sm:$0xff] %v7171_v21  ;;  %11452 = vst [vmem:[#allocation148_spill] sm:$0xff] %v7177_v13  ;;  %v11465_v21 = vld [vmem:[#allocation54_spill] sm:$0xff]  ;;  %v11515_v45 = vpack.i.bf16 %v11513_v28, %v11514_v15  ;;  %v11554_v13 = vld [vmem:[#allocation71_spill] sm:$0xff] }
  0xda   : > { %11453 = vst [vmem:[#allocation149_spill] sm:$0xff] %v7180_v37  ;;  %11454 = vst [vmem:[#allocation150_spill] sm:$0xff] %v7184_v2  ;;  %v7202_v8 = vadd.f32 %v1881_v63, %v6821_v1  ;;  %v7218_v2 = vadd.f32 %v1880_v0, %v6830_v47  ;;  %v7222_v1 = vmul.f32 %v7140_v20, %v11396_v41 }
  0xdb   : > { %11455 = vst [vmem:[#allocation151_spill] sm:$0xff] %v7189_v58  ;;  %11456 = vst [vmem:[#allocation152_spill] sm:$0xff] %v7193_v6  ;;  %v7226_v63 = vmul.f32 %v7140_v20, %v11398_v3  ;;  %v11466_v18 = vpack.i.bf16 %v6470_v55, %v11465_v21  ;;  %v7242_v47 = vmul.f32 %v7142_v32, %v11398_v3  ;;  %v7251_v55 = vunpack.i.h.bf16 %v5021_v57 }
  0xdc   : > { %11457 = vst [vmem:[#allocation153_spill] sm:$0xff] %v7197_v4  ;;  %11458 = vst [vmem:[#allocation154_spill] sm:$0xff] %v7202_v8  ;;  %v11461_v4 = vpack.i.bf16 %v6459_v10, %v6422_v33  ;;  %v7234_v33 = vadd.f32 %v1879_v11, %v6842_v7  ;;  %v7238_v10 = vmul.f32 %v7142_v32, %v11396_v41  ;;  %v5046_v7 = vpop.permute.xlu1 %5045  ;;  %v11548_v8 = vld [vmem:[#allocation15_spill] sm:$0xff] }
  0xdd   : > { %11459 = vst [vmem:[#allocation155_spill] sm:$0xff] %v7206_v34  ;;  %11460 = vst [vmem:[#allocation156_spill] sm:$0xff] %v7210_v36  ;;  %v1878_v36 = vmul.f32 %v7142_v32, %v11387_v49  ;;  %5350 = vperm.xlu0 %4897, %v11466_v18   ;;  %v7253_v18 = vunpack.i.l.bf16 %v5021_v57 }
  0xde   : > { %5355 = vperm.xlu1 %4908, %v11461_v4   ;;  %11462 = vst [vmem:[#allocation157_spill] sm:$0xff] %v7218_v2  ;;  %11463 = vst [vmem:[#allocation158_spill] sm:$0xff] %v7222_v1  ;;  %v7244_v4 = vunpack.i.h.bf16 %v5026_v39  ;;  %v11547_v2 = vld [vmem:[#allocation22_spill] sm:$0xff] }
  0xdf   : > { %11464 = vst [vmem:[#allocation159_spill] sm:$0xff] %v7226_v63  ;;  %11467 = vst [vmem:[#allocation54_spill] sm:$0xff] %v7234_v33  ;;  %v7247_v0 = vadd.f32 %v1878_v36, %v6851_v43  ;;  %v7249_v63 = vunpack.i.l.bf16 %v5026_v39  ;;  %v7265_v43 = vunpack.i.h.bf16 %v5036_v16  ;;  %v5041_v39 = vpop.permute.xlu0 %5040  ;;  %v11478_v36 = vld [vmem:[#allocation55_spill] sm:$0xff]  ;;  %v11549_v58 = vpack.i.bf16 %v11547_v2, %v11548_v8 }
  0xe0   : > { %11468 = vst [vmem:[#allocation160_spill] sm:$0xff] %v7238_v10  ;;  %11469 = vst [vmem:[#allocation161_spill] sm:$0xff] %v7242_v47  ;;  %v1885_v21 = vmul.f32 %v7244_v4, %v11387_v49  ;;  %v7259_v11 = vmul.f32 %v7244_v4, %v11396_v41  ;;  %v7263_v47 = vmul.f32 %v7244_v4, %v11398_v3 }
  0xe1   : > { %11470 = vst [vmem:[#allocation162_spill] sm:$0xff] %v7244_v4  ;;  %11471 = vst [vmem:[#allocation163_spill] sm:$0xff] %v7247_v0  ;;  %v11479_v1 = vpack.i.bf16 %v6480_v59, %v11478_v36  ;;  %v1884_v57 = vmul.f32 %v7249_v63, %v11387_v49  ;;  %v7274_v10 = vmul.f32 %v7249_v63, %v11396_v41  ;;  %v11482_v4 = vld [vmem:[#allocation56_spill] sm:$0xff] }
  0xe2   : > { %11472 = vst [vmem:[#allocation164_spill] sm:$0xff] %v7249_v63  ;;  %11473 = vst [vmem:[#allocation165_spill] sm:$0xff] %v7251_v55  ;;  %v7278_v20 = vmul.f32 %v7249_v63, %v11398_v3  ;;  %v11483_v32 = vpack.i.bf16 %v6496_v29, %v11482_v4  ;;  %v7286_v59 = vadd.f32 %v1885_v21, %v6860_v62  ;;  %v5056_v4 = vpop.permute.xlu1 %5055 }
  0xe3   : > { %11474 = vst [vmem:[#allocation166_spill] sm:$0xff] %v7253_v18  ;;  %11475 = vst [vmem:[#allocation167_spill] sm:$0xff] %v7259_v11  ;;  %5365 = vperm.xlu1 %4908, %v11479_v1   ;;  %v7290_v1 = vmul.f32 %v7251_v55, %v11396_v41  ;;  %v7294_v36 = vmul.f32 %v7251_v55, %v11398_v3  ;;  %v7299_v63 = vadd.f32 %v1884_v57, %v6869_v38  ;;  %v11495_v57 = vld [vmem:[#allocation4_spill] sm:$0xff]  ;;  %v11518_v11 = vld [vmem:[#allocation6_spill] sm:$0xff] }
  0xe4   : > { %11476 = vst [vmem:[#allocation168_spill] sm:$0xff] %v7263_v47  ;;  %11477 = vst [vmem:[#allocation169_spill] sm:$0xff] %v7265_v43  ;;  %v1883_v47 = vmul.f32 %v7251_v55, %v11387_v49  ;;  %5360 = vperm.xlu0 %4897, %v11483_v32   ;;  %v7306_v62 = vmul.f32 %v7253_v18, %v11396_v41  ;;  %v7310_v32 = vmul.f32 %v7253_v18, %v11398_v3 }
  0xe5   : > { %11480 = vst [vmem:[#allocation55_spill] sm:$0xff] %v7274_v10  ;;  %11481 = vst [vmem:[#allocation170_spill] sm:$0xff] %v7278_v20  ;;  %v1882_v20 = vmul.f32 %v7253_v18, %v11387_v49  ;;  %v7323_v38 = vunpack.i.l.bf16 %v5036_v16  ;;  %v7330_v55 = vunpack.i.l.bf16 %v5031_v61  ;;  %v11500_v18 = vpack.i.bf16 %v6528_v30, %v6501_v52  ;;  %v11517_v10 = vld [vmem:[#allocation10_spill] sm:$0xff] }
  0xe6   : > { %11484 = vst [vmem:[#allocation56_spill] sm:$0xff] %v7286_v59  ;;  %11485 = vst [vmem:[#allocation171_spill] sm:$0xff] %v7290_v1  ;;  %v7302_v29 = vadd.f32 %v1883_v47, %v6884_v40  ;;  %v7321_v40 = vmul.f32 %v7265_v43, %v11398_v3  ;;  %v5051_v47 = vpop.permute.xlu0 %5050  ;;  %v11496_v1 = vld [vmem:[#allocation2_spill] sm:$0xff]  ;;  %v5058_v28 = vunpack.i.h.bf16 %v5056_v4  ;;  %v11519_v34 = vpack.i.bf16 %v11517_v10, %v11518_v11 }
  0xe7   : > { %11486 = vst [vmem:[#allocation172_spill] sm:$0xff] %v7294_v36  ;;  %11487 = vst [vmem:[#allocation173_spill] sm:$0xff] %v7299_v63  ;;  %v7313_v21 = vadd.f32 %v1882_v20, %v6893_v31  ;;  %v7317_v36 = vmul.f32 %v7265_v43, %v11396_v41  ;;  %v5048_v31 = vunpack.i.h.bf16 %v5046_v7  ;;  %v5047_v20 = vunpack.i.l.bf16 %v5046_v7 }
  0xe8   : > { %11488 = vst [vmem:[#allocation174_spill] sm:$0xff] %v7302_v29  ;;  %11489 = vst [vmem:[#allocation175_spill] sm:$0xff] %v7306_v62  ;;  %v11497_v62 = vpack.i.bf16 %v11495_v57, %v11496_v1  ;;  %5370 = vperm.xlu0 %4897, %v11500_v18   ;;  %v7341_v16 = vmul.f32 %v7323_v38, %v11398_v3  ;;  %v5043_v1 = vunpack.i.h.bf16 %v5041_v39  ;;  %v5066_v18 = vpop.permute.xlu1 %5065 }
  0xe9   : > { %11490 = vst [vmem:[#allocation176_spill] sm:$0xff] %v7310_v32  ;;  %11491 = vst [vmem:[#allocation177_spill] sm:$0xff] %v7313_v21  ;;  %v7328_v32 = vunpack.i.h.bf16 %v5031_v61  ;;  %v1886_v30 = vmul.f32 %v7330_v55, %v11387_v49  ;;  %v7357_v57 = vmul.f32 %v7330_v55, %v11396_v41  ;;  %v7412_v6 = vmul.f32 %v5058_v28, %v6094_v51  ;;  %v11534_v21 = vld [vmem:[#allocation12_spill] sm:$0xff] }
  0xea   : > { %11492 = vst [vmem:[#allocation178_spill] sm:$0xff] %v7317_v36  ;;  %11493 = vst [vmem:[#allocation179_spill] sm:$0xff] %v7321_v40  ;;  %5375 = vperm.xlu1 %4908, %v11497_v62   ;;  %v7337_v40 = vmul.f32 %v7323_v38, %v11396_v41  ;;  %v5042_v62 = vunpack.i.l.bf16 %v5041_v39  ;;  %v7361_v39 = vmul.f32 %v7330_v55, %v11398_v3 }
  0xeb   : > { %11494 = vst [vmem:[#allocation180_spill] sm:$0xff] %v7323_v38  ;;  %11498 = vst [vmem:[#allocation4_spill] sm:$0xff] %v7328_v32  ;;  %v1887_v61 = vmul.f32 %v7328_v32, %v11387_v49  ;;  %v7347_v7 = vmul.f32 %v7328_v32, %v11396_v41  ;;  %v7351_v52 = vmul.f32 %v7328_v32, %v11398_v3  ;;  %v5061_v32 = vpop.permute.xlu0 %5060 }
  0xec   : > { %11499 = vst [vmem:[#allocation2_spill] sm:$0xff] %v7330_v55  ;;  %11501 = vst [vmem:[#allocation181_spill] sm:$0xff] %v7337_v40  ;;  %v7373_v38 = vadd.f32 %v1886_v30, %v6935_v5  ;;  %v7379_v55 = vmul.f32 %v5048_v31, %v11511_v22  ;;  %5380 = vperm.xlu0 %4897, %v11515_v45   ;;  %v7388_v40 = vmul.f32 %v5047_v20, %v6094_v51  ;;  %v5076_v15 = vpop.permute.xlu1 %5075 }
  0xed   : > { %11502 = vst [vmem:[#allocation182_spill] sm:$0xff] %v7341_v16  ;;  %11503 = vst [vmem:[#allocation183_spill] sm:$0xff] %v7347_v7  ;;  %v7364_v16 = vmul.f32 %v5048_v31, %v6091_v24  ;;  %v7367_v7 = vmul.f32 %v5048_v31, %v6094_v51  ;;  %v7394_v5 = vmul.f32 %v5043_v1, %v6091_v24  ;;  %v5057_v45 = vunpack.i.l.bf16 %v5056_v4 }
  0xee   : > { %11504 = vst [vmem:[#allocation184_spill] sm:$0xff] %v7351_v52  ;;  %11505 = vst [vmem:[#allocation185_spill] sm:$0xff] %v7357_v57  ;;  %v11507_v52 = vld [vmem:[#allocation3_spill] sm:$0xff]  ;;  %v7376_v57 = vadd.f32 %v1887_v61, %v6926_v19  ;;  %v7397_v19 = vmul.f32 %v5043_v1, %v6094_v51  ;;  %v7403_v31 = vmul.f32 %v5042_v62, %v6094_v51  ;;  %v5053_v61 = vunpack.i.h.bf16 %v5051_v47 }
  0xef   : > { %11506 = vst [vmem:[#allocation186_spill] sm:$0xff] %v7361_v39  ;;  %v11508_v43 = vpack.i.bf16 %v6543_v42, %v11507_v52  ;;  %11509 = vst [vmem:[#allocation3_spill] sm:$0xff] %v7373_v38  ;;  %v7382_v39 = vmul.f32 %v5047_v20, %v6091_v24  ;;  %v7391_v42 = vmul.f32 %v5047_v20, %v11511_v22  ;;  %v5052_v52 = vunpack.i.l.bf16 %v5051_v47  ;;  %v5071_v36 = vpop.permute.xlu0 %5070  ;;  %v11521_v47 = vld [vmem:[#allocation11_spill] sm:$0xff] }
  0xf0   : > { %11510 = vst [vmem:[#allocation187_spill] sm:$0xff] %v7376_v57  ;;  %11512 = vst [vmem:[#allocation188_spill] sm:$0xff] %v7379_v55  ;;  %v5068_v30 = vunpack.i.h.bf16 %v5066_v18  ;;  %v5067_v20 = vunpack.i.l.bf16 %v5066_v18  ;;  %v7409_v1 = vmul.f32 %v5058_v28, %v6091_v24  ;;  %v7418_v4 = vmul.f32 %v5057_v45, %v6091_v24  ;;  %v11533_v57 = vld [vmem:[#allocation16_spill] sm:$0xff] }
  0xf1   : > { %5385 = vperm.xlu1 %4908, %v11508_v43   ;;  %11516 = vst [vmem:[#allocation9_spill] sm:$0xff] %v7391_v42  ;;  %v7400_v43 = vmul.f32 %v5042_v62, %v6091_v24  ;;  %v7415_v62 = vmul.f32 %v5058_v28, %v11511_v22  ;;  %v11523_v18 = vpack.i.bf16 %v11521_v47, %v11522_v56  ;;  %v5063_v55 = vunpack.i.h.bf16 %v5061_v32 }
  0xf2   : > { %v7424_v54 = vmul.f32 %v5057_v45, %v6094_v51  ;;  %v7430_v10 = vmul.f32 %v5053_v61, %v6091_v24  ;;  %v7433_v11 = vmul.f32 %v5053_v61, %v6094_v51  ;;  %v7436_v28 = vmul.f32 %v5053_v61, %v11511_v22 }
  0xf3   : > { %11520 = vst [vmem:[#allocation5_spill] sm:$0xff] %v7415_v62  ;;  %5390 = vperm.xlu0 %4897, %v11523_v18   ;;  %v7439_v62 = vmul.f32 %v5052_v52, %v6091_v24  ;;  %v7442_v56 = vmul.f32 %v5052_v52, %v6094_v51  ;;  %v7445_v47 = vmul.f32 %v5052_v52, %v11511_v22  ;;  %v5062_v38 = vunpack.i.l.bf16 %v5061_v32 }
  0xf4   : > { %11525 = vst [vmem:[#allocation6_spill] sm:$0xff] %v7436_v28  ;;  %v7448_v18 = vmul.f32 %v5068_v30, %v6091_v24  ;;  %v7454_v25 = vmul.f32 %v5068_v30, %v11511_v22  ;;  %v7457_v61 = vmul.f32 %v5067_v20, %v6091_v24  ;;  %v5081_v28 = vpop.permute.xlu0 %5080  ;;  %v11530_v42 = vpack.i.bf16 %v11528_v53, %v11529_v46 }
  0xf5   : > { %5395 = vperm.xlu1 %4908, %v11519_v34   ;;  %v7427_v34 = vmul.f32 %v5057_v45, %v11511_v22  ;;  %11526 = vst [vmem:[#allocation11_spill] sm:$0xff] %v7445_v47  ;;  %v5086_v45 = vpop.permute.xlu1 %5085  ;;  %v7463_v52 = vmul.f32 %v5067_v20, %v6094_v51  ;;  %v7466_v47 = vmul.f32 %v5067_v20, %v11511_v22  ;;  %v5077_v29 = vunpack.i.l.bf16 %v5076_v15 }
  0xf6   : > { %11527 = vst [vmem:[#allocation7_spill] sm:$0xff] %v7454_v25  ;;  %v5078_v25 = vunpack.i.h.bf16 %v5076_v15  ;;  %v5073_v63 = vunpack.i.h.bf16 %v5071_v36  ;;  %v5072_v59 = vunpack.i.l.bf16 %v5071_v36  ;;  %v7472_v0 = vmul.f32 %v5063_v55, %v6091_v24 }
  0xf7   : > { %11524 = vst [vmem:[#allocation10_spill] sm:$0xff] %v7427_v34  ;;  %v7451_v34 = vmul.f32 %v5068_v30, %v6094_v51  ;;  %11531 = vst [vmem:[#allocation14_spill] sm:$0xff] %v7463_v52  ;;  %v11535_v30 = vpack.i.bf16 %v11533_v57, %v11534_v21  ;;  %v7475_v46 = vmul.f32 %v5063_v55, %v6094_v51  ;;  %v5088_v2 = vunpack.i.h.bf16 %v5086_v45 }
  0xf8   : > { %11532 = vst [vmem:[#allocation8_spill] sm:$0xff] %v7466_v47  ;;  %v7478_v53 = vmul.f32 %v5063_v55, %v11511_v22  ;;  %v7484_v32 = vmul.f32 %v5062_v38, %v6094_v51  ;;  %v7487_v21 = vmul.f32 %v5062_v38, %v11511_v22  ;;  %v7490_v36 = vmul.f32 %v5078_v25, %v6091_v24  ;;  %v5091_v20 = vpop.permute.xlu0 %5090  ;;  %v11542_v55 = vld [vmem:[#allocation13_spill] sm:$0xff] }
  0xf9   : > { %5405 = vperm.xlu1 %4908, %v11530_v42   ;;  %5400 = vperm.xlu0 %4897, %v11535_v30   ;;  %11536 = vst [vmem:[#allocation16_spill] sm:$0xff] %v7475_v46  ;;  %v7481_v42 = vmul.f32 %v5062_v38, %v6091_v24  ;;  %v7493_v57 = vmul.f32 %v5078_v25, %v6094_v51  ;;  %v5096_v15 = vpop.permute.xlu1 %5095  ;;  %v11541_v30 = vld [vmem:[#allocation17_spill] sm:$0xff]  ;;  %v5083_v8 = vunpack.i.h.bf16 %v5081_v28 }
  0xfa   : > { %11537 = vst [vmem:[#allocation12_spill] sm:$0xff] %v7478_v53  ;;  %11538 = vst [vmem:[#allocation189_spill] sm:$0xff] %v7484_v32  ;;  %v11543_v47 = vpack.i.bf16 %v11541_v30, %v11542_v55  ;;  %v7499_v53 = vmul.f32 %v5078_v25, %v11511_v22  ;;  %v7502_v33 = vmul.f32 %v5077_v29, %v6091_v24 }
  0xfb   : > { %11539 = vst [vmem:[#allocation190_spill] sm:$0xff] %v7487_v21  ;;  %11540 = vst [vmem:[#allocation191_spill] sm:$0xff] %v7493_v57  ;;  %v7505_v38 = vmul.f32 %v5077_v29, %v6094_v51  ;;  %v7508_v21 = vmul.f32 %v5077_v29, %v11511_v22  ;;  %v7514_v37 = vmul.f32 %v5073_v63, %v6091_v24 }
  0xfc   : > { %11544 = vst [vmem:[#allocation17_spill] sm:$0xff] %v7499_v53  ;;  %v7520_v25 = vmul.f32 %v5073_v63, %v11511_v22  ;;  %v7523_v30 = vmul.f32 %v5072_v59, %v6091_v24  ;;  %v7526_v55 = vmul.f32 %v5072_v59, %v6094_v51  ;;  %v7529_v29 = vmul.f32 %v5072_v59, %v11511_v22 }
  0xfd   : > { %5415 = vperm.xlu1 %4908, %v11543_v47   ;;  %11545 = vst [vmem:[#allocation13_spill] sm:$0xff] %v7505_v38  ;;  %11546 = vst [vmem:[#allocation192_spill] sm:$0xff] %v7508_v21  ;;  %5410 = vperm.xlu0 %4897, %v11549_v58   ;;  %v7517_v47 = vmul.f32 %v5073_v63, %v6094_v51  ;;  %v5087_v58 = vunpack.i.l.bf16 %v5086_v45  ;;  %v5082_v53 = vunpack.i.l.bf16 %v5081_v28  ;;  %v5098_v21 = vunpack.i.h.bf16 %v5096_v15 }
  0xfe   : > { %11551 = vst [vmem:[#allocation15_spill] sm:$0xff] %v7520_v25  ;;  %11552 = vst [vmem:[#allocation193_spill] sm:$0xff] %v7526_v55  ;;  %v5097_v38 = vunpack.i.l.bf16 %v5096_v15  ;;  %v7535_v63 = vmul.f32 %v5088_v2, %v6091_v24  ;;  %v7538_v25 = vmul.f32 %v5088_v2, %v6094_v51  ;;  %v7541_v55 = vmul.f32 %v5088_v2, %v11511_v22  ;;  %v5106_v15 = vpop.permute.xlu1 %5105 }
  0xff   : > { %11550 = vst [vmem:[#allocation22_spill] sm:$0xff] %v7517_v47  ;;  %11553 = vst [vmem:[#allocation194_spill] sm:$0xff] %v7529_v29  ;;  %v11555_v47 = vld [vmem:[#allocation23_spill] sm:$0xff]  ;;  %v7544_v59 = vmul.f32 %v5087_v58, %v6091_v24  ;;  %v7547_v28 = vmul.f32 %v5087_v58, %v6094_v51  ;;  %v7550_v45 = vmul.f32 %v5087_v58, %v11511_v22  ;;  %v5107_v32 = vunpack.i.l.bf16 %v5106_v15 }
 0x100   : > { %v11556_v57 = vpack.i.bf16 %v11554_v13, %v11555_v47  ;;  %11557 = vst [vmem:[#allocation71_spill] sm:$0xff] %v7538_v25  ;;  %11558 = vst [vmem:[#allocation23_spill] sm:$0xff] %v7541_v55  ;;  %v7553_v13 = vmul.f32 %v5083_v8, %v6091_v24  ;;  %v5101_v47 = vpop.permute.xlu0 %5100  ;;  %v7559_v2 = vmul.f32 %v5083_v8, %v11511_v22  ;;  %v5108_v25 = vunpack.i.h.bf16 %v5106_v15 }
 0x101   : > { %11559 = vst [vmem:[#allocation195_spill] sm:$0xff] %v7547_v28  ;;  %11560 = vst [vmem:[#allocation196_spill] sm:$0xff] %v7550_v45  ;;  %v7562_v55 = vmul.f32 %v5082_v53, %v6091_v24  ;;  %v7565_v29 = vmul.f32 %v5082_v53, %v6094_v51  ;;  %v7568_v58 = vmul.f32 %v5082_v53, %v11511_v22  ;;  %v5093_v53 = vunpack.i.h.bf16 %v5091_v20 }
 0x102   : > { %5425 = vperm.xlu1 %4908, %v11556_v57   ;;  %v7556_v57 = vmul.f32 %v5083_v8, %v6094_v51  ;;  %11562 = vst [vmem:[#allocation198_spill] sm:$0xff] %v7559_v2  ;;  %v7571_v45 = vmul.f32 %v5098_v21, %v6091_v24  ;;  %v7574_v28 = vmul.f32 %v5098_v21, %v6094_v51  ;;  %v5103_v46 = vunpack.i.h.bf16 %v5101_v47 }
 0x103   : > { %11563 = vst [vmem:[#allocation199_spill] sm:$0xff] %v7565_v29  ;;  %11564 = vst [vmem:[#allocation200_spill] sm:$0xff] %v7568_v58  ;;  %v7580_v8 = vmul.f32 %v5097_v38, %v6091_v24  ;;  %v7583_v2 = vmul.f32 %v5097_v38, %v6094_v51  ;;  %v7586_v29 = vmul.f32 %v5097_v38, %v11511_v22  ;;  %v5092_v58 = vunpack.i.l.bf16 %v5091_v20 }
 0x104   : > { %11561 = vst [vmem:[#allocation197_spill] sm:$0xff] %v7556_v57  ;;  %11565 = vst [vmem:[#allocation201_spill] sm:$0xff] %v7574_v28  ;;  %v7577_v57 = vmul.f32 %v5098_v21, %v11511_v22  ;;  %v5102_v48 = vunpack.i.l.bf16 %v5101_v47  ;;  %v7589_v28 = vmul.f32 %v5093_v53, %v6091_v24  ;;  %v7592_v21 = vmul.f32 %v5093_v53, %v6094_v51 }
 0x105   : > { %11567 = vst [vmem:[#allocation203_spill] sm:$0xff] %v7583_v2  ;;  %11568 = vst [vmem:[#allocation204_spill] sm:$0xff] %v7586_v29  ;;  %v7598_v2 = vmul.f32 %v5092_v58, %v6091_v24  ;;  %v7601_v38 = vmul.f32 %v5092_v58, %v6094_v51  ;;  %v7604_v20 = vmul.f32 %v5092_v58, %v11511_v22  ;;  %v5116_v29 = vpop.permute.xlu1 %5115 }
 0x106   : > { %11566 = vst [vmem:[#allocation202_spill] sm:$0xff] %v7577_v57  ;;  %11569 = vst [vmem:[#allocation205_spill] sm:$0xff] %v7592_v21  ;;  %v7595_v57 = vmul.f32 %v5093_v53, %v11511_v22  ;;  %v7607_v15 = vmul.f32 %v5108_v25, %v6091_v24  ;;  %v7610_v47 = vmul.f32 %v5108_v25, %v6094_v51  ;;  %v5111_v21 = vpop.permute.xlu0 %5110  ;;  %v7646_v60 = vunpack.i.l.bf16 %v5116_v29 }
 0x107   : > { %11571 = vst [vmem:[#allocation207_spill] sm:$0xff] %v7601_v38  ;;  %11572 = vst [vmem:[#allocation208_spill] sm:$0xff] %v7604_v20  ;;  %v7613_v53 = vmul.f32 %v5108_v25, %v11511_v22  ;;  %v7619_v52 = vmul.f32 %v5107_v32, %v6094_v51  ;;  %v7622_v58 = vmul.f32 %v5107_v32, %v11511_v22  ;;  %v7644_v38 = vunpack.i.h.bf16 %v5116_v29 }
 0x108   : > { %11570 = vst [vmem:[#allocation206_spill] sm:$0xff] %v7595_v57  ;;  %11573 = vst [vmem:[#allocation209_spill] sm:$0xff] %v7607_v15  ;;  %v7616_v57 = vmul.f32 %v5107_v32, %v6091_v24  ;;  %v7625_v20 = vmul.f32 %v5103_v46, %v6091_v24  ;;  %v7628_v15 = vmul.f32 %v5103_v46, %v6094_v51  ;;  %v11583_v32 = vld [vmem:[#allocation60_spill] sm:$0xff] }
 0x109   : > { %11574 = vst [vmem:[#allocation210_spill] sm:$0xff] %v7610_v47  ;;  %11575 = vst [vmem:[#allocation211_spill] sm:$0xff] %v7613_v53  ;;  %v7631_v47 = vmul.f32 %v5103_v46, %v11511_v22  ;;  %v7634_v25 = vmul.f32 %v5102_v48, %v6091_v24  ;;  %v11584_v53 = vld [vmem:[#allocation33_spill] sm:$0xff]  ;;  %v7650_v46 = vunpack.i.l.bf16 %v5111_v21  ;;  %v11590_v24 = vld [vmem:[#allocation76_spill] sm:$0xff]  ;;  %v7663_v29 = vmul.f32 %v7644_v38, %v11398_v3 }
 0x10a   : > { %11576 = vst [vmem:[#allocation212_spill] sm:$0xff] %v7616_v57  ;;  %11577 = vst [vmem:[#allocation213_spill] sm:$0xff] %v7619_v52  ;;  %v7637_v57 = vmul.f32 %v5102_v48, %v6094_v51  ;;  %v7640_v52 = vmul.f32 %v5102_v48, %v11511_v22  ;;  %v1921_v48 = vmul.f32 %v7644_v38, %v11387_v49  ;;  %v5126_v51 = vpop.permute.xlu1 %5125 }
 0x10b   : > { %11578 = vst [vmem:[#allocation214_spill] sm:$0xff] %v7622_v58  ;;  %11579 = vst [vmem:[#allocation215_spill] sm:$0xff] %v7628_v15  ;;  %v5419_v58 = vpack.i.bf16 %v11584_v53, %v11583_v32  ;;  %v7648_v15 = vunpack.i.h.bf16 %v5111_v21  ;;  %v7659_v53 = vmul.f32 %v7644_v38, %v11396_v41  ;;  %v11593_v32 = vld [vmem:[#allocation72_spill] sm:$0xff]  ;;  %v1920_v22 = vmul.f32 %v7646_v60, %v11387_v49 }
 0x10c   : > { %11580 = vst [vmem:[#allocation216_spill] sm:$0xff] %v7631_v47  ;;  %11581 = vst [vmem:[#allocation217_spill] sm:$0xff] %v7637_v57  ;;  %v11589_v47 = vld [vmem:[#allocation73_spill] sm:$0xff]  ;;  %v7690_v57 = vmul.f32 %v7650_v46, %v11396_v41  ;;  %v7705_v23 = vunpack.i.h.bf16 %v5126_v51 }
 0x10d   : > { %11582 = vst [vmem:[#allocation218_spill] sm:$0xff] %v7640_v52  ;;  %11585 = vst [vmem:[#allocation60_spill] sm:$0xff] %v7644_v38  ;;  %v2233_v26 = vsel %vm1479_vm0, %v11590_v24, %v11589_v47  ;;  %5420 = vperm.xlu0 %4897, %v5419_v58   ;;  %v608_v52 = vld [vmem:[%s5816_s11 + $0x68] sm:$0x1]  ;;  %v7671_v24 = vmul.f32 %v7646_v60, %v11396_v41  ;;  %v7675_v47 = vmul.f32 %v7646_v60, %v11398_v3  ;;  %v5121_v38 = vpop.permute.xlu0 %5120 }
 0x10e   : > { %11586 = vst [vmem:[#allocation33_spill] sm:$0xff] %v7646_v60  ;;  %11587 = vst [vmem:[#allocation219_spill] sm:$0xff] %v7648_v15  ;;  %v5434_v21 = vpack.i.bf16 %v2233_v26, %v11593_v32  ;;  %v1919_v58 = vmul.f32 %v7648_v15, %v11387_v49  ;;  %v7684_v26 = vmul.f32 %v7648_v15, %v11396_v41 }
 0x10f   : > { %11588 = vst [vmem:[#allocation220_spill] sm:$0xff] %v7650_v46  ;;  %11591 = vst [vmem:[#allocation73_spill] sm:$0xff] %v7659_v53  ;;  %v1918_v32 = vmul.f32 %v7650_v46, %v11387_v49  ;;  %v7694_v60 = vadd.f32 %v1920_v22, %v7382_v39  ;;  %v7707_v46 = vunpack.i.l.bf16 %v5126_v51  ;;  %v7711_v39 = vunpack.i.l.bf16 %v5121_v38 }
 0x110   : > { %11592 = vst [vmem:[#allocation76_spill] sm:$0xff] %v7663_v29  ;;  %11594 = vst [vmem:[#allocation72_spill] sm:$0xff] %v7671_v24  ;;  %v7680_v29 = vadd.f32 %v1921_v48, %v7364_v16  ;;  %5435 = vperm.xlu1 %4908, %v5434_v21   ;;  %v7697_v53 = vadd.f32 %v1919_v58, %v7394_v5  ;;  %v653_v16 = vunpack.c.l.bf16 %v608_v52  ;;  %v11598_v48 = vld [vmem:[#allocation79_spill] sm:$0xff]  ;;  %v7709_v21 = vunpack.i.h.bf16 %v5121_v38  ;;  %v11605_v58 = vld [vmem:[#allocation81_spill] sm:$0xff] }
 0x111   : > { %11595 = vst [vmem:[#allocation221_spill] sm:$0xff] %v7675_v47  ;;  %v617_v47 = vld [vmem:[%s5816_s11 + $0x8c] sm:$0x1]  ;;  %v7703_v24 = vadd.f32 %v1918_v32, %v7400_v43  ;;  %11602 = vst [vmem:[#allocation224_spill] sm:$0xff] %v7707_v46  ;;  %v11606_v52 = vld [vmem:[#allocation82_spill] sm:$0xff]  ;;  %v7720_v43 = vmul.f32 %v7705_v23, %v11396_v41  ;;  %v7724_v51 = vmul.f32 %v7705_v23, %v11398_v3 }
 0x112   : > { %11596 = vst [vmem:[#allocation222_spill] sm:$0xff] %v7680_v29  ;;  %11597 = vst [vmem:[#allocation223_spill] sm:$0xff] %v7697_v53  ;;  %v11599_v29 = vld [vmem:[#allocation80_spill] sm:$0xff]  ;;  %v2227_v22 = vrot.slane %v653_v16, 1  ;;  %v662_v5 = vunpack.c.l.bf16 %v617_v47  ;;  %v2241_v53 = vsel %vm1479_vm0, %v11606_v52, %v11605_v58  ;;  %v1924_v38 = vmul.f32 %v7707_v46, %v11387_v49 }
 0x113   : > { %v2226_v15 = vsel %vm1479_vm0, %v11599_v29, %v11598_v48  ;;  %11600 = vst [vmem:[#allocation79_spill] sm:$0xff] %v7703_v24  ;;  %11601 = vst [vmem:[#allocation80_spill] sm:$0xff] %v7705_v23  ;;  %v1925_v29 = vmul.f32 %v7705_v23, %v11387_v49  ;;  %v7732_v32 = vmul.f32 %v7707_v46, %v11396_v41  ;;  %v614_v23 = vld [vmem:[%s5816_s11 + $0x80] sm:$0x1] }
 0x114   : > { %11603 = vst [vmem:[#allocation225_spill] sm:$0xff] %v7709_v21  ;;  %11604 = vst [vmem:[#allocation226_spill] sm:$0xff] %v7711_v39  ;;  %v2228_v47 = vsel %vm1479_vm0, %v11598_v48, %v2227_v22  ;;  %v7736_v16 = vmul.f32 %v7707_v46, %v11398_v3  ;;  %v1923_v52 = vmul.f32 %v7709_v21, %v11387_v49  ;;  %v5136_v22 = vpop.permute.xlu1 %5135 }
 0x115   : > { %11607 = vst [vmem:[#allocation81_spill] sm:$0xff] %v7720_v43  ;;  %11608 = vst [vmem:[#allocation82_spill] sm:$0xff] %v7724_v51  ;;  %v5429_v51 = vpack.i.bf16 %v2228_v47, %v2226_v15  ;;  %v7742_v24 = vadd.f32 %v1924_v38, %v7418_v4  ;;  %v7745_v43 = vadd.f32 %v1925_v29, %v7409_v1  ;;  %v623_v4 = vld [vmem:[%s5816_s11 + $0xa4] sm:$0x1]  ;;  %v2242_v38 = vrot.slane %v662_v5, 1 }
 0x116   : > { %11609 = vst [vmem:[#allocation227_spill] sm:$0xff] %v7732_v32  ;;  %11610 = vst [vmem:[#allocation228_spill] sm:$0xff] %v7736_v16  ;;  %v7749_v48 = vmul.f32 %v7709_v21, %v11396_v41  ;;  %v5131_v32 = vpop.permute.xlu0 %5130  ;;  %v7753_v16 = vmul.f32 %v7709_v21, %v11398_v3  ;;  %v1922_v46 = vmul.f32 %v7711_v39, %v11387_v49  ;;  %v659_v47 = vunpack.c.l.bf16 %v614_v23  ;;  %v11616_v21 = vld [vmem:[#allocation83_spill] sm:$0xff] }
 0x117   : > { %11611 = vst [vmem:[#allocation229_spill] sm:$0xff] %v7742_v24  ;;  %v7758_v15 = vadd.f32 %v1923_v52, %v7430_v10  ;;  %v7762_v1 = vmul.f32 %v7711_v39, %v11396_v41  ;;  %5430 = vperm.xlu0 %4897, %v5429_v51   ;;  %v7767_v29 = vmul.f32 %v7711_v39, %v11398_v3  ;;  %v7775_v10 = vunpack.i.h.bf16 %v5136_v22 }
 0x118   : > { %11612 = vst [vmem:[#allocation230_spill] sm:$0xff] %v7749_v48  ;;  %11613 = vst [vmem:[#allocation231_spill] sm:$0xff] %v7753_v16  ;;  %v11617_v16 = vld [vmem:[#allocation84_spill] sm:$0xff]  ;;  %v7773_v24 = vadd.f32 %v1922_v46, %v7439_v62  ;;  %v7777_v52 = vunpack.i.l.bf16 %v5136_v22  ;;  %v2243_v51 = vsel %vm1479_vm0, %v11605_v58, %v2242_v38  ;;  %v2237_v39 = vrot.slane %v659_v47, 1 }
 0x119   : > { %11614 = vst [vmem:[#allocation232_spill] sm:$0xff] %v7758_v15  ;;  %11615 = vst [vmem:[#allocation233_spill] sm:$0xff] %v7767_v29  ;;  %v2236_v48 = vsel %vm1479_vm0, %v11617_v16, %v11616_v21  ;;  %v7779_v15 = vunpack.i.h.bf16 %v5131_v32  ;;  %v7783_v5 = vunpack.i.l.bf16 %v5131_v32  ;;  %v668_v23 = vunpack.c.l.bf16 %v623_v4 }
 0x11a   : > { %11618 = vst [vmem:[#allocation83_spill] sm:$0xff] %v7775_v10  ;;  %11619 = vst [vmem:[#allocation84_spill] sm:$0xff] %v7777_v52  ;;  %v5444_v29 = vpack.i.bf16 %v2243_v51, %v2241_v53  ;;  %v1929_v16 = vmul.f32 %v7775_v10, %v11387_v49  ;;  %v7789_v62 = vmul.f32 %v7775_v10, %v11396_v41  ;;  %v5146_v51 = vpop.permute.xlu1 %5145 }
 0x11b   : > { %11620 = vst [vmem:[#allocation234_spill] sm:$0xff] %v7779_v15  ;;  %11621 = vst [vmem:[#allocation235_spill] sm:$0xff] %v7783_v5  ;;  %v7793_v46 = vmul.f32 %v7775_v10, %v11398_v3  ;;  %v2238_v58 = vsel %vm1479_vm0, %v11616_v21, %v2237_v39  ;;  %v1928_v32 = vmul.f32 %v7777_v52, %v11387_v49  ;;  %v620_v39 = vld [vmem:[%s5816_s11 + $0x98] sm:$0x1] }
 0x11c   : > { %v7801_v53 = vmul.f32 %v7777_v52, %v11396_v41  ;;  %v7805_v22 = vmul.f32 %v7777_v52, %v11398_v3  ;;  %5445 = vperm.xlu1 %4908, %v5444_v29   ;;  %v5439_v4 = vpack.i.bf16 %v2238_v58, %v2236_v48  ;;  %v7808_v38 = vadd.f32 %v1929_v16, %v7448_v18  ;;  %v5141_v29 = vpop.permute.xlu0 %5140  ;;  %v11628_v58 = vld [vmem:[#allocation85_spill] sm:$0xff] }
 0x11d   : > { %11622 = vst [vmem:[#allocation236_spill] sm:$0xff] %v7793_v46  ;;  %v1927_v47 = vmul.f32 %v7779_v15, %v11387_v49  ;;  %v7814_v21 = vmul.f32 %v7779_v15, %v11396_v41  ;;  %v7818_v46 = vadd.f32 %v1928_v32, %v7457_v61  ;;  %v1926_v18 = vmul.f32 %v7783_v5, %v11387_v49  ;;  %v11629_v32 = vld [vmem:[#allocation86_spill] sm:$0xff] }
 0x11e   : > { %11623 = vst [vmem:[#allocation237_spill] sm:$0xff] %v7805_v22  ;;  %v7822_v22 = vmul.f32 %v7779_v15, %v11398_v3  ;;  %v7828_v48 = vmul.f32 %v7783_v5, %v11396_v41  ;;  %5440 = vperm.xlu0 %4897, %v5439_v4   ;;  %v7835_v61 = vmul.f32 %v7783_v5, %v11398_v3  ;;  %v2252_v15 = vrot.slane %v668_v23, 1 }
 0x11f   : > { %11624 = vst [vmem:[#allocation238_spill] sm:$0xff] %v7814_v21  ;;  %v7831_v16 = vadd.f32 %v1927_v47, %v7472_v0  ;;  %v7841_v10 = vadd.f32 %v1926_v18, %v7481_v42  ;;  %v665_v52 = vunpack.c.l.bf16 %v620_v39  ;;  %v11631_v21 = vld [vmem:[#allocation87_spill] sm:$0xff]  ;;  %v7846_v0 = vunpack.i.h.bf16 %v5146_v51 }
 0x120   : > { %11625 = vst [vmem:[#allocation239_spill] sm:$0xff] %v7822_v22  ;;  %11626 = vst [vmem:[#allocation240_spill] sm:$0xff] %v7828_v48  ;;  %v2251_v22 = vsel %vm1479_vm0, %v11629_v32, %v11628_v58  ;;  %v11632_v48 = vld [vmem:[#allocation88_spill] sm:$0xff]  ;;  %v2253_v47 = vsel %vm1479_vm0, %v11628_v58, %v2252_v15  ;;  %v7852_v5 = vunpack.i.h.bf16 %v5141_v29  ;;  %v7854_v23 = vunpack.i.l.bf16 %v5141_v29 }
 0x121   : > { %11627 = vst [vmem:[#allocation241_spill] sm:$0xff] %v7835_v61  ;;  %11630 = vst [vmem:[#allocation85_spill] sm:$0xff] %v7841_v10  ;;  %v2246_v4 = vsel %vm1479_vm0, %v11632_v48, %v11631_v21  ;;  %v7850_v61 = vunpack.i.l.bf16 %v5146_v51  ;;  %v5454_v42 = vpack.i.bf16 %v2253_v47, %v2251_v22  ;;  %v2247_v18 = vrot.slane %v665_v52, 1  ;;  %v4871_v22 = vld [vmem:[%s5612_s29 + $0xa8] sm:$0xff]  }
 0x122   : > { %11633 = vst [vmem:[#allocation86_spill] sm:$0xff] %v7846_v0  ;;  %11635 = vst [vmem:[#allocation88_spill] sm:$0xff] %v7852_v5  ;;  %v1933_v39 = vmul.f32 %v7846_v0, %v11387_v49  ;;  %v7860_v48 = vmul.f32 %v7846_v0, %v11396_v41  ;;  %v7864_v32 = vmul.f32 %v7846_v0, %v11398_v3  ;;  %v4864_v0 = vld [vmem:[%s5562_s26 + $0xa8] sm:$0xff]  }
 0x123   : > { %11634 = vst [vmem:[#allocation87_spill] sm:$0xff] %v7850_v61  ;;  %11636 = vst [vmem:[#allocation242_spill] sm:$0xff] %v7854_v23  ;;  %v1932_v15 = vmul.f32 %v7850_v61, %v11387_v49  ;;  %v7870_v51 = vmul.f32 %v7850_v61, %v11396_v41  ;;  %v7874_v52 = vmul.f32 %v7850_v61, %v11398_v3  ;;  %5455 = vperm.xlu1 %4908, %v5454_v42  }
 0x124   : > { %11637 = vst [vmem:[#allocation243_spill] sm:$0xff] %v7864_v32  ;;  %v2248_v29 = vsel %vm1479_vm0, %v11631_v21, %v2247_v18  ;;  %v7880_v58 = vadd.f32 %v1933_v39, %v7490_v36  ;;  %v1931_v47 = vmul.f32 %v7852_v5, %v11387_v49  ;;  %v7886_v32 = vmul.f32 %v7852_v5, %v11396_v41  ;;  %v5156_v21 = vpop.permute.xlu1 %5155  ;;  %v5151_v18 = vpop.permute.xlu0 %5150 }
 0x125   : > { %11638 = vst [vmem:[#allocation244_spill] sm:$0xff] %v7874_v52  ;;  %v5449_v10 = vpack.i.bf16 %v2248_v29, %v2246_v4  ;;  %v7890_v61 = vadd.f32 %v1932_v15, %v7502_v33  ;;  %v7894_v42 = vmul.f32 %v7852_v5, %v11398_v3  ;;  %v1930_v36 = vmul.f32 %v7854_v23, %v11387_v49 }
 0x126   : > { %11639 = vst [vmem:[#allocation245_spill] sm:$0xff] %v7886_v32  ;;  %v7899_v39 = vadd.f32 %v1931_v47, %v7514_v37  ;;  %v7903_v52 = vmul.f32 %v7854_v23, %v11396_v41  ;;  %v7907_v33 = vmul.f32 %v7854_v23, %v11398_v3  ;;  %v4792_v4 = vunpack.c.l.bf16 %v4871_v22 }
 0x127   : > { %11640 = vst [vmem:[#allocation246_spill] sm:$0xff] %v7890_v61  ;;  %11641 = vst [vmem:[#allocation247_spill] sm:$0xff] %v7894_v42  ;;  %5450 = vperm.xlu0 %4897, %v5449_v10   ;;  %v7910_v15 = vadd.f32 %v1930_v36, %v7523_v30  ;;  %v4793_v29 = vunpack.c.h.bf16 %v4871_v22  ;;  %v4760_v42 = vunpack.c.l.bf16 %v4864_v0  ;;  %v4761_v5 = vunpack.c.h.bf16 %v4864_v0 }
 0x128   : > { %11642 = vst [vmem:[#allocation248_spill] sm:$0xff] %v7899_v39  ;;  %11643 = vst [vmem:[#allocation249_spill] sm:$0xff] %v7903_v52  ;;  %v3197_v32 = vrot.slane %v4792_v4, 1  ;;  %v7912_v61 = vunpack.i.h.bf16 %v5156_v21  ;;  %v7914_v37 = vunpack.i.l.bf16 %v5156_v21  ;;  %v7916_v47 = vunpack.i.h.bf16 %v5151_v18 }
 0x129   : > { %11644 = vst [vmem:[#allocation250_spill] sm:$0xff] %v7907_v33  ;;  %11645 = vst [vmem:[#allocation251_spill] sm:$0xff] %v7910_v15  ;;  %v3198_v39 = vrot.slane %v4793_v29, 1  ;;  %v5464_v23 = vpack.i.bf16 %v4793_v29, %v4792_v4  ;;  %v2956_v33 = vrot.slane %v4761_v5, 1  ;;  %v5459_v52 = vpack.i.bf16 %v4761_v5, %v4760_v42  ;;  %v446_v4 = vld [vmem:[%s5612_s29 + $0xb0] sm:$0x1]  ;;  %v5166_v15 = vpop.permute.xlu1 %5165 }
 0x12a   : > { %11646 = vst [vmem:[#allocation252_spill] sm:$0xff] %v7912_v61  ;;  %11647 = vst [vmem:[#allocation253_spill] sm:$0xff] %v7914_v37  ;;  %v2955_v10 = vrot.slane %v4760_v42, 1  ;;  %v1937_v30 = vmul.f32 %v7912_v61, %v11387_v49  ;;  %v7922_v0 = vmul.f32 %v7912_v61, %v11396_v41  ;;  %v7926_v22 = vmul.f32 %v7912_v61, %v11398_v3  ;;  %v356_v29 = vld [vmem:[%s5562_s26 + $0xb0] sm:$0x1] }
 0x12b   : > { %11648 = vst [vmem:[#allocation254_spill] sm:$0xff] %v7916_v47  ;;  %5465 = vperm.xlu1 %4908, %v5464_v23   ;;  %5460 = vperm.xlu0 %4897, %v5459_v52   ;;  %v1936_v36 = vmul.f32 %v7914_v37, %v11387_v49  ;;  %v7932_v5 = vmul.f32 %v7914_v37, %v11396_v41  ;;  %v7938_v21 = vunpack.i.l.bf16 %v5151_v18 }
 0x12c   : > { %11649 = vst [vmem:[#allocation255_spill] sm:$0xff] %v7922_v0  ;;  %11650 = vst [vmem:[#allocation256_spill] sm:$0xff] %v7926_v22  ;;  %v7936_v42 = vmul.f32 %v7914_v37, %v11398_v3  ;;  %v7943_v22 = vadd.f32 %v1937_v30, %v7535_v63  ;;  %v1935_v23 = vmul.f32 %v7916_v47, %v11387_v49  ;;  %v5161_v37 = vpop.permute.xlu0 %5160 }
 0x12d   : > { %11652 = vst [vmem:[#allocation258_spill] sm:$0xff] %v7938_v21  ;;  %v7949_v52 = vmul.f32 %v7916_v47, %v11396_v41  ;;  %v7953_v61 = vmul.f32 %v7916_v47, %v11398_v3  ;;  %v7956_v18 = vadd.f32 %v1936_v36, %v7544_v59  ;;  %v7962_v63 = vmul.f32 %v7938_v21, %v11396_v41 }
 0x12e   : > { %11651 = vst [vmem:[#allocation257_spill] sm:$0xff] %v7936_v42  ;;  %11653 = vst [vmem:[#allocation259_spill] sm:$0xff] %v7943_v22  ;;  %v1934_v42 = vmul.f32 %v7938_v21, %v11387_v49  ;;  %v7966_v30 = vmul.f32 %v7938_v21, %v11398_v3  ;;  %v491_v47 = vunpack.c.l.bf16 %v446_v4  ;;  %v401_v59 = vunpack.c.l.bf16 %v356_v29 }
 0x12f   : > { %11654 = vst [vmem:[#allocation260_spill] sm:$0xff] %v7949_v52  ;;  %11655 = vst [vmem:[#allocation261_spill] sm:$0xff] %v7953_v61  ;;  %v7969_v52 = vadd.f32 %v1935_v23, %v7553_v13  ;;  %v3199_v61 = vsel %vm1479_vm0, %v3197_v32, %v3198_v39  ;;  %v7976_v22 = vunpack.i.h.bf16 %v5166_v15  ;;  %v7980_v0 = vunpack.i.h.bf16 %v5161_v37  ;;  %v4885_v23 = vld [vmem:[%s5816_s11 + $0xa8] sm:$0xff]  }
 0x130   : > { %11656 = vst [vmem:[#allocation262_spill] sm:$0xff] %v7956_v18  ;;  %11657 = vst [vmem:[#allocation263_spill] sm:$0xff] %v7962_v63  ;;  %v7973_v36 = vadd.f32 %v1934_v42, %v7562_v55  ;;  %v2957_v18 = vsel %vm1479_vm0, %v2955_v10, %v2956_v33  ;;  %v7978_v63 = vunpack.i.l.bf16 %v5166_v15  ;;  %v3200_v21 = vrot.slane %v491_v47, 1  ;;  %v5176_v47 = vpop.permute.xlu1 %5175 }
 0x131   : > { %11658 = vst [vmem:[#allocation264_spill] sm:$0xff] %v7966_v30  ;;  %11659 = vst [vmem:[#allocation265_spill] sm:$0xff] %v7969_v52  ;;  %v2958_v30 = vrot.slane %v401_v59, 1  ;;  %v7982_v13 = vunpack.i.l.bf16 %v5161_v37  ;;  %v1941_v32 = vmul.f32 %v7976_v22, %v11387_v49  ;;  %v7988_v55 = vmul.f32 %v7976_v22, %v11396_v41 }
 0x132   : > { %11660 = vst [vmem:[#allocation266_spill] sm:$0xff] %v7973_v36  ;;  %11661 = vst [vmem:[#allocation267_spill] sm:$0xff] %v7976_v22  ;;  %v7992_v10 = vmul.f32 %v7976_v22, %v11398_v3  ;;  %v1940_v15 = vmul.f32 %v7978_v63, %v11387_v49  ;;  %v3201_v42 = vsel %vm1479_vm0, %v3198_v39, %v3200_v21  ;;  %v4878_v39 = vld [vmem:[%s5718_s8 + $0xa8] sm:$0xff]  }
 0x133   : > { %11662 = vst [vmem:[#allocation268_spill] sm:$0xff] %v7978_v63  ;;  %11663 = vst [vmem:[#allocation269_spill] sm:$0xff] %v7980_v0  ;;  %v2959_v37 = vsel %vm1479_vm0, %v2956_v33, %v2958_v30  ;;  %v8000_v4 = vmul.f32 %v7978_v63, %v11396_v41  ;;  %v8004_v29 = vmul.f32 %v7978_v63, %v11398_v3 }
 0x134   : > { %11664 = vst [vmem:[#allocation270_spill] sm:$0xff] %v7982_v13  ;;  %11665 = vst [vmem:[#allocation271_spill] sm:$0xff] %v7988_v55  ;;  %v5474_v59 = vpack.i.bf16 %v3201_v42, %v3199_v61  ;;  %v5469_v22 = vpack.i.bf16 %v2959_v37, %v2957_v18  ;;  %v8011_v36 = vadd.f32 %v1941_v32, %v7571_v45  ;;  %v4856_v18 = vunpack.c.l.bf16 %v4885_v23 }
 0x135   : > { %11666 = vst [vmem:[#allocation272_spill] sm:$0xff] %v7992_v10  ;;  %11667 = vst [vmem:[#allocation273_spill] sm:$0xff] %v8000_v4  ;;  %v8008_v10 = vadd.f32 %v1940_v15, %v7580_v8  ;;  %v1939_v33 = vmul.f32 %v7980_v0, %v11387_v49  ;;  %v8018_v21 = vmul.f32 %v7980_v0, %v11396_v41  ;;  %v4857_v32 = vunpack.c.h.bf16 %v4885_v23  ;;  %v5171_v15 = vpop.permute.xlu0 %5170 }
 0x136   : > { %11668 = vst [vmem:[#allocation274_spill] sm:$0xff] %v8004_v29  ;;  %11670 = vst [vmem:[#allocation276_spill] sm:$0xff] %v8011_v36  ;;  %v8022_v30 = vmul.f32 %v7980_v0, %v11398_v3  ;;  %v1938_v8 = vmul.f32 %v7982_v13, %v11387_v49  ;;  %5475 = vperm.xlu1 %4908, %v5474_v59   ;;  %5470 = vperm.xlu0 %4897, %v5469_v22   ;;  %v4824_v59 = vunpack.c.l.bf16 %v4878_v39  ;;  %v626_v22 = vld [vmem:[%s5816_s11 + $0xb0] sm:$0x1] }
 0x137   : > { %11669 = vst [vmem:[#allocation275_spill] sm:$0xff] %v8008_v10  ;;  %11671 = vst [vmem:[#allocation277_spill] sm:$0xff] %v8018_v21  ;;  %v8028_v45 = vmul.f32 %v7982_v13, %v11396_v41  ;;  %v8032_v61 = vmul.f32 %v7982_v13, %v11398_v3  ;;  %v8038_v37 = vadd.f32 %v1939_v33, %v7589_v28  ;;  %v4825_v29 = vunpack.c.h.bf16 %v4878_v39  ;;  %v5186_v13 = vpop.permute.xlu1 %5185 }
 0x138   : > { %11672 = vst [vmem:[#allocation278_spill] sm:$0xff] %v8022_v30  ;;  %v8035_v42 = vadd.f32 %v1938_v8, %v7598_v2  ;;  %v3930_v30 = vrot.slane %v4857_v32, 1  ;;  %v5484_v0 = vpack.i.bf16 %v4857_v32, %v4856_v18  ;;  %v3929_v63 = vrot.slane %v4856_v18, 1 }
 0x139   : > { %11673 = vst [vmem:[#allocation279_spill] sm:$0xff] %v8028_v45  ;;  %11674 = vst [vmem:[#allocation280_spill] sm:$0xff] %v8032_v61  ;;  %v8041_v21 = vunpack.i.h.bf16 %v5176_v47  ;;  %v536_v45 = vld [vmem:[%s5718_s8 + $0xb0] sm:$0x1]  ;;  %v3688_v61 = vrot.slane %v4825_v29, 1  ;;  %v5479_v10 = vpack.i.bf16 %v4825_v29, %v4824_v59  ;;  %v3687_v23 = vrot.slane %v4824_v59, 1  ;;  %v5181_v59 = vpop.permute.xlu0 %5180 }
 0x13a   : > { %11675 = vst [vmem:[#allocation281_spill] sm:$0xff] %v8035_v42  ;;  %11676 = vst [vmem:[#allocation282_spill] sm:$0xff] %v8038_v37  ;;  %v8044_v36 = vunpack.i.l.bf16 %v5176_v47  ;;  %5485 = vperm.xlu1 %4908, %v5484_v0   ;;  %v8050_v2 = vunpack.i.h.bf16 %v5171_v15  ;;  %v8052_v39 = vunpack.i.l.bf16 %v5171_v15  ;;  %v671_v33 = vunpack.c.l.bf16 %v626_v22 }
 0x13b   : > { %11677 = vst [vmem:[#allocation283_spill] sm:$0xff] %v8041_v21  ;;  %v8048_v28 = vmul.f32 %v8041_v21, %v11398_v3  ;;  %5480 = vperm.xlu0 %4897, %v5479_v10   ;;  %v3931_v29 = vsel %vm1479_vm0, %v3929_v63, %v3930_v30  ;;  %v581_v18 = vunpack.c.l.bf16 %v536_v45  ;;  %v3689_v47 = vsel %vm1479_vm0, %v3687_v23, %v3688_v61 }
 0x13c   : > { %11678 = vst [vmem:[#allocation284_spill] sm:$0xff] %v8044_v36  ;;  %11680 = vst [vmem:[#allocation286_spill] sm:$0xff] %v8050_v2  ;;  %v8056_v8 = vmul.f32 %v8044_v36, %v11398_v3  ;;  %v1943_v0 = vmul.f32 %v8050_v2, %v11387_v49  ;;  %v8064_v32 = vmul.f32 %v8050_v2, %v11396_v41  ;;  %v3932_v22 = vrot.slane %v671_v33, 1  ;;  %v673_v36 = vld [vmem:[%s10730_s4 + $0x4] sm:$0x1] }
 0x13d   : > { %11679 = vst [vmem:[#allocation285_spill] sm:$0xff] %v8048_v28  ;;  %11681 = vst [vmem:[#allocation287_spill] sm:$0xff] %v8052_v39  ;;  %v8068_v15 = vmul.f32 %v8050_v2, %v11398_v3  ;;  %v1942_v10 = vmul.f32 %v8052_v39, %v11387_v49  ;;  %v8074_v63 = vmul.f32 %v8052_v39, %v11396_v41  ;;  %v3690_v23 = vrot.slane %v581_v18, 1 }
 0x13e   : > { %11682 = vst [vmem:[#allocation288_spill] sm:$0xff] %v8056_v8  ;;  %11683 = vst [vmem:[#allocation289_spill] sm:$0xff] %v8064_v32  ;;  %v8078_v45 = vmul.f32 %v8052_v39, %v11398_v3  ;;  %v8084_v8 = vadd.f32 %v1943_v0, %v7625_v20  ;;  %v8087_v21 = vunpack.i.h.bf16 %v5186_v13  ;;  %v5196_v32 = vpop.permute.xlu1 %5195  ;;  %v3933_v39 = vsel %vm1479_vm0, %v3930_v30, %v3932_v22  ;;  %v11692_v20 = vld [vmem:[#allocation89_spill] sm:$0xff] }
 0x13f   : > { %11684 = vst [vmem:[#allocation290_spill] sm:$0xff] %v8068_v15  ;;  %11685 = vst [vmem:[#allocation291_spill] sm:$0xff] %v8074_v63  ;;  %v8081_v28 = vadd.f32 %v1942_v10, %v7634_v25  ;;  %v11689_v15 = vld [vmem:[#allocation90_spill] sm:$0xff]  ;;  %v3691_v33 = vsel %vm1479_vm0, %v3688_v61, %v3690_v23  ;;  %v8094_v18 = vunpack.i.l.bf16 %v5186_v13  ;;  %v5183_v25 = vunpack.i.h.bf16 %v5181_v59 }
 0x140   : > { %11686 = vst [vmem:[#allocation292_spill] sm:$0xff] %v8078_v45  ;;  %11688 = vst [vmem:[#allocation294_spill] sm:$0xff] %v8084_v8  ;;  %v2480_v2 = vsub.s32 2, %v11689_v15  ;;  %v5494_v10 = vpack.i.bf16 %v3933_v39, %v3931_v29  ;;  %v5489_v45 = vpack.i.bf16 %v3691_v33, %v3689_v47  ;;  %v675_v63 = vunpack.c.l.bf16 %v673_v36  ;;  %v11697_v47 = vld [vmem:[#allocation45_spill] sm:$0xff] }
 0x141   : > { %11687 = vst [vmem:[#allocation293_spill] sm:$0xff] %v8081_v28  ;;  %11690 = vst [vmem:[#allocation90_spill] sm:$0xff] %v8087_v21  ;;  %v5182_v28 = vunpack.i.l.bf16 %v5181_v59  ;;  %v1891_v8 = vmul.f32 %v5183_v25, %v11387_v49  ;;  %v3212_v42 = vsub.s32 5, %v11689_v15  ;;  %v8101_v37 = vunpack.i.h.bf16 %v5196_v32 }
 0x142   : > { %11691 = vst [vmem:[#allocation295_spill] sm:$0xff] %v8094_v18  ;;  %v8097_v0 = vrot.slane %v11692_v20, %v2480_v2  ;;  %5495 = vperm.xlu1 %4908, %v5494_v10   ;;  %5490 = vperm.xlu0 %4897, %v5489_v45   ;;  %v8113_v29 = vunpack.i.l.bf16 %v5196_v32  ;;  %v11698_v45 = vld [vmem:[#allocation116_spill] sm:$0xff]  ;;  %v5191_v10 = vpop.permute.xlu0 %5190 }
 0x143   : > { %11694 = vst [vmem:[#allocation296_spill] sm:$0xff] %v8101_v37  ;;  %v8109_v2 = vadd.f32 %v1891_v8, %v6966_v50  ;;  %v1890_v39 = vmul.f32 %v5182_v28, %v11387_v49  ;;  %v8119_v33 = vrot.slane %v11692_v20, %v3212_v42  ;;  %v11702_v8 = vsub.s32 0, %v11689_v15  ;;  %v11758_v49 = vld [vmem:[#allocation71_spill] sm:$0xff] }
 0x144   : > { %11693 = vst [vmem:[#allocation89_spill] sm:$0xff] %v8097_v0  ;;  %v2485_v13 = vmul.f32 %v8087_v21, %v8097_v0  ;;  %v2484_v30 = vmul.f32 %v8094_v18, %v8097_v0  ;;  %v2483_v61 = vmul.f32 %v5183_v25, %v8097_v0  ;;  %v2482_v36 = vmul.f32 %v5182_v28, %v8097_v0  ;;  %v11700_v25 = vld [vmem:[#allocation48_spill] sm:$0xff] }
 0x145   : > { %11695 = vst [vmem:[#allocation297_spill] sm:$0xff] %v8109_v2  ;;  %11696 = vst [vmem:[#allocation298_spill] sm:$0xff] %v8113_v29  ;;  %v8122_v52 = vadd.f32 %v1890_v39, %v11700_v25  ;;  %v8127_v28 = vrot.slane %v675_v63, %v11702_v8  ;;  %v2489_v32 = vmul.f32 %v8101_v37, %v8097_v0  ;;  %v8159_v39 = vunpack.i.l.bf16 %v5191_v10 }
 0x146   : > { %v2596_v59 = vadd.f32 %v2484_v30, %v11697_v47  ;;  %v2597_v22 = vadd.f32 %v2485_v13, %v11698_v45  ;;  %v2595_v23 = vadd.f32 %v2483_v61, %v6989_v27  ;;  %11699 = vst [vmem:[#allocation45_spill] sm:$0xff] %v8119_v33  ;;  %v2594_v50 = vadd.f32 %v2482_v36, %v6986_v17  ;;  %v5206_v30 = vpop.permute.xlu1 %5205 }
 0x147   : > { %11701 = vst [vmem:[#allocation116_spill] sm:$0xff] %v8122_v52  ;;  %v8140_v20 = vmul.f32 %v8101_v37, %v8119_v33  ;;  %v2601_v15 = vadd.f32 %v2489_v32, %v7001_v44  ;;  %v8146_v63 = vmul.f32 %v8101_v37, %v8127_v28  ;;  %v8157_v61 = vunpack.i.h.bf16 %v5191_v10  ;;  %11705 = vst [vmem:[#allocation300_spill] sm:$0xff] %v8159_v39 }
 0x148   : > { %v8132_v13 = vadd.f32 %v7388_v40, %v2596_v59  ;;  %v8135_v27 = vadd.f32 %v7367_v7, %v2597_v22  ;;  %v2843_v42 = vadd.f32 %v7397_v19, %v2595_v23  ;;  %v2842_v17 = vadd.f32 %v7403_v31, %v2594_v50 }
 0x149   : > { %11703 = vst [vmem:[#allocation48_spill] sm:$0xff] %v8146_v63  ;;  %v2488_v40 = vmul.f32 %v8113_v29, %v8097_v0  ;;  %v8155_v19 = vmul.f32 %v8113_v29, %v8119_v33  ;;  %11704 = vst [vmem:[#allocation299_spill] sm:$0xff] %v8157_v61  ;;  %v8165_v31 = vadd.f32 %v7412_v6, %v2601_v15  ;;  %v8168_v47 = vunpack.i.h.bf16 %v5206_v30  ;;  %v5201_v6 = vpop.permute.xlu0 %5200 }
 0x14a   : > { %v8151_v7 = vadd.f32 %v7684_v26, %v2843_v42  ;;  %v8162_v44 = vadd.f32 %v7690_v57, %v2842_v17  ;;  %v8172_v26 = vmul.f32 %v8113_v29, %v8127_v28  ;;  %v2487_v59 = vmul.f32 %v8157_v61, %v8097_v0  ;;  %v5216_v25 = vpop.permute.xlu1 %5215 }
 0x14b   : > { %v2600_v36 = vadd.f32 %v2488_v40, %v7017_v12  ;;  %11706 = vst [vmem:[#allocation301_spill] sm:$0xff] %v8168_v47  ;;  %v8178_v45 = vmul.f32 %v8157_v61, %v8119_v33  ;;  %v2486_v57 = vmul.f32 %v8159_v39, %v8097_v0  ;;  %v8187_v12 = vmul.f32 %v8157_v61, %v8127_v28 }
 0x14c   : > { %11707 = vst [vmem:[#allocation302_spill] sm:$0xff] %v8172_v26  ;;  %v8191_v23 = vmul.f32 %v8159_v39, %v8119_v33  ;;  %v2493_v10 = vmul.f32 %v8168_v47, %v8097_v0  ;;  %v2599_v50 = vadd.f32 %v2487_v59, %v7030_v9  ;;  %v8203_v32 = vmul.f32 %v8168_v47, %v8119_v33  ;;  %v11723_v26 = vld [vmem:[#allocation132_spill] sm:$0xff] }
 0x14d   : > { %11708 = vst [vmem:[#allocation303_spill] sm:$0xff] %v8178_v45  ;;  %v8183_v22 = vadd.f32 %v7424_v54, %v2600_v36  ;;  %11709 = vst [vmem:[#allocation304_spill] sm:$0xff] %v8187_v12  ;;  %v2598_v8 = vadd.f32 %v2486_v57, %v7043_v35  ;;  %v8199_v54 = vmul.f32 %v8159_v39, %v8127_v28  ;;  %v8206_v17 = vunpack.i.l.bf16 %v5206_v30  ;;  %v11724_v12 = vld [vmem:[#allocation53_spill] sm:$0xff] }
 0x14e   : > { %11710 = vst [vmem:[#allocation305_spill] sm:$0xff] %v8191_v23  ;;  %v2605_v42 = vadd.f32 %v2493_v10, %v7082_v14  ;;  %v8208_v15 = vunpack.i.h.bf16 %v5201_v6  ;;  %v8210_v40 = vunpack.i.l.bf16 %v5201_v6  ;;  %v8213_v9 = vadd.f32 %v7433_v11, %v2599_v50  ;;  %v5211_v50 = vpop.permute.xlu0 %5210  ;;  %v5226_v63 = vpop.permute.xlu1 %5225 }
 0x14f   : > { %11711 = vst [vmem:[#allocation306_spill] sm:$0xff] %v8199_v54  ;;  %11712 = vst [vmem:[#allocation307_spill] sm:$0xff] %v8206_v17  ;;  %v8216_v35 = vadd.f32 %v7442_v56, %v2598_v8  ;;  %v8220_v36 = vmul.f32 %v8168_v47, %v8127_v28  ;;  %v8222_v59 = vunpack.i.h.bf16 %v5216_v25  ;;  %v2492_v30 = vmul.f32 %v8206_v17, %v8097_v0  ;;  %v11720_v8 = vld [vmem:[#allocation131_spill] sm:$0xff] }
 0x150   : > { %11713 = vst [vmem:[#allocation308_spill] sm:$0xff] %v8208_v15  ;;  %11714 = vst [vmem:[#allocation309_spill] sm:$0xff] %v8210_v40  ;;  %v8225_v14 = vadd.f32 %v7451_v34, %v2605_v42  ;;  %v8231_v57 = vmul.f32 %v8206_v17, %v8119_v33  ;;  %v8233_v11 = vunpack.i.l.bf16 %v5216_v25  ;;  %v8237_v56 = vmul.f32 %v8206_v17, %v8127_v28  ;;  %v11744_v17 = vld [vmem:[#allocation149_spill] sm:$0xff] }
 0x151   : > { %11715 = vst [vmem:[#allocation310_spill] sm:$0xff] %v8220_v36  ;;  %11716 = vst [vmem:[#allocation311_spill] sm:$0xff] %v8222_v59  ;;  %v2491_v6 = vmul.f32 %v8208_v15, %v8097_v0  ;;  %v8243_v34 = vmul.f32 %v8208_v15, %v8119_v33  ;;  %v2490_v10 = vmul.f32 %v8210_v40, %v8097_v0  ;;  %v8296_v47 = vunpack.i.h.bf16 %v5226_v63 }
 0x152   : > { %11717 = vst [vmem:[#allocation312_spill] sm:$0xff] %v8233_v11  ;;  %11718 = vst [vmem:[#allocation313_spill] sm:$0xff] %v8237_v56  ;;  %v2604_v42 = vadd.f32 %v2492_v30, %v11720_v8  ;;  %v8250_v25 = vmul.f32 %v8208_v15, %v8127_v28  ;;  %v8254_v36 = vmul.f32 %v8210_v40, %v8119_v33  ;;  %v11727_v8 = vld [vmem:[#allocation14_spill] sm:$0xff] }
 0x153   : > { %11719 = vst [vmem:[#allocation314_spill] sm:$0xff] %v8243_v34  ;;  %v2497_v56 = vmul.f32 %v8222_v59, %v8097_v0  ;;  %v2603_v34 = vadd.f32 %v2491_v6, %v11723_v26  ;;  %v2602_v54 = vadd.f32 %v2490_v10, %v11724_v12  ;;  %v8262_v45 = vmul.f32 %v8210_v40, %v8127_v28  ;;  %v11730_v12 = vld [vmem:[#allocation16_spill] sm:$0xff]  ;;  %v11731_v10 = vld [vmem:[#allocation189_spill] sm:$0xff] }
 0x154   : > { %11721 = vst [vmem:[#allocation131_spill] sm:$0xff] %v8250_v25  ;;  %11722 = vst [vmem:[#allocation315_spill] sm:$0xff] %v8254_v36  ;;  %v8266_v30 = vmul.f32 %v8222_v59, %v8119_v33  ;;  %v8269_v25 = vadd.f32 %v11727_v8, %v2604_v42  ;;  %v11728_v36 = vld [vmem:[#allocation139_spill] sm:$0xff]  ;;  %v8274_v15 = vmul.f32 %v8222_v59, %v8127_v28  ;;  %v8288_v42 = vunpack.i.h.bf16 %v5211_v50  ;;  %v11735_v8 = vld [vmem:[#allocation148_spill] sm:$0xff] }
 0x155   : > { %11725 = vst [vmem:[#allocation132_spill] sm:$0xff] %v8262_v45  ;;  %v2609_v23 = vadd.f32 %v2497_v56, %v11728_v36  ;;  %v2496_v26 = vmul.f32 %v8233_v11, %v8097_v0  ;;  %v8279_v6 = vadd.f32 %v11730_v12, %v2603_v34  ;;  %v8282_v45 = vadd.f32 %v11731_v10, %v2602_v54  ;;  %v11734_v36 = vld [vmem:[#allocation191_spill] sm:$0xff] }
 0x156   : > { %11726 = vst [vmem:[#allocation53_spill] sm:$0xff] %v8266_v30  ;;  %11729 = vst [vmem:[#allocation14_spill] sm:$0xff] %v8274_v15  ;;  %v8286_v40 = vmul.f32 %v8233_v11, %v8119_v33  ;;  %v8294_v59 = vunpack.i.l.bf16 %v5211_v50  ;;  %v8300_v34 = vmul.f32 %v8233_v11, %v8127_v28  ;;  %v2495_v54 = vmul.f32 %v8288_v42, %v8097_v0  ;;  %v5236_v11 = vpop.permute.xlu1 %5235 }
 0x157   : > { %11733 = vst [vmem:[#allocation16_spill] sm:$0xff] %v8288_v42  ;;  %v8291_v56 = vadd.f32 %v11734_v36, %v2609_v23  ;;  %v2608_v15 = vadd.f32 %v2496_v26, %v11735_v8  ;;  %11737 = vst [vmem:[#allocation191_spill] sm:$0xff] %v8296_v47  ;;  %v8306_v12 = vmul.f32 %v8288_v42, %v8119_v33  ;;  %v8308_v10 = vunpack.i.l.bf16 %v5226_v63  ;;  %v5221_v23 = vpop.permute.xlu0 %5220  ;;  %v11741_v36 = vld [vmem:[#allocation13_spill] sm:$0xff] }
 0x158   : > { %11732 = vst [vmem:[#allocation139_spill] sm:$0xff] %v8286_v40  ;;  %11736 = vst [vmem:[#allocation189_spill] sm:$0xff] %v8294_v59  ;;  %v8315_v50 = vmul.f32 %v8288_v42, %v8127_v28  ;;  %v2494_v8 = vmul.f32 %v8294_v59, %v8097_v0  ;;  %v8326_v63 = vmul.f32 %v8294_v59, %v8127_v28  ;;  %v8349_v52 = vunpack.i.h.bf16 %v5221_v23  ;;  %v11780_v40 = vld [vmem:[#allocation201_spill] sm:$0xff] }
 0x159   : > { %11738 = vst [vmem:[#allocation148_spill] sm:$0xff] %v8300_v34  ;;  %11739 = vst [vmem:[#allocation316_spill] sm:$0xff] %v8306_v12  ;;  %v8311_v26 = vadd.f32 %v11741_v36, %v2608_v15  ;;  %v8321_v34 = vmul.f32 %v8294_v59, %v8119_v33  ;;  %v2607_v12 = vadd.f32 %v2495_v54, %v11744_v17  ;;  %v11751_v59 = vld [vmem:[#allocation154_spill] sm:$0xff]  ;;  %v8351_v37 = vunpack.i.l.bf16 %v5221_v23 }
 0x15a   : > { %11740 = vst [vmem:[#allocation317_spill] sm:$0xff] %v8308_v10  ;;  %11742 = vst [vmem:[#allocation13_spill] sm:$0xff] %v8315_v50  ;;  %v2501_v15 = vmul.f32 %v8296_v47, %v8097_v0  ;;  %v8332_v36 = vmul.f32 %v8296_v47, %v8119_v33  ;;  %v11747_v50 = vld [vmem:[#allocation151_spill] sm:$0xff]  ;;  %v8337_v61 = vmul.f32 %v8296_v47, %v8127_v28  ;;  %v8357_v2 = vunpack.i.h.bf16 %v5236_v11 }
 0x15b   : > { %11743 = vst [vmem:[#allocation318_spill] sm:$0xff] %v8321_v34  ;;  %11745 = vst [vmem:[#allocation149_spill] sm:$0xff] %v8326_v63  ;;  %v2606_v42 = vadd.f32 %v2494_v8, %v11747_v50  ;;  %v2500_v17 = vmul.f32 %v8308_v10, %v8097_v0  ;;  %v8343_v54 = vmul.f32 %v8308_v10, %v8119_v33  ;;  %v11750_v63 = vld [vmem:[#allocation22_spill] sm:$0xff]  ;;  %v11754_v50 = vld [vmem:[#allocation193_spill] sm:$0xff]  ;;  %v8359_v29 = vunpack.i.l.bf16 %v5236_v11  ;;  %v5231_v23 = vpop.permute.xlu0 %5230 }
 0x15c   : > { %11746 = vst [vmem:[#allocation319_spill] sm:$0xff] %v8332_v36  ;;  %11748 = vst [vmem:[#allocation151_spill] sm:$0xff] %v8337_v61  ;;  %v8346_v34 = vadd.f32 %v11750_v63, %v2607_v12  ;;  %v2613_v39 = vadd.f32 %v2501_v15, %v11751_v59  ;;  %v11755_v61 = vld [vmem:[#allocation157_spill] sm:$0xff]  ;;  %v8366_v12 = vmul.f32 %v8308_v10, %v8127_v28  ;;  %v5246_v15 = vpop.permute.xlu1 %5245  ;;  %v8413_v36 = vunpack.i.h.bf16 %v5231_v23 }
 0x15d   : > { %11749 = vst [vmem:[#allocation320_spill] sm:$0xff] %v8343_v54  ;;  %11752 = vst [vmem:[#allocation22_spill] sm:$0xff] %v8349_v52  ;;  %v8354_v8 = vadd.f32 %v11754_v50, %v2606_v42  ;;  %v2612_v47 = vadd.f32 %v2500_v17, %v11755_v61  ;;  %v2499_v59 = vmul.f32 %v8349_v52, %v8097_v0  ;;  %v11761_v61 = vld [vmem:[#allocation195_spill] sm:$0xff]  ;;  %v11764_v17 = vld [vmem:[#allocation54_spill] sm:$0xff]  ;;  %v8421_v55 = vunpack.i.h.bf16 %v5246_v15 }
 0x15e   : > { %11753 = vst [vmem:[#allocation154_spill] sm:$0xff] %v8351_v37  ;;  %11756 = vst [vmem:[#allocation193_spill] sm:$0xff] %v8357_v2  ;;  %v8362_v54 = vadd.f32 %v11758_v49, %v2613_v39  ;;  %v8372_v42 = vmul.f32 %v8349_v52, %v8119_v33  ;;  %v8379_v11 = vmul.f32 %v8349_v52, %v8127_v28  ;;  %v8423_v4 = vunpack.i.l.bf16 %v5246_v15 }
 0x15f   : > { %11757 = vst [vmem:[#allocation157_spill] sm:$0xff] %v8359_v29  ;;  %11759 = vst [vmem:[#allocation71_spill] sm:$0xff] %v8366_v12  ;;  %v8375_v63 = vadd.f32 %v11761_v61, %v2612_v47  ;;  %v2498_v49 = vmul.f32 %v8351_v37, %v8097_v0  ;;  %v8385_v39 = vmul.f32 %v8351_v37, %v8119_v33 }
 0x160   : > { %11760 = vst [vmem:[#allocation321_spill] sm:$0xff] %v8372_v42  ;;  %11762 = vst [vmem:[#allocation195_spill] sm:$0xff] %v8379_v11  ;;  %v2611_v50 = vadd.f32 %v2499_v59, %v11764_v17  ;;  %v8390_v12 = vmul.f32 %v8351_v37, %v8127_v28  ;;  %v2505_v47 = vmul.f32 %v8357_v2, %v8097_v0  ;;  %v11767_v11 = vld [vmem:[#allocation163_spill] sm:$0xff]  ;;  %v11772_v37 = vld [vmem:[#allocation56_spill] sm:$0xff] }
 0x161   : > { %11763 = vst [vmem:[#allocation322_spill] sm:$0xff] %v8385_v39  ;;  %v8396_v61 = vmul.f32 %v8357_v2, %v8119_v33  ;;  %v2610_v42 = vadd.f32 %v2498_v49, %v11767_v11  ;;  %v8401_v52 = vmul.f32 %v8357_v2, %v8127_v28  ;;  %v2504_v59 = vmul.f32 %v8359_v29, %v8097_v0  ;;  %v11775_v11 = vld [vmem:[#allocation199_spill] sm:$0xff] }
 0x162   : > { %11765 = vst [vmem:[#allocation54_spill] sm:$0xff] %v8390_v12  ;;  %v8407_v17 = vmul.f32 %v8359_v29, %v8119_v33  ;;  %v11770_v12 = vld [vmem:[#allocation197_spill] sm:$0xff]  ;;  %v2617_v10 = vadd.f32 %v2505_v47, %v11772_v37  ;;  %11773 = vst [vmem:[#allocation56_spill] sm:$0xff] %v8413_v36  ;;  %v2503_v37 = vmul.f32 %v8413_v36, %v8097_v0  ;;  %v5256_v47 = vpop.permute.xlu1 %5255 }
 0x163   : > { %11766 = vst [vmem:[#allocation323_spill] sm:$0xff] %v8396_v61  ;;  %11768 = vst [vmem:[#allocation163_spill] sm:$0xff] %v8401_v52  ;;  %v8410_v39 = vadd.f32 %v11770_v12, %v2611_v50  ;;  %v8415_v61 = vunpack.i.l.bf16 %v5231_v23  ;;  %v8418_v49 = vadd.f32 %v11775_v11, %v2610_v42  ;;  %v11777_v52 = vld [vmem:[#allocation173_spill] sm:$0xff]  ;;  %v8430_v12 = vmul.f32 %v8359_v29, %v8127_v28  ;;  %v5241_v23 = vpop.permute.xlu0 %5240 }
 0x164   : > { %11769 = vst [vmem:[#allocation324_spill] sm:$0xff] %v8407_v17  ;;  %v2616_v2 = vadd.f32 %v2504_v59, %v11777_v52  ;;  %11778 = vst [vmem:[#allocation173_spill] sm:$0xff] %v8421_v55  ;;  %v8426_v17 = vadd.f32 %v11780_v40, %v2617_v10  ;;  %v8436_v42 = vmul.f32 %v8413_v36, %v8119_v33  ;;  %v11784_v52 = vld [vmem:[#allocation203_spill] sm:$0xff]  ;;  %v11788_v59 = vld [vmem:[#allocation174_spill] sm:$0xff]  ;;  %v8478_v29 = vunpack.i.l.bf16 %v5256_v47 }
 0x165   : > { %11771 = vst [vmem:[#allocation197_spill] sm:$0xff] %v8410_v39  ;;  %11774 = vst [vmem:[#allocation325_spill] sm:$0xff] %v8415_v61  ;;  %v8443_v15 = vmul.f32 %v8413_v36, %v8127_v28  ;;  %v2502_v40 = vmul.f32 %v8415_v61, %v8097_v0  ;;  %v8449_v10 = vmul.f32 %v8415_v61, %v8119_v33  ;;  %v8469_v36 = vunpack.i.h.bf16 %v5241_v23  ;;  %v11834_v39 = vld [vmem:[#allocation28_spill] sm:$0xff] }
 0x166   : > { %11776 = vst [vmem:[#allocation199_spill] sm:$0xff] %v8418_v49  ;;  %11779 = vst [vmem:[#allocation326_spill] sm:$0xff] %v8423_v4  ;;  %v8439_v50 = vadd.f32 %v11784_v52, %v2616_v2  ;;  %v2615_v11 = vadd.f32 %v2503_v37, %v11788_v59  ;;  %v8458_v2 = vmul.f32 %v8421_v55, %v8119_v33  ;;  %v8471_v37 = vunpack.i.l.bf16 %v5241_v23  ;;  %v11796_v59 = vld [vmem:[#allocation205_spill] sm:$0xff] }
 0x167   : > { %11781 = vst [vmem:[#allocation201_spill] sm:$0xff] %v8426_v17  ;;  %11782 = vst [vmem:[#allocation327_spill] sm:$0xff] %v8430_v12  ;;  %v8454_v12 = vmul.f32 %v8415_v61, %v8127_v28  ;;  %v8462_v52 = vmul.f32 %v8421_v55, %v8127_v28  ;;  %v8476_v61 = vunpack.i.h.bf16 %v5256_v47  ;;  %v11800_v55 = vld [vmem:[#allocation72_spill] sm:$0xff]  ;;  %v2507_v23 = vmul.f32 %v8469_v36, %v8097_v0  ;;  %v11835_v49 = vld [vmem:[#allocation57_spill] sm:$0xff] }
 0x168   : > { %11783 = vst [vmem:[#allocation328_spill] sm:$0xff] %v8436_v42  ;;  %11785 = vst [vmem:[#allocation203_spill] sm:$0xff] %v8439_v50  ;;  %v8497_v47 = vmul.f32 %v8469_v36, %v8127_v28 }
 0x169   : > { %11786 = vst [vmem:[#allocation329_spill] sm:$0xff] %v8443_v15  ;;  %11787 = vst [vmem:[#allocation330_spill] sm:$0xff] %v8449_v10  ;;  %v11792_v15 = vld [vmem:[#allocation177_spill] sm:$0xff]  ;;  %v8467_v10 = vmul.f32 %v8423_v4, %v8119_v33 }
 0x16a   : > { %11789 = vst [vmem:[#allocation174_spill] sm:$0xff] %v8454_v12  ;;  %11790 = vst [vmem:[#allocation331_spill] sm:$0xff] %v8458_v2  ;;  %v2614_v42 = vadd.f32 %v2502_v40, %v11792_v15  ;;  %v8474_v12 = vadd.f32 %v11796_v59, %v2615_v11  ;;  %v11801_v2 = vld [vmem:[#allocation207_spill] sm:$0xff]  ;;  %v8487_v40 = vmul.f32 %v8423_v4, %v8127_v28 }
 0x16b   : > { %11791 = vst [vmem:[#allocation332_spill] sm:$0xff] %v8462_v52  ;;  %11793 = vst [vmem:[#allocation177_spill] sm:$0xff] %v8467_v10  ;;  %v3086_v52 = vadd.f32 %v11800_v55, %v8132_v13  ;;  %v8493_v11 = vmul.f32 %v8469_v36, %v8119_v33  ;;  %v2506_v55 = vmul.f32 %v8471_v37, %v8097_v0  ;;  %v11810_v10 = vld [vmem:[#allocation222_spill] sm:$0xff] }
 0x16c   : > { %11794 = vst [vmem:[#allocation333_spill] sm:$0xff] %v8469_v36  ;;  %11795 = vst [vmem:[#allocation334_spill] sm:$0xff] %v8471_v37  ;;  %v8483_v15 = vadd.f32 %v11801_v2, %v2614_v42  ;;  %v8503_v13 = vmul.f32 %v8471_v37, %v8119_v33  ;;  %v2541_v42 = vmul.f32 %v8476_v61, %v8097_v0  ;;  %v11807_v2 = vld [vmem:[#allocation187_spill] sm:$0xff] }
 0x16d   : > { %11797 = vst [vmem:[#allocation205_spill] sm:$0xff] %v8474_v12  ;;  %11798 = vst [vmem:[#allocation335_spill] sm:$0xff] %v8476_v61  ;;  %v2619_v59 = vadd.f32 %v2507_v23, %v11807_v2  ;;  %v11809_v36 = vld [vmem:[#allocation3_spill] sm:$0xff]  ;;  %v3216_v23 = vmul.f32 %v8478_v29, %v8119_v33 }
 0x16e   : > { %11799 = vst [vmem:[#allocation336_spill] sm:$0xff] %v8478_v29  ;;  %11802 = vst [vmem:[#allocation72_spill] sm:$0xff] %v8483_v15  ;;  %v2618_v4 = vadd.f32 %v2506_v55, %v11809_v36  ;;  %v2653_v12 = vadd.f32 %v2541_v42, %v11810_v10  ;;  %v11812_v2 = vld [vmem:[#allocation215_spill] sm:$0xff]  ;;  %v8532_v36 = vmul.f32 %v8478_v29, %v8127_v28  ;;  %v5251_v10 = vpop.permute.xlu0 %5250  ;;  %v11816_v55 = vld [vmem:[#allocation217_spill] sm:$0xff] }
 0x16f   : > { %11803 = vst [vmem:[#allocation207_spill] sm:$0xff] %v8487_v40  ;;  %11804 = vst [vmem:[#allocation337_spill] sm:$0xff] %v8493_v11  ;;  %v8510_v40 = vmul.f32 %v8471_v37, %v8127_v28  ;;  %v3217_v11 = vmul.f32 %v8476_v61, %v8119_v33  ;;  %v8523_v17 = vadd.f32 %v11812_v2, %v2619_v59  ;;  %v11821_v59 = vld [vmem:[#allocation113_spill] sm:$0xff] }
 0x170   : > { %11805 = vst [vmem:[#allocation338_spill] sm:$0xff] %v8497_v47  ;;  %11806 = vst [vmem:[#allocation339_spill] sm:$0xff] %v8503_v13  ;;  %v2540_v47 = vmul.f32 %v8478_v29, %v8097_v0  ;;  %v11811_v13 = vld [vmem:[#allocation73_spill] sm:$0xff]  ;;  %v8535_v42 = vadd.f32 %v11816_v55, %v2618_v4  ;;  %v8540_v50 = vadd.f32 %v3216_v23, %v3086_v52  ;;  %v8557_v23 = vunpack.i.h.bf16 %v5251_v10 }
 0x171   : > { %11808 = vst [vmem:[#allocation187_spill] sm:$0xff] %v8510_v40  ;;  %v3087_v15 = vadd.f32 %v11811_v13, %v8135_v27  ;;  %11813 = vst [vmem:[#allocation3_spill] sm:$0xff] %v8523_v17  ;;  %v8527_v40 = vmul.f32 %v8476_v61, %v8127_v28  ;;  %v11818_v27 = vld [vmem:[#allocation18_spill] sm:$0xff]  ;;  %v3028_v2 = vmul.f32 %v11821_v59, %v11396_v41  ;;  %v5266_v61 = vpop.permute.xlu1 %5265  ;;  %v8559_v55 = vunpack.i.l.bf16 %v5251_v10 }
 0x172   : > { %v2652_v37 = vadd.f32 %v2540_v47, %v7694_v60  ;;  %11815 = vst [vmem:[#allocation73_spill] sm:$0xff] %v8532_v36  ;;  %11817 = vst [vmem:[#allocation215_spill] sm:$0xff] %v8535_v42  ;;  %v8538_v13 = vadd.f32 %v11818_v27, %v2653_v12  ;;  %v11825_v47 = vld [vmem:[#allocation112_spill] sm:$0xff]  ;;  %v3270_v4 = vmul.f32 %v8094_v18, %v8119_v33  ;;  %v11829_v27 = vld [vmem:[#allocation81_spill] sm:$0xff] }
 0x173   : > { %11814 = vst [vmem:[#allocation222_spill] sm:$0xff] %v8527_v40  ;;  %11820 = vst [vmem:[#allocation18_spill] sm:$0xff] %v8540_v50  ;;  %v11822_v40 = vld [vmem:[#allocation20_spill] sm:$0xff]  ;;  %v8547_v60 = vadd.f32 %v3217_v11, %v3087_v15  ;;  %v3029_v36 = vmul.f32 %v11825_v47, %v11396_v41  ;;  %v3271_v12 = vmul.f32 %v8087_v21, %v8119_v33  ;;  %v8563_v15 = vunpack.i.l.bf16 %v5266_v61  ;;  %v11832_v41 = vld [vmem:[#allocation79_spill] sm:$0xff] }
 0x174   : > { %11819 = vst [vmem:[#allocation217_spill] sm:$0xff] %v8538_v13  ;;  %v8545_v17 = vadd.f32 %v11822_v40, %v2652_v37  ;;  %v3704_v52 = vmul.f32 %v11821_v59, %v11398_v3  ;;  %11826 = vst [vmem:[#allocation341_spill] sm:$0xff] %v8557_v23  ;;  %v8561_v37 = vunpack.i.h.bf16 %v5266_v61  ;;  %v11828_v40 = vld [vmem:[#allocation227_spill] sm:$0xff]  ;;  %v2539_v50 = vmul.f32 %v8557_v23, %v8097_v0 }
 0x175   : > { %11824 = vst [vmem:[#allocation340_spill] sm:$0xff] %v8547_v60  ;;  %11827 = vst [vmem:[#allocation342_spill] sm:$0xff] %v8559_v55  ;;  %v3090_v11 = vadd.f32 %v11828_v40, %v8183_v22  ;;  %v3091_v60 = vadd.f32 %v11829_v27, %v8165_v31  ;;  %v3215_v13 = vmul.f32 %v8557_v23, %v8119_v33  ;;  %v11831_v27 = vld [vmem:[#allocation223_spill] sm:$0xff] }
 0x176   : > { %11823 = vst [vmem:[#allocation20_spill] sm:$0xff] %v8545_v17  ;;  %v2538_v10 = vmul.f32 %v8559_v55, %v8097_v0  ;;  %v3214_v17 = vmul.f32 %v8559_v55, %v8119_v33  ;;  %v3705_v61 = vmul.f32 %v11825_v47, %v11398_v3  ;;  %v2545_v22 = vmul.f32 %v8561_v37, %v8097_v0 }
 0x177   : > { %v3221_v31 = vmul.f32 %v8561_v37, %v8119_v33  ;;  %v8585_v40 = vmul.f32 %v8561_v37, %v11398_v3  ;;  %v2651_v23 = vadd.f32 %v2539_v50, %v11831_v27  ;;  %v3327_v55 = vadd.f32 %v3215_v13, %v8151_v7  ;;  %v11836_v27 = vld [vmem:[#allocation59_spill] sm:$0xff]  ;;  %v11839_v7 = vld [vmem:[#allocation229_spill] sm:$0xff] }
 0x178   : > { %v2650_v29 = vadd.f32 %v2538_v10, %v11832_v41  ;;  %v3326_v21 = vadd.f32 %v3214_v17, %v8162_v44  ;;  %v2657_v18 = vadd.f32 %v2545_v22, %v7745_v43  ;;  %v2544_v47 = vmul.f32 %v8563_v15, %v8097_v0  ;;  %v11837_v10 = vld [vmem:[#allocation29_spill] sm:$0xff]  ;;  %v5261_v17 = vpop.permute.xlu0 %5260  ;;  %v11840_v22 = vld [vmem:[#allocation66_spill] sm:$0xff] }
 0x179   : > { %11830 = vst [vmem:[#allocation227_spill] sm:$0xff] %v8585_v40  ;;  %v3220_v59 = vmul.f32 %v8563_v15, %v8119_v33  ;;  %v8596_v42 = vadd.f32 %v3221_v31, %v3091_v60  ;;  %v2899_v40 = vadd.f32 %v11834_v39, %v2651_v23  ;;  %v3575_v44 = vadd.f32 %v11837_v10, %v3327_v55  ;;  %v11850_v10 = vld [vmem:[#allocation9_spill] sm:$0xff] }
 0x17a   : > { %v2898_v50 = vadd.f32 %v11835_v49, %v2650_v29  ;;  %v3574_v41 = vadd.f32 %v11836_v27, %v3326_v21  ;;  %v8604_v43 = vmul.f32 %v8561_v37, %v8127_v28  ;;  %v2656_v13 = vadd.f32 %v2544_v47, %v11839_v7  ;;  %v11844_v49 = vld [vmem:[#allocation68_spill] sm:$0xff] }
 0x17b   : > { %11833 = vst [vmem:[#allocation81_spill] sm:$0xff] %v8596_v42  ;;  %v8608_v30 = vadd.f32 %v11840_v22, %v2657_v18  ;;  %v8610_v60 = vadd.f32 %v3220_v59, %v3090_v11  ;;  %v3141_v31 = vadd.f32 %v3029_v36, %v2899_v40  ;;  %v8616_v21 = vmul.f32 %v8563_v15, %v11398_v3  ;;  %v5276_v18 = vpop.permute.xlu1 %5275 }
 0x17c   : > { %11838 = vst [vmem:[#allocation223_spill] sm:$0xff] %v8604_v43  ;;  %v3140_v39 = vadd.f32 %v3028_v2, %v2898_v50  ;;  %v8612_v23 = vadd.f32 %v3704_v52, %v3574_v41  ;;  %v8618_v29 = vadd.f32 %v3705_v61, %v3575_v44  ;;  %v8621_v55 = vadd.f32 %v11844_v49, %v2656_v13  ;;  %v11848_v2 = vld [vmem:[#allocation230_spill] sm:$0xff]  ;;  %v11853_v44 = vld [vmem:[#allocation232_spill] sm:$0xff] }
 0x17d   : > { %11841 = vst [vmem:[#allocation79_spill] sm:$0xff] %v8608_v30  ;;  %11842 = vst [vmem:[#allocation28_spill] sm:$0xff] %v8610_v60  ;;  %v8623_v27 = vunpack.i.h.bf16 %v5261_v17  ;;  %v8625_v47 = vunpack.i.l.bf16 %v5261_v17  ;;  %v3383_v59 = vadd.f32 %v3271_v12, %v3141_v31  ;;  %v3088_v36 = vadd.f32 %v7762_v1, %v8216_v35  ;;  %v11849_v12 = vld [vmem:[#allocation188_spill] sm:$0xff]  ;;  %v12035_v60 = vld [vmem:[#allocation297_spill] sm:$0xff] }
 0x17e   : > { %11843 = vst [vmem:[#allocation57_spill] sm:$0xff] %v8616_v21  ;;  %11845 = vst [vmem:[#allocation59_spill] sm:$0xff] %v8621_v55  ;;  %v3382_v11 = vadd.f32 %v3270_v4, %v3140_v39  ;;  %v3089_v52 = vadd.f32 %v11848_v2, %v8213_v9  ;;  %v8645_v35 = vunpack.i.h.bf16 %v5276_v18  ;;  %v8647_v9 = vunpack.i.l.bf16 %v5276_v18  ;;  %v11857_v2 = vld [vmem:[#allocation26_spill] sm:$0xff] }
 0x17f   : > { %11846 = vst [vmem:[#allocation29_spill] sm:$0xff] %v8623_v27  ;;  %11847 = vst [vmem:[#allocation229_spill] sm:$0xff] %v8625_v47  ;;  %v2543_v61 = vmul.f32 %v8623_v27, %v8097_v0  ;;  %v3219_v40 = vmul.f32 %v8623_v27, %v8119_v33  ;;  %v2542_v50 = vmul.f32 %v8625_v47, %v8097_v0 }
 0x180   : > { %v3218_v41 = vmul.f32 %v8625_v47, %v8119_v33  ;;  %v8640_v4 = vadd.f32 %v11849_v12, %v3383_v59  ;;  %v8643_v1 = vadd.f32 %v11850_v10, %v3382_v11  ;;  %11851 = vst [vmem:[#allocation66_spill] sm:$0xff] %v8645_v35  ;;  %11852 = vst [vmem:[#allocation68_spill] sm:$0xff] %v8647_v9  ;;  %v11856_v59 = vld [vmem:[#allocation24_spill] sm:$0xff]  ;;  %v5271_v10 = vpop.permute.xlu0 %5270 }
 0x181   : > { %v2655_v17 = vadd.f32 %v2543_v61, %v11853_v44  ;;  %v2654_v7 = vadd.f32 %v2542_v50, %v7773_v24  ;;  %v3331_v22 = vadd.f32 %v3219_v40, %v3089_v52  ;;  %v8653_v31 = vmul.f32 %v8563_v15, %v8127_v28  ;;  %v11861_v44 = vld [vmem:[#allocation117_spill] sm:$0xff]  ;;  %v12055_v47 = vld [vmem:[#allocation84_spill] sm:$0xff] }
 0x182   : > { %v3330_v13 = vadd.f32 %v3218_v41, %v3088_v36  ;;  %v2549_v39 = vmul.f32 %v8645_v35, %v8097_v0  ;;  %v3225_v49 = vmul.f32 %v8645_v35, %v8119_v33  ;;  %v8661_v18 = vmul.f32 %v8645_v35, %v11398_v3  ;;  %v11858_v36 = vld [vmem:[#allocation27_spill] sm:$0xff] }
 0x183   : > { %11854 = vst [vmem:[#allocation230_spill] sm:$0xff] %v8653_v31  ;;  %v2903_v11 = vadd.f32 %v11856_v59, %v2655_v17  ;;  %v2902_v24 = vadd.f32 %v11857_v2, %v2654_v7  ;;  %v8670_v61 = vmul.f32 %v8645_v35, %v8127_v28  ;;  %v2548_v50 = vmul.f32 %v8647_v9, %v8097_v0  ;;  %v11862_v7 = vld [vmem:[#allocation50_spill] sm:$0xff]  ;;  %v11863_v59 = vld [vmem:[#allocation25_spill] sm:$0xff] }
 0x184   : > { %11855 = vst [vmem:[#allocation188_spill] sm:$0xff] %v8661_v18  ;;  %v8666_v52 = vadd.f32 %v11858_v36, %v3330_v13  ;;  %v2661_v40 = vadd.f32 %v2549_v39, %v7808_v38  ;;  %v3094_v41 = vadd.f32 %v7801_v53, %v8269_v25  ;;  %v3095_v12 = vadd.f32 %v7789_v62, %v8225_v14  ;;  %v11865_v36 = vld [vmem:[#allocation30_spill] sm:$0xff]  ;;  %v5286_v14 = vpop.permute.xlu1 %5285  ;;  %v12027_v18 = vld [vmem:[#allocation177_spill] sm:$0xff] }
 0x185   : > { %11860 = vst [vmem:[#allocation232_spill] sm:$0xff] %v8670_v61  ;;  %v3145_v17 = vadd.f32 %v11861_v44, %v2903_v11  ;;  %v3144_v13 = vadd.f32 %v11862_v7, %v2902_v24  ;;  %v8682_v2 = vadd.f32 %v11863_v59, %v3331_v22  ;;  %v3224_v38 = vmul.f32 %v8647_v9, %v8119_v33 }
 0x186   : > { %11859 = vst [vmem:[#allocation9_spill] sm:$0xff] %v8666_v52  ;;  %v2660_v39 = vadd.f32 %v2548_v50, %v7818_v46  ;;  %v8688_v61 = vadd.f32 %v11865_v36, %v2661_v40  ;;  %v8690_v53 = vadd.f32 %v3225_v49, %v3095_v12  ;;  %v8694_v62 = vmul.f32 %v8647_v9, %v11398_v3  ;;  %v11875_v40 = vld [vmem:[#allocation240_spill] sm:$0xff]  ;;  %v11876_v12 = vld [vmem:[#allocation238_spill] sm:$0xff] }
 0x187   : > { %11864 = vst [vmem:[#allocation24_spill] sm:$0xff] %v8682_v2  ;;  %v8697_v25 = vadd.f32 %v8140_v20, %v3145_v17  ;;  %v8700_v22 = vadd.f32 %v8155_v19, %v3144_v13  ;;  %v8702_v11 = vadd.f32 %v3224_v38, %v3094_v41  ;;  %v8704_v24 = vunpack.i.h.bf16 %v5271_v10 }
 0x188   : > { %11866 = vst [vmem:[#allocation26_spill] sm:$0xff] %v8688_v61  ;;  %11867 = vst [vmem:[#allocation27_spill] sm:$0xff] %v8690_v53  ;;  %v8708_v46 = vmul.f32 %v8647_v9, %v8127_v28  ;;  %v8710_v49 = vunpack.i.l.bf16 %v5271_v10  ;;  %v3092_v50 = vadd.f32 %v11875_v40, %v8282_v45  ;;  %v3093_v20 = vadd.f32 %v11876_v12, %v8279_v6  ;;  %v11881_v12 = vld [vmem:[#allocation85_spill] sm:$0xff] }
 0x189   : > { %11868 = vst [vmem:[#allocation117_spill] sm:$0xff] %v8694_v62  ;;  %11869 = vst [vmem:[#allocation50_spill] sm:$0xff] %v8697_v25  ;;  %v2547_v19 = vmul.f32 %v8704_v24, %v8097_v0  ;;  %v3223_v41 = vmul.f32 %v8704_v24, %v8119_v33  ;;  %v8720_v44 = vunpack.i.h.bf16 %v5286_v14  ;;  %v8722_v17 = vunpack.i.l.bf16 %v5286_v14  ;;  %v11879_v14 = vld [vmem:[#allocation58_spill] sm:$0xff]  ;;  %v12030_v62 = vld [vmem:[#allocation219_spill] sm:$0xff] }
 0x18a   : > { %11870 = vst [vmem:[#allocation25_spill] sm:$0xff] %v8700_v22  ;;  %11871 = vst [vmem:[#allocation30_spill] sm:$0xff] %v8702_v11  ;;  %v2546_v10 = vmul.f32 %v8710_v49, %v8097_v0  ;;  %v3222_v7 = vmul.f32 %v8710_v49, %v8119_v33  ;;  %v3098_v45 = vadd.f32 %v7870_v51, %v8311_v26 }
 0x18b   : > { %11872 = vst [vmem:[#allocation343_spill] sm:$0xff] %v8704_v24  ;;  %11873 = vst [vmem:[#allocation344_spill] sm:$0xff] %v8708_v46  ;;  %v3099_v6 = vadd.f32 %v7860_v48, %v8291_v56  ;;  %v2659_v13 = vadd.f32 %v2547_v19, %v7831_v16  ;;  %v3335_v59 = vadd.f32 %v3223_v41, %v3093_v20  ;;  %v11883_v48 = vld [vmem:[#allocation62_spill] sm:$0xff]  ;;  %v11885_v19 = vld [vmem:[#allocation64_spill] sm:$0xff] }
 0x18c   : > { %11874 = vst [vmem:[#allocation345_spill] sm:$0xff] %v8710_v49  ;;  %11877 = vst [vmem:[#allocation240_spill] sm:$0xff] %v8720_v44  ;;  %v2553_v38 = vmul.f32 %v8720_v44, %v8097_v0  ;;  %v3229_v36 = vmul.f32 %v8720_v44, %v8119_v33  ;;  %v8738_v40 = vadd.f32 %v11879_v14, %v2660_v39  ;;  %v5281_v39 = vpop.permute.xlu0 %5280 }
 0x18d   : > { %11878 = vst [vmem:[#allocation238_spill] sm:$0xff] %v8722_v17  ;;  %v2658_v53 = vadd.f32 %v2546_v10, %v11881_v12  ;;  %v3334_v11 = vadd.f32 %v3222_v7, %v3092_v50  ;;  %v8743_v51 = vmul.f32 %v8720_v44, %v11398_v3  ;;  %v2907_v56 = vadd.f32 %v11883_v48, %v2659_v13  ;;  %v11886_v10 = vld [vmem:[#allocation63_spill] sm:$0xff]  ;;  %v11889_v13 = vld [vmem:[#allocation49_spill] sm:$0xff]  ;;  %v11892_v48 = vld [vmem:[#allocation246_spill] sm:$0xff] }
 0x18e   : > { %11880 = vst [vmem:[#allocation58_spill] sm:$0xff] %v8738_v40  ;;  %v2665_v16 = vadd.f32 %v2553_v38, %v7880_v58  ;;  %v8749_v26 = vmul.f32 %v8720_v44, %v8127_v28  ;;  %v2552_v20 = vmul.f32 %v8722_v17, %v8097_v0  ;;  %v8755_v50 = vadd.f32 %v11886_v10, %v3335_v59  ;;  %v11890_v38 = vld [vmem:[#allocation65_spill] sm:$0xff] }
 0x18f   : > { %11882 = vst [vmem:[#allocation85_spill] sm:$0xff] %v8743_v51  ;;  %v2906_v41 = vadd.f32 %v11885_v19, %v2658_v53  ;;  %v3228_v7 = vmul.f32 %v8722_v17, %v8119_v33  ;;  %v8759_v14 = vadd.f32 %v3229_v36, %v3099_v6  ;;  %v3149_v58 = vadd.f32 %v11889_v13, %v2907_v56  ;;  %v11893_v51 = vld [vmem:[#allocation97_spill] sm:$0xff]  ;;  %v5296_v36 = vpop.permute.xlu1 %5295 }
 0x190   : > { %11884 = vst [vmem:[#allocation62_spill] sm:$0xff] %v8749_v26  ;;  %11887 = vst [vmem:[#allocation64_spill] sm:$0xff] %v8755_v50  ;;  %v8763_v12 = vadd.f32 %v11890_v38, %v3334_v11  ;;  %v2664_v26 = vadd.f32 %v2552_v20, %v11892_v48  ;;  %v8767_v61 = vadd.f32 %v11893_v51, %v2665_v16  ;;  %v11895_v40 = vld [vmem:[#allocation77_spill] sm:$0xff]  ;;  %v8776_v6 = vunpack.i.h.bf16 %v5281_v39  ;;  %v12032_v50 = vld [vmem:[#allocation114_spill] sm:$0xff] }
 0x191   : > { %11888 = vst [vmem:[#allocation63_spill] sm:$0xff] %v8759_v14  ;;  %v3148_v53 = vadd.f32 %v11895_v40, %v2906_v41  ;;  %v8770_v19 = vadd.f32 %v3228_v7, %v3098_v45  ;;  %v8774_v59 = vmul.f32 %v8722_v17, %v11398_v3  ;;  %v8779_v56 = vadd.f32 %v8203_v32, %v3149_v58  ;;  %v11902_v40 = vld [vmem:[#allocation249_spill] sm:$0xff] }
 0x192   : > { %11891 = vst [vmem:[#allocation49_spill] sm:$0xff] %v8763_v12  ;;  %11894 = vst [vmem:[#allocation65_spill] sm:$0xff] %v8767_v61  ;;  %v8783_v11 = vmul.f32 %v8722_v17, %v8127_v28  ;;  %v8785_v51 = vunpack.i.l.bf16 %v5281_v39  ;;  %v3096_v45 = vadd.f32 %v11902_v40, %v8354_v8  ;;  %v2551_v20 = vmul.f32 %v8776_v6, %v8097_v0  ;;  %v11904_v32 = vld [vmem:[#allocation245_spill] sm:$0xff] }
 0x193   : > { %11896 = vst [vmem:[#allocation246_spill] sm:$0xff] %v8770_v19  ;;  %11897 = vst [vmem:[#allocation97_spill] sm:$0xff] %v8774_v59  ;;  %v8790_v16 = vadd.f32 %v8231_v57, %v3148_v53  ;;  %v3227_v41 = vmul.f32 %v8776_v6, %v8119_v33  ;;  %v3097_v10 = vadd.f32 %v11904_v32, %v8346_v34  ;;  %v8802_v13 = vunpack.i.h.bf16 %v5296_v36  ;;  %v11907_v57 = vld [vmem:[#allocation248_spill] sm:$0xff]  ;;  %v11908_v53 = vld [vmem:[#allocation255_spill] sm:$0xff] }
 0x194   : > { %11898 = vst [vmem:[#allocation77_spill] sm:$0xff] %v8776_v6  ;;  %11899 = vst [vmem:[#allocation346_spill] sm:$0xff] %v8779_v56  ;;  %v2550_v7 = vmul.f32 %v8785_v51, %v8097_v0  ;;  %v3226_v39 = vmul.f32 %v8785_v51, %v8119_v33  ;;  %v8804_v8 = vunpack.i.l.bf16 %v5296_v36  ;;  %v2663_v58 = vadd.f32 %v2551_v20, %v11907_v57  ;;  %v11909_v34 = vld [vmem:[#allocation251_spill] sm:$0xff]  ;;  %v11912_v20 = vld [vmem:[#allocation94_spill] sm:$0xff] }
 0x195   : > { %11900 = vst [vmem:[#allocation347_spill] sm:$0xff] %v8783_v11  ;;  %11901 = vst [vmem:[#allocation348_spill] sm:$0xff] %v8785_v51  ;;  %v3339_v38 = vadd.f32 %v3227_v41, %v3097_v10  ;;  %v3102_v48 = vadd.f32 %v7932_v5, %v8375_v63  ;;  %v3103_v40 = vadd.f32 %v11908_v53, %v8362_v54  ;;  %v11910_v36 = vld [vmem:[#allocation99_spill] sm:$0xff]  ;;  %v11913_v10 = vld [vmem:[#allocation74_spill] sm:$0xff]  ;;  %v5291_v53 = vpop.permute.xlu0 %5290 }
 0x196   : > { %11903 = vst [vmem:[#allocation249_spill] sm:$0xff] %v8790_v16  ;;  %11905 = vst [vmem:[#allocation245_spill] sm:$0xff] %v8802_v13  ;;  %v2662_v32 = vadd.f32 %v2550_v7, %v11909_v34  ;;  %v3338_v14 = vadd.f32 %v3226_v39, %v3096_v45  ;;  %v2557_v19 = vmul.f32 %v8802_v13, %v8097_v0  ;;  %v11916_v54 = vld [vmem:[#allocation75_spill] sm:$0xff]  ;;  %v12013_v6 = vld [vmem:[#allocation41_spill] sm:$0xff] }
 0x197   : > { %11906 = vst [vmem:[#allocation349_spill] sm:$0xff] %v8804_v8  ;;  %v3233_v61 = vmul.f32 %v8802_v13, %v8119_v33  ;;  %v8817_v11 = vadd.f32 %v11910_v36, %v2664_v26  ;;  %v2911_v41 = vadd.f32 %v11912_v20, %v2663_v58  ;;  %v8821_v57 = vadd.f32 %v11913_v10, %v3339_v38  ;;  %v11917_v45 = vld [vmem:[#allocation259_spill] sm:$0xff]  ;;  %v11920_v38 = vld [vmem:[#allocation61_spill] sm:$0xff] }
 0x198   : > { %v8825_v5 = vmul.f32 %v8802_v13, %v11398_v3  ;;  %v2910_v63 = vadd.f32 %v11916_v54, %v2662_v32  ;;  %v2669_v7 = vadd.f32 %v2557_v19, %v11917_v45  ;;  %v8831_v39 = vmul.f32 %v8802_v13, %v8127_v28  ;;  %v11919_v58 = vld [vmem:[#allocation51_spill] sm:$0xff]  ;;  %v11924_v54 = vld [vmem:[#allocation262_spill] sm:$0xff]  ;;  %v12022_v44 = vld [vmem:[#allocation109_spill] sm:$0xff] }
 0x199   : > { %11911 = vst [vmem:[#allocation248_spill] sm:$0xff] %v8817_v11  ;;  %11914 = vst [vmem:[#allocation255_spill] sm:$0xff] %v8821_v57  ;;  %v2556_v26 = vmul.f32 %v8804_v8, %v8097_v0  ;;  %v3153_v34 = vadd.f32 %v11919_v58, %v2911_v41  ;;  %v8837_v36 = vadd.f32 %v11920_v38, %v3338_v14  ;;  %v11923_v32 = vld [vmem:[#allocation143_spill] sm:$0xff]  ;;  %v11928_v41 = vld [vmem:[#allocation53_spill] sm:$0xff]  ;;  %v8857_v38 = vunpack.i.h.bf16 %v5291_v53 }
 0x19a   : > { %11915 = vst [vmem:[#allocation251_spill] sm:$0xff] %v8825_v5  ;;  %11918 = vst [vmem:[#allocation99_spill] sm:$0xff] %v8831_v39  ;;  %v3232_v20 = vmul.f32 %v8804_v8, %v8119_v33  ;;  %v8841_v10 = vadd.f32 %v3233_v61, %v3103_v40  ;;  %v3152_v19 = vadd.f32 %v11923_v32, %v2910_v63  ;;  %v11925_v5 = vld [vmem:[#allocation36_spill] sm:$0xff]  ;;  %v8859_v61 = vunpack.i.l.bf16 %v5291_v53  ;;  %v5306_v40 = vpop.permute.xlu1 %5305  ;;  %v11933_v63 = vld [vmem:[#allocation139_spill] sm:$0xff] }
 0x19b   : > { %11921 = vst [vmem:[#allocation94_spill] sm:$0xff] %v8837_v36  ;;  %v2668_v45 = vadd.f32 %v2556_v26, %v11924_v54  ;;  %v8846_v39 = vadd.f32 %v11925_v5, %v2669_v7  ;;  %v8850_v11 = vmul.f32 %v8804_v8, %v11398_v3  ;;  %v8853_v58 = vadd.f32 %v11928_v41, %v3153_v34  ;;  %v11936_v7 = vld [vmem:[#allocation199_spill] sm:$0xff]  ;;  %v11939_v34 = vld [vmem:[#allocation260_spill] sm:$0xff]  ;;  %v5301_v36 = vpop.permute.xlu0 %5300 }
 0x19c   : > { %11922 = vst [vmem:[#allocation74_spill] sm:$0xff] %v8841_v10  ;;  %v8855_v14 = vadd.f32 %v3232_v20, %v3102_v48  ;;  %11931 = vst [vmem:[#allocation143_spill] sm:$0xff] %v8857_v38  ;;  %v8862_v32 = vadd.f32 %v11933_v63, %v3152_v19  ;;  %v8866_v5 = vmul.f32 %v8804_v8, %v8127_v28  ;;  %v11937_v26 = vld [vmem:[#allocation263_spill] sm:$0xff]  ;;  %v11938_v10 = vld [vmem:[#allocation197_spill] sm:$0xff]  ;;  %v8880_v63 = vunpack.i.h.bf16 %v5306_v40 }
 0x19d   : > { %11926 = vst [vmem:[#allocation75_spill] sm:$0xff] %v8846_v39  ;;  %11927 = vst [vmem:[#allocation259_spill] sm:$0xff] %v8850_v11  ;;  %v3100_v54 = vadd.f32 %v11937_v26, %v11936_v7  ;;  %v3101_v41 = vadd.f32 %v11939_v34, %v11938_v10  ;;  %v2555_v48 = vmul.f32 %v8857_v38, %v8097_v0  ;;  %v11942_v7 = vld [vmem:[#allocation203_spill] sm:$0xff]  ;;  %v11943_v26 = vld [vmem:[#allocation273_spill] sm:$0xff] }
 0x19e   : > { %11929 = vst [vmem:[#allocation51_spill] sm:$0xff] %v8853_v58  ;;  %11930 = vst [vmem:[#allocation61_spill] sm:$0xff] %v8855_v14  ;;  %v3231_v53 = vmul.f32 %v8857_v38, %v8119_v33  ;;  %v2554_v20 = vmul.f32 %v8859_v61, %v8097_v0  ;;  %v3230_v19 = vmul.f32 %v8859_v61, %v8119_v33  ;;  %v8882_v14 = vunpack.i.l.bf16 %v5306_v40  ;;  %v11944_v10 = vld [vmem:[#allocation201_spill] sm:$0xff]  ;;  %v11945_v34 = vld [vmem:[#allocation271_spill] sm:$0xff] }
 0x19f   : > { %11932 = vst [vmem:[#allocation262_spill] sm:$0xff] %v8859_v61  ;;  %11934 = vst [vmem:[#allocation36_spill] sm:$0xff] %v8862_v32  ;;  %v3106_v39 = vadd.f32 %v11943_v26, %v11942_v7  ;;  %v11946_v11 = vld [vmem:[#allocation265_spill] sm:$0xff]  ;;  %v11947_v8 = vld [vmem:[#allocation266_spill] sm:$0xff]  ;;  %v2561_v40 = vmul.f32 %v8880_v63, %v8097_v0  ;;  %v3237_v61 = vmul.f32 %v8880_v63, %v8119_v33 }
 0x1a0   : > { %11935 = vst [vmem:[#allocation53_spill] sm:$0xff] %v8866_v5  ;;  %11940 = vst [vmem:[#allocation139_spill] sm:$0xff] %v8880_v63  ;;  %v3107_v5 = vadd.f32 %v11945_v34, %v11944_v10  ;;  %v2667_v13 = vadd.f32 %v2555_v48, %v11946_v11  ;;  %v2666_v38 = vadd.f32 %v2554_v20, %v11947_v8  ;;  %v11948_v58 = vld [vmem:[#allocation104_spill] sm:$0xff]  ;;  %v11951_v26 = vld [vmem:[#allocation31_spill] sm:$0xff] }
 0x1a1   : > { %11941 = vst [vmem:[#allocation199_spill] sm:$0xff] %v8882_v14  ;;  %v3342_v59 = vadd.f32 %v3230_v19, %v3100_v54  ;;  %v3343_v57 = vadd.f32 %v3231_v53, %v3101_v41  ;;  %v8891_v32 = vadd.f32 %v11948_v58, %v2668_v45  ;;  %v8899_v7 = vmul.f32 %v8880_v63, %v11398_v3  ;;  %v11952_v48 = vld [vmem:[#allocation34_spill] sm:$0xff]  ;;  %v11953_v54 = vld [vmem:[#allocation96_spill] sm:$0xff]  ;;  %v11956_v58 = vld [vmem:[#allocation95_spill] sm:$0xff] }
 0x1a2   : > { %v2915_v11 = vadd.f32 %v11951_v26, %v2667_v13  ;;  %v2914_v8 = vadd.f32 %v11952_v48, %v2666_v38  ;;  %v8908_v45 = vmul.f32 %v8880_v63, %v8127_v28  ;;  %v11958_v20 = vld [vmem:[#allocation276_spill] sm:$0xff]  ;;  %v2560_v10 = vmul.f32 %v8882_v14, %v8097_v0  ;;  %v11960_v26 = vld [vmem:[#allocation155_spill] sm:$0xff] }
 0x1a3   : > { %11949 = vst [vmem:[#allocation263_spill] sm:$0xff] %v8891_v32  ;;  %11950 = vst [vmem:[#allocation197_spill] sm:$0xff] %v8899_v7  ;;  %v8904_v41 = vadd.f32 %v11953_v54, %v3342_v59  ;;  %v8911_v53 = vadd.f32 %v11956_v58, %v3343_v57  ;;  %v2673_v19 = vadd.f32 %v2561_v40, %v11958_v20  ;;  %v11959_v34 = vld [vmem:[#allocation152_spill] sm:$0xff]  ;;  %v11963_v57 = vld [vmem:[#allocation275_spill] sm:$0xff]  ;;  %v8934_v7 = vunpack.i.h.bf16 %v5301_v36 }
 0x1a4   : > { %11955 = vst [vmem:[#allocation203_spill] sm:$0xff] %v8908_v45  ;;  %v3236_v13 = vmul.f32 %v8882_v14, %v8119_v33  ;;  %v3157_v38 = vadd.f32 %v11959_v34, %v2915_v11  ;;  %v3156_v59 = vadd.f32 %v11960_v26, %v2914_v8  ;;  %v8920_v48 = vadd.f32 %v3237_v61, %v3107_v5  ;;  %v11964_v45 = vld [vmem:[#allocation44_spill] sm:$0xff]  ;;  %v5316_v11 = vpop.permute.xlu1 %5315  ;;  %v11968_v34 = vld [vmem:[#allocation319_spill] sm:$0xff] }
 0x1a5   : > { %11954 = vst [vmem:[#allocation260_spill] sm:$0xff] %v8904_v41  ;;  %11957 = vst [vmem:[#allocation273_spill] sm:$0xff] %v8911_v53  ;;  %v8924_v54 = vmul.f32 %v8882_v14, %v11398_v3  ;;  %v2672_v58 = vadd.f32 %v2560_v10, %v11963_v57  ;;  %v8928_v40 = vadd.f32 %v11964_v45, %v2673_v19  ;;  %v11970_v61 = vld [vmem:[#allocation320_spill] sm:$0xff]  ;;  %v8942_v26 = vunpack.i.l.bf16 %v5301_v36  ;;  %v11974_v10 = vld [vmem:[#allocation279_spill] sm:$0xff]  ;;  %v5311_v45 = vpop.permute.xlu0 %5310 }
 0x1a6   : > { %11961 = vst [vmem:[#allocation201_spill] sm:$0xff] %v8920_v48  ;;  %v8932_v20 = vmul.f32 %v8882_v14, %v8127_v28  ;;  %11967 = vst [vmem:[#allocation104_spill] sm:$0xff] %v8934_v7  ;;  %v8937_v8 = vadd.f32 %v11968_v34, %v3157_v38  ;;  %v8940_v5 = vadd.f32 %v11970_v61, %v3156_v59  ;;  %v11973_v48 = vld [vmem:[#allocation72_spill] sm:$0xff]  ;;  %v11977_v38 = vld [vmem:[#allocation277_spill] sm:$0xff]  ;;  %v8958_v61 = vunpack.i.h.bf16 %v5316_v11 }
 0x1a7   : > { %11962 = vst [vmem:[#allocation271_spill] sm:$0xff] %v8924_v54  ;;  %11965 = vst [vmem:[#allocation265_spill] sm:$0xff] %v8928_v40  ;;  %v3104_v57 = vadd.f32 %v11974_v10, %v11973_v48  ;;  %v8946_v19 = vadd.f32 %v3236_v13, %v3106_v39  ;;  %v2559_v40 = vmul.f32 %v8934_v7, %v8097_v0  ;;  %v11976_v54 = vld [vmem:[#allocation205_spill] sm:$0xff]  ;;  %v8960_v48 = vunpack.i.l.bf16 %v5316_v11  ;;  %v11980_v39 = vld [vmem:[#allocation282_spill] sm:$0xff] }
 0x1a8   : > { %11966 = vst [vmem:[#allocation266_spill] sm:$0xff] %v8932_v20  ;;  %11969 = vst [vmem:[#allocation31_spill] sm:$0xff] %v8937_v8  ;;  %v3235_v20 = vmul.f32 %v8934_v7, %v8119_v33  ;;  %v3105_v34 = vadd.f32 %v11977_v38, %v11976_v54  ;;  %v2558_v59 = vmul.f32 %v8942_v26, %v8097_v0  ;;  %v8965_v32 = vunpack.i.l.bf16 %v5311_v45  ;;  %v11983_v7 = vld [vmem:[#allocation110_spill] sm:$0xff]  ;;  %v11985_v54 = vld [vmem:[#allocation281_spill] sm:$0xff] }
 0x1a9   : > { %11971 = vst [vmem:[#allocation34_spill] sm:$0xff] %v8940_v5  ;;  %11972 = vst [vmem:[#allocation96_spill] sm:$0xff] %v8942_v26  ;;  %v3234_v36 = vmul.f32 %v8942_v26, %v8119_v33  ;;  %v2671_v13 = vadd.f32 %v2559_v40, %v11980_v39  ;;  %v8968_v63 = vadd.f32 %v11983_v7, %v2672_v58  ;;  %v11987_v53 = vld [vmem:[#allocation101_spill] sm:$0xff]  ;;  %v11988_v41 = vld [vmem:[#allocation102_spill] sm:$0xff] }
 0x1aa   : > { %11975 = vst [vmem:[#allocation95_spill] sm:$0xff] %v8946_v19  ;;  %11978 = vst [vmem:[#allocation276_spill] sm:$0xff] %v8958_v61  ;;  %v3347_v10 = vadd.f32 %v3235_v20, %v3105_v34  ;;  %v8963_v19 = vunpack.i.h.bf16 %v5311_v45  ;;  %v2670_v38 = vadd.f32 %v2558_v59, %v11985_v54  ;;  %v8973_v26 = vmul.f32 %v8958_v61, %v11398_v3  ;;  %v11992_v58 = vld [vmem:[#allocation37_spill] sm:$0xff]  ;;  %v11994_v45 = vld [vmem:[#allocation167_spill] sm:$0xff] }
 0x1ab   : > { %11979 = vst [vmem:[#allocation152_spill] sm:$0xff] %v8960_v48  ;;  %11982 = vst [vmem:[#allocation275_spill] sm:$0xff] %v8965_v32  ;;  %v3346_v14 = vadd.f32 %v3234_v36, %v3104_v57  ;;  %v2919_v11 = vadd.f32 %v11987_v53, %v2671_v13  ;;  %v8981_v40 = vmul.f32 %v8958_v61, %v8127_v28  ;;  %v11995_v36 = vld [vmem:[#allocation215_spill] sm:$0xff]  ;;  %v11998_v54 = vld [vmem:[#allocation289_spill] sm:$0xff] }
 0x1ac   : > { %11981 = vst [vmem:[#allocation155_spill] sm:$0xff] %v8963_v19  ;;  %11984 = vst [vmem:[#allocation44_spill] sm:$0xff] %v8968_v63  ;;  %v8977_v8 = vadd.f32 %v11988_v41, %v3347_v10  ;;  %v8985_v7 = vmul.f32 %v8960_v48, %v11398_v3  ;;  %v2918_v20 = vadd.f32 %v11992_v58, %v2670_v38  ;;  %v11996_v39 = vld [vmem:[#allocation291_spill] sm:$0xff]  ;;  %v12007_v5 = vld [vmem:[#allocation113_spill] sm:$0xff] }
 0x1ad   : > { %11986 = vst [vmem:[#allocation319_spill] sm:$0xff] %v8973_v26  ;;  %11990 = vst [vmem:[#allocation72_spill] sm:$0xff] %v8981_v40  ;;  %v8990_v57 = vmul.f32 %v8960_v48, %v8127_v28  ;;  %v2563_v53 = vmul.f32 %v8963_v19, %v8097_v0  ;;  %v3239_v41 = vmul.f32 %v8963_v19, %v8119_v33  ;;  %v11997_v10 = vld [vmem:[#allocation3_spill] sm:$0xff]  ;;  %v12005_v48 = vld [vmem:[#allocation293_spill] sm:$0xff] }
 0x1ae   : > { %11989 = vst [vmem:[#allocation320_spill] sm:$0xff] %v8977_v8  ;;  %11991 = vst [vmem:[#allocation279_spill] sm:$0xff] %v8985_v7  ;;  %v3161_v34 = vadd.f32 %v11994_v45, %v2919_v11  ;;  %v2562_v59 = vmul.f32 %v8965_v32, %v8097_v0  ;;  %v3108_v13 = vadd.f32 %v11996_v39, %v11995_v36  ;;  %v11999_v58 = vld [vmem:[#allocation55_spill] sm:$0xff]  ;;  %v12002_v7 = vld [vmem:[#allocation294_spill] sm:$0xff]  ;;  %v5326_v11 = vpop.permute.xlu1 %5325 }
 0x1af   : > { %11993 = vst [vmem:[#allocation205_spill] sm:$0xff] %v8990_v57  ;;  %v3109_v38 = vadd.f32 %v11998_v54, %v11997_v10  ;;  %v3160_v40 = vadd.f32 %v11999_v58, %v2918_v20  ;;  %v12000_v57 = vld [vmem:[#allocation35_spill] sm:$0xff]  ;;  %v2675_v63 = vadd.f32 %v2563_v53, %v12002_v7  ;;  %v3238_v19 = vmul.f32 %v8965_v32, %v8119_v33  ;;  %v12008_v54 = vld [vmem:[#allocation324_spill] sm:$0xff] }
 0x1b0   : > { %v9005_v26 = vadd.f32 %v12000_v57, %v3346_v14  ;;  %v12003_v45 = vld [vmem:[#allocation323_spill] sm:$0xff]  ;;  %v2674_v8 = vadd.f32 %v2562_v59, %v12005_v48  ;;  %v12011_v7 = vld [vmem:[#allocation112_spill] sm:$0xff]  ;;  %v12016_v48 = vld [vmem:[#allocation33_spill] sm:$0xff]  ;;  %v5328_v59 = vunpack.i.h.bf16 %v5326_v11 }
 0x1b1   : > { %v9011_v61 = vadd.f32 %v12003_v45, %v3161_v34  ;;  %v3351_v36 = vadd.f32 %v3239_v41, %v3109_v38  ;;  %v12006_v39 = vld [vmem:[#allocation91_spill] sm:$0xff]  ;;  %v9017_v20 = vadd.f32 %v12008_v54, %v3160_v40  ;;  %v3350_v58 = vadd.f32 %v3238_v19, %v3108_v13  ;;  %v12012_v32 = vld [vmem:[#allocation108_spill] sm:$0xff]  ;;  %v12017_v38 = vld [vmem:[#allocation178_spill] sm:$0xff] }
 0x1b2   : > { %12001 = vst [vmem:[#allocation277_spill] sm:$0xff] %v9005_v26  ;;  %v1271_v10 = vmul.f32 %v12007_v5, %v12006_v39  ;;  %v12010_v14 = vld [vmem:[#allocation107_spill] sm:$0xff]  ;;  %v1272_v53 = vmul.f32 %v12011_v7, %v12006_v39  ;;  %v2922_v26 = vadd.f32 %v12012_v32, %v2674_v8  ;;  %v12015_v45 = vld [vmem:[#allocation92_spill] sm:$0xff]  ;;  %v9039_v8 = vmul.f32 %v5328_v59, %v8119_v33 }
 0x1b3   : > { %12004 = vst [vmem:[#allocation282_spill] sm:$0xff] %v9011_v61  ;;  %12009 = vst [vmem:[#allocation110_spill] sm:$0xff] %v9017_v20  ;;  %v2923_v57 = vadd.f32 %v12010_v14, %v2675_v63  ;;  %v9024_v34 = vadd.f32 %v12013_v6, %v3351_v36  ;;  %v2760_v41 = vmul.f32 %v12016_v48, %v12015_v45  ;;  %v12018_v40 = vld [vmem:[#allocation60_spill] sm:$0xff]  ;;  %v5327_v20 = vunpack.i.l.bf16 %v5326_v11  ;;  %v12019_v63 = vld [vmem:[#allocation38_spill] sm:$0xff]  ;;  %v5321_v36 = vpop.permute.xlu0 %5320 }
 0x1b4   : > { %v2761_v54 = vmul.f32 %v12018_v40, %v12015_v45  ;;  %v12020_v19 = vld [vmem:[#allocation295_spill] sm:$0xff]  ;;  %v12021_v14 = vld [vmem:[#allocation181_spill] sm:$0xff]  ;;  %v9035_v32 = vadd.f32 %v12022_v44, %v3350_v58  ;;  %v2513_v6 = vmul.f32 %v5328_v59, %v8097_v0  ;;  %v9051_v44 = vmul.f32 %v5328_v59, %v8127_v28 }
 0x1b5   : > { %12014 = vst [vmem:[#allocation281_spill] sm:$0xff] %v9024_v34  ;;  %v3165_v61 = vadd.f32 %v12017_v38, %v2923_v57  ;;  %v1892_v13 = vmul.f32 %v12020_v19, %v12019_v63  ;;  %v3164_v51 = vadd.f32 %v12021_v14, %v2922_v26  ;;  %v12024_v34 = vld [vmem:[#allocation331_spill] sm:$0xff]  ;;  %v12026_v38 = vld [vmem:[#allocation90_spill] sm:$0xff]  ;;  %v2512_v46 = vmul.f32 %v5327_v20, %v8097_v0 }
 0x1b6   : > { %12023 = vst [vmem:[#allocation101_spill] sm:$0xff] %v9035_v32  ;;  %v1893_v11 = vmul.f32 %v12026_v38, %v12019_v63  ;;  %v9054_v58 = vmul.f32 %v5327_v20, %v8119_v33  ;;  %v9057_v14 = vmul.f32 %v5327_v20, %v8127_v28  ;;  %v12029_v32 = vld [vmem:[#allocation220_spill] sm:$0xff]  ;;  %v12031_v59 = vld [vmem:[#allocation115_spill] sm:$0xff]  ;;  %v1276_v12 = vmul.f32 %v12032_v50, %v12006_v39 }
 0x1b7   : > { %v9042_v57 = vadd.f32 %v12024_v34, %v3165_v61  ;;  %v2004_v17 = vadd.f32 %v1892_v13, %v1271_v10  ;;  %v9048_v26 = vadd.f32 %v12027_v18, %v3164_v51  ;;  %v5323_v10 = vunpack.i.h.bf16 %v5321_v36  ;;  %v5336_v13 = vpop.permute.xlu1 %5335  ;;  %v5331_v43 = vpop.permute.xlu0 %5330 }
 0x1b8   : > { %v2005_v61 = vadd.f32 %v1893_v11, %v1272_v53  ;;  %v2759_v18 = vmul.f32 %v12030_v62, %v12015_v45  ;;  %v5322_v51 = vunpack.i.l.bf16 %v5321_v36  ;;  %v5338_v16 = vunpack.i.h.bf16 %v5336_v13  ;;  %v12034_v36 = vld [vmem:[#allocation298_spill] sm:$0xff] }
 0x1b9   : > { %12025 = vst [vmem:[#allocation102_spill] sm:$0xff] %v9042_v57  ;;  %12028 = vst [vmem:[#allocation37_spill] sm:$0xff] %v9048_v26  ;;  %v2624_v34 = vadd.f32 %v2512_v46, %v2004_v17  ;;  %v2758_v57 = vmul.f32 %v12029_v32, %v12015_v45  ;;  %v1275_v26 = vmul.f32 %v12031_v59, %v12006_v39  ;;  %v12033_v17 = vld [vmem:[#allocation224_spill] sm:$0xff]  ;;  %v5337_v24 = vunpack.i.l.bf16 %v5336_v13  ;;  %v12040_v13 = vld [vmem:[#allocation42_spill] sm:$0xff] }
 0x1ba   : > { %v2625_v56 = vadd.f32 %v2513_v6, %v2005_v61  ;;  %v2511_v46 = vmul.f32 %v5323_v10, %v8097_v0  ;;  %v2764_v53 = vmul.f32 %v12033_v17, %v12015_v45  ;;  %v2510_v11 = vmul.f32 %v5322_v51, %v8097_v0  ;;  %v12036_v6 = vld [vmem:[#allocation80_spill] sm:$0xff]  ;;  %v12056_v59 = vld [vmem:[#allocation307_spill] sm:$0xff] }
 0x1bb   : > { %v9067_v20 = vadd.f32 %v2760_v41, %v2624_v34  ;;  %v1896_v49 = vmul.f32 %v12034_v36, %v12019_v63  ;;  %v2765_v41 = vmul.f32 %v12036_v6, %v12015_v45  ;;  %v12037_v61 = vld [vmem:[#allocation296_spill] sm:$0xff]  ;;  %v2517_v35 = vmul.f32 %v5338_v16, %v8097_v0 }
 0x1bc   : > { %v9075_v42 = vadd.f32 %v2761_v54, %v2625_v56  ;;  %v2623_v30 = vadd.f32 %v2511_v46, %v12035_v60  ;;  %v1897_v34 = vmul.f32 %v12037_v61, %v12019_v63  ;;  %v12038_v10 = vld [vmem:[#allocation116_spill] sm:$0xff]  ;;  %v9085_v51 = vmul.f32 %v5338_v16, %v8119_v33 }
 0x1bd   : > { %v2622_v55 = vadd.f32 %v2510_v11, %v12038_v10  ;;  %v1273_v9 = vmul.f32 %v12040_v13, %v12006_v39  ;;  %v2008_v54 = vadd.f32 %v1896_v49, %v1275_v26  ;;  %v2516_v46 = vmul.f32 %v5337_v24, %v8097_v0 }
 0x1be   : > { %12039 = vst [vmem:[#allocation167_spill] sm:$0xff] %v9085_v51  ;;  %v9089_v56 = vadd.f32 %v2759_v18, %v2623_v30  ;;  %v2009_v60 = vadd.f32 %v1897_v34, %v1276_v12  ;;  %v9095_v21 = vmul.f32 %v5338_v16, %v8127_v28  ;;  %v9098_v11 = vmul.f32 %v5337_v24, %v8119_v33  ;;  %v12044_v30 = vld [vmem:[#allocation46_spill] sm:$0xff]  ;;  %v12047_v34 = vld [vmem:[#allocation299_spill] sm:$0xff] }
 0x1bf   : > { %v9092_v31 = vadd.f32 %v2758_v57, %v2622_v55  ;;  %v9101_v10 = vmul.f32 %v5337_v24, %v8127_v28  ;;  %v2628_v51 = vadd.f32 %v2516_v46, %v2008_v54  ;;  %v1274_v49 = vmul.f32 %v12044_v30, %v12006_v39  ;;  %v12045_v12 = vld [vmem:[#allocation226_spill] sm:$0xff]  ;;  %v12046_v57 = vld [vmem:[#allocation300_spill] sm:$0xff] }
 0x1c0   : > { %12041 = vst [vmem:[#allocation215_spill] sm:$0xff] %v9095_v21  ;;  %12042 = vst [vmem:[#allocation291_spill] sm:$0xff] %v9098_v11  ;;  %v2629_v2 = vadd.f32 %v2517_v35, %v2009_v60  ;;  %v2762_v26 = vmul.f32 %v12045_v12, %v12015_v45  ;;  %v5333_v18 = vunpack.i.h.bf16 %v5331_v43  ;;  %v5332_v55 = vunpack.i.l.bf16 %v5331_v43  ;;  %v12050_v35 = vld [vmem:[#allocation225_spill] sm:$0xff]  ;;  %v12051_v60 = vld [vmem:[#allocation123_spill] sm:$0xff] }
 0x1c1   : > { %12043 = vst [vmem:[#allocation3_spill] sm:$0xff] %v9101_v10  ;;  %v1894_v16 = vmul.f32 %v12046_v57, %v12019_v63  ;;  %v1895_v21 = vmul.f32 %v12047_v34, %v12019_v63  ;;  %v9111_v11 = vadd.f32 %v2764_v53, %v2628_v51  ;;  %v2763_v54 = vmul.f32 %v12050_v35, %v12015_v45  ;;  %v5346_v10 = vpop.permute.xlu1 %5345  ;;  %v12053_v53 = vld [vmem:[#allocation122_spill] sm:$0xff] }
 0x1c2   : > { %v9113_v24 = vadd.f32 %v2765_v41, %v2629_v2  ;;  %v1279_v46 = vmul.f32 %v12051_v60, %v12006_v39  ;;  %v2515_v52 = vmul.f32 %v5333_v18, %v8097_v0  ;;  %v9121_v43 = vmul.f32 %v5333_v18, %v8119_v33 }
 0x1c3   : > { %12048 = vst [vmem:[#allocation289_spill] sm:$0xff] %v9111_v11  ;;  %v9124_v25 = vmul.f32 %v5333_v18, %v8127_v28  ;;  %v1280_v51 = vmul.f32 %v12053_v53, %v12006_v39  ;;  %v2006_v2 = vadd.f32 %v1894_v16, %v1273_v9  ;;  %v2007_v41 = vadd.f32 %v1895_v21, %v1274_v49  ;;  %v12057_v21 = vld [vmem:[#allocation301_spill] sm:$0xff]  ;;  %v12058_v49 = vld [vmem:[#allocation83_spill] sm:$0xff] }
 0x1c4   : > { %12049 = vst [vmem:[#allocation55_spill] sm:$0xff] %v9113_v24  ;;  %12052 = vst [vmem:[#allocation35_spill] sm:$0xff] %v9121_v43  ;;  %v2514_v22 = vmul.f32 %v5332_v55, %v8097_v0  ;;  %v9130_v27 = vmul.f32 %v5332_v55, %v8119_v33  ;;  %v9133_v60 = vmul.f32 %v5332_v55, %v8127_v28  ;;  %v5348_v43 = vunpack.i.h.bf16 %v5346_v10 }
 0x1c5   : > { %v2768_v61 = vmul.f32 %v12055_v47, %v12015_v45  ;;  %v5347_v36 = vunpack.i.l.bf16 %v5346_v10  ;;  %v2627_v50 = vadd.f32 %v2515_v52, %v2007_v41  ;;  %v1900_v53 = vmul.f32 %v12056_v59, %v12019_v63 }
 0x1c6   : > { %12054 = vst [vmem:[#allocation294_spill] sm:$0xff] %v9130_v27  ;;  %v2626_v18 = vadd.f32 %v2514_v22, %v2006_v2  ;;  %v1901_v9 = vmul.f32 %v12057_v21, %v12019_v63  ;;  %v2769_v16 = vmul.f32 %v12058_v49, %v12015_v45  ;;  %v2521_v27 = vmul.f32 %v5348_v43, %v8097_v0  ;;  %v5341_v2 = vpop.permute.xlu0 %5340 }
 0x1c7   : > { %v9145_v55 = vmul.f32 %v5348_v43, %v8119_v33  ;;  %v2520_v47 = vmul.f32 %v5347_v36, %v8097_v0  ;;  %v9150_v22 = vadd.f32 %v2763_v54, %v2627_v50  ;;  %v2012_v52 = vadd.f32 %v1900_v53, %v1279_v46  ;;  %v12066_v50 = vld [vmem:[#allocation124_spill] sm:$0xff]  ;;  %v12067_v46 = vld [vmem:[#allocation235_spill] sm:$0xff] }
 0x1c8   : > { %v9148_v35 = vadd.f32 %v2762_v26, %v2626_v18  ;;  %v2013_v10 = vadd.f32 %v1901_v9, %v1280_v51  ;;  %v9153_v41 = vmul.f32 %v5348_v43, %v8127_v28  ;;  %v9156_v21 = vmul.f32 %v5347_v36, %v8119_v33  ;;  %v12068_v18 = vld [vmem:[#allocation309_spill] sm:$0xff] }
 0x1c9   : > { %12059 = vst [vmem:[#allocation323_spill] sm:$0xff] %v9145_v55  ;;  %12061 = vst [vmem:[#allocation91_spill] sm:$0xff] %v9150_v22  ;;  %v9159_v59 = vmul.f32 %v5347_v36, %v8127_v28  ;;  %v12065_v55 = vld [vmem:[#allocation125_spill] sm:$0xff]  ;;  %v2632_v12 = vadd.f32 %v2520_v47, %v2012_v52  ;;  %v1278_v54 = vmul.f32 %v12066_v50, %v12006_v39  ;;  %v5343_v51 = vunpack.i.h.bf16 %v5341_v2  ;;  %v12073_v52 = vld [vmem:[#allocation52_spill] sm:$0xff]  ;;  %v5356_v22 = vpop.permute.xlu1 %5355 }
 0x1ca   : > { %12060 = vst [vmem:[#allocation293_spill] sm:$0xff] %v9148_v35  ;;  %12062 = vst [vmem:[#allocation113_spill] sm:$0xff] %v9153_v41  ;;  %v1277_v49 = vmul.f32 %v12065_v55, %v12006_v39  ;;  %v2633_v26 = vadd.f32 %v2521_v27, %v2013_v10  ;;  %v2766_v53 = vmul.f32 %v12067_v46, %v12015_v45  ;;  %v5342_v43 = vunpack.i.l.bf16 %v5341_v2  ;;  %v12069_v41 = vld [vmem:[#allocation308_spill] sm:$0xff]  ;;  %v12072_v27 = vld [vmem:[#allocation234_spill] sm:$0xff] }
 0x1cb   : > { %12063 = vst [vmem:[#allocation324_spill] sm:$0xff] %v9156_v21  ;;  %12064 = vst [vmem:[#allocation107_spill] sm:$0xff] %v9159_v59  ;;  %v1898_v9 = vmul.f32 %v12068_v18, %v12019_v63  ;;  %v1899_v36 = vmul.f32 %v12069_v41, %v12019_v63  ;;  %v9171_v59 = vadd.f32 %v2768_v61, %v2632_v12  ;;  %v12076_v61 = vld [vmem:[#allocation127_spill] sm:$0xff]  ;;  %v5357_v11 = vunpack.i.l.bf16 %v5356_v22  ;;  %v12080_v41 = vld [vmem:[#allocation312_spill] sm:$0xff] }
 0x1cc   : > { %v9173_v21 = vadd.f32 %v2769_v16, %v2633_v26  ;;  %v2767_v47 = vmul.f32 %v12072_v27, %v12015_v45  ;;  %v1283_v10 = vmul.f32 %v12073_v52, %v12006_v39  ;;  %v2519_v46 = vmul.f32 %v5343_v51, %v8097_v0 }
 0x1cd   : > { %12070 = vst [vmem:[#allocation112_spill] sm:$0xff] %v9171_v59  ;;  %v9181_v2 = vmul.f32 %v5343_v51, %v8119_v33  ;;  %v9184_v35 = vmul.f32 %v5343_v51, %v8127_v28  ;;  %v1284_v12 = vmul.f32 %v12076_v61, %v12006_v39  ;;  %v2010_v16 = vadd.f32 %v1898_v9, %v1277_v49  ;;  %v12079_v59 = vld [vmem:[#allocation87_spill] sm:$0xff]  ;;  %v12082_v9 = vld [vmem:[#allocation86_spill] sm:$0xff] }
 0x1ce   : > { %12071 = vst [vmem:[#allocation108_spill] sm:$0xff] %v9173_v21  ;;  %v2011_v26 = vadd.f32 %v1899_v36, %v1278_v54  ;;  %v2518_v21 = vmul.f32 %v5342_v43, %v8097_v0  ;;  %v9190_v27 = vmul.f32 %v5342_v43, %v8119_v33  ;;  %v9193_v52 = vmul.f32 %v5342_v43, %v8127_v28  ;;  %v12081_v49 = vld [vmem:[#allocation311_spill] sm:$0xff] }
 0x1cf   : > { %12074 = vst [vmem:[#allocation41_spill] sm:$0xff] %v9181_v2  ;;  %12075 = vst [vmem:[#allocation92_spill] sm:$0xff] %v9184_v35  ;;  %v2772_v24 = vmul.f32 %v12079_v59, %v12015_v45  ;;  %v5358_v2 = vunpack.i.h.bf16 %v5356_v22  ;;  %v1904_v61 = vmul.f32 %v12080_v41, %v12019_v63  ;;  %v1905_v54 = vmul.f32 %v12081_v49, %v12019_v63 }
 0x1d0   : > { %12077 = vst [vmem:[#allocation33_spill] sm:$0xff] %v9190_v27  ;;  %12078 = vst [vmem:[#allocation178_spill] sm:$0xff] %v9193_v52  ;;  %v2630_v51 = vadd.f32 %v2518_v21, %v2010_v16  ;;  %v2631_v35 = vadd.f32 %v2519_v46, %v2011_v26  ;;  %v2773_v36 = vmul.f32 %v12082_v9, %v12015_v45  ;;  %v5351_v16 = vpop.permute.xlu0 %5350 }
 0x1d1   : > { %v2525_v27 = vmul.f32 %v5358_v2, %v8097_v0  ;;  %v9205_v43 = vmul.f32 %v5358_v2, %v8119_v33  ;;  %v2524_v59 = vmul.f32 %v5357_v11, %v8097_v0  ;;  %v2016_v22 = vadd.f32 %v1904_v61, %v1283_v10  ;;  %v12091_v10 = vld [vmem:[#allocation242_spill] sm:$0xff] }
 0x1d2   : > { %v9208_v52 = vadd.f32 %v2766_v53, %v2630_v51  ;;  %v9210_v21 = vadd.f32 %v2767_v47, %v2631_v35  ;;  %v2017_v46 = vadd.f32 %v1905_v54, %v1284_v12  ;;  %v9213_v26 = vmul.f32 %v5358_v2, %v8127_v28  ;;  %v12090_v35 = vld [vmem:[#allocation136_spill] sm:$0xff]  ;;  %v12092_v51 = vld [vmem:[#allocation189_spill] sm:$0xff] }
 0x1d3   : > { %12083 = vst [vmem:[#allocation60_spill] sm:$0xff] %v9205_v43  ;;  %v9216_v49 = vmul.f32 %v5357_v11, %v8119_v33  ;;  %v9219_v41 = vmul.f32 %v5357_v11, %v8127_v28  ;;  %v12089_v43 = vld [vmem:[#allocation137_spill] sm:$0xff]  ;;  %v2636_v18 = vadd.f32 %v2524_v59, %v2016_v22  ;;  %v1282_v47 = vmul.f32 %v12090_v35, %v12006_v39  ;;  %v12096_v59 = vld [vmem:[#allocation88_spill] sm:$0xff] }
 0x1d4   : > { %12084 = vst [vmem:[#allocation38_spill] sm:$0xff] %v9208_v52  ;;  %12085 = vst [vmem:[#allocation295_spill] sm:$0xff] %v9210_v21  ;;  %v1281_v9 = vmul.f32 %v12089_v43, %v12006_v39  ;;  %v2637_v53 = vadd.f32 %v2525_v27, %v2017_v46  ;;  %v2770_v61 = vmul.f32 %v12091_v10, %v12015_v45  ;;  %v5353_v12 = vunpack.i.h.bf16 %v5351_v16  ;;  %v12097_v22 = vld [vmem:[#allocation140_spill] sm:$0xff]  ;;  %v5366_v21 = vpop.permute.xlu1 %5365  ;;  %v12104_v35 = vld [vmem:[#allocation317_spill] sm:$0xff] }
 0x1d5   : > { %12086 = vst [vmem:[#allocation181_spill] sm:$0xff] %v9213_v26  ;;  %12087 = vst [vmem:[#allocation109_spill] sm:$0xff] %v9216_v49  ;;  %v5352_v2 = vunpack.i.l.bf16 %v5351_v16  ;;  %v1902_v54 = vmul.f32 %v12092_v51, %v12019_v63  ;;  %v12093_v26 = vld [vmem:[#allocation16_spill] sm:$0xff]  ;;  %v2771_v27 = vmul.f32 %v12096_v59, %v12015_v45  ;;  %v1287_v46 = vmul.f32 %v12097_v22, %v12006_v39 }
 0x1d6   : > { %12088 = vst [vmem:[#allocation331_spill] sm:$0xff] %v9219_v41  ;;  %v1903_v11 = vmul.f32 %v12093_v26, %v12019_v63  ;;  %v9231_v41 = vadd.f32 %v2772_v24, %v2636_v18  ;;  %v9233_v49 = vadd.f32 %v2773_v36, %v2637_v53  ;;  %v2523_v10 = vmul.f32 %v5353_v12, %v8097_v0  ;;  %v12100_v24 = vld [vmem:[#allocation138_spill] sm:$0xff] }
 0x1d7   : > { %v9241_v16 = vmul.f32 %v5353_v12, %v8119_v33  ;;  %v9244_v52 = vmul.f32 %v5353_v12, %v8127_v28  ;;  %v1288_v18 = vmul.f32 %v12100_v24, %v12006_v39  ;;  %v2014_v36 = vadd.f32 %v1902_v54, %v1281_v9  ;;  %v12105_v9 = vld [vmem:[#allocation191_spill] sm:$0xff]  ;;  %v12106_v54 = vld [vmem:[#allocation252_spill] sm:$0xff] }
 0x1d8   : > { %12094 = vst [vmem:[#allocation90_spill] sm:$0xff] %v9231_v41  ;;  %12095 = vst [vmem:[#allocation177_spill] sm:$0xff] %v9233_v49  ;;  %v2015_v53 = vadd.f32 %v1903_v11, %v1282_v47  ;;  %v2522_v49 = vmul.f32 %v5352_v2, %v8097_v0  ;;  %v9250_v59 = vmul.f32 %v5352_v2, %v8119_v33  ;;  %v12103_v41 = vld [vmem:[#allocation253_spill] sm:$0xff]  ;;  %v5367_v51 = vunpack.i.l.bf16 %v5366_v21 }
 0x1d9   : > { %12098 = vst [vmem:[#allocation220_spill] sm:$0xff] %v9241_v16  ;;  %12099 = vst [vmem:[#allocation219_spill] sm:$0xff] %v9244_v52  ;;  %v9253_v22 = vmul.f32 %v5352_v2, %v8127_v28  ;;  %v2776_v26 = vmul.f32 %v12103_v41, %v12015_v45  ;;  %v5368_v16 = vunpack.i.h.bf16 %v5366_v21  ;;  %v1908_v24 = vmul.f32 %v12104_v35, %v12019_v63 }
 0x1da   : > { %12101 = vst [vmem:[#allocation224_spill] sm:$0xff] %v9250_v59  ;;  %v2634_v12 = vadd.f32 %v2522_v49, %v2014_v36  ;;  %v2635_v52 = vadd.f32 %v2523_v10, %v2015_v53  ;;  %v1909_v47 = vmul.f32 %v12105_v9, %v12019_v63  ;;  %v2777_v11 = vmul.f32 %v12106_v54, %v12015_v45  ;;  %v5361_v36 = vpop.permute.xlu0 %5360 }
 0x1db   : > { %12102 = vst [vmem:[#allocation297_spill] sm:$0xff] %v9253_v22  ;;  %v2529_v59 = vmul.f32 %v5368_v16, %v8097_v0  ;;  %v9265_v2 = vmul.f32 %v5368_v16, %v8119_v33  ;;  %v2528_v41 = vmul.f32 %v5367_v51, %v8097_v0  ;;  %v2020_v21 = vadd.f32 %v1908_v24, %v1287_v46  ;;  %v12115_v46 = vld [vmem:[#allocation258_spill] sm:$0xff] }
 0x1dc   : > { %v9268_v22 = vadd.f32 %v2770_v61, %v2634_v12  ;;  %v9270_v49 = vadd.f32 %v2771_v27, %v2635_v52  ;;  %v2021_v10 = vadd.f32 %v1909_v47, %v1288_v18  ;;  %v9273_v53 = vmul.f32 %v5368_v16, %v8127_v28  ;;  %v12114_v52 = vld [vmem:[#allocation141_spill] sm:$0xff]  ;;  %v12116_v12 = vld [vmem:[#allocation154_spill] sm:$0xff] }
 0x1dd   : > { %12107 = vst [vmem:[#allocation80_spill] sm:$0xff] %v9265_v2  ;;  %v9276_v9 = vmul.f32 %v5367_v51, %v8119_v33  ;;  %v9279_v35 = vmul.f32 %v5367_v51, %v8127_v28  ;;  %v12113_v2 = vld [vmem:[#allocation142_spill] sm:$0xff]  ;;  %v2640_v43 = vadd.f32 %v2528_v41, %v2020_v21  ;;  %v1286_v27 = vmul.f32 %v12114_v52, %v12006_v39  ;;  %v12121_v21 = vld [vmem:[#allocation164_spill] sm:$0xff] }
 0x1de   : > { %12108 = vst [vmem:[#allocation116_spill] sm:$0xff] %v9268_v22  ;;  %12109 = vst [vmem:[#allocation42_spill] sm:$0xff] %v9270_v49  ;;  %v1285_v54 = vmul.f32 %v12113_v2, %v12006_v39  ;;  %v2641_v61 = vadd.f32 %v2529_v59, %v2021_v10  ;;  %v2774_v24 = vmul.f32 %v12115_v46, %v12015_v45  ;;  %v5363_v18 = vunpack.i.h.bf16 %v5361_v36  ;;  %v12120_v41 = vld [vmem:[#allocation254_spill] sm:$0xff]  ;;  %v5376_v49 = vpop.permute.xlu1 %5375 }
 0x1df   : > { %12110 = vst [vmem:[#allocation46_spill] sm:$0xff] %v9273_v53  ;;  %12111 = vst [vmem:[#allocation300_spill] sm:$0xff] %v9276_v9  ;;  %v5362_v16 = vunpack.i.l.bf16 %v5361_v36  ;;  %v1906_v47 = vmul.f32 %v12116_v12, %v12019_v63  ;;  %v12117_v53 = vld [vmem:[#allocation22_spill] sm:$0xff]  ;;  %v2775_v59 = vmul.f32 %v12120_v41, %v12015_v45  ;;  %v1291_v10 = vmul.f32 %v12121_v21, %v12006_v39  ;;  %v12127_v41 = vld [vmem:[#allocation268_spill] sm:$0xff] }
 0x1e0   : > { %12112 = vst [vmem:[#allocation299_spill] sm:$0xff] %v9279_v35  ;;  %v1907_v51 = vmul.f32 %v12117_v53, %v12019_v63  ;;  %v9291_v35 = vadd.f32 %v2776_v26, %v2640_v43  ;;  %v9293_v9 = vadd.f32 %v2777_v11, %v2641_v61  ;;  %v2527_v46 = vmul.f32 %v5363_v18, %v8097_v0  ;;  %v12123_v12 = vld [vmem:[#allocation162_spill] sm:$0xff] }
 0x1e1   : > { %v9301_v36 = vmul.f32 %v5363_v18, %v8119_v33  ;;  %v2018_v22 = vadd.f32 %v1906_v47, %v1285_v54  ;;  %v1292_v53 = vmul.f32 %v12123_v12, %v12006_v39  ;;  %v9306_v43 = vmul.f32 %v5363_v18, %v8127_v28  ;;  %v12128_v12 = vld [vmem:[#allocation157_spill] sm:$0xff] }
 0x1e2   : > { %12118 = vst [vmem:[#allocation125_spill] sm:$0xff] %v9291_v35  ;;  %12119 = vst [vmem:[#allocation124_spill] sm:$0xff] %v9293_v9  ;;  %v2019_v26 = vadd.f32 %v1907_v51, %v1286_v27  ;;  %v2526_v11 = vmul.f32 %v5362_v16, %v8097_v0  ;;  %v9310_v61 = vmul.f32 %v5362_v16, %v8119_v33  ;;  %v5377_v54 = vunpack.i.l.bf16 %v5376_v49  ;;  %v12129_v27 = vld [vmem:[#allocation193_spill] sm:$0xff] }
 0x1e3   : > { %12122 = vst [vmem:[#allocation350_spill] sm:$0xff] %v9301_v36  ;;  %12124 = vst [vmem:[#allocation351_spill] sm:$0xff] %v9306_v43  ;;  %v9313_v21 = vmul.f32 %v5362_v16, %v8127_v28  ;;  %v2780_v9 = vmul.f32 %v12127_v41, %v12015_v45  ;;  %v5378_v36 = vunpack.i.h.bf16 %v5376_v49  ;;  %v1912_v18 = vmul.f32 %v12128_v12, %v12019_v63  ;;  %v12130_v43 = vld [vmem:[#allocation267_spill] sm:$0xff] }
 0x1e4   : > { %12125 = vst [vmem:[#allocation352_spill] sm:$0xff] %v9310_v61  ;;  %v2638_v47 = vadd.f32 %v2526_v11, %v2018_v22  ;;  %v2639_v35 = vadd.f32 %v2527_v46, %v2019_v26  ;;  %v1913_v51 = vmul.f32 %v12129_v27, %v12019_v63  ;;  %v2781_v52 = vmul.f32 %v12130_v43, %v12015_v45  ;;  %v5371_v26 = vpop.permute.xlu0 %5370 }
 0x1e5   : > { %12126 = vst [vmem:[#allocation353_spill] sm:$0xff] %v9313_v21  ;;  %v2533_v61 = vmul.f32 %v5378_v36, %v8097_v0  ;;  %v9325_v16 = vmul.f32 %v5378_v36, %v8119_v33  ;;  %v2532_v41 = vmul.f32 %v5377_v54, %v8097_v0  ;;  %v2024_v49 = vadd.f32 %v1912_v18, %v1291_v10  ;;  %v12140_v18 = vld [vmem:[#allocation325_spill] sm:$0xff] }
 0x1e6   : > { %v9328_v21 = vadd.f32 %v2774_v24, %v2638_v47  ;;  %v9330_v22 = vadd.f32 %v2775_v59, %v2639_v35  ;;  %v2025_v46 = vadd.f32 %v1913_v51, %v1292_v53  ;;  %v9333_v11 = vmul.f32 %v5378_v36, %v8127_v28  ;;  %v12138_v35 = vld [vmem:[#allocation165_spill] sm:$0xff]  ;;  %v12139_v53 = vld [vmem:[#allocation270_spill] sm:$0xff] }
 0x1e7   : > { %12131 = vst [vmem:[#allocation354_spill] sm:$0xff] %v9325_v16  ;;  %v9336_v27 = vmul.f32 %v5377_v54, %v8119_v33  ;;  %v9339_v12 = vmul.f32 %v5377_v54, %v8127_v28  ;;  %v12137_v16 = vld [vmem:[#allocation166_spill] sm:$0xff]  ;;  %v2644_v2 = vadd.f32 %v2532_v41, %v2024_v49  ;;  %v1290_v59 = vmul.f32 %v12138_v35, %v12006_v39  ;;  %v12144_v41 = vld [vmem:[#allocation269_spill] sm:$0xff]  ;;  %v12145_v49 = vld [vmem:[#allocation180_spill] sm:$0xff] }
 0x1e8   : > { %12132 = vst [vmem:[#allocation355_spill] sm:$0xff] %v9328_v21  ;;  %12133 = vst [vmem:[#allocation356_spill] sm:$0xff] %v9330_v22  ;;  %v1289_v43 = vmul.f32 %v12137_v16, %v12006_v39  ;;  %v2645_v24 = vadd.f32 %v2533_v61, %v2025_v46  ;;  %v2778_v10 = vmul.f32 %v12139_v53, %v12015_v45  ;;  %v5373_v47 = vunpack.i.h.bf16 %v5371_v26  ;;  %v5386_v22 = vpop.permute.xlu1 %5385 }
 0x1e9   : > { %12134 = vst [vmem:[#allocation357_spill] sm:$0xff] %v9333_v11  ;;  %12135 = vst [vmem:[#allocation358_spill] sm:$0xff] %v9336_v27  ;;  %v5372_v36 = vunpack.i.l.bf16 %v5371_v26  ;;  %v1910_v51 = vmul.f32 %v12140_v18, %v12019_v63  ;;  %v12141_v11 = vld [vmem:[#allocation56_spill] sm:$0xff]  ;;  %v2779_v61 = vmul.f32 %v12144_v41, %v12015_v45  ;;  %v1295_v46 = vmul.f32 %v12145_v49, %v12006_v39  ;;  %v12147_v18 = vld [vmem:[#allocation169_spill] sm:$0xff] }
 0x1ea   : > { %12136 = vst [vmem:[#allocation359_spill] sm:$0xff] %v9339_v12  ;;  %v1911_v54 = vmul.f32 %v12141_v11, %v12019_v63  ;;  %v9351_v12 = vadd.f32 %v2780_v9, %v2644_v2  ;;  %v9353_v27 = vadd.f32 %v2781_v52, %v2645_v24  ;;  %v2531_v53 = vmul.f32 %v5373_v47, %v8097_v0  ;;  %v12151_v41 = vld [vmem:[#allocation284_spill] sm:$0xff] }
 0x1eb   : > { %v9361_v26 = vmul.f32 %v5373_v47, %v8119_v33  ;;  %v2022_v21 = vadd.f32 %v1910_v51, %v1289_v43  ;;  %v1296_v11 = vmul.f32 %v12147_v18, %v12006_v39  ;;  %v9366_v9 = vmul.f32 %v5373_v47, %v8127_v28  ;;  %v12152_v18 = vld [vmem:[#allocation326_spill] sm:$0xff] }
 0x1ec   : > { %12142 = vst [vmem:[#allocation360_spill] sm:$0xff] %v9351_v12  ;;  %12143 = vst [vmem:[#allocation361_spill] sm:$0xff] %v9353_v27  ;;  %v2023_v2 = vadd.f32 %v1911_v54, %v1290_v59  ;;  %v2530_v52 = vmul.f32 %v5372_v36, %v8097_v0  ;;  %v9370_v24 = vmul.f32 %v5372_v36, %v8119_v33  ;;  %v5387_v43 = vunpack.i.l.bf16 %v5386_v22  ;;  %v12153_v59 = vld [vmem:[#allocation173_spill] sm:$0xff] }
 0x1ed   : > { %12146 = vst [vmem:[#allocation362_spill] sm:$0xff] %v9361_v26  ;;  %12148 = vst [vmem:[#allocation363_spill] sm:$0xff] %v9366_v9  ;;  %v9373_v49 = vmul.f32 %v5372_v36, %v8127_v28  ;;  %v2784_v27 = vmul.f32 %v12151_v41, %v12015_v45  ;;  %v5388_v26 = vunpack.i.h.bf16 %v5386_v22  ;;  %v1916_v47 = vmul.f32 %v12152_v18, %v12019_v63  ;;  %v12154_v9 = vld [vmem:[#allocation283_spill] sm:$0xff] }
 0x1ee   : > { %12149 = vst [vmem:[#allocation364_spill] sm:$0xff] %v9370_v24  ;;  %v2642_v51 = vadd.f32 %v2530_v52, %v2022_v21  ;;  %v2643_v12 = vadd.f32 %v2531_v53, %v2023_v2  ;;  %v1917_v54 = vmul.f32 %v12153_v59, %v12019_v63  ;;  %v2785_v35 = vmul.f32 %v12154_v9, %v12015_v45  ;;  %v5381_v2 = vpop.permute.xlu0 %5380 }
 0x1ef   : > { %12150 = vst [vmem:[#allocation365_spill] sm:$0xff] %v9373_v49  ;;  %v2537_v24 = vmul.f32 %v5388_v26, %v8097_v0  ;;  %v9385_v36 = vmul.f32 %v5388_v26, %v8119_v33  ;;  %v2536_v41 = vmul.f32 %v5387_v43, %v8097_v0  ;;  %v2028_v22 = vadd.f32 %v1916_v47, %v1295_v46  ;;  %v12164_v47 = vld [vmem:[#allocation334_spill] sm:$0xff] }
 0x1f0   : > { %v9388_v49 = vadd.f32 %v2778_v10, %v2642_v51  ;;  %v9390_v21 = vadd.f32 %v2779_v61, %v2643_v12  ;;  %v2029_v53 = vadd.f32 %v1917_v54, %v1296_v11  ;;  %v9393_v52 = vmul.f32 %v5388_v26, %v8127_v28  ;;  %v12162_v12 = vld [vmem:[#allocation4_spill] sm:$0xff]  ;;  %v12163_v11 = vld [vmem:[#allocation287_spill] sm:$0xff] }
 0x1f1   : > { %12155 = vst [vmem:[#allocation366_spill] sm:$0xff] %v9385_v36  ;;  %v9396_v59 = vmul.f32 %v5387_v43, %v8119_v33  ;;  %v9399_v18 = vmul.f32 %v5387_v43, %v8127_v28  ;;  %v12161_v36 = vld [vmem:[#allocation2_spill] sm:$0xff]  ;;  %v2648_v16 = vadd.f32 %v2536_v41, %v2028_v22  ;;  %v1294_v61 = vmul.f32 %v12162_v12, %v12006_v39 }
 0x1f2   : > { %12156 = vst [vmem:[#allocation367_spill] sm:$0xff] %v9388_v49  ;;  %12157 = vst [vmem:[#allocation368_spill] sm:$0xff] %v9390_v21  ;;  %v1293_v9 = vmul.f32 %v12161_v36, %v12006_v39  ;;  %v2649_v10 = vadd.f32 %v2537_v24, %v2029_v53  ;;  %v2782_v46 = vmul.f32 %v12163_v11, %v12015_v45  ;;  %v5383_v51 = vunpack.i.h.bf16 %v5381_v2  ;;  %v12168_v41 = vld [vmem:[#allocation286_spill] sm:$0xff]  ;;  %v5396_v53 = vpop.permute.xlu1 %5395 }
 0x1f3   : > { %12158 = vst [vmem:[#allocation369_spill] sm:$0xff] %v9393_v52  ;;  %12159 = vst [vmem:[#allocation370_spill] sm:$0xff] %v9396_v59  ;;  %v5382_v26 = vunpack.i.l.bf16 %v5381_v2  ;;  %v1914_v54 = vmul.f32 %v12164_v47, %v12019_v63  ;;  %v12165_v52 = vld [vmem:[#allocation333_spill] sm:$0xff]  ;;  %v2783_v24 = vmul.f32 %v12168_v41, %v12015_v45  ;;  %v1327_v22 = vmul.f32 %v12016_v48, %v12006_v39 }
 0x1f4   : > { %12160 = vst [vmem:[#allocation371_spill] sm:$0xff] %v9399_v18  ;;  %v1915_v43 = vmul.f32 %v12165_v52, %v12019_v63  ;;  %v9411_v18 = vadd.f32 %v2784_v27, %v2648_v16  ;;  %v9413_v59 = vadd.f32 %v2785_v35, %v2649_v10  ;;  %v2535_v11 = vmul.f32 %v5383_v51, %v8097_v0 }
 0x1f5   : > { %v9421_v2 = vmul.f32 %v5383_v51, %v8119_v33  ;;  %v2026_v21 = vadd.f32 %v1914_v54, %v1293_v9  ;;  %v1328_v49 = vmul.f32 %v12018_v40, %v12006_v39  ;;  %v9426_v27 = vmul.f32 %v5383_v51, %v8127_v28 }
 0x1f6   : > { %12166 = vst [vmem:[#allocation372_spill] sm:$0xff] %v9411_v18  ;;  %12167 = vst [vmem:[#allocation373_spill] sm:$0xff] %v9413_v59  ;;  %v2027_v16 = vadd.f32 %v1915_v43, %v1294_v61  ;;  %v2534_v35 = vmul.f32 %v5382_v26, %v8097_v0  ;;  %v9430_v10 = vmul.f32 %v5382_v26, %v8119_v33  ;;  %v5398_v41 = vunpack.i.h.bf16 %v5396_v53  ;;  %v12172_v18 = vld [vmem:[#allocation336_spill] sm:$0xff] }
 0x1f7   : > { %12169 = vst [vmem:[#allocation374_spill] sm:$0xff] %v9421_v2  ;;  %12170 = vst [vmem:[#allocation375_spill] sm:$0xff] %v9426_v27  ;;  %v5397_v59 = vunpack.i.l.bf16 %v5396_v53  ;;  %v1948_v52 = vmul.f32 %v12172_v18, %v12019_v63  ;;  %v12173_v2 = vld [vmem:[#allocation335_spill] sm:$0xff]  ;;  %v9437_v12 = vmul.f32 %v5382_v26, %v8127_v28  ;;  %v2816_v61 = vmul.f32 %v12040_v13, %v12015_v45 }
 0x1f8   : > { %12171 = vst [vmem:[#allocation376_spill] sm:$0xff] %v9430_v10  ;;  %v1949_v9 = vmul.f32 %v12173_v2, %v12019_v63  ;;  %v2646_v54 = vadd.f32 %v2534_v35, %v2026_v21  ;;  %v2647_v47 = vadd.f32 %v2535_v11, %v2027_v16  ;;  %v2569_v51 = vmul.f32 %v5398_v41, %v8097_v0  ;;  %v12178_v16 = vld [vmem:[#allocation70_spill] sm:$0xff] }
 0x1f9   : > { %12174 = vst [vmem:[#allocation336_spill] sm:$0xff] %v9437_v12  ;;  %v3245_v43 = vmul.f32 %v5398_v41, %v8119_v33  ;;  %v2060_v10 = vadd.f32 %v1948_v52, %v1327_v22  ;;  %v2817_v53 = vmul.f32 %v12044_v30, %v12015_v45  ;;  %v2568_v11 = vmul.f32 %v5397_v59, %v8097_v0 }
 0x1fa   : > { %v9445_v27 = vadd.f32 %v2782_v46, %v2646_v54  ;;  %v9447_v36 = vadd.f32 %v2783_v24, %v2647_v47  ;;  %v2061_v21 = vadd.f32 %v1949_v9, %v1328_v49  ;;  %v9451_v26 = vmul.f32 %v5398_v41, %v8127_v28  ;;  %v12179_v9 = vld [vmem:[#allocation93_spill] sm:$0xff] }
 0x1fb   : > { %v3002_v35 = vmul.f32 %v12172_v18, %v12178_v16  ;;  %v3003_v12 = vmul.f32 %v12173_v2, %v12178_v16  ;;  %v3058_v52 = vmul.f32 %v12046_v57, %v12178_v16  ;;  %v2680_v22 = vadd.f32 %v2568_v11, %v2060_v10 }
 0x1fc   : > { %12175 = vst [vmem:[#allocation335_spill] sm:$0xff] %v9445_v27  ;;  %12176 = vst [vmem:[#allocation377_spill] sm:$0xff] %v9447_v36  ;;  %v2681_v46 = vadd.f32 %v2569_v51, %v2061_v21  ;;  %v3059_v47 = vmul.f32 %v12047_v34, %v12178_v16  ;;  %v3244_v49 = vmul.f32 %v5397_v59, %v8119_v33 }
 0x1fd   : > { %12177 = vst [vmem:[#allocation378_spill] sm:$0xff] %v9451_v26  ;;  %v3114_v24 = vadd.f32 %v3002_v35, %v9067_v20  ;;  %v3115_v41 = vadd.f32 %v3003_v12, %v9075_v42  ;;  %v3492_v54 = vmul.f32 %v12040_v13, %v12179_v9  ;;  %v3493_v36 = vmul.f32 %v12044_v30, %v12179_v9 }
 0x1fe   : > { %v2928_v27 = vadd.f32 %v2816_v61, %v2680_v22  ;;  %v2929_v26 = vadd.f32 %v2817_v53, %v2681_v46  ;;  %v3734_v10 = vmul.f32 %v12046_v57, %v11398_v3  ;;  %v3735_v51 = vmul.f32 %v12047_v34, %v11398_v3  ;;  %v5391_v22 = vpop.permute.xlu0 %5390 }
 0x1ff   : > { %v3356_v21 = vadd.f32 %v3244_v49, %v3114_v24  ;;  %v3357_v11 = vadd.f32 %v3245_v43, %v3115_v41  ;;  %v9473_v20 = vmul.f32 %v5397_v59, %v8127_v28  ;;  %v1325_v42 = vmul.f32 %v12029_v32, %v12006_v39  ;;  %v12183_v41 = vld [vmem:[#allocation342_spill] sm:$0xff] }
 0x200   : > { %v9477_v13 = vadd.f32 %v3058_v52, %v2928_v27  ;;  %v9479_v12 = vadd.f32 %v3059_v47, %v2929_v26  ;;  %v1326_v30 = vmul.f32 %v12030_v62, %v12006_v39  ;;  %v2814_v57 = vmul.f32 %v12007_v5, %v12015_v45 }
 0x201   : > { %v3604_v61 = vadd.f32 %v3492_v54, %v3356_v21  ;;  %v3605_v34 = vadd.f32 %v3493_v36, %v3357_v11  ;;  %v2815_v43 = vmul.f32 %v12011_v7, %v12015_v45  ;;  %v3056_v59 = vmul.f32 %v12020_v19, %v12178_v16 }
 0x202   : > { %12180 = vst [vmem:[#allocation93_spill] sm:$0xff] %v9479_v12  ;;  %v3057_v32 = vmul.f32 %v12026_v38, %v12178_v16  ;;  %v3490_v27 = vmul.f32 %v12007_v5, %v12179_v9  ;;  %v3491_v62 = vmul.f32 %v12011_v7, %v12179_v9  ;;  %v9497_v53 = vmul.f32 %v12016_v48, %v12179_v9 }
 0x203   : > { %v3846_v36 = vadd.f32 %v3734_v10, %v3604_v61  ;;  %v3847_v26 = vadd.f32 %v3735_v51, %v3605_v34  ;;  %v3547_v35 = vmul.f32 %v12018_v40, %v12179_v9  ;;  %v3732_v52 = vmul.f32 %v12020_v19, %v11398_v3 }
 0x204   : > { %v3733_v46 = vmul.f32 %v12026_v38, %v11398_v3  ;;  %v9507_v5 = vmul.f32 %v12172_v18, %v11398_v3  ;;  %v9511_v7 = vmul.f32 %v12173_v2, %v11398_v3  ;;  %v3946_v48 = vmul.f32 %v12020_v19, %v8127_v28  ;;  %v12184_v2 = vld [vmem:[#allocation341_spill] sm:$0xff] }
 0x205   : > { %v9516_v40 = vadd.f32 %v9133_v60, %v3846_v36  ;;  %v9519_v47 = vadd.f32 %v9124_v25, %v3847_v26  ;;  %v3947_v49 = vmul.f32 %v12026_v38, %v8127_v28  ;;  %v5393_v24 = vunpack.i.h.bf16 %v5391_v22  ;;  %v12185_v25 = vld [vmem:[#allocation221_spill] sm:$0xff]  ;;  %v12186_v38 = vld [vmem:[#allocation76_spill] sm:$0xff] }
 0x206   : > { %v5392_v18 = vunpack.i.l.bf16 %v5391_v22  ;;  %v1946_v54 = vmul.f32 %v12183_v41, %v12019_v63  ;;  %v1947_v10 = vmul.f32 %v12184_v2, %v12019_v63  ;;  %v3000_v19 = vmul.f32 %v12183_v41, %v12178_v16 }
 0x207   : > { %12181 = vst [vmem:[#allocation379_spill] sm:$0xff] %v9516_v40  ;;  %12182 = vst [vmem:[#allocation380_spill] sm:$0xff] %v9519_v47  ;;  %v3001_v60 = vmul.f32 %v12184_v2, %v12178_v16  ;;  %v3872_v51 = vadd.f32 %v12185_v25, %v8643_v1  ;;  %v3873_v21 = vadd.f32 %v12186_v38, %v8640_v4  ;;  %v12187_v4 = vld [vmem:[#allocation73_spill] sm:$0xff] }
 0x208   : > { %v2567_v11 = vmul.f32 %v5393_v24, %v8097_v0  ;;  %v3243_v61 = vmul.f32 %v5393_v24, %v8119_v33  ;;  %v2058_v34 = vadd.f32 %v1946_v54, %v1325_v42  ;;  %v2059_v36 = vadd.f32 %v1947_v10, %v1326_v30  ;;  %v12188_v42 = vld [vmem:[#allocation222_spill] sm:$0xff]  ;;  %v5406_v54 = vpop.permute.xlu1 %5405 }
 0x209   : > { %v2566_v26 = vmul.f32 %v5392_v18, %v8097_v0  ;;  %v3112_v22 = vadd.f32 %v3000_v19, %v9092_v31  ;;  %v3113_v41 = vadd.f32 %v3001_v60, %v9089_v56  ;;  %v3242_v2 = vmul.f32 %v5392_v18, %v8119_v33 }
 0x20a   : > { %v2679_v47 = vadd.f32 %v2567_v11, %v2059_v36  ;;  %v4058_v1 = vadd.f32 %v3946_v48, %v8612_v23  ;;  %v4059_v25 = vadd.f32 %v3947_v49, %v8618_v29  ;;  %v4114_v38 = vadd.f32 %v12187_v4, %v3872_v51 }
 0x20b   : > { %v2678_v40 = vadd.f32 %v2566_v26, %v2058_v34  ;;  %v3354_v12 = vadd.f32 %v3242_v2, %v3112_v22  ;;  %v3355_v24 = vadd.f32 %v3243_v61, %v3113_v41  ;;  %v4115_v30 = vadd.f32 %v12188_v42, %v3873_v21 }
 0x20c   : > { %v2927_v10 = vadd.f32 %v2815_v43, %v2679_v47  ;;  %v4171_v31 = vsel %vm4170_vm1, %v4058_v1, -inf  ;;  %v4174_v56 = vsel %vm4170_vm1, %v4114_v38, -inf  ;;  %v4178_v18 = vsel %vm4170_vm1, %v4059_v25, -inf }
 0x20d   : > { %v2926_v19 = vadd.f32 %v2814_v57, %v2678_v40  ;;  %v3602_v60 = vadd.f32 %v3490_v27, %v3354_v12  ;;  %v3603_v23 = vadd.f32 %v3491_v62, %v3355_v24  ;;  %v4181_v29 = vsel %vm4170_vm1, %v4115_v30, -inf }
 0x20e   : > { %v3169_v48 = vadd.f32 %v3057_v32, %v2927_v10  ;;  %v1331_v49 = vmul.f32 %v12033_v17, %v12006_v39  ;;  %v1332_v51 = vmul.f32 %v12036_v6, %v12006_v39  ;;  %v5408_v21 = vunpack.i.h.bf16 %v5406_v54 }
 0x20f   : > { %v3168_v43 = vadd.f32 %v3056_v59, %v2926_v19  ;;  %v3844_v47 = vadd.f32 %v3732_v52, %v3602_v60  ;;  %v3845_v11 = vadd.f32 %v3733_v46, %v3603_v23  ;;  %v5407_v61 = vunpack.i.l.bf16 %v5406_v54  ;;  %v12191_v60 = vld [vmem:[#allocation308_spill] sm:$0xff] }
 0x210   : > { %v3411_v34 = vadd.f32 %v9039_v8, %v3169_v48  ;;  %v2573_v57 = vmul.f32 %v5408_v21, %v8097_v0  ;;  %v3249_v12 = vmul.f32 %v5408_v21, %v8119_v33  ;;  %v9557_v27 = vmul.f32 %v5408_v21, %v8127_v28 }
 0x211   : > { %v3410_v32 = vadd.f32 %v9054_v58, %v3168_v43  ;;  %v4086_v62 = vadd.f32 %v9057_v14, %v3844_v47  ;;  %v4087_v40 = vadd.f32 %v9051_v44, %v3845_v11  ;;  %v1952_v59 = vmul.f32 %v8563_v15, %v12019_v63 }
 0x212   : > { %v3659_v52 = vadd.f32 %v3547_v35, %v3411_v34  ;;  %v1953_v8 = vmul.f32 %v8561_v37, %v12019_v63  ;;  %v2572_v46 = vmul.f32 %v5407_v61, %v8097_v0  ;;  %v2820_v36 = vmul.f32 %v12065_v55, %v12015_v45 }
 0x213   : > { %v3658_v26 = vadd.f32 %v9497_v53, %v3410_v32  ;;  %v4172_v58 = vsel %vm4170_vm1, %v4086_v62, -inf  ;;  %v4179_v14 = vsel %vm4170_vm1, %v4087_v40, -inf  ;;  %v2064_v22 = vadd.f32 %v1952_v59, %v1331_v49  ;;  %v12189_v53 = vld [vmem:[#allocation378_spill] sm:$0xff] }
 0x214   : > { %v3901_v44 = vadd.f32 %v9511_v7, %v3659_v52  ;;  %v4173_v41 = vmax.f32 %v4171_v31, %v4172_v58  ;;  %v4180_v2 = vmax.f32 %v4178_v18, %v4179_v14  ;;  %v2065_v35 = vadd.f32 %v1953_v8, %v1332_v51  ;;  %v12190_v31 = vld [vmem:[#allocation309_spill] sm:$0xff] }
 0x215   : > { %v3900_v1 = vadd.f32 %v9507_v5, %v3658_v26  ;;  %v2684_v25 = vadd.f32 %v2572_v46, %v2064_v22  ;;  %v2821_v4 = vmul.f32 %v12066_v50, %v12015_v45  ;;  %v3006_v38 = vmul.f32 %v8563_v15, %v12178_v16  ;;  %v9587_v15 = vld [vmem:[%s10731_s5] ss:$0 sm:$0xff]  ;;  %v12195_v58 = vld [vmem:[#allocation225_spill] sm:$0xff] }
 0x216   : > { %v4143_v24 = vadd.f32 %v12189_v53, %v3901_v44  ;;  %v4175_v42 = vmax.f32 %v4173_v41, %v4174_v56  ;;  %v4182_v30 = vmax.f32 %v4180_v2, %v4181_v29  ;;  %v2685_v54 = vadd.f32 %v2573_v57, %v2065_v35  ;;  %v12192_v29 = vld [vmem:[#allocation289_spill] sm:$0xff]  ;;  %v12194_v26 = vld [vmem:[#allocation226_spill] sm:$0xff]  ;;  %v12196_v44 = vld [vmem:[#allocation115_spill] sm:$0xff] }
 0x217   : > { %v4142_v7 = vadd.f32 %v9473_v20, %v3900_v1  ;;  %v2932_v10 = vadd.f32 %v2820_v36, %v2684_v25  ;;  %v3007_v5 = vmul.f32 %v8561_v37, %v12178_v16  ;;  %v3062_v18 = vmul.f32 %v12190_v31, %v12178_v16  ;;  %v12193_v37 = vld [vmem:[#allocation55_spill] sm:$0xff]  ;;  %v12197_v41 = vld [vmem:[#allocation114_spill] sm:$0xff] }
 0x218   : > { %v4183_v19 = vsel %vm4170_vm1, %v4143_v24, -inf  ;;  %v2933_v56 = vadd.f32 %v2821_v4, %v2685_v54  ;;  %v3063_v23 = vmul.f32 %v12191_v60, %v12178_v16  ;;  %v3118_v20 = vadd.f32 %v3006_v38, %v12192_v29  ;;  %v12198_v25 = vld [vmem:[#allocation298_spill] sm:$0xff]  ;;  %v12199_v38 = vld [vmem:[#allocation296_spill] sm:$0xff]  ;;  %v5401_v29 = vpop.permute.xlu0 %5400 }
 0x219   : > { %v4176_v48 = vsel %vm4170_vm1, %v4142_v7, -inf  ;;  %v4184_v49 = vmax.f32 %v4182_v30, %v4183_v19  ;;  %v3119_v51 = vadd.f32 %v3007_v5, %v12193_v37  ;;  %v9595_v21 = vadd.f32 %v3062_v18, %v2932_v10  ;;  %v12200_v30 = vld [vmem:[#allocation20_spill] sm:$0xff]  ;;  %v12202_v10 = vld [vmem:[#allocation217_spill] sm:$0xff]  ;;  %v12203_v5 = vld [vmem:[#allocation118_spill] sm:$0xff] }
 0x21a   : > { %v4177_v43 = vmax.f32 %v4175_v42, %v4176_v48  ;;  %v9598_v47 = vadd.f32 %v3063_v23, %v2933_v56  ;;  %v3248_v11 = vmul.f32 %v5407_v61, %v8119_v33  ;;  %v3496_v34 = vmul.f32 %v12065_v55, %v12179_v9  ;;  %v12201_v54 = vld [vmem:[#allocation120_spill] sm:$0xff] }
 0x21b   : > { %v4374_v57 = vadd.f32 %v9587_v15, %v4184_v49  ;;  %v3361_v32 = vadd.f32 %v3249_v12, %v3119_v51  ;;  %v3497_v62 = vmul.f32 %v12066_v50, %v12179_v9  ;;  %v3738_v40 = vmul.f32 %v12190_v31, %v11398_v3  ;;  %v12204_v18 = vld [vmem:[#allocation92_spill] sm:$0xff] }
 0x21c   : > { %v4373_v59 = vadd.f32 %v9587_v15, %v4177_v43  ;;  %v3360_v52 = vadd.f32 %v3248_v11, %v3118_v20  ;;  %v3739_v8 = vmul.f32 %v12191_v60, %v11398_v3  ;;  %v9612_v46 = vmul.f32 %v5407_v61, %v8127_v28  ;;  %v12206_v20 = vld [vmem:[#allocation178_spill] sm:$0xff]  ;;  %v12209_v11 = vld [vmem:[#allocation21_spill] sm:$0xff] }
 0x21d   : > { %v4402_v36 = vmax.f32 %v4374_v57, 0.0  ;;  %v3609_v55 = vadd.f32 %v3497_v62, %v3361_v32  ;;  %v1329_v12 = vmul.f32 %v12194_v26, %v12006_v39  ;;  %v1330_v50 = vmul.f32 %v12195_v58, %v12006_v39  ;;  %v12208_v43 = vld [vmem:[#allocation18_spill] sm:$0xff]  ;;  %v12210_v57 = vld [vmem:[#allocation340_spill] sm:$0xff]  ;;  %v12211_v32 = vld [vmem:[#allocation19_spill] sm:$0xff] }
 0x21e   : > { %v4401_v14 = vmax.f32 %v4373_v59, 0.0  ;;  %v3608_v22 = vadd.f32 %v3496_v34, %v3360_v52  ;;  %v2818_v61 = vmul.f32 %v12196_v44, %v12015_v45  ;;  %v2819_v2 = vmul.f32 %v12197_v41, %v12015_v45 }
 0x21f   : > { %v4703_v35 = vpack.c.bf16 %v4402_v36, %v4402_v36  ;;  %v3851_v1 = vadd.f32 %v3739_v8, %v3609_v55  ;;  %v3060_v4 = vmul.f32 %v12198_v25, %v12178_v16  ;;  %v3061_v53 = vmul.f32 %v12199_v38, %v12178_v16  ;;  %v12212_v36 = vld [vmem:[#allocation229_spill] sm:$0xff] }
 0x220   : > { %v4702_v24 = vpack.c.bf16 %v4401_v14, %v4401_v14  ;;  %v3850_v42 = vadd.f32 %v3738_v40, %v3608_v22  ;;  %v3142_v7 = vadd.f32 %v12201_v54, %v12200_v30  ;;  %v3143_v31 = vadd.f32 %v12203_v5, %v12202_v10  ;;  %v12213_v55 = vld [vmem:[#allocation29_spill] sm:$0xff]  ;;  %v12215_v14 = vld [vmem:[#allocation119_spill] sm:$0xff] }
 0x221   : > { %4543 = vst.msk [vmem:[%s9621_s22 + $0x4] sm:$0xf] %vm4541_vm2, %v4703_v35  ;;  %v9638_v19 = vadd.f32 %v12204_v18, %v3851_v1  ;;  %v3494_v56 = vmul.f32 %v12196_v44, %v12179_v9  ;;  %v3495_v60 = vmul.f32 %v12197_v41, %v12179_v9  ;;  %v3548_v23 = vmul.f32 %v12194_v26, %v12179_v9  ;;  %v12214_v26 = vld [vmem:[#allocation121_spill] sm:$0xff]  ;;  %v12217_v10 = vld [vmem:[#allocation91_spill] sm:$0xff] }
 0x222   : > { %4542 = vst.msk [vmem:[%s9621_s22] sm:$0xf] %vm4541_vm2, %v4702_v24  ;;  %v9649_v48 = vadd.f32 %v12206_v20, %v3850_v42  ;;  %v3549_v49 = vmul.f32 %v12195_v58, %v12179_v9  ;;  %v3550_v37 = vmul.f32 %v12033_v17, %v12179_v9  ;;  %v3551_v51 = vmul.f32 %v12036_v6, %v12179_v9  ;;  %v12216_v30 = vld [vmem:[#allocation293_spill] sm:$0xff] }
 0x223   : > { %12205 = vst [vmem:[#allocation342_spill] sm:$0xff] %v9638_v19  ;;  %v3576_v34 = vadd.f32 %v12209_v11, %v12208_v43  ;;  %v3577_v62 = vadd.f32 %v12211_v32, %v12210_v57  ;;  %v3736_v40 = vmul.f32 %v12198_v25, %v11398_v3  ;;  %v3737_v59 = vmul.f32 %v12199_v38, %v11398_v3  ;;  %v12219_v43 = vld [vmem:[#allocation303_spill] sm:$0xff] }
 0x224   : > { %12207 = vst [vmem:[#allocation341_spill] sm:$0xff] %v9649_v48  ;;  %v5403_v52 = vunpack.i.h.bf16 %v5401_v29  ;;  %v5402_v8 = vunpack.i.l.bf16 %v5401_v29  ;;  %v1950_v17 = vmul.f32 %v12212_v36, %v12019_v63  ;;  %v1951_v6 = vmul.f32 %v12213_v55, %v12019_v63  ;;  %v12218_v29 = vld [vmem:[#allocation305_spill] sm:$0xff] }
 0x225   : > { %v3818_v58 = vadd.f32 %v12214_v26, %v3576_v34  ;;  %v3819_v22 = vadd.f32 %v12215_v14, %v3577_v62  ;;  %v3004_v44 = vmul.f32 %v12212_v36, %v12178_v16  ;;  %v3005_v41 = vmul.f32 %v12213_v55, %v12178_v16  ;;  %v12220_v34 = vld [vmem:[#allocation294_spill] sm:$0xff]  ;;  %v12223_v26 = vld [vmem:[#allocation11_spill] sm:$0xff]  ;;  %v12228_v48 = vld [vmem:[#allocation5_spill] sm:$0xff] }
 0x226   : > { %v2571_v35 = vmul.f32 %v5403_v52, %v8097_v0  ;;  %v3247_v1 = vmul.f32 %v5403_v52, %v8119_v33  ;;  %v4033_v25 = vmul.f32 %v5403_v52, %v8127_v28  ;;  %v2062_v38 = vadd.f32 %v1950_v17, %v1329_v12  ;;  %v12221_v12 = vld [vmem:[#allocation93_spill] sm:$0xff] }
 0x227   : > { %v2063_v24 = vadd.f32 %v1951_v6, %v1330_v50  ;;  %v2570_v42 = vmul.f32 %v5402_v8, %v8097_v0  ;;  %v3116_v54 = vadd.f32 %v3004_v44, %v12216_v30  ;;  %v3117_v5 = vadd.f32 %v3005_v41, %v12217_v10  ;;  %v12222_v50 = vld [vmem:[#allocation35_spill] sm:$0xff]  ;;  %v12224_v44 = vld [vmem:[#allocation6_spill] sm:$0xff]  ;;  %v12225_v30 = vld [vmem:[#allocation25_spill] sm:$0xff] }
 0x228   : > { %v3246_v18 = vmul.f32 %v5402_v8, %v8119_v33  ;;  %v3384_v20 = vadd.f32 %v12218_v29, %v3142_v7  ;;  %v3385_v11 = vadd.f32 %v12219_v43, %v3143_v31  ;;  %v3412_v57 = vadd.f32 %v12220_v34, %v9477_v13  ;;  %v12226_v10 = vld [vmem:[#allocation10_spill] sm:$0xff] }
 0x229   : > { %v2682_v32 = vadd.f32 %v2570_v42, %v2062_v38  ;;  %v2683_v62 = vadd.f32 %v2571_v35, %v2063_v24  ;;  %v3359_v52 = vadd.f32 %v3247_v1, %v3117_v5  ;;  %v3413_v17 = vadd.f32 %v12222_v50, %v12221_v12  ;;  %v12227_v43 = vld [vmem:[#allocation50_spill] sm:$0xff] }
 0x22a   : > { %v3358_v6 = vadd.f32 %v3246_v18, %v3116_v54  ;;  %v3632_v14 = vadd.f32 %v12223_v26, %v3384_v20  ;;  %v3633_v41 = vadd.f32 %v12224_v44, %v3385_v11  ;;  %v3634_v19 = vadd.f32 %v12226_v10, %v12225_v30  ;;  %v12229_v18 = vld [vmem:[#allocation9_spill] sm:$0xff]  ;;  %v12230_v20 = vld [vmem:[#allocation47_spill] sm:$0xff]  ;;  %v12238_v50 = vld [vmem:[#allocation82_spill] sm:$0xff] }
 0x22b   : > { %v2930_v7 = vadd.f32 %v2818_v61, %v2682_v32  ;;  %v2931_v29 = vadd.f32 %v2819_v2, %v2683_v62  ;;  %v3607_v31 = vadd.f32 %v3495_v60, %v3359_v52  ;;  %v3635_v13 = vadd.f32 %v12228_v48, %v12227_v43  ;;  %v12231_v61 = vld [vmem:[#allocation24_spill] sm:$0xff]  ;;  %v12232_v2 = vld [vmem:[#allocation43_spill] sm:$0xff]  ;;  %v12233_v48 = vld [vmem:[#allocation233_spill] sm:$0xff] }
 0x22c   : > { %v3606_v38 = vadd.f32 %v3494_v56, %v3358_v6  ;;  %v3660_v35 = vadd.f32 %v3548_v23, %v3412_v57  ;;  %v3661_v1 = vadd.f32 %v3549_v49, %v3413_v17  ;;  %v3790_v24 = vmul.f32 %v12212_v36, %v11398_v3  ;;  %v12234_v23 = vld [vmem:[#allocation291_spill] sm:$0xff]  ;;  %v12239_v10 = vld [vmem:[#allocation306_spill] sm:$0xff]  ;;  %v12242_v43 = vld [vmem:[#allocation48_spill] sm:$0xff] }
 0x22d   : > { %v3172_v42 = vadd.f32 %v3060_v4, %v2930_v7  ;;  %v3173_v54 = vadd.f32 %v3061_v53, %v2931_v29  ;;  %v3791_v5 = vmul.f32 %v12213_v55, %v11398_v3  ;;  %v3820_v11 = vadd.f32 %v12230_v20, %v12229_v18  ;;  %v12235_v57 = vld [vmem:[#allocation167_spill] sm:$0xff]  ;;  %v12237_v53 = vld [vmem:[#allocation228_spill] sm:$0xff] }
 0x22e   : > { %v3821_v60 = vadd.f32 %v12232_v2, %v12231_v61  ;;  %v3848_v34 = vadd.f32 %v3736_v40, %v3606_v38  ;;  %v3849_v32 = vadd.f32 %v3737_v59, %v3607_v31  ;;  %v3874_v56 = vadd.f32 %v12233_v48, %v3632_v14  ;;  %v12236_v52 = vld [vmem:[#allocation231_spill] sm:$0xff]  ;;  %v12240_v29 = vld [vmem:[#allocation304_spill] sm:$0xff]  ;;  %v12241_v31 = vld [vmem:[#allocation302_spill] sm:$0xff] }
 0x22f   : > { %v3414_v49 = vadd.f32 %v12234_v23, %v3172_v42  ;;  %v3415_v62 = vadd.f32 %v12235_v57, %v3173_v54  ;;  %v3875_v4 = vadd.f32 %v12236_v52, %v3633_v41  ;;  %v3876_v12 = vadd.f32 %v12237_v53, %v3634_v19  ;;  %v12243_v38 = vld [vmem:[#allocation57_spill] sm:$0xff]  ;;  %v12248_v18 = vld [vmem:[#allocation223_spill] sm:$0xff] }
 0x230   : > { %v3877_v17 = vadd.f32 %v12238_v50, %v3635_v13  ;;  %v3902_v6 = vadd.f32 %v3790_v24, %v3660_v35  ;;  %v3903_v26 = vadd.f32 %v3791_v5, %v3661_v1  ;;  %v4004_v44 = vmul.f32 %v12212_v36, %v8127_v28  ;;  %v12244_v1 = vld [vmem:[#allocation227_spill] sm:$0xff]  ;;  %v12247_v5 = vld [vmem:[#allocation230_spill] sm:$0xff] }
 0x231   : > { %v3662_v30 = vadd.f32 %v3550_v37, %v3414_v49  ;;  %v3663_v40 = vadd.f32 %v3551_v51, %v3415_v62  ;;  %v4005_v59 = vmul.f32 %v12213_v55, %v8127_v28  ;;  %v4032_v14 = vmul.f32 %v5402_v8, %v8127_v28  ;;  %v12245_v36 = vld [vmem:[#allocation3_spill] sm:$0xff]  ;;  %v12250_v49 = vld [vmem:[#allocation380_spill] sm:$0xff] }
 0x232   : > { %v4060_v7 = vadd.f32 %v12239_v10, %v3818_v58  ;;  %v4061_v41 = vadd.f32 %v12240_v29, %v3819_v22  ;;  %v4062_v19 = vadd.f32 %v12241_v31, %v3820_v11  ;;  %v4063_v13 = vadd.f32 %v12242_v43, %v3821_v60  ;;  %v12246_v51 = vld [vmem:[#allocation215_spill] sm:$0xff]  ;;  %v12251_v29 = vld [vmem:[#allocation84_spill] sm:$0xff] }
 0x233   : > { %v3904_v35 = vadd.f32 %v12243_v38, %v3662_v30  ;;  %v3905_v24 = vadd.f32 %v12244_v1, %v3663_v40  ;;  %v4090_v37 = vadd.f32 %v12245_v36, %v3848_v34  ;;  %v4091_v42 = vadd.f32 %v12246_v51, %v3849_v32  ;;  %v12249_v60 = vld [vmem:[#allocation379_spill] sm:$0xff] }
 0x234   : > { %v4116_v54 = vadd.f32 %v4004_v44, %v3874_v56  ;;  %v4117_v55 = vadd.f32 %v4005_v59, %v3875_v4  ;;  %v4118_v8 = vadd.f32 %v12247_v5, %v3876_v12  ;;  %v4119_v58 = vadd.f32 %v12248_v18, %v3877_v17  ;;  %v5416_v17 = vpop.permute.xlu1 %5415  ;;  %v12252_v31 = vld [vmem:[#allocation83_spill] sm:$0xff]  ;;  %v12253_v5 = vld [vmem:[#allocation68_spill] sm:$0xff] }
 0x235   : > { %v4144_v20 = vadd.f32 %v4032_v14, %v3902_v6  ;;  %v4145_v22 = vadd.f32 %v4033_v25, %v3903_v26  ;;  %v4146_v11 = vadd.f32 %v9612_v46, %v3904_v35  ;;  %v4147_v61 = vadd.f32 %v9557_v27, %v3905_v24 }
 0x236   : > { %v4185_v2 = vsel %vm4170_vm1, %v4060_v7, -inf  ;;  %v4186_v48 = vsel %vm4170_vm1, %v12249_v60, -inf  ;;  %v4188_v34 = vsel %vm4170_vm1, %v4116_v54, -inf  ;;  %v4192_v32 = vsel %vm4170_vm1, %v4061_v41, -inf }
 0x237   : > { %v4187_v56 = vmax.f32 %v4185_v2, %v4186_v48  ;;  %v4190_v23 = vsel %vm4170_vm1, %v4144_v20, -inf  ;;  %v4193_v57 = vsel %vm4170_vm1, %v12250_v49, -inf  ;;  %v4195_v25 = vsel %vm4170_vm1, %v4117_v55, -inf }
 0x238   : > { %v4194_v46 = vmax.f32 %v4192_v32, %v4193_v57  ;;  %v4197_v27 = vsel %vm4170_vm1, %v4145_v22, -inf  ;;  %v4199_v62 = vsel %vm4170_vm1, %v4062_v19, -inf  ;;  %v4200_v52 = vsel %vm4170_vm1, %v4090_v37, -inf }
 0x239   : > { %v4189_v4 = vmax.f32 %v4187_v56, %v4188_v34  ;;  %v4201_v53 = vmax.f32 %v4199_v62, %v4200_v52  ;;  %v4202_v12 = vsel %vm4170_vm1, %v4118_v8, -inf  ;;  %v4204_v50 = vsel %vm4170_vm1, %v4146_v11, -inf  ;;  %v12255_v11 = vld [vmem:[#allocation137_spill] sm:$0xff] }
 0x23a   : > { %v4196_v6 = vmax.f32 %v4194_v46, %v4195_v25  ;;  %v4206_v26 = vsel %vm4170_vm1, %v4063_v13, -inf  ;;  %v4207_v44 = vsel %vm4170_vm1, %v4091_v42, -inf  ;;  %v4209_v30 = vsel %vm4170_vm1, %v4119_v58, -inf  ;;  %v12254_v58 = vld [vmem:[#allocation66_spill] sm:$0xff] }
 0x23b   : > { %v4191_v40 = vmax.f32 %v4189_v4, %v4190_v23  ;;  %v4203_v59 = vmax.f32 %v4201_v53, %v4202_v12  ;;  %v4208_v14 = vmax.f32 %v4206_v26, %v4207_v44  ;;  %v4211_v10 = vsel %vm4170_vm1, %v4147_v61, -inf  ;;  %v12256_v23 = vld [vmem:[#allocation136_spill] sm:$0xff]  ;;  %v12257_v4 = vld [vmem:[#allocation189_spill] sm:$0xff] }
 0x23c   : > { %v4198_v7 = vmax.f32 %v4196_v6, %v4197_v27  ;;  %v1335_v41 = vmul.f32 %v12251_v29, %v12006_v39  ;;  %v1336_v19 = vmul.f32 %v12252_v31, %v12006_v39  ;;  %v5418_v43 = vunpack.i.h.bf16 %v5416_v17  ;;  %v12258_v12 = vld [vmem:[#allocation16_spill] sm:$0xff] }
 0x23d   : > { %v4205_v38 = vmax.f32 %v4203_v59, %v4204_v50  ;;  %v4210_v35 = vmax.f32 %v4208_v14, %v4209_v30  ;;  %v4375_v13 = vadd.f32 %v9587_v15, %v4191_v40  ;;  %v5417_v1 = vunpack.i.l.bf16 %v5416_v17  ;;  %v12259_v17 = vld [vmem:[#allocation112_spill] sm:$0xff] }
 0x23e   : > { %v4376_v24 = vadd.f32 %v9587_v15, %v4198_v7  ;;  %v2577_v36 = vmul.f32 %v5418_v43, %v8097_v0  ;;  %v3253_v37 = vmul.f32 %v5418_v43, %v8119_v33  ;;  %v9752_v51 = vmul.f32 %v5418_v43, %v8127_v28  ;;  %v12260_v30 = vld [vmem:[#allocation108_spill] sm:$0xff] }
 0x23f   : > { %v4212_v42 = vmax.f32 %v4210_v35, %v4211_v10  ;;  %v4377_v54 = vadd.f32 %v9587_v15, %v4205_v38  ;;  %v4403_v55 = vmax.f32 %v4375_v13, 0.0  ;;  %v1956_v8 = vmul.f32 %v12253_v5, %v12019_v63 }
 0x240   : > { %v4404_v18 = vmax.f32 %v4376_v24, 0.0  ;;  %v1957_v20 = vmul.f32 %v12254_v58, %v12019_v63  ;;  %v2576_v22 = vmul.f32 %v5417_v1, %v8097_v0  ;;  %v2824_v61 = vmul.f32 %v12255_v11, %v12015_v45 }
 0x241   : > { %v4378_v2 = vadd.f32 %v9587_v15, %v4212_v42  ;;  %v4405_v60 = vmax.f32 %v4377_v54, 0.0  ;;  %v4704_v48 = vpack.c.bf16 %v4403_v55, %v4403_v55  ;;  %v2068_v34 = vadd.f32 %v1956_v8, %v1335_v41  ;;  %v12262_v54 = vld [vmem:[#allocation234_spill] sm:$0xff] }
 0x242   : > { %v4705_v32 = vpack.c.bf16 %v4404_v18, %v4404_v18  ;;  %v2069_v56 = vadd.f32 %v1957_v20, %v1336_v19  ;;  %v2825_v49 = vmul.f32 %v12256_v23, %v12015_v45  ;;  %v3010_v57 = vmul.f32 %v12253_v5, %v12178_v16  ;;  %v12263_v18 = vld [vmem:[#allocation123_spill] sm:$0xff] }
 0x243   : > { %v4406_v25 = vmax.f32 %v4378_v2, 0.0  ;;  %v4706_v46 = vpack.c.bf16 %v4405_v60, %v4405_v60  ;;  %4544 = vst.msk [vmem:[%s9621_s22 + $0x8] sm:$0xf] %vm4541_vm2, %v4704_v48  ;;  %v2688_v27 = vadd.f32 %v2576_v22, %v2068_v34  ;;  %v3011_v62 = vmul.f32 %v12254_v58, %v12178_v16  ;;  %v12265_v22 = vld [vmem:[#allocation307_spill] sm:$0xff]  ;;  %v12268_v60 = vld [vmem:[#allocation133_spill] sm:$0xff] }
 0x244   : > { %4545 = vst.msk [vmem:[%s9621_s22 + $0xc] sm:$0xf] %vm4541_vm2, %v4705_v32  ;;  %v2689_v52 = vadd.f32 %v2577_v36, %v2069_v56  ;;  %v3066_v53 = vmul.f32 %v12257_v4, %v12178_v16  ;;  %v3067_v50 = vmul.f32 %v12258_v12, %v12178_v16  ;;  %v3122_v6 = vadd.f32 %v3010_v57, %v12259_v17  ;;  %v12261_v36 = vld [vmem:[#allocation235_spill] sm:$0xff]  ;;  %v12270_v32 = vld [vmem:[#allocation129_spill] sm:$0xff] }
 0x245   : > { %v4707_v26 = vpack.c.bf16 %v4406_v25, %v4406_v25  ;;  %4546 = vst.msk [vmem:[%s9621_s22 + $0x10] sm:$0xf] %vm4541_vm2, %v4706_v46  ;;  %v2936_v44 = vadd.f32 %v2824_v61, %v2688_v27  ;;  %v3123_v40 = vadd.f32 %v3011_v62, %v12260_v30  ;;  %v3252_v59 = vmul.f32 %v5417_v1, %v8119_v33  ;;  %v12267_v2 = vld [vmem:[#allocation59_spill] sm:$0xff]  ;;  %v5411_v46 = vpop.permute.xlu0 %5410  ;;  %v12277_v30 = vld [vmem:[#allocation81_spill] sm:$0xff] }
 0x246   : > { %v2937_v14 = vadd.f32 %v2825_v49, %v2689_v52  ;;  %v3500_v10 = vmul.f32 %v12255_v11, %v12179_v9  ;;  %v3501_v7 = vmul.f32 %v12256_v23, %v12179_v9  ;;  %v3742_v41 = vmul.f32 %v12257_v4, %v11398_v3  ;;  %v12269_v34 = vld [vmem:[#allocation79_spill] sm:$0xff] }
 0x247   : > { %4547 = vst.msk [vmem:[%s9621_s22 + $0x14] sm:$0xf] %vm4541_vm2, %v4707_v26  ;;  %v9790_v19 = vadd.f32 %v3066_v53, %v2936_v44  ;;  %v3364_v43 = vadd.f32 %v3252_v59, %v3122_v6  ;;  %v3365_v38 = vadd.f32 %v3253_v37, %v3123_v40  ;;  %v3743_v35 = vmul.f32 %v12258_v12, %v11398_v3  ;;  %v12264_v37 = vld [vmem:[#allocation122_spill] sm:$0xff]  ;;  %v12271_v53 = vld [vmem:[#allocation297_spill] sm:$0xff]  ;;  %v12275_v6 = vld [vmem:[#allocation28_spill] sm:$0xff] }
 0x248   : > { %v9794_v13 = vadd.f32 %v3067_v50, %v2937_v14  ;;  %v9797_v24 = vmul.f32 %v5417_v1, %v8127_v28  ;;  %v1333_v42 = vmul.f32 %v12261_v36, %v12006_v39  ;;  %v1334_v55 = vmul.f32 %v12262_v54, %v12006_v39  ;;  %v12266_v1 = vld [vmem:[#allocation301_spill] sm:$0xff]  ;;  %v12273_v50 = vld [vmem:[#allocation219_spill] sm:$0xff] }
 0x249   : > { %v3612_v5 = vadd.f32 %v3500_v10, %v3364_v43  ;;  %v3613_v8 = vadd.f32 %v3501_v7, %v3365_v38  ;;  %v2822_v58 = vmul.f32 %v12263_v18, %v12015_v45  ;;  %v2823_v20 = vmul.f32 %v12264_v37, %v12015_v45  ;;  %v12276_v26 = vld [vmem:[#allocation69_spill] sm:$0xff]  ;;  %v12278_v40 = vld [vmem:[#allocation67_spill] sm:$0xff]  ;;  %v12279_v7 = vld [vmem:[#allocation134_spill] sm:$0xff] }
 0x24a   : > { %v3064_v11 = vmul.f32 %v12265_v22, %v12178_v16  ;;  %v3065_v61 = vmul.f32 %v12266_v1, %v12178_v16  ;;  %v3146_v48 = vadd.f32 %v12268_v60, %v12267_v2  ;;  %v3147_v56 = vadd.f32 %v12270_v32, %v12269_v34  ;;  %v12280_v43 = vld [vmem:[#allocation130_spill] sm:$0xff] }
 0x24b   : > { %v3854_v23 = vadd.f32 %v3742_v41, %v3612_v5  ;;  %v3855_v49 = vadd.f32 %v3743_v35, %v3613_v8  ;;  %v3498_v57 = vmul.f32 %v12263_v18, %v12179_v9  ;;  %v3499_v25 = vmul.f32 %v12264_v37, %v12179_v9  ;;  %v12281_v35 = vld [vmem:[#allocation345_spill] sm:$0xff] }
 0x24c   : > { %v3552_v27 = vmul.f32 %v12261_v36, %v12179_v9  ;;  %v3553_v62 = vmul.f32 %v12262_v54, %v12179_v9  ;;  %v3554_v52 = vmul.f32 %v12251_v29, %v12179_v9  ;;  %v3555_v4 = vmul.f32 %v12252_v31, %v12179_v9  ;;  %v12282_v54 = vld [vmem:[#allocation343_spill] sm:$0xff] }
 0x24d   : > { %v9828_v12 = vadd.f32 %v12271_v53, %v3854_v23  ;;  %v9831_v17 = vadd.f32 %v12273_v50, %v3855_v49  ;;  %v3580_v44 = vadd.f32 %v12276_v26, %v12275_v6  ;;  %v3581_v59 = vadd.f32 %v12278_v40, %v12277_v30  ;;  %v12283_v23 = vld [vmem:[#allocation315_spill] sm:$0xff]  ;;  %v12285_v50 = vld [vmem:[#allocation33_spill] sm:$0xff]  ;;  %v12286_v30 = vld [vmem:[#allocation38_spill] sm:$0xff] }
 0x24e   : > { %v3740_v14 = vmul.f32 %v12265_v22, %v11398_v3  ;;  %v3741_v29 = vmul.f32 %v12266_v1, %v11398_v3  ;;  %v5413_v10 = vunpack.i.h.bf16 %v5411_v46  ;;  %v5412_v31 = vunpack.i.l.bf16 %v5411_v46  ;;  %v12284_v46 = vld [vmem:[#allocation314_spill] sm:$0xff] }
 0x24f   : > { %12272 = vst [vmem:[#allocation221_spill] sm:$0xff] %v9828_v12  ;;  %12274 = vst [vmem:[#allocation76_spill] sm:$0xff] %v9831_v17  ;;  %v3822_v41 = vadd.f32 %v12279_v7, %v3580_v44  ;;  %v3823_v38 = vadd.f32 %v12280_v43, %v3581_v59  ;;  %v1954_v36 = vmul.f32 %v12281_v35, %v12019_v63  ;;  %v12288_v59 = vld [vmem:[#allocation41_spill] sm:$0xff]  ;;  %v12289_v7 = vld [vmem:[#allocation190_spill] sm:$0xff] }
 0x250   : > { %v1955_v5 = vmul.f32 %v12282_v54, %v12019_v63  ;;  %v2575_v8 = vmul.f32 %v5413_v10, %v8097_v0  ;;  %v3251_v18 = vmul.f32 %v5413_v10, %v8119_v33  ;;  %v4037_v37 = vmul.f32 %v5413_v10, %v8127_v28  ;;  %v12291_v17 = vld [vmem:[#allocation249_spill] sm:$0xff] }
 0x251   : > { %v2574_v22 = vmul.f32 %v5412_v31, %v8097_v0  ;;  %v2066_v1 = vadd.f32 %v1954_v36, %v1333_v42  ;;  %v3008_v60 = vmul.f32 %v12281_v35, %v12178_v16  ;;  %v3009_v34 = vmul.f32 %v12282_v54, %v12178_v16  ;;  %v12290_v36 = vld [vmem:[#allocation12_spill] sm:$0xff] }
 0x252   : > { %v2067_v2 = vadd.f32 %v1955_v5, %v1334_v55  ;;  %v3250_v32 = vmul.f32 %v5412_v31, %v8119_v33  ;;  %v3388_v49 = vadd.f32 %v12283_v23, %v3146_v48  ;;  %v3389_v53 = vadd.f32 %v12284_v46, %v3147_v56  ;;  %v12287_v55 = vld [vmem:[#allocation295_spill] sm:$0xff]  ;;  %v12292_v48 = vld [vmem:[#allocation8_spill] sm:$0xff] }
 0x253   : > { %v3416_v6 = vadd.f32 %v12285_v50, %v9595_v21  ;;  %v2686_v26 = vadd.f32 %v2574_v22, %v2066_v1  ;;  %v3120_v42 = vadd.f32 %v3008_v60, %v12286_v30  ;;  %v3121_v40 = vadd.f32 %v3009_v34, %v12287_v55  ;;  %v12293_v22 = vld [vmem:[#allocation346_spill] sm:$0xff] }
 0x254   : > { %v2687_v44 = vadd.f32 %v2575_v8, %v2067_v2  ;;  %v3417_v10 = vadd.f32 %v12288_v59, %v9598_v47  ;;  %v3636_v43 = vadd.f32 %v12289_v7, %v3388_v49  ;;  %v3637_v5 = vadd.f32 %v12290_v36, %v3389_v53  ;;  %v12294_v8 = vld [vmem:[#allocation7_spill] sm:$0xff]  ;;  %v12304_v59 = vld [vmem:[#allocation236_spill] sm:$0xff] }
 0x255   : > { %v3638_v23 = vadd.f32 %v12292_v48, %v12291_v17  ;;  %v2934_v56 = vadd.f32 %v2822_v58, %v2686_v26  ;;  %v3362_v12 = vadd.f32 %v3250_v32, %v3120_v42  ;;  %v3363_v21 = vadd.f32 %v3251_v18, %v3121_v40  ;;  %v12295_v17 = vld [vmem:[#allocation49_spill] sm:$0xff]  ;;  %v12296_v58 = vld [vmem:[#allocation128_spill] sm:$0xff]  ;;  %v12298_v18 = vld [vmem:[#allocation126_spill] sm:$0xff] }
 0x256   : > { %v2935_v46 = vadd.f32 %v2823_v20, %v2687_v44  ;;  %v3639_v1 = vadd.f32 %v12294_v8, %v12293_v22  ;;  %v3664_v2 = vadd.f32 %v3552_v27, %v3416_v6  ;;  %v3665_v60 = vadd.f32 %v3553_v62, %v3417_v10  ;;  %v12297_v32 = vld [vmem:[#allocation64_spill] sm:$0xff]  ;;  %v12299_v44 = vld [vmem:[#allocation241_spill] sm:$0xff]  ;;  %v12301_v6 = vld [vmem:[#allocation323_spill] sm:$0xff] }
 0x257   : > { %v3794_v34 = vmul.f32 %v12281_v35, %v11398_v3  ;;  %v3176_v47 = vadd.f32 %v3064_v11, %v2934_v56  ;;  %v3610_v49 = vadd.f32 %v3498_v57, %v3362_v12  ;;  %v3611_v30 = vadd.f32 %v3499_v25, %v3363_v21  ;;  %v12300_v27 = vld [vmem:[#allocation324_spill] sm:$0xff]  ;;  %v12303_v25 = vld [vmem:[#allocation237_spill] sm:$0xff]  ;;  %v12306_v22 = vld [vmem:[#allocation131_spill] sm:$0xff] }
 0x258   : > { %v3177_v50 = vadd.f32 %v3065_v61, %v2935_v46  ;;  %v3795_v53 = vmul.f32 %v12282_v54, %v11398_v3  ;;  %v3824_v20 = vadd.f32 %v12296_v58, %v12295_v17  ;;  %v3825_v26 = vadd.f32 %v12298_v18, %v12297_v32  ;;  %v12302_v61 = vld [vmem:[#allocation239_spill] sm:$0xff]  ;;  %v12307_v8 = vld [vmem:[#allocation117_spill] sm:$0xff]  ;;  %v12314_v17 = vld [vmem:[#allocation232_spill] sm:$0xff] }
 0x259   : > { %v3878_v42 = vadd.f32 %v12299_v44, %v3636_v43  ;;  %v3418_v62 = vadd.f32 %v12300_v27, %v3176_v47  ;;  %v3852_v40 = vadd.f32 %v3740_v14, %v3610_v49  ;;  %v3853_v11 = vadd.f32 %v3741_v29, %v3611_v30  ;;  %v12305_v14 = vld [vmem:[#allocation132_spill] sm:$0xff]  ;;  %v12315_v44 = vld [vmem:[#allocation341_spill] sm:$0xff] }
 0x25a   : > { %v3419_v55 = vadd.f32 %v12301_v6, %v3177_v50  ;;  %v3879_v57 = vadd.f32 %v12302_v61, %v3637_v5  ;;  %v3880_v12 = vadd.f32 %v12303_v25, %v3638_v23  ;;  %v3881_v10 = vadd.f32 %v12304_v59, %v3639_v1  ;;  %v12308_v47 = vld [vmem:[#allocation188_spill] sm:$0xff] }
 0x25b   : > { %v3906_v7 = vadd.f32 %v3794_v34, %v3664_v2  ;;  %v3666_v36 = vadd.f32 %v3554_v52, %v3418_v62  ;;  %v3907_v56 = vadd.f32 %v3795_v53, %v3665_v60  ;;  %v4008_v46 = vmul.f32 %v12281_v35, %v8127_v28  ;;  %v12309_v2 = vld [vmem:[#allocation313_spill] sm:$0xff]  ;;  %v12311_v34 = vld [vmem:[#allocation107_spill] sm:$0xff]  ;;  %v12313_v53 = vld [vmem:[#allocation344_spill] sm:$0xff] }
 0x25c   : > { %v3667_v48 = vadd.f32 %v3555_v4, %v3419_v55  ;;  %v4009_v43 = vmul.f32 %v12282_v54, %v8127_v28  ;;  %v4036_v21 = vmul.f32 %v5412_v31, %v8127_v28  ;;  %v4064_v29 = vadd.f32 %v12305_v14, %v3822_v41  ;;  %v12310_v4 = vld [vmem:[#allocation310_spill] sm:$0xff]  ;;  %v12312_v35 = vld [vmem:[#allocation113_spill] sm:$0xff] }
 0x25d   : > { %v4065_v5 = vadd.f32 %v12306_v22, %v3823_v38  ;;  %v3908_v23 = vadd.f32 %v12307_v8, %v3666_v36  ;;  %v4066_v52 = vadd.f32 %v12309_v2, %v3824_v20  ;;  %v4067_v60 = vadd.f32 %v12310_v4, %v3825_v26  ;;  %v12316_v55 = vld [vmem:[#allocation342_spill] sm:$0xff]  ;;  %v5426_v36 = vpop.permute.xlu1 %5425 }
 0x25e   : > { %v3909_v1 = vadd.f32 %v12308_v47, %v3667_v48  ;;  %v4094_v50 = vadd.f32 %v12311_v34, %v3852_v40  ;;  %v4095_v49 = vadd.f32 %v12312_v35, %v3853_v11  ;;  %v4120_v30 = vadd.f32 %v4008_v46, %v3878_v42 }
 0x25f   : > { %v4121_v54 = vadd.f32 %v4009_v43, %v3879_v57  ;;  %v4122_v31 = vadd.f32 %v12313_v53, %v3880_v12  ;;  %v4123_v41 = vadd.f32 %v12314_v17, %v3881_v10  ;;  %v4148_v58 = vadd.f32 %v4036_v21, %v3906_v7 }
 0x260   : > { %v4149_v38 = vadd.f32 %v4037_v37, %v3907_v56  ;;  %v4150_v32 = vadd.f32 %v9797_v24, %v3908_v23  ;;  %v4151_v18 = vadd.f32 %v9752_v51, %v3909_v1  ;;  %v4213_v20 = vsel %vm4170_vm1, %v4064_v29, -inf  ;;  %v12317_v29 = vld [vmem:[#allocation87_spill] sm:$0xff] }
 0x261   : > { %v4214_v26 = vsel %vm4170_vm1, %v12315_v44, -inf  ;;  %v4216_v62 = vsel %vm4170_vm1, %v4120_v30, -inf  ;;  %v4218_v42 = vsel %vm4170_vm1, %v4148_v58, -inf  ;;  %v4220_v6 = vsel %vm4170_vm1, %v4065_v5, -inf  ;;  %v12318_v5 = vld [vmem:[#allocation86_spill] sm:$0xff] }
 0x262   : > { %v4215_v27 = vmax.f32 %v4213_v20, %v4214_v26  ;;  %v4221_v40 = vsel %vm4170_vm1, %v12316_v55, -inf  ;;  %v4223_v37 = vsel %vm4170_vm1, %v4121_v54, -inf  ;;  %v4225_v24 = vsel %vm4170_vm1, %v4149_v38, -inf }
 0x263   : > { %v4227_v51 = vsel %vm4170_vm1, %v4066_v52, -inf  ;;  %v4222_v61 = vmax.f32 %v4220_v6, %v4221_v40  ;;  %v4228_v57 = vsel %vm4170_vm1, %v4094_v50, -inf  ;;  %v4230_v25 = vsel %vm4170_vm1, %v4122_v31, -inf  ;;  %v12320_v50 = vld [vmem:[#allocation240_spill] sm:$0xff] }
 0x264   : > { %v4217_v11 = vmax.f32 %v4215_v27, %v4216_v62  ;;  %v4229_v12 = vmax.f32 %v4227_v51, %v4228_v57  ;;  %v4232_v59 = vsel %vm4170_vm1, %v4150_v32, -inf  ;;  %v4234_v10 = vsel %vm4170_vm1, %v4067_v60, -inf  ;;  %v12319_v60 = vld [vmem:[#allocation238_spill] sm:$0xff] }
 0x265   : > { %v4235_v7 = vsel %vm4170_vm1, %v4095_v49, -inf  ;;  %v4224_v56 = vmax.f32 %v4222_v61, %v4223_v37  ;;  %v4237_v43 = vsel %vm4170_vm1, %v4123_v41, -inf  ;;  %v4239_v14 = vsel %vm4170_vm1, %v4151_v18, -inf  ;;  %v12321_v27 = vld [vmem:[#allocation142_spill] sm:$0xff] }
 0x266   : > { %v4219_v48 = vmax.f32 %v4217_v11, %v4218_v42  ;;  %v4236_v46 = vmax.f32 %v4234_v10, %v4235_v7  ;;  %v4231_v21 = vmax.f32 %v4229_v12, %v4230_v25  ;;  %v1339_v22 = vmul.f32 %v12317_v29, %v12006_v39  ;;  %v12322_v42 = vld [vmem:[#allocation141_spill] sm:$0xff]  ;;  %v12323_v57 = vld [vmem:[#allocation154_spill] sm:$0xff] }
 0x267   : > { %v1340_v8 = vmul.f32 %v12318_v5, %v12006_v39  ;;  %v4226_v23 = vmax.f32 %v4224_v56, %v4225_v24  ;;  %v5428_v2 = vunpack.i.h.bf16 %v5426_v36  ;;  %v5427_v4 = vunpack.i.l.bf16 %v5426_v36  ;;  %v12324_v10 = vld [vmem:[#allocation22_spill] sm:$0xff] }
 0x268   : > { %v4238_v47 = vmax.f32 %v4236_v46, %v4237_v43  ;;  %v4379_v1 = vadd.f32 %v9587_v15, %v4219_v48  ;;  %v4233_v52 = vmax.f32 %v4231_v21, %v4232_v59  ;;  %v1960_v34 = vmul.f32 %v12319_v60, %v12019_v63  ;;  %v12325_v36 = vld [vmem:[#allocation90_spill] sm:$0xff]  ;;  %v12326_v46 = vld [vmem:[#allocation177_spill] sm:$0xff] }
 0x269   : > { %v1961_v35 = vmul.f32 %v12320_v50, %v12019_v63  ;;  %v4380_v30 = vadd.f32 %v9587_v15, %v4226_v23  ;;  %v2581_v53 = vmul.f32 %v5428_v2, %v8097_v0  ;;  %v3257_v17 = vmul.f32 %v5428_v2, %v8119_v33 }
 0x26a   : > { %v4240_v49 = vmax.f32 %v4238_v47, %v4239_v14  ;;  %v4407_v54 = vmax.f32 %v4379_v1, 0.0  ;;  %v4381_v31 = vadd.f32 %v9587_v15, %v4233_v52  ;;  %v9933_v41 = vmul.f32 %v5428_v2, %v8127_v28 }
 0x26b   : > { %v2072_v58 = vadd.f32 %v1960_v34, %v1339_v22  ;;  %v4408_v32 = vmax.f32 %v4380_v30, 0.0  ;;  %v2073_v20 = vadd.f32 %v1961_v35, %v1340_v8  ;;  %v2580_v26 = vmul.f32 %v5427_v4, %v8097_v0  ;;  %v12327_v34 = vld [vmem:[#allocation242_spill] sm:$0xff]  ;;  %v12328_v35 = vld [vmem:[#allocation88_spill] sm:$0xff] }
 0x26c   : > { %v4382_v38 = vadd.f32 %v9587_v15, %v4240_v49  ;;  %v4708_v18 = vpack.c.bf16 %v4407_v54, %v4407_v54  ;;  %v4409_v44 = vmax.f32 %v4381_v31, 0.0  ;;  %v2828_v62 = vmul.f32 %v12321_v27, %v12015_v45  ;;  %v12329_v30 = vld [vmem:[#allocation52_spill] sm:$0xff] }
 0x26d   : > { %v2829_v6 = vmul.f32 %v12322_v42, %v12015_v45  ;;  %v4709_v40 = vpack.c.bf16 %v4408_v32, %v4408_v32  ;;  %v2693_v37 = vadd.f32 %v2581_v53, %v2073_v20  ;;  %v3014_v24 = vmul.f32 %v12319_v60, %v12178_v16  ;;  %v12330_v53 = vld [vmem:[#allocation127_spill] sm:$0xff]  ;;  %v12331_v32 = vld [vmem:[#allocation312_spill] sm:$0xff]  ;;  %v12333_v20 = vld [vmem:[#allocation58_spill] sm:$0xff] }
 0x26e   : > { %v4410_v55 = vmax.f32 %v4382_v38, 0.0  ;;  %4548 = vst.msk [vmem:[%s9621_s22 + $0x18] sm:$0xf] %vm4541_vm2, %v4708_v18  ;;  %v4710_v51 = vpack.c.bf16 %v4409_v44, %v4409_v44  ;;  %v2692_v11 = vadd.f32 %v2580_v26, %v2072_v58  ;;  %v3015_v61 = vmul.f32 %v12320_v50, %v12178_v16  ;;  %v12334_v44 = vld [vmem:[#allocation147_spill] sm:$0xff] }
 0x26f   : > { %v3070_v25 = vmul.f32 %v12323_v57, %v12178_v16  ;;  %4549 = vst.msk [vmem:[%s9621_s22 + $0x1c] sm:$0xf] %vm4541_vm2, %v4709_v40  ;;  %v2941_v59 = vadd.f32 %v2829_v6, %v2693_v37  ;;  %v3071_v7 = vmul.f32 %v12324_v10, %v12178_v16  ;;  %v3126_v48 = vadd.f32 %v3014_v24, %v12325_v36 }
 0x270   : > { %v4711_v12 = vpack.c.bf16 %v4410_v55, %v4410_v55  ;;  %4550 = vst.msk [vmem:[%s9621_s22 + $0x20] sm:$0xf] %vm4541_vm2, %v4710_v51  ;;  %v2940_v56 = vadd.f32 %v2828_v62, %v2692_v11  ;;  %v3127_v43 = vadd.f32 %v3015_v61, %v12326_v46  ;;  %v3256_v21 = vmul.f32 %v5427_v4, %v8119_v33  ;;  %v12336_v62 = vld [vmem:[#allocation145_spill] sm:$0xff]  ;;  %v5421_v11 = vpop.permute.xlu0 %5420  ;;  %v12343_v46 = vld [vmem:[#allocation351_spill] sm:$0xff] }
 0x271   : > { %v3504_v14 = vmul.f32 %v12321_v27, %v12179_v9  ;;  %v9962_v22 = vadd.f32 %v3071_v7, %v2941_v59  ;;  %v3505_v8 = vmul.f32 %v12322_v42, %v12179_v9  ;;  %v3746_v23 = vmul.f32 %v12323_v57, %v11398_v3  ;;  %v12335_v27 = vld [vmem:[#allocation26_spill] sm:$0xff]  ;;  %v12340_v7 = vld [vmem:[#allocation32_spill] sm:$0xff] }
 0x272   : > { %4551 = vst.msk [vmem:[%s9621_s22 + $0x24] sm:$0xf] %vm4541_vm2, %v4711_v12  ;;  %v3747_v47 = vmul.f32 %v12324_v10, %v11398_v3  ;;  %v9970_v1 = vadd.f32 %v3070_v25, %v2940_v56  ;;  %v3368_v2 = vadd.f32 %v3256_v21, %v3126_v48  ;;  %v3369_v52 = vadd.f32 %v3257_v17, %v3127_v43  ;;  %v12337_v25 = vld [vmem:[#allocation30_spill] sm:$0xff]  ;;  %v12339_v10 = vld [vmem:[#allocation27_spill] sm:$0xff]  ;;  %v12341_v48 = vld [vmem:[#allocation353_spill] sm:$0xff] }
 0x273   : > { %v9973_v60 = vmul.f32 %v5427_v4, %v8127_v28  ;;  %v1337_v50 = vmul.f32 %v12327_v34, %v12006_v39  ;;  %v1338_v49 = vmul.f32 %v12328_v35, %v12006_v39  ;;  %v2826_v54 = vmul.f32 %v12329_v30, %v12015_v45  ;;  %v12332_v4 = vld [vmem:[#allocation311_spill] sm:$0xff]  ;;  %v12338_v12 = vld [vmem:[#allocation78_spill] sm:$0xff] }
 0x274   : > { %v2827_v31 = vmul.f32 %v12330_v53, %v12015_v45  ;;  %v3616_v58 = vadd.f32 %v3504_v14, %v3368_v2  ;;  %v3617_v38 = vadd.f32 %v3505_v8, %v3369_v52  ;;  %v3068_v17 = vmul.f32 %v12331_v32, %v12178_v16  ;;  %v12345_v14 = vld [vmem:[#allocation150_spill] sm:$0xff]  ;;  %v12347_v52 = vld [vmem:[#allocation348_spill] sm:$0xff] }
 0x275   : > { %v3069_v18 = vmul.f32 %v12332_v4, %v12178_v16  ;;  %v3150_v26 = vadd.f32 %v12334_v44, %v12333_v20  ;;  %v3151_v42 = vadd.f32 %v12336_v62, %v12335_v27  ;;  %v3502_v6 = vmul.f32 %v12329_v30, %v12179_v9  ;;  %v12346_v8 = vld [vmem:[#allocation146_spill] sm:$0xff]  ;;  %v12349_v62 = vld [vmem:[#allocation116_spill] sm:$0xff] }
 0x276   : > { %v3503_v55 = vmul.f32 %v12330_v53, %v12179_v9  ;;  %v3858_v40 = vadd.f32 %v3746_v23, %v3616_v58  ;;  %v3859_v37 = vadd.f32 %v3747_v47, %v3617_v38  ;;  %v3556_v24 = vmul.f32 %v12327_v34, %v12179_v9 }
 0x277   : > { %v3557_v51 = vmul.f32 %v12328_v35, %v12179_v9  ;;  %v3558_v61 = vmul.f32 %v12317_v29, %v12179_v9  ;;  %v3559_v57 = vmul.f32 %v12318_v5, %v12179_v9  ;;  %v3584_v59 = vadd.f32 %v12338_v12, %v12337_v25  ;;  %v12348_v35 = vld [vmem:[#allocation77_spill] sm:$0xff]  ;;  %v12351_v12 = vld [vmem:[#allocation318_spill] sm:$0xff] }
 0x278   : > { %v3585_v36 = vadd.f32 %v12340_v7, %v12339_v10  ;;  %v10008_v56 = vadd.f32 %v12341_v48, %v3858_v40  ;;  %v10011_v43 = vadd.f32 %v12343_v46, %v3859_v37  ;;  %v3744_v21 = vmul.f32 %v12331_v32, %v11398_v3  ;;  %v12350_v37 = vld [vmem:[#allocation42_spill] sm:$0xff]  ;;  %v12352_v10 = vld [vmem:[#allocation316_spill] sm:$0xff] }
 0x279   : > { %v3745_v29 = vmul.f32 %v12332_v4, %v11398_v3  ;;  %v3826_v5 = vadd.f32 %v12345_v14, %v3584_v59  ;;  %v5423_v47 = vunpack.i.h.bf16 %v5421_v11  ;;  %v5422_v2 = vunpack.i.l.bf16 %v5421_v11 }
 0x27a   : > { %12342 = vst [vmem:[#allocation73_spill] sm:$0xff] %v10008_v56  ;;  %12344 = vst [vmem:[#allocation222_spill] sm:$0xff] %v10011_v43  ;;  %v3827_v23 = vadd.f32 %v12346_v8, %v3585_v36  ;;  %v1958_v34 = vmul.f32 %v12347_v52, %v12019_v63  ;;  %v1959_v30 = vmul.f32 %v12348_v35, %v12019_v63  ;;  %v12353_v36 = vld [vmem:[#allocation224_spill] sm:$0xff]  ;;  %v12360_v56 = vld [vmem:[#allocation17_spill] sm:$0xff] }
 0x27b   : > { %v3012_v53 = vmul.f32 %v12347_v52, %v12178_v16  ;;  %v3013_v58 = vmul.f32 %v12348_v35, %v12178_v16  ;;  %v2579_v38 = vmul.f32 %v5423_v47, %v8097_v0  ;;  %v3255_v32 = vmul.f32 %v5423_v47, %v8119_v33 }
 0x27c   : > { %v4041_v4 = vmul.f32 %v5423_v47, %v8127_v28  ;;  %v2578_v20 = vmul.f32 %v5422_v2, %v8097_v0  ;;  %v2070_v44 = vadd.f32 %v1958_v34, %v1337_v50  ;;  %v2071_v27 = vadd.f32 %v1959_v30, %v1338_v49  ;;  %v12354_v47 = vld [vmem:[#allocation220_spill] sm:$0xff]  ;;  %v12355_v34 = vld [vmem:[#allocation194_spill] sm:$0xff] }
 0x27d   : > { %v3124_v40 = vadd.f32 %v3012_v53, %v12349_v62  ;;  %v3125_v11 = vadd.f32 %v3013_v58, %v12350_v37  ;;  %v3254_v25 = vmul.f32 %v5422_v2, %v8119_v33  ;;  %v3392_v59 = vadd.f32 %v12351_v12, %v3150_v26  ;;  %v12356_v53 = vld [vmem:[#allocation15_spill] sm:$0xff]  ;;  %v12357_v62 = vld [vmem:[#allocation36_spill] sm:$0xff] }
 0x27e   : > { %v3393_v7 = vadd.f32 %v12352_v10, %v3151_v42  ;;  %v3420_v48 = vadd.f32 %v12353_v36, %v9790_v19  ;;  %v2690_v46 = vadd.f32 %v2578_v20, %v2070_v44  ;;  %v2691_v14 = vadd.f32 %v2579_v38, %v2071_v27  ;;  %v12358_v37 = vld [vmem:[#allocation192_spill] sm:$0xff]  ;;  %v12359_v10 = vld [vmem:[#allocation51_spill] sm:$0xff] }
 0x27f   : > { %v3367_v8 = vadd.f32 %v3255_v32, %v3125_v11  ;;  %v3421_v50 = vadd.f32 %v12354_v47, %v9794_v13  ;;  %v3366_v49 = vadd.f32 %v3254_v25, %v3124_v40  ;;  %v3640_v30 = vadd.f32 %v12355_v34, %v3392_v59  ;;  %v12361_v11 = vld [vmem:[#allocation94_spill] sm:$0xff]  ;;  %v12362_v25 = vld [vmem:[#allocation144_spill] sm:$0xff]  ;;  %v12370_v47 = vld [vmem:[#allocation243_spill] sm:$0xff] }
 0x280   : > { %v3641_v58 = vadd.f32 %v12356_v53, %v3393_v7  ;;  %v3642_v43 = vadd.f32 %v12358_v37, %v12357_v62  ;;  %v2938_v26 = vadd.f32 %v2826_v54, %v2690_v46  ;;  %v2939_v12 = vadd.f32 %v2827_v31, %v2691_v14  ;;  %v12363_v54 = vld [vmem:[#allocation255_spill] sm:$0xff]  ;;  %v12371_v37 = vld [vmem:[#allocation149_spill] sm:$0xff] }
 0x281   : > { %v3615_v42 = vadd.f32 %v3503_v55, %v3367_v8  ;;  %v3643_v19 = vadd.f32 %v12360_v56, %v12359_v10  ;;  %v3614_v20 = vadd.f32 %v3502_v6, %v3366_v49  ;;  %v3668_v38 = vadd.f32 %v3556_v24, %v3420_v48  ;;  %v12364_v31 = vld [vmem:[#allocation135_spill] sm:$0xff]  ;;  %v12365_v56 = vld [vmem:[#allocation250_spill] sm:$0xff]  ;;  %v12366_v24 = vld [vmem:[#allocation109_spill] sm:$0xff] }
 0x282   : > { %v3669_v32 = vadd.f32 %v3557_v51, %v3421_v50  ;;  %v3798_v13 = vmul.f32 %v12347_v52, %v11398_v3  ;;  %v3180_v44 = vadd.f32 %v3068_v17, %v2938_v26  ;;  %v3181_v27 = vadd.f32 %v3069_v18, %v2939_v12  ;;  %v12367_v48 = vld [vmem:[#allocation60_spill] sm:$0xff]  ;;  %v12368_v14 = vld [vmem:[#allocation247_spill] sm:$0xff]  ;;  %v12372_v12 = vld [vmem:[#allocation13_spill] sm:$0xff] }
 0x283   : > { %v3799_v40 = vmul.f32 %v12348_v35, %v11398_v3  ;;  %v3828_v59 = vadd.f32 %v12362_v25, %v12361_v11  ;;  %v3829_v55 = vadd.f32 %v12364_v31, %v12363_v54  ;;  %v3856_v7 = vadd.f32 %v3744_v21, %v3614_v20  ;;  %v12369_v18 = vld [vmem:[#allocation244_spill] sm:$0xff]  ;;  %v12374_v10 = vld [vmem:[#allocation14_spill] sm:$0xff]  ;;  %v12375_v20 = vld [vmem:[#allocation97_spill] sm:$0xff] }
 0x284   : > { %v3857_v36 = vadd.f32 %v3745_v29, %v3615_v42  ;;  %v3882_v6 = vadd.f32 %v12365_v56, %v3640_v30  ;;  %v3422_v51 = vadd.f32 %v12366_v24, %v3180_v44  ;;  %v3423_v46 = vadd.f32 %v12367_v48, %v3181_v27  ;;  %v12373_v42 = vld [vmem:[#allocation148_spill] sm:$0xff]  ;;  %v12380_v11 = vld [vmem:[#allocation62_spill] sm:$0xff] }
 0x285   : > { %v3883_v17 = vadd.f32 %v12368_v14, %v3641_v58  ;;  %v3884_v8 = vadd.f32 %v12369_v18, %v3642_v43  ;;  %v3885_v50 = vadd.f32 %v12370_v47, %v3643_v19  ;;  %v3910_v49 = vadd.f32 %v3798_v13, %v3668_v38 }
 0x286   : > { %v3911_v34 = vadd.f32 %v3799_v40, %v3669_v32  ;;  %v4012_v53 = vmul.f32 %v12347_v52, %v8127_v28  ;;  %v3670_v62 = vadd.f32 %v3558_v61, %v3422_v51  ;;  %v3671_v21 = vadd.f32 %v3559_v57, %v3423_v46  ;;  %v12376_v32 = vld [vmem:[#allocation85_spill] sm:$0xff]  ;;  %v12377_v52 = vld [vmem:[#allocation331_spill] sm:$0xff]  ;;  %v12382_v51 = vld [vmem:[#allocation76_spill] sm:$0xff] }
 0x287   : > { %v4013_v29 = vmul.f32 %v12348_v35, %v8127_v28  ;;  %v4040_v30 = vmul.f32 %v5422_v2, %v8127_v28  ;;  %v4068_v26 = vadd.f32 %v12371_v37, %v3826_v5  ;;  %v4069_v58 = vadd.f32 %v12372_v12, %v3827_v23  ;;  %v12378_v57 = vld [vmem:[#allocation181_spill] sm:$0xff]  ;;  %v12379_v40 = vld [vmem:[#allocation347_spill] sm:$0xff] }
 0x288   : > { %v4070_v43 = vadd.f32 %v12373_v42, %v3828_v59  ;;  %v4071_v19 = vadd.f32 %v12374_v10, %v3829_v55  ;;  %v3912_v38 = vadd.f32 %v12375_v20, %v3670_v62  ;;  %v3913_v13 = vadd.f32 %v12376_v32, %v3671_v21  ;;  %v12381_v55 = vld [vmem:[#allocation221_spill] sm:$0xff]  ;;  %v12384_v42 = vld [vmem:[#allocation252_spill] sm:$0xff] }
 0x289   : > { %v4098_v61 = vadd.f32 %v12377_v52, %v3856_v7  ;;  %v4099_v44 = vadd.f32 %v12378_v57, %v3857_v36  ;;  %v4124_v27 = vadd.f32 %v4012_v53, %v3882_v6  ;;  %v4125_v35 = vadd.f32 %v4013_v29, %v3883_v17  ;;  %v12383_v12 = vld [vmem:[#allocation253_spill] sm:$0xff] }
 0x28a   : > { %v4126_v2 = vadd.f32 %v12379_v40, %v3884_v8  ;;  %v4127_v5 = vadd.f32 %v12380_v11, %v3885_v50  ;;  %v4152_v25 = vadd.f32 %v4040_v30, %v3910_v49  ;;  %v4153_v23 = vadd.f32 %v4041_v4, %v3911_v34  ;;  %v5436_v50 = vpop.permute.xlu1 %5435 }
 0x28b   : > { %v4154_v59 = vadd.f32 %v9973_v60, %v3912_v38  ;;  %v4155_v54 = vadd.f32 %v9933_v41, %v3913_v13  ;;  %v4241_v31 = vsel %vm4170_vm1, %v4068_v26, -inf  ;;  %v4242_v56 = vsel %vm4170_vm1, %v12381_v55, -inf }
 0x28c   : > { %v4244_v7 = vsel %vm4170_vm1, %v4124_v27, -inf  ;;  %v4248_v36 = vsel %vm4170_vm1, %v4069_v58, -inf  ;;  %v4243_v6 = vmax.f32 %v4241_v31, %v4242_v56  ;;  %v4246_v24 = vsel %vm4170_vm1, %v4152_v25, -inf  ;;  %v10109_v27 = vld [vmem:[%s10731_s5] ss:$0 sm:$0xff] }
 0x28d   : > { %v4249_v48 = vsel %vm4170_vm1, %v12382_v51, -inf  ;;  %v4251_v4 = vsel %vm4170_vm1, %v4125_v35, -inf  ;;  %v4253_v41 = vsel %vm4170_vm1, %v4153_v23, -inf  ;;  %v4255_v46 = vsel %vm4170_vm1, %v4070_v43, -inf }
 0x28e   : > { %v4250_v60 = vmax.f32 %v4248_v36, %v4249_v48  ;;  %v4256_v14 = vsel %vm4170_vm1, %v4098_v61, -inf  ;;  %v4245_v17 = vmax.f32 %v4243_v6, %v4244_v7  ;;  %v4258_v8 = vsel %vm4170_vm1, %v4126_v2, -inf  ;;  %v12385_v2 = vld [vmem:[#allocation349_spill] sm:$0xff] }
 0x28f   : > { %v4257_v18 = vmax.f32 %v4255_v46, %v4256_v14  ;;  %v4260_v47 = vsel %vm4170_vm1, %v4154_v59, -inf  ;;  %v4262_v34 = vsel %vm4170_vm1, %v4071_v19, -inf  ;;  %v4263_v53 = vsel %vm4170_vm1, %v4099_v44, -inf  ;;  %v12387_v59 = vld [vmem:[#allocation166_spill] sm:$0xff] }
 0x290   : > { %v4252_v49 = vmax.f32 %v4250_v60, %v4251_v4  ;;  %v4265_v62 = vsel %vm4170_vm1, %v4127_v5, -inf  ;;  %v4247_v21 = vmax.f32 %v4245_v17, %v4246_v24  ;;  %v4264_v30 = vmax.f32 %v4262_v34, %v4263_v53  ;;  %v12386_v5 = vld [vmem:[#allocation245_spill] sm:$0xff] }
 0x291   : > { %v4259_v29 = vmax.f32 %v4257_v18, %v4258_v8  ;;  %v4267_v37 = vsel %vm4170_vm1, %v4155_v54, -inf  ;;  %v1343_v58 = vmul.f32 %v12383_v12, %v12006_v39  ;;  %v1344_v43 = vmul.f32 %v12384_v42, %v12006_v39  ;;  %v12388_v24 = vld [vmem:[#allocation165_spill] sm:$0xff]  ;;  %v12390_v8 = vld [vmem:[#allocation56_spill] sm:$0xff] }
 0x292   : > { %v4254_v26 = vmax.f32 %v4252_v49, %v4253_v41  ;;  %v5438_v10 = vunpack.i.h.bf16 %v5436_v50  ;;  %v4266_v38 = vmax.f32 %v4264_v30, %v4265_v62  ;;  %v4383_v19 = vadd.f32 %v9587_v15, %v4247_v21  ;;  %v12389_v17 = vld [vmem:[#allocation325_spill] sm:$0xff]  ;;  %v12392_v62 = vld [vmem:[#allocation124_spill] sm:$0xff] }
 0x293   : > { %v4261_v20 = vmax.f32 %v4259_v29, %v4260_v47  ;;  %v5437_v32 = vunpack.i.l.bf16 %v5436_v50  ;;  %v1965_v25 = vmul.f32 %v12386_v5, %v12019_v63  ;;  %v2832_v54 = vmul.f32 %v12387_v59, %v12015_v45  ;;  %v12391_v50 = vld [vmem:[#allocation125_spill] sm:$0xff] }
 0x294   : > { %v4384_v13 = vadd.f32 %v9587_v15, %v4254_v26  ;;  %v2585_v52 = vmul.f32 %v5438_v10, %v8097_v0  ;;  %v3261_v61 = vmul.f32 %v5438_v10, %v8119_v33  ;;  %v10104_v57 = vmul.f32 %v5438_v10, %v8127_v28 }
 0x295   : > { %v4268_v44 = vmax.f32 %v4266_v38, %v4267_v37  ;;  %v4385_v35 = vadd.f32 %v10109_v27, %v4261_v20  ;;  %v4411_v40 = vmax.f32 %v4383_v19, 0.0  ;;  %v1964_v15 = vmul.f32 %v12385_v2, %v12019_v63 }
 0x296   : > { %v4412_v11 = vmax.f32 %v4384_v13, 0.0  ;;  %v2584_v23 = vmul.f32 %v5437_v32, %v8097_v0  ;;  %v2077_v6 = vadd.f32 %v1965_v25, %v1344_v43  ;;  %v2833_v51 = vmul.f32 %v12388_v24, %v12015_v45 }
 0x297   : > { %v4386_v31 = vadd.f32 %v10109_v27, %v4268_v44  ;;  %v4413_v55 = vmax.f32 %v4385_v35, 0.0  ;;  %v4712_v56 = vpack.c.bf16 %v4411_v40, %v4411_v40  ;;  %v2076_v7 = vadd.f32 %v1964_v15, %v1343_v58  ;;  %v12394_v35 = vld [vmem:[#allocation254_spill] sm:$0xff] }
 0x298   : > { %v4713_v36 = vpack.c.bf16 %v4412_v11, %v4412_v11  ;;  %v3018_v48 = vmul.f32 %v12385_v2, %v12178_v16  ;;  %v3019_v46 = vmul.f32 %v12386_v5, %v12178_v16  ;;  %v2697_v14 = vadd.f32 %v2585_v52, %v2077_v6  ;;  %v12393_v52 = vld [vmem:[#allocation258_spill] sm:$0xff]  ;;  %v12395_v11 = vld [vmem:[#allocation140_spill] sm:$0xff] }
 0x299   : > { %v4414_v4 = vmax.f32 %v4386_v31, 0.0  ;;  %v4714_v60 = vpack.c.bf16 %v4413_v55, %v4413_v55  ;;  %4552 = vst.msk [vmem:[%s9621_s22 + $0x28] sm:$0xf] %vm4541_vm2, %v4712_v56  ;;  %v2696_v41 = vadd.f32 %v2584_v23, %v2076_v7  ;;  %v3074_v18 = vmul.f32 %v12389_v17, %v12178_v16  ;;  %v12397_v23 = vld [vmem:[#allocation317_spill] sm:$0xff]  ;;  %v12399_v31 = vld [vmem:[#allocation248_spill] sm:$0xff] }
 0x29a   : > { %4553 = vst.msk [vmem:[%s9621_s22 + $0x2c] sm:$0xf] %vm4541_vm2, %v4713_v36  ;;  %v3075_v47 = vmul.f32 %v12390_v8, %v12178_v16  ;;  %v3130_v49 = vadd.f32 %v3018_v48, %v12391_v50  ;;  %v3131_v21 = vadd.f32 %v3019_v46, %v12392_v62  ;;  %v3260_v29 = vmul.f32 %v5437_v32, %v8119_v33  ;;  %v12400_v55 = vld [vmem:[#allocation160_spill] sm:$0xff]  ;;  %v12401_v7 = vld [vmem:[#allocation65_spill] sm:$0xff]  ;;  %v12402_v36 = vld [vmem:[#allocation158_spill] sm:$0xff] }
 0x29b   : > { %v4715_v34 = vpack.c.bf16 %v4414_v4, %v4414_v4  ;;  %4554 = vst.msk [vmem:[%s9621_s22 + $0x30] sm:$0xf] %vm4541_vm2, %v4714_v60  ;;  %v2944_v53 = vadd.f32 %v2832_v54, %v2696_v41  ;;  %v2945_v30 = vadd.f32 %v2833_v51, %v2697_v14  ;;  %v3508_v37 = vmul.f32 %v12387_v59, %v12179_v9  ;;  %v5431_v60 = vpop.permute.xlu0 %5430  ;;  %v12409_v62 = vld [vmem:[#allocation63_spill] sm:$0xff] }
 0x29c   : > { %v3509_v26 = vmul.f32 %v12388_v24, %v12179_v9  ;;  %v3750_v58 = vmul.f32 %v12389_v17, %v11398_v3  ;;  %v3372_v10 = vadd.f32 %v3260_v29, %v3130_v49  ;;  %v3373_v20 = vadd.f32 %v3261_v61, %v3131_v21  ;;  %v12396_v61 = vld [vmem:[#allocation138_spill] sm:$0xff] }
 0x29d   : > { %4555 = vst.msk [vmem:[%s9621_s22 + $0x34] sm:$0xf] %vm4541_vm2, %v4715_v34  ;;  %v10147_v43 = vadd.f32 %v3074_v18, %v2944_v53  ;;  %v3751_v38 = vmul.f32 %v12390_v8, %v11398_v3  ;;  %v10151_v19 = vadd.f32 %v3075_v47, %v2945_v30  ;;  %v10154_v13 = vmul.f32 %v5437_v32, %v8127_v28  ;;  %v12398_v32 = vld [vmem:[#allocation191_spill] sm:$0xff]  ;;  %v12403_v18 = vld [vmem:[#allocation365_spill] sm:$0xff]  ;;  %v12407_v49 = vld [vmem:[#allocation246_spill] sm:$0xff] }
 0x29e   : > { %v1341_v44 = vmul.f32 %v12393_v52, %v12006_v39  ;;  %v1342_v40 = vmul.f32 %v12394_v35, %v12006_v39  ;;  %v3620_v2 = vadd.f32 %v3508_v37, %v3372_v10  ;;  %v3621_v15 = vadd.f32 %v3509_v26, %v3373_v20  ;;  %v12405_v47 = vld [vmem:[#allocation363_spill] sm:$0xff]  ;;  %v12408_v34 = vld [vmem:[#allocation100_spill] sm:$0xff]  ;;  %v12410_v21 = vld [vmem:[#allocation98_spill] sm:$0xff] }
 0x29f   : > { %v2830_v5 = vmul.f32 %v12395_v11, %v12015_v45  ;;  %v2831_v25 = vmul.f32 %v12396_v61, %v12015_v45  ;;  %v3072_v59 = vmul.f32 %v12397_v23, %v12178_v16  ;;  %v3073_v54 = vmul.f32 %v12398_v32, %v12178_v16  ;;  %v12411_v26 = vld [vmem:[#allocation161_spill] sm:$0xff]  ;;  %v12412_v10 = vld [vmem:[#allocation159_spill] sm:$0xff] }
 0x2a0   : > { %v3154_v56 = vadd.f32 %v12400_v55, %v12399_v31  ;;  %v3155_v6 = vadd.f32 %v12402_v36, %v12401_v7  ;;  %v3862_v24 = vadd.f32 %v3750_v58, %v3620_v2  ;;  %v3863_v51 = vadd.f32 %v3751_v38, %v3621_v15  ;;  %v12413_v38 = vld [vmem:[#allocation262_spill] sm:$0xff] }
 0x2a1   : > { %v3506_v48 = vmul.f32 %v12395_v11, %v12179_v9  ;;  %v3507_v4 = vmul.f32 %v12396_v61, %v12179_v9  ;;  %v3560_v41 = vmul.f32 %v12393_v52, %v12179_v9  ;;  %v3561_v46 = vmul.f32 %v12394_v35, %v12179_v9  ;;  %v12414_v35 = vld [vmem:[#allocation143_spill] sm:$0xff] }
 0x2a2   : > { %v3562_v14 = vmul.f32 %v12383_v12, %v12179_v9  ;;  %v3563_v17 = vmul.f32 %v12384_v42, %v12179_v9  ;;  %v10185_v8 = vadd.f32 %v12403_v18, %v3862_v24  ;;  %v10188_v50 = vadd.f32 %v12405_v47, %v3863_v51  ;;  %v12415_v24 = vld [vmem:[#allocation322_spill] sm:$0xff]  ;;  %v12417_v47 = vld [vmem:[#allocation352_spill] sm:$0xff] }
 0x2a3   : > { %v3588_v53 = vadd.f32 %v12408_v34, %v12407_v49  ;;  %v3589_v29 = vadd.f32 %v12410_v21, %v12409_v62  ;;  %v3748_v30 = vmul.f32 %v12397_v23, %v11398_v3  ;;  %v3749_v12 = vmul.f32 %v12398_v32, %v11398_v3  ;;  %v12418_v62 = vld [vmem:[#allocation355_spill] sm:$0xff] }
 0x2a4   : > { %12404 = vst [vmem:[#allocation378_spill] sm:$0xff] %v10185_v8  ;;  %12406 = vst [vmem:[#allocation309_spill] sm:$0xff] %v10188_v50  ;;  %v5433_v37 = vunpack.i.h.bf16 %v5431_v60  ;;  %v5432_v42 = vunpack.i.l.bf16 %v5431_v60  ;;  %v1962_v52 = vmul.f32 %v12413_v38, %v12019_v63  ;;  %v1963_v2 = vmul.f32 %v12414_v35, %v12019_v63  ;;  %v12416_v60 = vld [vmem:[#allocation321_spill] sm:$0xff]  ;;  %v12423_v50 = vld [vmem:[#allocation34_spill] sm:$0xff] }
 0x2a5   : > { %v3830_v58 = vadd.f32 %v12411_v26, %v3588_v53  ;;  %v3831_v20 = vadd.f32 %v12412_v10, %v3589_v29  ;;  %v3016_v55 = vmul.f32 %v12413_v38, %v12178_v16  ;;  %v3017_v7 = vmul.f32 %v12414_v35, %v12178_v16  ;;  %v12420_v29 = vld [vmem:[#allocation350_spill] sm:$0xff]  ;;  %v12421_v26 = vld [vmem:[#allocation200_spill] sm:$0xff] }
 0x2a6   : > { %v2583_v15 = vmul.f32 %v5433_v37, %v8097_v0  ;;  %v3259_v11 = vmul.f32 %v5433_v37, %v8119_v33  ;;  %v4045_v61 = vmul.f32 %v5433_v37, %v8127_v28  ;;  %v2582_v23 = vmul.f32 %v5432_v42, %v8097_v0 }
 0x2a7   : > { %v2074_v32 = vadd.f32 %v1962_v52, %v1341_v44  ;;  %v2075_v31 = vadd.f32 %v1963_v2, %v1342_v40  ;;  %v3258_v36 = vmul.f32 %v5432_v42, %v8119_v33  ;;  %v3396_v51 = vadd.f32 %v12415_v24, %v3154_v56  ;;  %v12419_v40 = vld [vmem:[#allocation356_spill] sm:$0xff]  ;;  %v12422_v52 = vld [vmem:[#allocation198_spill] sm:$0xff] }
 0x2a8   : > { %v3397_v18 = vadd.f32 %v12416_v60, %v3155_v6  ;;  %v3424_v49 = vadd.f32 %v12417_v47, %v9970_v1  ;;  %v3128_v44 = vadd.f32 %v3016_v55, %v12418_v62  ;;  %v3129_v21 = vadd.f32 %v3017_v7, %v12419_v40  ;;  %v12424_v56 = vld [vmem:[#allocation196_spill] sm:$0xff] }
 0x2a9   : > { %v2694_v34 = vadd.f32 %v2582_v23, %v2074_v32  ;;  %v2695_v53 = vadd.f32 %v2583_v15, %v2075_v31  ;;  %v3425_v37 = vadd.f32 %v12420_v29, %v9962_v22  ;;  %v3644_v10 = vadd.f32 %v12421_v26, %v3396_v51  ;;  %v12425_v23 = vld [vmem:[#allocation31_spill] sm:$0xff]  ;;  %v12436_v29 = vld [vmem:[#allocation256_spill] sm:$0xff] }
 0x2aa   : > { %v3645_v2 = vadd.f32 %v12422_v52, %v3397_v18  ;;  %v3646_v24 = vadd.f32 %v12424_v56, %v12423_v50  ;;  %v3370_v8 = vadd.f32 %v3258_v36, %v3128_v44  ;;  %v3371_v1 = vadd.f32 %v3259_v11, %v3129_v21  ;;  %v12426_v15 = vld [vmem:[#allocation23_spill] sm:$0xff]  ;;  %v12427_v50 = vld [vmem:[#allocation260_spill] sm:$0xff]  ;;  %v12429_v36 = vld [vmem:[#allocation273_spill] sm:$0xff] }
 0x2ab   : > { %v2942_v6 = vadd.f32 %v2830_v5, %v2694_v34  ;;  %v2943_v60 = vadd.f32 %v2831_v25, %v2695_v53  ;;  %v3647_v32 = vadd.f32 %v12426_v15, %v12425_v23  ;;  %v3672_v31 = vadd.f32 %v3560_v41, %v3424_v49  ;;  %v12428_v5 = vld [vmem:[#allocation156_spill] sm:$0xff]  ;;  %v12430_v11 = vld [vmem:[#allocation153_spill] sm:$0xff]  ;;  %v12438_v23 = vld [vmem:[#allocation195_spill] sm:$0xff] }
 0x2ac   : > { %v3673_v55 = vadd.f32 %v3561_v46, %v3425_v37  ;;  %v3802_v7 = vmul.f32 %v12413_v38, %v11398_v3  ;;  %v3618_v51 = vadd.f32 %v3506_v48, %v3370_v8  ;;  %v3619_v62 = vadd.f32 %v3507_v4, %v3371_v1  ;;  %v12431_v53 = vld [vmem:[#allocation264_spill] sm:$0xff]  ;;  %v12435_v4 = vld [vmem:[#allocation257_spill] sm:$0xff]  ;;  %v12439_v15 = vld [vmem:[#allocation259_spill] sm:$0xff] }
 0x2ad   : > { %v3184_v22 = vadd.f32 %v3072_v59, %v2942_v6  ;;  %v3185_v47 = vadd.f32 %v3073_v54, %v2943_v60  ;;  %v3803_v18 = vmul.f32 %v12414_v35, %v11398_v3  ;;  %v3832_v25 = vadd.f32 %v12428_v5, %v12427_v50  ;;  %v12432_v41 = vld [vmem:[#allocation300_spill] sm:$0xff]  ;;  %v12434_v54 = vld [vmem:[#allocation261_spill] sm:$0xff]  ;;  %v12446_v50 = vld [vmem:[#allocation99_spill] sm:$0xff] }
 0x2ae   : > { %v3833_v34 = vadd.f32 %v12430_v11, %v12429_v36  ;;  %v3886_v44 = vadd.f32 %v12431_v53, %v3644_v10  ;;  %v12433_v49 = vld [vmem:[#allocation80_spill] sm:$0xff]  ;;  %v3860_v21 = vadd.f32 %v3748_v30, %v3618_v51  ;;  %v3861_v59 = vadd.f32 %v3749_v12, %v3619_v62  ;;  %v12437_v30 = vld [vmem:[#allocation54_spill] sm:$0xff]  ;;  %v12447_v53 = vld [vmem:[#allocation73_spill] sm:$0xff] }
 0x2af   : > { %v3426_v46 = vadd.f32 %v12432_v41, %v3184_v22  ;;  %v3427_v40 = vadd.f32 %v12433_v49, %v3185_v47  ;;  %v3887_v48 = vadd.f32 %v12434_v54, %v3645_v2  ;;  %v3888_v8 = vadd.f32 %v12435_v4, %v3646_v24  ;;  %v12440_v22 = vld [vmem:[#allocation251_spill] sm:$0xff] }
 0x2b0   : > { %v3889_v37 = vadd.f32 %v12436_v29, %v3647_v32  ;;  %v3914_v26 = vadd.f32 %v3802_v7, %v3672_v31  ;;  %v3915_v6 = vadd.f32 %v3803_v18, %v3673_v55  ;;  %v4016_v60 = vmul.f32 %v12413_v38, %v8127_v28  ;;  %v12441_v31 = vld [vmem:[#allocation71_spill] sm:$0xff]  ;;  %v12444_v38 = vld [vmem:[#allocation46_spill] sm:$0xff]  ;;  %v12445_v18 = vld [vmem:[#allocation53_spill] sm:$0xff] }
 0x2b1   : > { %v3674_v52 = vadd.f32 %v3562_v14, %v3426_v46  ;;  %v3675_v56 = vadd.f32 %v3563_v17, %v3427_v40  ;;  %v4017_v10 = vmul.f32 %v12414_v35, %v8127_v28  ;;  %v4044_v1 = vmul.f32 %v5432_v42, %v8127_v28  ;;  %v12442_v17 = vld [vmem:[#allocation151_spill] sm:$0xff]  ;;  %v12448_v40 = vld [vmem:[#allocation222_spill] sm:$0xff] }
 0x2b2   : > { %v4072_v12 = vadd.f32 %v12437_v30, %v3830_v58  ;;  %v4073_v2 = vadd.f32 %v12438_v23, %v3831_v20  ;;  %v4074_v14 = vadd.f32 %v12441_v31, %v3832_v25  ;;  %v4075_v55 = vadd.f32 %v12442_v17, %v3833_v34  ;;  %v12443_v7 = vld [vmem:[#allocation299_spill] sm:$0xff] }
 0x2b3   : > { %v3916_v24 = vadd.f32 %v12439_v15, %v3674_v52  ;;  %v3917_v32 = vadd.f32 %v12440_v22, %v3675_v56  ;;  %v4102_v47 = vadd.f32 %v12443_v7, %v3860_v21  ;;  %v4103_v51 = vadd.f32 %v12444_v38, %v3861_v59  ;;  %v5446_v52 = vpop.permute.xlu1 %5445 }
 0x2b4   : > { %v4128_v62 = vadd.f32 %v4016_v60, %v3886_v44  ;;  %v4129_v35 = vadd.f32 %v4017_v10, %v3887_v48  ;;  %v4130_v42 = vadd.f32 %v12445_v18, %v3888_v8  ;;  %v4131_v58 = vadd.f32 %v12446_v50, %v3889_v37 }
 0x2b5   : > { %v4156_v5 = vadd.f32 %v4044_v1, %v3914_v26  ;;  %v4157_v20 = vadd.f32 %v4045_v61, %v3915_v6  ;;  %v4158_v36 = vadd.f32 %v10154_v13, %v3916_v24  ;;  %v4159_v11 = vadd.f32 %v10104_v57, %v3917_v32 }
 0x2b6   : > { %v4269_v25 = vsel %vm4170_vm1, %v4072_v12, -inf  ;;  %v4270_v34 = vsel %vm4170_vm1, %v12447_v53, -inf  ;;  %v4272_v46 = vsel %vm4170_vm1, %v4128_v62, -inf  ;;  %v4276_v49 = vsel %vm4170_vm1, %v4073_v2, -inf  ;;  %v12449_v12 = vld [vmem:[#allocation268_spill] sm:$0xff]  ;;  %v12450_v2 = vld [vmem:[#allocation267_spill] sm:$0xff] }
 0x2b7   : > { %v4271_v41 = vmax.f32 %v4269_v25, %v4270_v34  ;;  %v4274_v44 = vsel %vm4170_vm1, %v4156_v5, -inf  ;;  %v4277_v21 = vsel %vm4170_vm1, %v12448_v40, -inf  ;;  %v4279_v61 = vsel %vm4170_vm1, %v4129_v35, -inf }
 0x2b8   : > { %v4281_v13 = vsel %vm4170_vm1, %v4157_v20, -inf  ;;  %v4283_v57 = vsel %vm4170_vm1, %v4074_v14, -inf  ;;  %v4278_v54 = vmax.f32 %v4276_v49, %v4277_v21  ;;  %v4284_v48 = vsel %vm4170_vm1, %v4102_v47, -inf  ;;  %v12452_v47 = vld [vmem:[#allocation139_spill] sm:$0xff] }
 0x2b9   : > { %v4273_v59 = vmax.f32 %v4271_v41, %v4272_v46  ;;  %v4286_v4 = vsel %vm4170_vm1, %v4130_v42, -inf  ;;  %v4285_v8 = vmax.f32 %v4283_v57, %v4284_v48  ;;  %v4288_v29 = vsel %vm4170_vm1, %v4158_v36, -inf  ;;  %v12453_v41 = vld [vmem:[#allocation2_spill] sm:$0xff] }
 0x2ba   : > { %v4290_v37 = vsel %vm4170_vm1, %v4075_v55, -inf  ;;  %v4291_v26 = vsel %vm4170_vm1, %v4103_v51, -inf  ;;  %v4280_v6 = vmax.f32 %v4278_v54, %v4279_v61  ;;  %v4293_v10 = vsel %vm4170_vm1, %v4131_v58, -inf  ;;  %v12451_v55 = vld [vmem:[#allocation199_spill] sm:$0xff]  ;;  %v12455_v48 = vld [vmem:[#allocation334_spill] sm:$0xff] }
 0x2bb   : > { %v4275_v56 = vmax.f32 %v4273_v59, %v4274_v44  ;;  %v4292_v60 = vmax.f32 %v4290_v37, %v4291_v26  ;;  %v4287_v1 = vmax.f32 %v4285_v8, %v4286_v4  ;;  %v4295_v30 = vsel %vm4170_vm1, %v4159_v11, -inf  ;;  %v12454_v44 = vld [vmem:[#allocation4_spill] sm:$0xff]  ;;  %v12456_v37 = vld [vmem:[#allocation333_spill] sm:$0xff] }
 0x2bc   : > { %v1347_v23 = vmul.f32 %v12449_v12, %v12006_v39  ;;  %v1348_v15 = vmul.f32 %v12450_v2, %v12006_v39  ;;  %v4282_v24 = vmax.f32 %v4280_v6, %v4281_v13  ;;  %v5448_v31 = vunpack.i.h.bf16 %v5446_v52 }
 0x2bd   : > { %v4294_v22 = vmax.f32 %v4292_v60, %v4293_v10  ;;  %v4387_v32 = vadd.f32 %v10109_v27, %v4275_v56  ;;  %v4289_v14 = vmax.f32 %v4287_v1, %v4288_v29  ;;  %v5447_v17 = vunpack.i.l.bf16 %v5446_v52  ;;  %v12457_v52 = vld [vmem:[#allocation360_spill] sm:$0xff]  ;;  %v12458_v60 = vld [vmem:[#allocation361_spill] sm:$0xff] }
 0x2be   : > { %v1968_v7 = vmul.f32 %v12451_v55, %v12019_v63  ;;  %v1969_v38 = vmul.f32 %v12452_v47, %v12019_v63  ;;  %v4388_v62 = vadd.f32 %v10109_v27, %v4282_v24  ;;  %v2589_v18 = vmul.f32 %v5448_v31, %v8097_v0 }
 0x2bf   : > { %v4296_v51 = vmax.f32 %v4294_v22, %v4295_v30  ;;  %v4415_v35 = vmax.f32 %v4387_v32, 0.0  ;;  %v4389_v42 = vadd.f32 %v10109_v27, %v4289_v14  ;;  %v3265_v50 = vmul.f32 %v5448_v31, %v8119_v33 }
 0x2c0   : > { %v10290_v58 = vmul.f32 %v5448_v31, %v8127_v28  ;;  %v2080_v5 = vadd.f32 %v1968_v7, %v1347_v23  ;;  %v4416_v36 = vmax.f32 %v4388_v62, 0.0  ;;  %v2081_v25 = vadd.f32 %v1969_v38, %v1348_v15  ;;  %v12459_v7 = vld [vmem:[#allocation270_spill] sm:$0xff]  ;;  %v12460_v38 = vld [vmem:[#allocation269_spill] sm:$0xff]  ;;  %v12461_v62 = vld [vmem:[#allocation164_spill] sm:$0xff] }
 0x2c1   : > { %v4390_v20 = vadd.f32 %v10109_v27, %v4296_v51  ;;  %v4716_v11 = vpack.c.bf16 %v4415_v35, %v4415_v35  ;;  %v4417_v53 = vmax.f32 %v4389_v42, 0.0  ;;  %v2588_v34 = vmul.f32 %v5447_v17, %v8097_v0 }
 0x2c2   : > { %v2836_v46 = vmul.f32 %v12453_v41, %v12015_v45  ;;  %v2837_v49 = vmul.f32 %v12454_v44, %v12015_v45  ;;  %v4717_v21 = vpack.c.bf16 %v4416_v36, %v4416_v36  ;;  %v2701_v61 = vadd.f32 %v2589_v18, %v2081_v25  ;;  %v12462_v18 = vld [vmem:[#allocation162_spill] sm:$0xff]  ;;  %v12463_v36 = vld [vmem:[#allocation157_spill] sm:$0xff]  ;;  %v12465_v25 = vld [vmem:[#allocation263_spill] sm:$0xff] }
 0x2c3   : > { %v4418_v40 = vmax.f32 %v4390_v20, 0.0  ;;  %4556 = vst.msk [vmem:[%s9621_s22 + $0x38] sm:$0xf] %vm4541_vm2, %v4716_v11  ;;  %v3022_v13 = vmul.f32 %v12451_v55, %v12178_v16  ;;  %v4718_v57 = vpack.c.bf16 %v4417_v53, %v4417_v53  ;;  %v2700_v59 = vadd.f32 %v2588_v34, %v2080_v5  ;;  %v12466_v53 = vld [vmem:[#allocation175_spill] sm:$0xff] }
 0x2c4   : > { %v3023_v54 = vmul.f32 %v12452_v47, %v12178_v16  ;;  %v3078_v4 = vmul.f32 %v12455_v48, %v12178_v16  ;;  %4557 = vst.msk [vmem:[%s9621_s22 + $0x3c] sm:$0xf] %vm4541_vm2, %v4717_v21  ;;  %v2949_v29 = vadd.f32 %v2837_v49, %v2701_v61  ;;  %v3079_v26 = vmul.f32 %v12456_v37, %v12178_v16 }
 0x2c5   : > { %v4719_v8 = vpack.c.bf16 %v4418_v40, %v4418_v40  ;;  %v3134_v56 = vadd.f32 %v3022_v13, %v12457_v52  ;;  %4558 = vst.msk [vmem:[%s9621_s22 + $0x40] sm:$0xf] %vm4541_vm2, %v4718_v57  ;;  %v2948_v6 = vadd.f32 %v2836_v46, %v2700_v59  ;;  %v3264_v1 = vmul.f32 %v5447_v17, %v8119_v33  ;;  %v12468_v46 = vld [vmem:[#allocation171_spill] sm:$0xff]  ;;  %v5441_v59 = vpop.permute.xlu0 %5440 }
 0x2c6   : > { %v3135_v10 = vadd.f32 %v3023_v54, %v12458_v60  ;;  %v3512_v30 = vmul.f32 %v12453_v41, %v12179_v9  ;;  %v10319_v23 = vadd.f32 %v3079_v26, %v2949_v29  ;;  %v3513_v15 = vmul.f32 %v12454_v44, %v12179_v9  ;;  %v12467_v41 = vld [vmem:[#allocation75_spill] sm:$0xff] }
 0x2c7   : > { %4559 = vst.msk [vmem:[%s9621_s22 + $0x44] sm:$0xf] %vm4541_vm2, %v4719_v8  ;;  %v3754_v24 = vmul.f32 %v12455_v48, %v11398_v3  ;;  %v3755_v22 = vmul.f32 %v12456_v37, %v11398_v3  ;;  %v10327_v32 = vadd.f32 %v3078_v4, %v2948_v6  ;;  %v3376_v31 = vadd.f32 %v3264_v1, %v3134_v56  ;;  %v12469_v4 = vld [vmem:[#allocation61_spill] sm:$0xff]  ;;  %v12471_v37 = vld [vmem:[#allocation74_spill] sm:$0xff]  ;;  %v12472_v26 = vld [vmem:[#allocation103_spill] sm:$0xff] }
 0x2c8   : > { %v3377_v14 = vadd.f32 %v3265_v50, %v3135_v10  ;;  %v10330_v55 = vmul.f32 %v5447_v17, %v8127_v28  ;;  %v1345_v47 = vmul.f32 %v12459_v7, %v12006_v39  ;;  %v1346_v51 = vmul.f32 %v12460_v38, %v12006_v39  ;;  %v12464_v17 = vld [vmem:[#allocation193_spill] sm:$0xff]  ;;  %v12473_v56 = vld [vmem:[#allocation336_spill] sm:$0xff]  ;;  %v12475_v60 = vld [vmem:[#allocation375_spill] sm:$0xff] }
 0x2c9   : > { %v2834_v35 = vmul.f32 %v12461_v62, %v12015_v45  ;;  %v2835_v42 = vmul.f32 %v12462_v18, %v12015_v45  ;;  %v3624_v5 = vadd.f32 %v3512_v30, %v3376_v31  ;;  %v3076_v50 = vmul.f32 %v12463_v36, %v12178_v16  ;;  %v12470_v8 = vld [vmem:[#allocation105_spill] sm:$0xff]  ;;  %v12477_v30 = vld [vmem:[#allocation176_spill] sm:$0xff] }
 0x2ca   : > { %v3625_v20 = vadd.f32 %v3513_v15, %v3377_v14  ;;  %v3077_v11 = vmul.f32 %v12464_v17, %v12178_v16  ;;  %v3158_v34 = vadd.f32 %v12466_v53, %v12465_v25  ;;  %v3159_v44 = vadd.f32 %v12468_v46, %v12467_v41  ;;  %v12478_v15 = vld [vmem:[#allocation172_spill] sm:$0xff]  ;;  %v12481_v46 = vld [vmem:[#allocation367_spill] sm:$0xff] }
 0x2cb   : > { %v3510_v49 = vmul.f32 %v12461_v62, %v12179_v9  ;;  %v3511_v40 = vmul.f32 %v12462_v18, %v12179_v9  ;;  %v3866_v21 = vadd.f32 %v3754_v24, %v3624_v5  ;;  %v3564_v13 = vmul.f32 %v12459_v7, %v12179_v9  ;;  %v12479_v14 = vld [vmem:[#allocation96_spill] sm:$0xff] }
 0x2cc   : > { %v3867_v61 = vadd.f32 %v3755_v22, %v3625_v20  ;;  %v3565_v57 = vmul.f32 %v12460_v38, %v12179_v9  ;;  %v3566_v54 = vmul.f32 %v12449_v12, %v12179_v9  ;;  %v3567_v48 = vmul.f32 %v12450_v2, %v12179_v9  ;;  %v12480_v38 = vld [vmem:[#allocation104_spill] sm:$0xff] }
 0x2cd   : > { %v3592_v29 = vadd.f32 %v12470_v8, %v12469_v4  ;;  %v3593_v52 = vadd.f32 %v12472_v26, %v12471_v37  ;;  %v10365_v6 = vadd.f32 %v12473_v56, %v3866_v21  ;;  %v3752_v1 = vmul.f32 %v12463_v36, %v11398_v3  ;;  %v12483_v8 = vld [vmem:[#allocation330_spill] sm:$0xff]  ;;  %v12484_v37 = vld [vmem:[#allocation328_spill] sm:$0xff] }
 0x2ce   : > { %v10368_v10 = vadd.f32 %v12475_v60, %v3867_v61  ;;  %v3753_v12 = vmul.f32 %v12464_v17, %v11398_v3  ;;  %v5443_v22 = vunpack.i.h.bf16 %v5441_v59  ;;  %v5442_v31 = vunpack.i.l.bf16 %v5441_v59  ;;  %v12482_v61 = vld [vmem:[#allocation368_spill] sm:$0xff] }
 0x2cf   : > { %12474 = vst [vmem:[#allocation308_spill] sm:$0xff] %v10365_v6  ;;  %v3834_v2 = vadd.f32 %v12477_v30, %v3592_v29  ;;  %v3835_v24 = vadd.f32 %v12478_v15, %v3593_v52  ;;  %v1966_v7 = vmul.f32 %v12479_v14, %v12019_v63  ;;  %v1967_v62 = vmul.f32 %v12480_v38, %v12019_v63  ;;  %v12485_v52 = vld [vmem:[#allocation364_spill] sm:$0xff]  ;;  %v12492_v6 = vld [vmem:[#allocation202_spill] sm:$0xff] }
 0x2d0   : > { %12476 = vst [vmem:[#allocation289_spill] sm:$0xff] %v10368_v10  ;;  %v3020_v18 = vmul.f32 %v12479_v14, %v12178_v16  ;;  %v3021_v5 = vmul.f32 %v12480_v38, %v12178_v16  ;;  %v2587_v20 = vmul.f32 %v5443_v22, %v8097_v0  ;;  %v3263_v36 = vmul.f32 %v5443_v22, %v8119_v33 }
 0x2d1   : > { %v4049_v17 = vmul.f32 %v5443_v22, %v8127_v28  ;;  %v2586_v25 = vmul.f32 %v5442_v31, %v8097_v0  ;;  %v2078_v53 = vadd.f32 %v1966_v7, %v1345_v47  ;;  %v2079_v41 = vadd.f32 %v1967_v62, %v1346_v51  ;;  %v12486_v22 = vld [vmem:[#allocation362_spill] sm:$0xff]  ;;  %v12487_v7 = vld [vmem:[#allocation208_spill] sm:$0xff] }
 0x2d2   : > { %v3132_v21 = vadd.f32 %v3020_v18, %v12481_v46  ;;  %v3133_v59 = vadd.f32 %v3021_v5, %v12482_v61  ;;  %v3262_v4 = vmul.f32 %v5442_v31, %v8119_v33  ;;  %v3400_v29 = vadd.f32 %v12483_v8, %v3158_v34  ;;  %v12488_v18 = vld [vmem:[#allocation206_spill] sm:$0xff]  ;;  %v12490_v61 = vld [vmem:[#allocation204_spill] sm:$0xff] }
 0x2d3   : > { %v3401_v26 = vadd.f32 %v12484_v37, %v3159_v44  ;;  %v3428_v56 = vadd.f32 %v12485_v52, %v10147_v43  ;;  %v2698_v60 = vadd.f32 %v2586_v25, %v2078_v53  ;;  %v2699_v30 = vadd.f32 %v2587_v20, %v2079_v41  ;;  %v12489_v46 = vld [vmem:[#allocation110_spill] sm:$0xff] }
 0x2d4   : > { %v3375_v15 = vadd.f32 %v3263_v36, %v3133_v59  ;;  %v3429_v47 = vadd.f32 %v12486_v22, %v10151_v19  ;;  %v3374_v51 = vadd.f32 %v3262_v4, %v3132_v21  ;;  %v3648_v62 = vadd.f32 %v12487_v7, %v3400_v29  ;;  %v12491_v37 = vld [vmem:[#allocation282_spill] sm:$0xff]  ;;  %v12493_v59 = vld [vmem:[#allocation277_spill] sm:$0xff]  ;;  %v12502_v22 = vld [vmem:[#allocation272_spill] sm:$0xff] }
 0x2d5   : > { %v3649_v5 = vadd.f32 %v12488_v18, %v3401_v26  ;;  %v3650_v10 = vadd.f32 %v12490_v61, %v12489_v46  ;;  %v2946_v34 = vadd.f32 %v2834_v35, %v2698_v60  ;;  %v2947_v8 = vadd.f32 %v2835_v42, %v2699_v30  ;;  %v12494_v4 = vld [vmem:[#allocation170_spill] sm:$0xff]  ;;  %v12495_v35 = vld [vmem:[#allocation320_spill] sm:$0xff] }
 0x2d6   : > { %v3623_v44 = vadd.f32 %v3511_v40, %v3375_v15  ;;  %v3651_v43 = vadd.f32 %v12492_v6, %v12491_v37  ;;  %v3622_v25 = vadd.f32 %v3510_v49, %v3374_v51  ;;  %v3676_v20 = vadd.f32 %v3564_v13, %v3428_v56  ;;  %v12496_v42 = vld [vmem:[#allocation168_spill] sm:$0xff]  ;;  %v12498_v13 = vld [vmem:[#allocation358_spill] sm:$0xff]  ;;  %v12506_v37 = vld [vmem:[#allocation163_spill] sm:$0xff] }
 0x2d7   : > { %v3677_v36 = vadd.f32 %v3565_v57, %v3429_v47  ;;  %v3806_v19 = vmul.f32 %v12479_v14, %v11398_v3  ;;  %v3188_v53 = vadd.f32 %v3076_v50, %v2946_v34  ;;  %v3189_v41 = vadd.f32 %v3077_v11, %v2947_v8  ;;  %v12497_v6 = vld [vmem:[#allocation280_spill] sm:$0xff]  ;;  %v12499_v56 = vld [vmem:[#allocation354_spill] sm:$0xff]  ;;  %v12504_v8 = vld [vmem:[#allocation329_spill] sm:$0xff] }
 0x2d8   : > { %v3807_v21 = vmul.f32 %v12480_v38, %v11398_v3  ;;  %v3836_v29 = vadd.f32 %v12494_v4, %v12493_v59  ;;  %v3837_v40 = vadd.f32 %v12496_v42, %v12495_v35  ;;  %v3864_v26 = vadd.f32 %v3752_v1, %v3622_v25  ;;  %v12500_v30 = vld [vmem:[#allocation278_spill] sm:$0xff]  ;;  %v12507_v25 = vld [vmem:[#allocation271_spill] sm:$0xff] }
 0x2d9   : > { %v3865_v52 = vadd.f32 %v3753_v12, %v3623_v44  ;;  %v3890_v49 = vadd.f32 %v12497_v6, %v3648_v62  ;;  %v3430_v57 = vadd.f32 %v12498_v13, %v3188_v53  ;;  %v3431_v60 = vadd.f32 %v12499_v56, %v3189_v41  ;;  %v12501_v11 = vld [vmem:[#allocation274_spill] sm:$0xff]  ;;  %v12505_v44 = vld [vmem:[#allocation327_spill] sm:$0xff] }
 0x2da   : > { %v3891_v50 = vadd.f32 %v12500_v30, %v3649_v5  ;;  %v3892_v15 = vadd.f32 %v12501_v11, %v3650_v10  ;;  %v3893_v47 = vadd.f32 %v12502_v22, %v3651_v43  ;;  %v3918_v51 = vadd.f32 %v3806_v19, %v3676_v20  ;;  %v12503_v61 = vld [vmem:[#allocation174_spill] sm:$0xff]  ;;  %v12512_v59 = vld [vmem:[#allocation203_spill] sm:$0xff] }
 0x2db   : > { %v3919_v7 = vadd.f32 %v3807_v21, %v3677_v36  ;;  %v4020_v18 = vmul.f32 %v12479_v14, %v8127_v28  ;;  %v3678_v46 = vadd.f32 %v3566_v54, %v3430_v57  ;;  %v3679_v1 = vadd.f32 %v3567_v48, %v3431_v60  ;;  %v12508_v36 = vld [vmem:[#allocation197_spill] sm:$0xff]  ;;  %v12509_v14 = vld [vmem:[#allocation359_spill] sm:$0xff]  ;;  %v12511_v21 = vld [vmem:[#allocation266_spill] sm:$0xff] }
 0x2dc   : > { %v4021_v12 = vmul.f32 %v12480_v38, %v8127_v28  ;;  %v4048_v62 = vmul.f32 %v5442_v31, %v8127_v28  ;;  %v4076_v34 = vadd.f32 %v12503_v61, %v3834_v2  ;;  %v4077_v5 = vadd.f32 %v12504_v8, %v3835_v24  ;;  %v12510_v48 = vld [vmem:[#allocation357_spill] sm:$0xff]  ;;  %v12515_v8 = vld [vmem:[#allocation284_spill] sm:$0xff] }
 0x2dd   : > { %v4078_v10 = vadd.f32 %v12505_v44, %v3836_v29  ;;  %v4079_v43 = vadd.f32 %v12506_v37, %v3837_v40  ;;  %v3920_v20 = vadd.f32 %v12507_v25, %v3678_v46  ;;  %v3921_v19 = vadd.f32 %v12508_v36, %v3679_v1  ;;  %v12513_v40 = vld [vmem:[#allocation378_spill] sm:$0xff]  ;;  %v12514_v57 = vld [vmem:[#allocation309_spill] sm:$0xff]  ;;  %v12516_v44 = vld [vmem:[#allocation283_spill] sm:$0xff] }
 0x2de   : > { %v4106_v54 = vadd.f32 %v12509_v14, %v3864_v26  ;;  %v4107_v53 = vadd.f32 %v12510_v48, %v3865_v52  ;;  %v4132_v41 = vadd.f32 %v4020_v18, %v3890_v49  ;;  %v4133_v38 = vadd.f32 %v4021_v12, %v3891_v50 }
 0x2df   : > { %v4134_v31 = vadd.f32 %v12511_v21, %v3892_v15  ;;  %v4135_v2 = vadd.f32 %v12512_v59, %v3893_v47  ;;  %v4160_v4 = vadd.f32 %v4048_v62, %v3918_v51  ;;  %v4161_v24 = vadd.f32 %v4049_v17, %v3919_v7  ;;  %v5456_v47 = vpop.permute.xlu1 %5455  ;;  %v12517_v21 = vld [vmem:[#allocation152_spill] sm:$0xff] }
 0x2e0   : > { %v4162_v29 = vadd.f32 %v10330_v55, %v3920_v20  ;;  %v4163_v35 = vadd.f32 %v10290_v58, %v3921_v19  ;;  %v4297_v42 = vsel %vm4170_vm1, %v4076_v34, -inf  ;;  %v4298_v6 = vsel %vm4170_vm1, %v12513_v40, -inf }
 0x2e1   : > { %v4300_v26 = vsel %vm4170_vm1, %v4132_v41, -inf  ;;  %v4304_v52 = vsel %vm4170_vm1, %v4077_v5, -inf  ;;  %v4299_v49 = vmax.f32 %v4297_v42, %v4298_v6  ;;  %v4302_v13 = vsel %vm4170_vm1, %v4160_v4, -inf }
 0x2e2   : > { %v4305_v56 = vsel %vm4170_vm1, %v12514_v57, -inf  ;;  %v4307_v17 = vsel %vm4170_vm1, %v4133_v38, -inf  ;;  %v4309_v58 = vsel %vm4170_vm1, %v4161_v24, -inf  ;;  %v4311_v60 = vsel %vm4170_vm1, %v4078_v10, -inf }
 0x2e3   : > { %v4306_v55 = vmax.f32 %v4304_v52, %v4305_v56  ;;  %v4312_v30 = vsel %vm4170_vm1, %v4106_v54, -inf  ;;  %v4301_v50 = vmax.f32 %v4299_v49, %v4300_v26  ;;  %v4314_v15 = vsel %vm4170_vm1, %v4134_v31, -inf }
 0x2e4   : > { %v4313_v11 = vmax.f32 %v4311_v60, %v4312_v30  ;;  %v4316_v22 = vsel %vm4170_vm1, %v4162_v29, -inf  ;;  %v4318_v7 = vsel %vm4170_vm1, %v4079_v43, -inf  ;;  %v4319_v18 = vsel %vm4170_vm1, %v4107_v53, -inf  ;;  %v12522_v30 = vld [vmem:[#allocation373_spill] sm:$0xff] }
 0x2e5   : > { %v4308_v51 = vmax.f32 %v4306_v55, %v4307_v17  ;;  %v4321_v46 = vsel %vm4170_vm1, %v4135_v2, -inf  ;;  %v4303_v1 = vmax.f32 %v4301_v50, %v4302_v13  ;;  %v4320_v62 = vmax.f32 %v4318_v7, %v4319_v18  ;;  %v12518_v2 = vld [vmem:[#allocation276_spill] sm:$0xff]  ;;  %v12524_v7 = vld [vmem:[#allocation286_spill] sm:$0xff] }
 0x2e6   : > { %v4315_v12 = vmax.f32 %v4313_v11, %v4314_v15  ;;  %v4323_v61 = vsel %vm4170_vm1, %v4163_v35, -inf  ;;  %v1351_v5 = vmul.f32 %v12515_v8, %v12006_v39  ;;  %v1352_v10 = vmul.f32 %v12516_v44, %v12006_v39  ;;  %v12519_v13 = vld [vmem:[#allocation372_spill] sm:$0xff]  ;;  %v12523_v15 = vld [vmem:[#allocation287_spill] sm:$0xff] }
 0x2e7   : > { %v4310_v34 = vmax.f32 %v4308_v51, %v4309_v58  ;;  %v5458_v37 = vunpack.i.h.bf16 %v5456_v47  ;;  %v4322_v20 = vmax.f32 %v4320_v62, %v4321_v46  ;;  %v4391_v43 = vadd.f32 %v10109_v27, %v4303_v1  ;;  %v12525_v46 = vld [vmem:[#allocation180_spill] sm:$0xff]  ;;  %v12526_v62 = vld [vmem:[#allocation169_spill] sm:$0xff] }
 0x2e8   : > { %v4317_v25 = vmax.f32 %v4315_v12, %v4316_v22  ;;  %v5457_v36 = vunpack.i.l.bf16 %v5456_v47  ;;  %v1972_v31 = vmul.f32 %v12517_v21, %v12019_v63  ;;  %v1973_v4 = vmul.f32 %v12518_v2, %v12019_v63 }
 0x2e9   : > { %v4392_v19 = vadd.f32 %v10109_v27, %v4310_v34  ;;  %v2593_v14 = vmul.f32 %v5458_v37, %v8097_v0  ;;  %v3269_v54 = vmul.f32 %v5458_v37, %v8119_v33  ;;  %v10461_v48 = vmul.f32 %v5458_v37, %v8127_v28  ;;  %v12527_v34 = vld [vmem:[#allocation326_spill] sm:$0xff] }
 0x2ea   : > { %v4324_v53 = vmax.f32 %v4322_v20, %v4323_v61  ;;  %v4393_v41 = vadd.f32 %v10109_v27, %v4317_v25  ;;  %v4419_v38 = vmax.f32 %v4391_v43, 0.0  ;;  %v2592_v24 = vmul.f32 %v5457_v36, %v8097_v0  ;;  %v12529_v25 = vld [vmem:[#allocation44_spill] sm:$0xff]  ;;  %v12530_v20 = vld [vmem:[#allocation185_spill] sm:$0xff] }
 0x2eb   : > { %v4420_v59 = vmax.f32 %v4392_v19, 0.0  ;;  %v3026_v29 = vmul.f32 %v12517_v21, %v12178_v16  ;;  %v2084_v6 = vadd.f32 %v1972_v31, %v1351_v5  ;;  %v2085_v52 = vadd.f32 %v1973_v4, %v1352_v10  ;;  %v12528_v10 = vld [vmem:[#allocation173_spill] sm:$0xff]  ;;  %v12533_v4 = vld [vmem:[#allocation95_spill] sm:$0xff] }
 0x2ec   : > { %v4394_v35 = vadd.f32 %v10109_v27, %v4324_v53  ;;  %v4421_v42 = vmax.f32 %v4393_v41, 0.0  ;;  %v4720_v40 = vpack.c.bf16 %v4419_v38, %v4419_v38  ;;  %v3027_v49 = vmul.f32 %v12518_v2, %v12178_v16  ;;  %v5451_v53 = vpop.permute.xlu0 %5450 }
 0x2ed   : > { %v4721_v26 = vpack.c.bf16 %v4420_v59, %v4420_v59  ;;  %v3138_v57 = vadd.f32 %v3026_v29, %v12519_v13  ;;  %v10477_v55 = vadd.f32 %v2592_v24, %v2084_v6  ;;  %v3268_v58 = vmul.f32 %v5457_v36, %v8119_v33  ;;  %v12534_v24 = vld [vmem:[#allocation111_spill] sm:$0xff] }
 0x2ee   : > { %v4422_v56 = vmax.f32 %v4394_v35, 0.0  ;;  %v4722_v17 = vpack.c.bf16 %v4421_v42, %v4421_v42  ;;  %4560 = vst.msk [vmem:[%s9621_s22 + $0x48] sm:$0xf] %vm4541_vm2, %v4720_v40  ;;  %v10482_v60 = vadd.f32 %v2593_v14, %v2085_v52  ;;  %v3139_v50 = vadd.f32 %v3027_v49, %v12522_v30  ;;  %v12535_v35 = vld [vmem:[#allocation201_spill] sm:$0xff]  ;;  %v12536_v42 = vld [vmem:[#allocation40_spill] sm:$0xff]  ;;  %v12537_v13 = vld [vmem:[#allocation275_spill] sm:$0xff] }
 0x2ef   : > { %12520 = vst [vmem:[#allocation55_spill] sm:$0xff] %v10477_v55  ;;  %4561 = vst.msk [vmem:[%s9621_s22 + $0x4c] sm:$0xf] %vm4541_vm2, %v4721_v26  ;;  %v10486_v11 = vmul.f32 %v5457_v36, %v8127_v28  ;;  %v1349_v22 = vmul.f32 %v12523_v15, %v12006_v39  ;;  %v10492_v51 = vadd.f32 %v3268_v58, %v3138_v57  ;;  %v12532_v36 = vld [vmem:[#allocation183_spill] sm:$0xff]  ;;  %v5453_v52 = vunpack.i.h.bf16 %v5451_v53  ;;  %v12539_v58 = vld [vmem:[#allocation186_spill] sm:$0xff] }
 0x2f0   : > { %12521 = vst [vmem:[#allocation226_spill] sm:$0xff] %v10482_v60  ;;  %v4723_v47 = vpack.c.bf16 %v4422_v56, %v4422_v56  ;;  %4562 = vst.msk [vmem:[%s9621_s22 + $0x50] sm:$0xf] %vm4541_vm2, %v4722_v17  ;;  %v1350_v18 = vmul.f32 %v12524_v7, %v12006_v39  ;;  %v2838_v1 = vmul.f32 %v12525_v46, %v12015_v45  ;;  %v12531_v39 = vld [vmem:[#allocation265_spill] sm:$0xff]  ;;  %v5452_v49 = vunpack.i.l.bf16 %v5451_v53  ;;  %v12538_v56 = vld [vmem:[#allocation155_spill] sm:$0xff] }
 0x2f1   : > { %v10498_v12 = vadd.f32 %v3269_v54, %v3139_v50  ;;  %v2839_v61 = vmul.f32 %v12526_v62, %v12015_v45  ;;  %v3080_v5 = vmul.f32 %v12527_v34, %v12178_v16  ;;  %v3081_v37 = vmul.f32 %v12528_v10, %v12178_v16  ;;  %v12540_v50 = vld [vmem:[#allocation184_spill] sm:$0xff]  ;;  %v12544_v60 = vld [vmem:[#allocation337_spill] sm:$0xff] }
 0x2f2   : > { %4563 = vst.msk [vmem:[%s9621_s22 + $0x54] sm:$0xf] %vm4541_vm2, %v4723_v47  ;;  %v3162_v43 = vadd.f32 %v12530_v20, %v12529_v25  ;;  %v3163_v19 = vadd.f32 %v12532_v36, %v12531_v39  ;;  %v3514_v14 = vmul.f32 %v12525_v46, %v12179_v9  ;;  %v3515_v54 = vmul.f32 %v12526_v62, %v12179_v9 }
 0x2f3   : > { %v3568_v41 = vmul.f32 %v12523_v15, %v12179_v9  ;;  %v3569_v38 = vmul.f32 %v12524_v7, %v12179_v9  ;;  %v3570_v31 = vmul.f32 %v12515_v8, %v12179_v9  ;;  %v3571_v59 = vmul.f32 %v12516_v44, %v12179_v9 }
 0x2f4   : > { %v3596_v29 = vadd.f32 %v12534_v24, %v12533_v4  ;;  %v3597_v40 = vadd.f32 %v12536_v42, %v12535_v35  ;;  %v3756_v6 = vmul.f32 %v12527_v34, %v11398_v3  ;;  %v3757_v26 = vmul.f32 %v12528_v10, %v11398_v3  ;;  %v12541_v24 = vld [vmem:[#allocation335_spill] sm:$0xff]  ;;  %v12542_v35 = vld [vmem:[#allocation377_spill] sm:$0xff] }
 0x2f5   : > { %v1970_v57 = vmul.f32 %v12537_v13, %v12019_v63  ;;  %v1971_v17 = vmul.f32 %v12538_v56, %v12019_v63  ;;  %v3024_v47 = vmul.f32 %v12537_v13, %v12178_v16  ;;  %v3025_v7 = vmul.f32 %v12538_v56, %v12178_v16  ;;  %v12545_v16 = vld [vmem:[#allocation376_spill] sm:$0xff] }
 0x2f6   : > { %v3838_v30 = vadd.f32 %v12539_v58, %v3596_v29  ;;  %v3839_v15 = vadd.f32 %v12540_v50, %v3597_v40  ;;  %v2591_v25 = vmul.f32 %v5453_v52, %v8097_v0  ;;  %v3267_v20 = vmul.f32 %v5453_v52, %v8119_v33  ;;  %v12543_v58 = vld [vmem:[#allocation339_spill] sm:$0xff] }
 0x2f7   : > { %v4053_v39 = vmul.f32 %v5453_v52, %v8127_v28  ;;  %v2082_v36 = vadd.f32 %v1970_v57, %v1349_v22  ;;  %v2083_v53 = vadd.f32 %v1971_v17, %v1350_v18  ;;  %v2590_v4 = vmul.f32 %v5452_v49, %v8097_v0  ;;  %v12546_v22 = vld [vmem:[#allocation374_spill] sm:$0xff]  ;;  %v12552_v0 = vld [vmem:[#allocation211_spill] sm:$0xff] }
 0x2f8   : > { %v3136_v29 = vadd.f32 %v3024_v47, %v12541_v24  ;;  %v3137_v42 = vadd.f32 %v3025_v7, %v12542_v35  ;;  %v3266_v40 = vmul.f32 %v5452_v49, %v8119_v33  ;;  %v3404_v50 = vadd.f32 %v12543_v58, %v3162_v43  ;;  %v12547_v17 = vld [vmem:[#allocation218_spill] sm:$0xff]  ;;  %v12548_v24 = vld [vmem:[#allocation216_spill] sm:$0xff]  ;;  %v12549_v35 = vld [vmem:[#allocation37_spill] sm:$0xff] }
 0x2f9   : > { %v3405_v55 = vadd.f32 %v12544_v60, %v3163_v19  ;;  %v3432_v2 = vadd.f32 %v12545_v16, %v10327_v32  ;;  %v2702_v21 = vadd.f32 %v2590_v4, %v2082_v36  ;;  %v2703_v10 = vadd.f32 %v2591_v25, %v2083_v53  ;;  %v12550_v33 = vld [vmem:[#allocation214_spill] sm:$0xff]  ;;  %v12553_v4 = vld [vmem:[#allocation101_spill] sm:$0xff] }
 0x2fa   : > { %v3379_v52 = vadd.f32 %v3267_v20, %v3137_v42  ;;  %v3433_v18 = vadd.f32 %v12546_v22, %v10319_v23  ;;  %v3378_v57 = vadd.f32 %v3266_v40, %v3136_v29  ;;  %v3652_v47 = vadd.f32 %v12547_v17, %v3404_v50  ;;  %v12551_v19 = vld [vmem:[#allocation102_spill] sm:$0xff] }
 0x2fb   : > { %v3653_v7 = vadd.f32 %v12548_v24, %v3405_v55  ;;  %v3654_v34 = vadd.f32 %v12550_v33, %v12549_v35  ;;  %v2950_v43 = vadd.f32 %v2838_v1, %v2702_v21  ;;  %v2951_v58 = vadd.f32 %v2839_v61, %v2703_v10  ;;  %v12554_v29 = vld [vmem:[#allocation182_spill] sm:$0xff]  ;;  %v12555_v21 = vld [vmem:[#allocation281_spill] sm:$0xff]  ;;  %v12556_v1 = vld [vmem:[#allocation179_spill] sm:$0xff] }
 0x2fc   : > { %v3627_v60 = vadd.f32 %v3515_v54, %v3379_v52  ;;  %v3655_v16 = vadd.f32 %v12552_v0, %v12551_v19  ;;  %v3626_v32 = vadd.f32 %v3514_v14, %v3378_v57  ;;  %v3680_v25 = vadd.f32 %v3568_v41, %v3432_v2  ;;  %v12557_v0 = vld [vmem:[#allocation292_spill] sm:$0xff]  ;;  %v12558_v2 = vld [vmem:[#allocation370_spill] sm:$0xff]  ;;  %v12562_v52 = vld [vmem:[#allocation285_spill] sm:$0xff] }
 0x2fd   : > { %v3681_v20 = vadd.f32 %v3569_v38, %v3433_v18  ;;  %v3810_v23 = vmul.f32 %v12537_v13, %v11398_v3  ;;  %v3192_v36 = vadd.f32 %v3080_v5, %v2950_v43  ;;  %v3193_v53 = vadd.f32 %v3081_v37, %v2951_v58  ;;  %v12559_v38 = vld [vmem:[#allocation366_spill] sm:$0xff]  ;;  %v12561_v37 = vld [vmem:[#allocation288_spill] sm:$0xff]  ;;  %v12563_v35 = vld [vmem:[#allocation187_spill] sm:$0xff] }
 0x2fe   : > { %v3811_v55 = vmul.f32 %v12538_v56, %v11398_v3  ;;  %v3840_v33 = vadd.f32 %v12554_v29, %v12553_v4  ;;  %v3841_v61 = vadd.f32 %v12556_v1, %v12555_v21  ;;  %v3868_v10 = vadd.f32 %v3756_v6, %v3626_v32  ;;  %v12560_v40 = vld [vmem:[#allocation290_spill] sm:$0xff]  ;;  %v12566_v19 = vld [vmem:[#allocation332_spill] sm:$0xff]  ;;  %v12567_v32 = vld [vmem:[#allocation279_spill] sm:$0xff] }
 0x2ff   : > { %v3869_v54 = vadd.f32 %v3757_v26, %v3627_v60  ;;  %v3894_v14 = vadd.f32 %v12557_v0, %v3652_v47  ;;  %v3434_v41 = vadd.f32 %v12558_v2, %v3192_v36  ;;  %v3435_v42 = vadd.f32 %v12559_v38, %v3193_v53  ;;  %v12564_v58 = vld [vmem:[#allocation338_spill] sm:$0xff]  ;;  %v12565_v60 = vld [vmem:[#allocation207_spill] sm:$0xff]  ;;  %v12572_v4 = vld [vmem:[#allocation72_spill] sm:$0xff] }
 0x300   : > { %v3895_v5 = vadd.f32 %v12560_v40, %v3653_v7  ;;  %v3896_v50 = vadd.f32 %v12561_v37, %v3654_v34  ;;  %v3897_v22 = vadd.f32 %v12562_v52, %v3655_v16  ;;  %v3922_v18 = vadd.f32 %v3810_v23, %v3680_v25 }
 0x301   : > { %v3923_v57 = vadd.f32 %v3811_v55, %v3681_v20  ;;  %v4024_v17 = vmul.f32 %v12537_v13, %v8127_v28  ;;  %v3682_v24 = vadd.f32 %v3570_v31, %v3434_v41  ;;  %v3683_v6 = vadd.f32 %v3571_v59, %v3435_v42  ;;  %v12568_v20 = vld [vmem:[#allocation319_spill] sm:$0xff]  ;;  %v12570_v59 = vld [vmem:[#allocation369_spill] sm:$0xff] }
 0x302   : > { %v4025_v26 = vmul.f32 %v12538_v56, %v8127_v28  ;;  %v4052_v47 = vmul.f32 %v5452_v49, %v8127_v28  ;;  %v4080_v43 = vadd.f32 %v12563_v35, %v3838_v30  ;;  %v4081_v7 = vadd.f32 %v12564_v58, %v3839_v15  ;;  %v12569_v13 = vld [vmem:[#allocation371_spill] sm:$0xff]  ;;  %v12571_v55 = vld [vmem:[#allocation205_spill] sm:$0xff] }
 0x303   : > { %v4082_v34 = vadd.f32 %v12565_v60, %v3840_v33  ;;  %v4083_v16 = vadd.f32 %v12566_v19, %v3841_v61  ;;  %v3924_v25 = vadd.f32 %v12567_v32, %v3682_v24  ;;  %v3925_v23 = vadd.f32 %v12568_v20, %v3683_v6  ;;  %v12573_v61 = vld [vmem:[#allocation308_spill] sm:$0xff]  ;;  %v12574_v41 = vld [vmem:[#allocation289_spill] sm:$0xff] }
 0x304   : > { %v4110_v31 = vadd.f32 %v12569_v13, %v3868_v10  ;;  %v4111_v36 = vadd.f32 %v12570_v59, %v3869_v54  ;;  %v4136_v53 = vadd.f32 %v4024_v17, %v3894_v14  ;;  %v4137_v56 = vadd.f32 %v4025_v26, %v3895_v5 }
 0x305   : > { %v4138_v49 = vadd.f32 %v12571_v55, %v3896_v50  ;;  %v4139_v30 = vadd.f32 %v12572_v4, %v3897_v22  ;;  %v4164_v29 = vadd.f32 %v4052_v47, %v3922_v18  ;;  %v4165_v15 = vadd.f32 %v4053_v39, %v3923_v57  ;;  %v5466_v22 = vpop.permute.xlu1 %5465 }
 0x306   : > { %v4166_v33 = vadd.f32 %v10486_v11, %v3924_v25  ;;  %v4167_v21 = vadd.f32 %v10461_v48, %v3925_v23  ;;  %v4325_v1 = vsel %vm4170_vm1, %v4080_v43, -inf  ;;  %v4326_v0 = vsel %vm4170_vm1, %v12573_v61, -inf  ;;  %v12577_v61 = vld [vmem:[#allocation212_spill] sm:$0xff] }
 0x307   : > { %v4328_v10 = vsel %vm4170_vm1, %v4136_v53, -inf  ;;  %v4332_v54 = vsel %vm4170_vm1, %v4081_v7, -inf  ;;  %v4327_v14 = vmax.f32 %v4325_v1, %v4326_v0  ;;  %v4330_v2 = vsel %vm4170_vm1, %v4164_v29, -inf  ;;  %v12576_v1 = vld [vmem:[#allocation106_spill] sm:$0xff] }
 0x308   : > { %v4333_v38 = vsel %vm4170_vm1, %v12574_v41, -inf  ;;  %v4335_v39 = vsel %vm4170_vm1, %v4137_v56, -inf  ;;  %v4337_v48 = vsel %vm4170_vm1, %v4165_v15, -inf  ;;  %v4339_v42 = vsel %vm4170_vm1, %v4082_v34, -inf  ;;  %v12579_v41 = vld [vmem:[#allocation89_spill] sm:$0xff] }
 0x309   : > { %v4334_v11 = vmax.f32 %v4332_v54, %v4333_v38  ;;  %v4340_v40 = vsel %vm4170_vm1, %v4110_v31, -inf  ;;  %v4329_v5 = vmax.f32 %v4327_v14, %v4328_v10  ;;  %v4342_v50 = vsel %vm4170_vm1, %v4138_v49, -inf  ;;  %v5461_v49 = vpop.permute.xlu0 %5460  ;;  %v12578_v14 = vld [vmem:[#allocation209_spill] sm:$0xff]  ;;  %v12580_v38 = vld [vmem:[#allocation326_spill] sm:$0xff] }
 0x30a   : > { %v4341_v37 = vmax.f32 %v4339_v42, %v4340_v40  ;;  %v4344_v52 = vsel %vm4170_vm1, %v4166_v33, -inf  ;;  %v4346_v57 = vsel %vm4170_vm1, %v4083_v16, -inf  ;;  %v4347_v17 = vsel %vm4170_vm1, %v4111_v36, -inf  ;;  %v12575_v33 = vld [vmem:[#allocation39_spill] sm:$0xff]  ;;  %v12583_v40 = vld [vmem:[#allocation276_spill] sm:$0xff] }
 0x30b   : > { %v4336_v18 = vmax.f32 %v4334_v11, %v4335_v39  ;;  %v4349_v24 = vsel %vm4170_vm1, %v4139_v30, -inf  ;;  %v4331_v6 = vmax.f32 %v4329_v5, %v4330_v2  ;;  %v4348_v47 = vmax.f32 %v4346_v57, %v4347_v17 }
 0x30c   : > { %v4343_v26 = vmax.f32 %v4341_v37, %v4342_v50  ;;  %v4351_v35 = vsel %vm4170_vm1, %v4167_v21, -inf  ;;  %v5468_v58 = vunpack.i.h.bf16 %v5466_v22  ;;  %v5467_v7 = vunpack.i.l.bf16 %v5466_v22  ;;  %v12584_v37 = vld [vmem:[#allocation70_spill] sm:$0xff] }
 0x30d   : > { %v4338_v43 = vmax.f32 %v4336_v18, %v4337_v48  ;;  %v1888_v60 = vmul.f32 %v12525_v46, %v12019_v63  ;;  %v4350_v19 = vmax.f32 %v4348_v47, %v4349_v24  ;;  %v4395_v32 = vadd.f32 %v10109_v27, %v4331_v6  ;;  %v12582_v48 = vld [vmem:[#allocation152_spill] sm:$0xff]  ;;  %v5476_v47 = vpop.permute.xlu1 %5475 }
 0x30e   : > { %v4345_v34 = vmax.f32 %v4343_v26, %v4344_v52  ;;  %v1889_v16 = vmul.f32 %v12526_v62, %v12019_v63  ;;  %v10617_v20 = vmul.f32 %v5468_v58, %v12015_v45  ;;  %v3517_v23 = vmul.f32 %v5468_v58, %v12179_v9 }
 0x30f   : > { %v4396_v25 = vadd.f32 %v10109_v27, %v4338_v43  ;;  %v10621_v13 = vmul.f32 %v5467_v7, %v12015_v45  ;;  %v4352_v31 = vmax.f32 %v4350_v19, %v4351_v35  ;;  %v4423_v59 = vmax.f32 %v4395_v32, 0.0  ;;  %v5471_v35 = vpop.permute.xlu0 %5470  ;;  %v12585_v43 = vld [vmem:[#allocation213_spill] sm:$0xff]  ;;  %v12587_v32 = vld [vmem:[#allocation210_spill] sm:$0xff] }
 0x310   : > { %v4397_v46 = vadd.f32 %v10109_v27, %v4345_v34  ;;  %v3516_v36 = vmul.f32 %v5467_v7, %v12179_v9  ;;  %v10626_v62 = vadd.f32 %v3517_v23, %v10498_v12  ;;  %v1944_v56 = vmul.f32 %v12515_v8, %v12019_v63  ;;  %v10635_v27 = vld [vmem:[%s10731_s5] ss:$0 sm:$0xff] }
 0x311   : > { %v4424_v53 = vmax.f32 %v4396_v25, 0.0  ;;  %v1945_v55 = vmul.f32 %v12516_v44, %v12019_v63  ;;  %v4398_v4 = vadd.f32 %v10635_v27, %v4352_v31  ;;  %v4724_v29 = vpack.c.bf16 %v4423_v59, %v4423_v59 }
 0x312   : > { %v4425_v30 = vmax.f32 %v4397_v46, 0.0  ;;  %v10639_v12 = vadd.f32 %v3516_v36, %v10492_v51  ;;  %v2000_v21 = vadd.f32 %v1888_v60, %v12575_v33  ;;  %v2001_v63 = vadd.f32 %v1889_v16, %v12576_v1  ;;  %v12581_v51 = vld [vmem:[#allocation173_spill] sm:$0xff] }
 0x313   : > { %v4725_v15 = vpack.c.bf16 %v4424_v53, %v4424_v53  ;;  %v2056_v0 = vadd.f32 %v1944_v56, %v12577_v61  ;;  %v4426_v10 = vmax.f32 %v4398_v4, 0.0  ;;  %4564 = vst.msk [vmem:[%s9621_s22 + $0x58] sm:$0xf] %vm4541_vm2, %v4724_v29  ;;  %v2057_v2 = vadd.f32 %v1945_v55, %v12578_v14  ;;  %v12586_v60 = vld [vmem:[#allocation45_spill] sm:$0xff] }
 0x314   : > { %v4726_v54 = vpack.c.bf16 %v4425_v30, %v4425_v30  ;;  %v2508_v39 = vmul.f32 %v12580_v38, %v12579_v41  ;;  %v2509_v11 = vmul.f32 %v12581_v51, %v12579_v41  ;;  %v2564_v42 = vmul.f32 %v12582_v48, %v12579_v41 }
 0x315   : > { %4565 = vst.msk [vmem:[%s9621_s22 + $0x5c] sm:$0xf] %vm4541_vm2, %v4725_v15  ;;  %v2565_v5 = vmul.f32 %v12583_v40, %v12579_v41  ;;  %v2998_v50 = vmul.f32 %v12515_v8, %v12584_v37  ;;  %v4727_v52 = vpack.c.bf16 %v4426_v10, %v4426_v10  ;;  %v2999_v18 = vmul.f32 %v12516_v44, %v12584_v37 }
 0x316   : > { %4566 = vst.msk [vmem:[%s9621_s22 + $0x60] sm:$0xf] %vm4541_vm2, %v4726_v54  ;;  %v2620_v22 = vadd.f32 %v2508_v39, %v2000_v21  ;;  %v3054_v57 = vmul.f32 %v5467_v7, %v12584_v37  ;;  %v2621_v17 = vadd.f32 %v2509_v11, %v2001_v63  ;;  %v2676_v24 = vadd.f32 %v2564_v42, %v2056_v0  ;;  %v5486_v63 = vpop.permute.xlu1 %5485 }
 0x317   : > { %v2677_v6 = vadd.f32 %v2565_v5, %v2057_v2  ;;  %v3055_v26 = vmul.f32 %v5468_v58, %v12584_v37  ;;  %4567 = vst.msk [vmem:[%s9621_s22 + $0x64] sm:$0xf] %vm4541_vm2, %v4727_v52  ;;  %v3240_v34 = vmul.f32 %v12582_v48, %v12586_v60  ;;  %v3241_v19 = vmul.f32 %v12583_v40, %v12586_v60  ;;  %v5481_v48 = vpop.permute.xlu0 %5480  ;;  %v12588_v5 = vld [vmem:[#allocation55_spill] sm:$0xff]  ;;  %v12589_v52 = vld [vmem:[#allocation226_spill] sm:$0xff] }
 0x318   : > { %v2868_v8 = vadd.f32 %v12585_v43, %v2620_v22  ;;  %v3730_v44 = vmul.f32 %v5467_v7, %v11398_v3  ;;  %v2869_v16 = vadd.f32 %v12587_v32, %v2621_v17  ;;  %v3731_v25 = vmul.f32 %v5468_v58, %v11398_v3 }
 0x319   : > { %v5463_v23 = vunpack.i.h.bf16 %v5461_v49  ;;  %v5462_v31 = vunpack.i.l.bf16 %v5461_v49  ;;  %v5478_v59 = vunpack.i.h.bf16 %v5476_v47  ;;  %v5477_v36 = vunpack.i.l.bf16 %v5476_v47 }
 0x31a   : > { %v3110_v46 = vadd.f32 %v2998_v50, %v2868_v8  ;;  %v5473_v53 = vunpack.i.h.bf16 %v5471_v35  ;;  %v3111_v56 = vadd.f32 %v2999_v18, %v2869_v16  ;;  %v5472_v51 = vunpack.i.l.bf16 %v5471_v35  ;;  %v5496_v35 = vpop.permute.xlu1 %5495 }
 0x31b   : > { %v2813_v55 = vmul.f32 %v5463_v23, %v12015_v45  ;;  %v3489_v4 = vmul.f32 %v5463_v23, %v12179_v9  ;;  %v2812_v30 = vmul.f32 %v5462_v31, %v12015_v45  ;;  %v3488_v7 = vmul.f32 %v5462_v31, %v12179_v9  ;;  %v5491_v31 = vpop.permute.xlu0 %5490 }
 0x31c   : > { %v3352_v29 = vadd.f32 %v3240_v34, %v3110_v46  ;;  %v3325_v15 = vmul.f32 %v5478_v59, %v12586_v60  ;;  %v4001_v58 = vmul.f32 %v5478_v59, %v8127_v28  ;;  %v3353_v33 = vadd.f32 %v3241_v19, %v3111_v56 }
 0x31d   : > { %v2925_v49 = vadd.f32 %v2813_v55, %v2677_v6  ;;  %v2924_v21 = vadd.f32 %v2812_v30, %v2676_v24  ;;  %v3324_v1 = vmul.f32 %v5477_v36, %v12586_v60  ;;  %v4000_v0 = vmul.f32 %v5477_v36, %v8127_v28 }
 0x31e   : > { %v3600_v61 = vadd.f32 %v3488_v7, %v3352_v29  ;;  %v3083_v10 = vmul.f32 %v5473_v53, %v12584_v37  ;;  %v3759_v45 = vmul.f32 %v5473_v53, %v11398_v3  ;;  %v3601_v14 = vadd.f32 %v3489_v4, %v3353_v33 }
 0x31f   : > { %v3167_v54 = vadd.f32 %v3055_v26, %v2925_v49  ;;  %v3166_v2 = vadd.f32 %v3054_v57, %v2924_v21  ;;  %v3973_v41 = vmul.f32 %v5473_v53, %v8127_v28  ;;  %v5488_v11 = vunpack.i.h.bf16 %v5486_v63 }
 0x320   : > { %v3842_v38 = vadd.f32 %v3730_v44, %v3600_v61  ;;  %v3871_v39 = vadd.f32 %v3759_v45, %v10626_v62  ;;  %v3843_v42 = vadd.f32 %v3731_v25, %v3601_v14  ;;  %v5487_v40 = vunpack.i.l.bf16 %v5486_v63 }
 0x321   : > { %v2952_v50 = vadd.f32 %v10621_v13, %v12588_v5  ;;  %v2953_v22 = vadd.f32 %v10617_v20, %v12589_v52  ;;  %v3082_v18 = vmul.f32 %v5472_v51, %v12584_v37  ;;  %v3758_v57 = vmul.f32 %v5472_v51, %v11398_v3 }
 0x322   : > { %v3972_v17 = vmul.f32 %v5472_v51, %v8127_v28  ;;  %v3573_v24 = vmul.f32 %v5488_v11, %v12179_v9  ;;  %v4085_v62 = vadd.f32 %v3973_v41, %v3843_v42  ;;  %v3787_v6 = vmul.f32 %v5488_v11, %v11398_v3 }
 0x323   : > { %v3195_v26 = vadd.f32 %v3083_v10, %v2953_v22  ;;  %v3572_v47 = vmul.f32 %v5487_v40, %v12179_v9  ;;  %v3870_v13 = vadd.f32 %v3758_v57, %v10639_v12  ;;  %v3194_v8 = vadd.f32 %v3082_v18, %v2952_v50 }
 0x324   : > { %v4084_v43 = vadd.f32 %v3972_v17, %v3842_v38  ;;  %v3786_v20 = vmul.f32 %v5487_v40, %v11398_v3  ;;  %v5483_v34 = vunpack.i.h.bf16 %v5481_v48  ;;  %v5482_v19 = vunpack.i.l.bf16 %v5481_v48 }
 0x325   : > { %v3437_v37 = vadd.f32 %v3325_v15, %v3195_v26  ;;  %v3296_v44 = vmul.f32 %v5472_v51, %v12586_v60  ;;  %v3436_v32 = vadd.f32 %v3324_v1, %v3194_v8  ;;  %v3297_v16 = vmul.f32 %v5473_v53, %v12586_v60 }
 0x326   : > { %v5498_v25 = vunpack.i.h.bf16 %v5496_v35  ;;  %v5497_v23 = vunpack.i.l.bf16 %v5496_v35  ;;  %v3545_v59 = vmul.f32 %v5483_v34, %v12179_v9  ;;  %v3544_v12 = vmul.f32 %v5482_v19, %v12179_v9 }
 0x327   : > { %v3685_v46 = vadd.f32 %v3573_v24, %v3437_v37  ;;  %v3408_v36 = vadd.f32 %v3296_v44, %v3166_v2  ;;  %v3684_v56 = vadd.f32 %v3572_v47, %v3436_v32  ;;  %v3409_v55 = vadd.f32 %v3297_v16, %v3167_v54 }
 0x328   : > { %v4057_v4 = vmul.f32 %v5498_v25, %v8127_v28  ;;  %v4056_v30 = vmul.f32 %v5497_v23, %v8127_v28  ;;  %v5493_v7 = vunpack.i.h.bf16 %v5491_v31  ;;  %v5492_v15 = vunpack.i.l.bf16 %v5491_v31 }
 0x329   : > { %v3656_v29 = vadd.f32 %v3544_v12, %v3408_v36  ;;  %v4112_v33 = vadd.f32 %v4000_v0, %v3870_v13  ;;  %v3657_v60 = vadd.f32 %v3545_v59, %v3409_v55  ;;  %v4113_v53 = vadd.f32 %v4001_v58, %v3871_v39 }
 0x32a   : > { %v4353_v49 = vsel %vm4170_vm1, %v4084_v43, -inf  ;;  %v4360_v21 = vsel %vm4170_vm1, %v4085_v62, -inf  ;;  %v3815_v1 = vmul.f32 %v5493_v7, %v11398_v3  ;;  %v4029_v9 = vmul.f32 %v5493_v7, %v8127_v28 }
 0x32b   : > { %v3814_v63 = vmul.f32 %v5492_v15, %v11398_v3  ;;  %v3898_v61 = vadd.f32 %v3786_v20, %v3656_v29  ;;  %v3899_v10 = vadd.f32 %v3787_v6, %v3657_v60  ;;  %v4028_v45 = vmul.f32 %v5492_v15, %v8127_v28 }
 0x32c   : > { %v4354_v54 = vsel %vm4170_vm1, %v4112_v33, -inf  ;;  %v4361_v0 = vsel %vm4170_vm1, %v4113_v53, -inf  ;;  %v3927_v58 = vadd.f32 %v3815_v1, %v3685_v46 }
 0x32d   : > { %v3926_v14 = vadd.f32 %v3814_v63, %v3684_v56  ;;  %v4355_v2 = vmax.f32 %v4353_v49, %v4354_v54  ;;  %v4362_v41 = vmax.f32 %v4360_v21, %v4361_v0  ;;  %v4140_v38 = vadd.f32 %v4028_v45, %v3898_v61 }
 0x32e   : > { %v4141_v39 = vadd.f32 %v4029_v9, %v3899_v10  ;;  %v4169_v11 = vadd.f32 %v4057_v4, %v3927_v58 }
 0x32f   : > { %v4168_v51 = vadd.f32 %v4056_v30, %v3926_v14  ;;  %v4356_v3 = vsel %vm4170_vm1, %v4140_v38, -inf }
 0x330   : > { %v4363_v48 = vsel %vm4170_vm1, %v4141_v39, -inf  ;;  %v4357_v42 = vmax.f32 %v4355_v2, %v4356_v3  ;;  %v4365_v5 = vsel %vm4170_vm1, %v4169_v11, -inf }
 0x331   : > { %v4358_v28 = vsel %vm4170_vm1, %v4168_v51, -inf  ;;  %v4364_v40 = vmax.f32 %v4362_v41, %v4363_v48 }
 0x332   : > { %v4359_v50 = vmax.f32 %v4357_v42, %v4358_v28 }
 0x333   : > { %v4366_v52 = vmax.f32 %v4364_v40, %v4365_v5 }
 0x334   : > { %v4399_v22 = vadd.f32 %v10635_v27, %v4359_v50 }
 0x335   : > { %v4400_v18 = vadd.f32 %v10635_v27, %v4366_v52 }
 0x336   : > { %v4427_v57 = vmax.f32 %v4399_v22, 0.0 }
 0x337   : > { %v4428_v17 = vmax.f32 %v4400_v18, 0.0 }
 0x338   : > { %v4728_v24 = vpack.c.bf16 %v4427_v57, %v4427_v57 }
 0x339   : > { %v4729_v62 = vpack.c.bf16 %v4428_v17, %v4428_v17 }
 0x33a   : > { %4568 = vst.msk [vmem:[%s9621_s22 + $0x68] sm:$0xf] %vm4541_vm2, %v4728_v24 }
 0x33b   : > { %4569 = vst.msk [vmem:[%s9621_s22 + $0x6c] sm:$0xf] %vm4541_vm2, %v4729_v62 }
 0x33c PF: > { %s16_s21 = sadd.s32 1, %s5507_s21  }
 0x33d   : > { %p13_p4 = scmp.ge.s32.totalorder %s16_s21, 4  }
 0x33f   :  { %15 = sbr.rel (!%p13_p4) target bundleno = 1 (0x1), region = 83 }

// kernel: defended_target_model_forward.5
= control target key start
LH: loop header
LB: loop body
LE: loop exit
PB: predicated region body
PF: predicated region fallthrough
CT: control target
= control target key end

     0   :  { %vm3191_vm0 = vmmov 0   ;;  %vm1747_vm1 = vcmask 523264   ;;  %s3935_s1 = inlined_call_operand.vmem [shape: bf16[3136,128], index: 1, kind: input, shape index: {}]   ;;  %s3936_s0 = inlined_call_operand.vmem [shape: bf16[16,3136], index: 0, kind: input, shape index: {}]   ;;  %s3937_s2 = inlined_call_operand.vmem [shape: f32[1,128], index: 2, kind: input, shape index: {}]   ;;  %s3938_s3 = inlined_call_operand.vmem [shape: bf16[128,128], index: 3, kind: input, shape index: {}]   ;;  %s3939_s4 = inlined_call_operand.vmem [shape: f32[1,128], index: 4, kind: input, shape index: {}]   ;;  %s3940_s5 = inlined_call_operand.vmem [shape: f32[16,128], index: 5, kind: output, shape index: {}]  }
   0x1   :  { %v2949_v0 = vld [vmem:[%s3935_s1 + $0x40] sm:$0xff]   ;;  %v2953_v4 = vld [vmem:[%s3935_s1 + $0x48] sm:$0xff]   ;;  %v2957_v8 = vld [vmem:[%s3935_s1 + $0x50] sm:$0xff]  }
   0x2   :  { %v2950_v1 = vld [vmem:[%s3935_s1] sm:$0xff]   ;;  %2637 = vmatprep.subr.bf16.mxu0 %v2949_v0  ;;  %v2954_v5 = vld [vmem:[%s3935_s1 + $0x8] sm:$0xff]   ;;  %v2958_v9 = vld [vmem:[%s3935_s1 + $0x10] sm:$0xff]  }
   0x3   :  { %v2951_v2 = vld [vmem:[%s3935_s1 + $0xc0] sm:$0xff]   ;;  %2638 = vmatpush3.bf16.msra.mxu0 %v2950_v1  ;;  %v2955_v6 = vld [vmem:[%s3935_s1 + $0xc8] sm:$0xff]   ;;  %v2959_v10 = vld [vmem:[%s3935_s1 + $0xd0] sm:$0xff]  }
   0x4   :  { %v2952_v3 = vld [vmem:[%s3935_s1 + $0x80] sm:$0xff]   ;;  %2659 = vmatprep.subr.bf16.mxu1 %v2951_v2  ;;  %2639 = vmatprep.subr.bf16.mxu0 %v2953_v4  ;;  %v2956_v7 = vld [vmem:[%s3935_s1 + $0x88] sm:$0xff]   ;;  %v2960_v11 = vld [vmem:[%s3935_s1 + $0x90] sm:$0xff]  }
   0x5   :  { %2660 = vmatpush3.bf16.msra.mxu1 %v2952_v3  ;;  %v2961_v12 = vld [vmem:[%s3935_s1 + $0x58] sm:$0xff]   ;;  %v2965_v16 = vld [vmem:[%s3935_s1 + $0x60] sm:$0xff]   ;;  %v2969_v20 = vld [vmem:[%s3935_s1 + $0x68] sm:$0xff]  }
   0x6   :  { %2661 = vmatprep.subr.bf16.mxu1 %v2955_v6  ;;  %v2962_v13 = vld [vmem:[%s3935_s1 + $0x18] sm:$0xff]   ;;  %v2966_v17 = vld [vmem:[%s3935_s1 + $0x20] sm:$0xff]   ;;  %v2970_v21 = vld [vmem:[%s3935_s1 + $0x28] sm:$0xff]  }
   0x7   :  { %2640 = vmatpush3.bf16.msra.mxu0 %v2954_v5  ;;  %v2963_v14 = vld [vmem:[%s3935_s1 + $0xd8] sm:$0xff]   ;;  %v2967_v18 = vld [vmem:[%s3935_s1 + $0xe0] sm:$0xff]   ;;  %v2971_v22 = vld [vmem:[%s3935_s1 + $0xe8] sm:$0xff]  }
   0x8   :  { %2641 = vmatprep.subr.bf16.mxu0 %v2957_v8  ;;  %v2964_v15 = vld [vmem:[%s3935_s1 + $0x98] sm:$0xff]   ;;  %v2968_v19 = vld [vmem:[%s3935_s1 + $0xa0] sm:$0xff]   ;;  %v2972_v23 = vld [vmem:[%s3935_s1 + $0xa8] sm:$0xff]  }
   0x9   :  { %2662 = vmatpush3.bf16.msra.mxu1 %v2956_v7  ;;  %v2973_v24 = vld [vmem:[%s3935_s1 + $0x70] sm:$0xff]   ;;  %v2977_v28 = vld [vmem:[%s3935_s1 + $0x78] sm:$0xff]   ;;  %v2980_v31 = vld [vmem:[%s3936_s0] ss:$100 sps:$4 sm:$0xff]  }
   0xa   :  { %2663 = vmatprep.subr.bf16.mxu1 %v2959_v10  ;;  %v2974_v25 = vld [vmem:[%s3935_s1 + $0x30] sm:$0xff]   ;;  %v2978_v29 = vld [vmem:[%s3935_s1 + $0x38] sm:$0xff]   ;;  %v2982_v32 = vld [vmem:[%s3936_s0 + $0x4] ss:$100 sps:$4 sm:$0xff]  }
   0xb   :  { %2642 = vmatpush3.bf16.msra.mxu0 %v2958_v9  ;;  %v2975_v26 = vld [vmem:[%s3935_s1 + $0xf0] sm:$0xff]   ;;  %v2979_v30 = vld [vmem:[%s3935_s1 + $0xf8] sm:$0xff]   ;;  %1783 = vmatprep.mubr.bf16.mxu0 %v2982_v32  ;;  %v2984_v34 = vld [vmem:[%s3935_s1 + $0x140] sm:$0xff]  }
   0xc   :  { %2643 = vmatprep.subr.bf16.mxu0 %v2961_v12  ;;  %v2976_v27 = vld [vmem:[%s3935_s1 + $0xb0] sm:$0xff]   ;;  %v2983_v33 = vld [vmem:[%s3935_s1 + $0xb8] sm:$0xff]   ;;  %v2985_v35 = vld [vmem:[%s3936_s0 + $0x8] ss:$100 sps:$4 sm:$0xff]  }
   0xd   :  { %2664 = vmatpush3.bf16.msra.mxu1 %v2960_v11  ;;  %v2987_v36 = vld [vmem:[%s3936_s0 + $0xc] ss:$100 sps:$4 sm:$0xff]   ;;  %v2988_v37 = vld [vmem:[%s3935_s1 + $0x100] sm:$0xff]   ;;  %v2999_v48 = vld [vmem:[%s3935_s1 + $0x158] sm:$0xff]  }
   0xe   :  { %2665 = vmatprep.subr.bf16.mxu1 %v2963_v14  ;;  %1824 = vmatprep.mubr.bf16.mxu1 %v2987_v36  ;;  %v2989_v38 = vld [vmem:[%s3935_s1 + $0x1c0] sm:$0xff]   ;;  %v2991_v40 = vld [vmem:[%s3935_s1 + $0x148] sm:$0xff]   ;;  %v2995_v44 = vld [vmem:[%s3935_s1 + $0x150] sm:$0xff]  }
   0xf   :  { %2644 = vmatpush3.bf16.msra.mxu0 %v2962_v13  ;;  %v2990_v39 = vld [vmem:[%s3935_s1 + $0x180] sm:$0xff]   ;;  %v2992_v41 = vld [vmem:[%s3935_s1 + $0x108] sm:$0xff]   ;;  %v2996_v45 = vld [vmem:[%s3935_s1 + $0x110] sm:$0xff]  }
  0x10   :  { %2645 = vmatprep.subr.bf16.mxu0 %v2965_v16  ;;  %v2993_v42 = vld [vmem:[%s3935_s1 + $0x1c8] sm:$0xff]   ;;  %v2997_v46 = vld [vmem:[%s3935_s1 + $0x1d0] sm:$0xff]   ;;  %v3000_v49 = vld [vmem:[%s3935_s1 + $0x118] sm:$0xff]  }
  0x11   :  { %2666 = vmatpush3.bf16.msra.mxu1 %v2964_v15  ;;  %v2994_v43 = vld [vmem:[%s3935_s1 + $0x188] sm:$0xff]   ;;  %v2998_v47 = vld [vmem:[%s3935_s1 + $0x190] sm:$0xff]   ;;  %v3001_v50 = vld [vmem:[%s3935_s1 + $0x1d8] sm:$0xff]  }
  0x12   :  { %2667 = vmatprep.subr.bf16.mxu1 %v2967_v18  ;;  %v3002_v51 = vld [vmem:[%s3935_s1 + $0x198] sm:$0xff]   ;;  %v3003_v52 = vld [vmem:[%s3935_s1 + $0x160] sm:$0xff]   ;;  %v3007_v56 = vld [vmem:[%s3935_s1 + $0x168] sm:$0xff]  }
  0x13   :  { %2646 = vmatpush3.bf16.msra.mxu0 %v2966_v17  ;;  %v3004_v53 = vld [vmem:[%s3935_s1 + $0x120] sm:$0xff]   ;;  %v3008_v57 = vld [vmem:[%s3935_s1 + $0x128] sm:$0xff]   ;;  %v3011_v60 = vld [vmem:[%s3935_s1 + $0x170] sm:$0xff]  }
  0x14   :  { %2647 = vmatprep.subr.bf16.mxu0 %v2969_v20  ;;  %v3005_v54 = vld [vmem:[%s3935_s1 + $0x1e0] sm:$0xff]   ;;  %v3009_v58 = vld [vmem:[%s3935_s1 + $0x1e8] sm:$0xff]   ;;  %v3012_v61 = vld [vmem:[%s3935_s1 + $0x130] sm:$0xff]  }
  0x15   :  { %2668 = vmatpush3.bf16.msra.mxu1 %v2968_v19  ;;  %v3006_v55 = vld [vmem:[%s3935_s1 + $0x1a0] sm:$0xff]   ;;  %v3010_v59 = vld [vmem:[%s3935_s1 + $0x1a8] sm:$0xff]   ;;  %v3013_v62 = vld [vmem:[%s3935_s1 + $0x1f0] sm:$0xff]  }
  0x16   :  { %2669 = vmatprep.subr.bf16.mxu1 %v2971_v22  ;;  %v3014_v63 = vld [vmem:[%s3935_s1 + $0x1b0] sm:$0xff]   ;;  %v3015_v0 = vld [vmem:[%s3935_s1 + $0x178] sm:$0xff]   ;;  %v3022_v6 = vld [vmem:[%s3935_s1 + $0x240] sm:$0xff]  }
  0x17   :  { %2648 = vmatpush3.bf16.msra.mxu0 %v2970_v21  ;;  %v3016_v1 = vld [vmem:[%s3935_s1 + $0x138] sm:$0xff]   ;;  %v3018_v3 = vld [vmem:[%s3936_s0 + $0x10] ss:$100 sps:$4 sm:$0xff]   ;;  %v3026_v9 = vld [vmem:[%s3935_s1 + $0x200] sm:$0xff]  }
  0x18   :  { %2649 = vmatprep.subr.bf16.mxu0 %v2973_v24  ;;  %v3017_v2 = vld [vmem:[%s3935_s1 + $0x1f8] sm:$0xff]   ;;  %v3027_v10 = vld [vmem:[%s3935_s1 + $0x2c0] sm:$0xff]   ;;  %v3029_v12 = vld [vmem:[%s3935_s1 + $0x248] sm:$0xff]  }
  0x19   :  { %2670 = vmatpush3.bf16.msra.mxu1 %v2972_v23  ;;  %v3020_v4 = vld [vmem:[%s3936_s0 + $0x14] ss:$100 sps:$4 sm:$0xff]   ;;  %v3025_v8 = vld [vmem:[%s3936_s0 + $0x1c] ss:$100 sps:$4 sm:$0xff]   ;;  %v3030_v13 = vld [vmem:[%s3935_s1 + $0x208] sm:$0xff]  }
  0x1a   :  { %2671 = vmatprep.subr.bf16.mxu1 %v2975_v26  ;;  %v3021_v5 = vld [vmem:[%s3935_s1 + $0x1b8] sm:$0xff]   ;;  %v3028_v11 = vld [vmem:[%s3935_s1 + $0x280] sm:$0xff]   ;;  %v3031_v14 = vld [vmem:[%s3935_s1 + $0x2c8] sm:$0xff]  }
  0x1b   :  { %2650 = vmatpush3.bf16.msra.mxu0 %v2974_v25  ;;  %v3023_v7 = vld [vmem:[%s3936_s0 + $0x18] ss:$100 sps:$4 sm:$0xff]   ;;  %v3032_v15 = vld [vmem:[%s3935_s1 + $0x288] sm:$0xff]   ;;  %v3033_v16 = vld [vmem:[%s3935_s1 + $0x250] sm:$0xff]  }
  0x1c   :  { %2651 = vmatprep.subr.bf16.mxu0 %v2977_v28  ;;  %v3034_v17 = vld [vmem:[%s3935_s1 + $0x210] sm:$0xff]   ;;  %v3037_v20 = vld [vmem:[%s3935_s1 + $0x258] sm:$0xff]   ;;  %v3041_v24 = vld [vmem:[%s3935_s1 + $0x260] sm:$0xff]  }
  0x1d   :  { %2672 = vmatpush3.bf16.msra.mxu1 %v2976_v27  ;;  %v3035_v18 = vld [vmem:[%s3935_s1 + $0x2d0] sm:$0xff]   ;;  %v3038_v21 = vld [vmem:[%s3935_s1 + $0x218] sm:$0xff]   ;;  %v3042_v25 = vld [vmem:[%s3935_s1 + $0x220] sm:$0xff]  }
  0x1e   :  { %2673 = vmatprep.subr.bf16.mxu1 %v2979_v30  ;;  %v3036_v19 = vld [vmem:[%s3935_s1 + $0x290] sm:$0xff]   ;;  %v3039_v22 = vld [vmem:[%s3935_s1 + $0x2d8] sm:$0xff]   ;;  %v3043_v26 = vld [vmem:[%s3935_s1 + $0x2e0] sm:$0xff]  }
  0x1f   :  { %2652 = vmatpush3.bf16.msra.mxu0 %v2978_v29  ;;  %v3040_v23 = vld [vmem:[%s3935_s1 + $0x298] sm:$0xff]   ;;  %v3044_v27 = vld [vmem:[%s3935_s1 + $0x2a0] sm:$0xff]   ;;  %v3045_v28 = vld [vmem:[%s3935_s1 + $0x268] sm:$0xff]  }
  0x20   :  { %2681 = vmatprep.subr.bf16.mxu0 %v2984_v34  ;;  %v3046_v29 = vld [vmem:[%s3935_s1 + $0x228] sm:$0xff]   ;;  %v3049_v32 = vld [vmem:[%s3935_s1 + $0x270] sm:$0xff]   ;;  %v3053_v36 = vld [vmem:[%s3935_s1 + $0x278] sm:$0xff]  }
  0x21   :  { %2674 = vmatpush3.bf16.msra.mxu1 %v2983_v33  ;;  %v3047_v30 = vld [vmem:[%s3935_s1 + $0x2e8] sm:$0xff]   ;;  %v3050_v33 = vld [vmem:[%s3935_s1 + $0x230] sm:$0xff]  }
  0x22   :  { %1784 = vmatmul.mubr.bf16.vlgmr.msra.gmra.mrb[0].mxu0 %v2980_v31  ;;  %2703 = vmatprep.subr.bf16.mxu1 %v2989_v38  ;;  %v3048_v31 = vld [vmem:[%s3935_s1 + $0x2a8] sm:$0xff]   ;;  %v3051_v34 = vld [vmem:[%s3935_s1 + $0x2f0] sm:$0xff]   ;;  %v3055_v38 = vld [vmem:[%s3935_s1 + $0x2f8] sm:$0xff]  }
  0x23   :  { %2682 = vmatpush3.bf16.msra.mxu0 %v2988_v37  ;;  %1865 = vmatprep.mubr.bf16.mxu0 %v3020_v4  ;;  %v3054_v37 = vld [vmem:[%s3935_s1 + $0x238] sm:$0xff]   ;;  %v3087_v4 = vld [vmem:[%s3935_s1 + $0x370] sm:$0xff]  }
  0x24   :  { %1825 = vmatmul.mubr.bf16.vlgmr.msra.gmra.mrb[0].mxu1 %v2985_v35  ;;  %2683 = vmatprep.subr.bf16.mxu0 %v2991_v40  ;;  %v3052_v35 = vld [vmem:[%s3935_s1 + $0x2b0] sm:$0xff]   ;;  %v3058_v40 = vld [vmem:[%s3936_s0 + $0x24] ss:$100 sps:$4 sm:$0xff]  }
  0x25   :  { %2704 = vmatpush3.bf16.msra.mxu1 %v2990_v39  ;;  %1906 = vmatprep.mubr.bf16.mxu1 %v3025_v8  ;;  %v3056_v39 = vld [vmem:[%s3936_s0 + $0x20] ss:$100 sps:$4 sm:$0xff]   ;;  %v3091_v8 = vld [vmem:[%s3935_s1 + $0x378] sm:$0xff]  }
  0x26   :  { %2705 = vmatprep.subr.bf16.mxu1 %v2993_v42  ;;  %v3060_v42 = vld [vmem:[%s3935_s1 + $0x340] sm:$0xff]  }
  0x27   :  { %2684 = vmatpush3.bf16.msra.mxu0 %v2992_v41  ;;  %v3059_v41 = vld [vmem:[%s3935_s1 + $0x2b8] sm:$0xff]  }
  0x28   :  { %2685 = vmatprep.subr.bf16.mxu0 %v2995_v44  ;;  %v3063_v44 = vld [vmem:[%s3936_s0 + $0x2c] ss:$100 sps:$4 sm:$0xff]  }
  0x29   :  { %2706 = vmatpush3.bf16.msra.mxu1 %v2994_v43  ;;  %v3061_v43 = vld [vmem:[%s3936_s0 + $0x28] ss:$100 sps:$4 sm:$0xff]  }
  0x2a   :  { %2707 = vmatprep.subr.bf16.mxu1 %v2997_v46  ;;  %v3065_v46 = vld [vmem:[%s3935_s1 + $0x3c0] sm:$0xff]  }
  0x2b   :  { %2686 = vmatpush3.bf16.msra.mxu0 %v2996_v45  ;;  %v3064_v45 = vld [vmem:[%s3935_s1 + $0x300] sm:$0xff]  }
  0x2c   :  { %2687 = vmatprep.subr.bf16.mxu0 %v2999_v48  ;;  %v3067_v48 = vld [vmem:[%s3935_s1 + $0x348] sm:$0xff]  }
  0x2d   :  { %2708 = vmatpush3.bf16.msra.mxu1 %v2998_v47  ;;  %v3066_v47 = vld [vmem:[%s3935_s1 + $0x380] sm:$0xff]  }
  0x2e   :  { %2709 = vmatprep.subr.bf16.mxu1 %v3001_v50  ;;  %v3069_v50 = vld [vmem:[%s3935_s1 + $0x3c8] sm:$0xff]  }
  0x2f   :  { %2688 = vmatpush3.bf16.msra.mxu0 %v3000_v49  ;;  %v3068_v49 = vld [vmem:[%s3935_s1 + $0x308] sm:$0xff]  }
  0x30   :  { %2689 = vmatprep.subr.bf16.mxu0 %v3003_v52  ;;  %v3071_v52 = vld [vmem:[%s3935_s1 + $0x350] sm:$0xff]  }
  0x31   :  { %2710 = vmatpush3.bf16.msra.mxu1 %v3002_v51  ;;  %v3070_v51 = vld [vmem:[%s3935_s1 + $0x388] sm:$0xff]  }
  0x32   :  { %2711 = vmatprep.subr.bf16.mxu1 %v3005_v54  ;;  %v3073_v54 = vld [vmem:[%s3935_s1 + $0x3d0] sm:$0xff]  }
  0x33   :  { %2690 = vmatpush3.bf16.msra.mxu0 %v3004_v53  ;;  %v3072_v53 = vld [vmem:[%s3935_s1 + $0x310] sm:$0xff]  }
  0x34   :  { %2691 = vmatprep.subr.bf16.mxu0 %v3007_v56  ;;  %v3075_v56 = vld [vmem:[%s3935_s1 + $0x358] sm:$0xff]  }
  0x35   :  { %2712 = vmatpush3.bf16.msra.mxu1 %v3006_v55  ;;  %v3074_v55 = vld [vmem:[%s3935_s1 + $0x390] sm:$0xff]  }
  0x36   :  { %2713 = vmatprep.subr.bf16.mxu1 %v3009_v58  ;;  %v3077_v58 = vld [vmem:[%s3935_s1 + $0x3d8] sm:$0xff]  }
  0x37   :  { %2692 = vmatpush3.bf16.msra.mxu0 %v3008_v57  ;;  %v3076_v57 = vld [vmem:[%s3935_s1 + $0x318] sm:$0xff]  }
  0x38   :  { %2693 = vmatprep.subr.bf16.mxu0 %v3011_v60  ;;  %v3079_v60 = vld [vmem:[%s3935_s1 + $0x360] sm:$0xff]  }
  0x39   :  { %2714 = vmatpush3.bf16.msra.mxu1 %v3010_v59  ;;  %v3078_v59 = vld [vmem:[%s3935_s1 + $0x398] sm:$0xff]  }
  0x3a   :  { %2715 = vmatprep.subr.bf16.mxu1 %v3013_v62  ;;  %v3081_v62 = vld [vmem:[%s3935_s1 + $0x3e0] sm:$0xff]  }
  0x3b   :  { %2694 = vmatpush3.bf16.msra.mxu0 %v3012_v61  ;;  %v3080_v61 = vld [vmem:[%s3935_s1 + $0x320] sm:$0xff]  }
  0x3c   :  { %2695 = vmatprep.subr.bf16.mxu0 %v3015_v0  ;;  %v3083_v0 = vld [vmem:[%s3935_s1 + $0x368] sm:$0xff]  }
  0x3d   :  { %2716 = vmatpush3.bf16.msra.mxu1 %v3014_v63  ;;  %v3082_v63 = vld [vmem:[%s3935_s1 + $0x3a0] sm:$0xff]  }
  0x3e   :  { %2717 = vmatprep.subr.bf16.mxu1 %v3017_v2  ;;  %v3085_v2 = vld [vmem:[%s3935_s1 + $0x3e8] sm:$0xff]  }
  0x3f   :  { %2696 = vmatpush3.bf16.msra.mxu0 %v3016_v1  ;;  %v3084_v1 = vld [vmem:[%s3935_s1 + $0x328] sm:$0xff]  }
  0x40   :  { %2725 = vmatprep.subr.bf16.mxu0 %v3022_v6  ;;  %v3089_v6 = vld [vmem:[%s3935_s1 + $0x3f0] sm:$0xff]  }
  0x41   :  { %2718 = vmatpush3.bf16.msra.mxu1 %v3021_v5  ;;  %v3088_v5 = vld [vmem:[%s3935_s1 + $0x330] sm:$0xff]  }
  0x42   :  { %1866 = vmatmul.mubr.bf16.vlgmr.msra.gmra.mrb[4].mxu0 %v3018_v3  ;;  %2747 = vmatprep.subr.bf16.mxu1 %v3027_v10  ;;  %v3086_v3 = vld [vmem:[%s3935_s1 + $0x3a8] sm:$0xff]   ;;  %v3093_v10 = vld [vmem:[%s3935_s1 + $0x3f8] sm:$0xff]  }
  0x43   :  { %2726 = vmatpush3.bf16.msra.mxu0 %v3026_v9  ;;  %1947 = vmatprep.mubr.bf16.mxu0 %v3058_v40  ;;  %v3092_v9 = vld [vmem:[%s3935_s1 + $0x338] sm:$0xff]   ;;  %v3125_v40 = vld [vmem:[%s3935_s1 + $0x470] sm:$0xff]  }
  0x44   :  { %1907 = vmatmul.mubr.bf16.vlgmr.msra.gmra.mrb[4].mxu1 %v3023_v7  ;;  %2727 = vmatprep.subr.bf16.mxu0 %v3029_v12  ;;  %v3090_v7 = vld [vmem:[%s3935_s1 + $0x3b0] sm:$0xff]  }
  0x45   :  { %2748 = vmatpush3.bf16.msra.mxu1 %v3028_v11  ;;  %1988 = vmatprep.mubr.bf16.mxu1 %v3063_v44  ;;  %v3094_v11 = vld [vmem:[%s3936_s0 + $0x30] ss:$100 sps:$4 sm:$0xff]   ;;  %v3129_v44 = vld [vmem:[%s3935_s1 + $0x478] sm:$0xff]  }
  0x46   :  { %2749 = vmatprep.subr.bf16.mxu1 %v3031_v14  ;;  %v3096_v12 = vld [vmem:[%s3936_s0 + $0x34] ss:$100 sps:$4 sm:$0xff]   ;;  %v3098_v14 = vld [vmem:[%s3935_s1 + $0x440] sm:$0xff]  }
  0x47   :  { %2728 = vmatpush3.bf16.msra.mxu0 %v3030_v13  ;;  %v3097_v13 = vld [vmem:[%s3935_s1 + $0x3b8] sm:$0xff]  }
  0x48   :  { %2729 = vmatprep.subr.bf16.mxu0 %v3033_v16  ;;  %v3101_v16 = vld [vmem:[%s3936_s0 + $0x3c] ss:$100 sps:$4 sm:$0xff]  }
  0x49   :  { %2750 = vmatpush3.bf16.msra.mxu1 %v3032_v15  ;;  %v3099_v15 = vld [vmem:[%s3936_s0 + $0x38] ss:$100 sps:$4 sm:$0xff]  }
  0x4a   :  { %2751 = vmatprep.subr.bf16.mxu1 %v3035_v18  ;;  %v3103_v18 = vld [vmem:[%s3935_s1 + $0x4c0] sm:$0xff]  }
  0x4b   :  { %2730 = vmatpush3.bf16.msra.mxu0 %v3034_v17  ;;  %v3102_v17 = vld [vmem:[%s3935_s1 + $0x400] sm:$0xff]  }
  0x4c   :  { %2731 = vmatprep.subr.bf16.mxu0 %v3037_v20  ;;  %v3105_v20 = vld [vmem:[%s3935_s1 + $0x448] sm:$0xff]  }
  0x4d   :  { %2752 = vmatpush3.bf16.msra.mxu1 %v3036_v19  ;;  %v3104_v19 = vld [vmem:[%s3935_s1 + $0x480] sm:$0xff]  }
  0x4e   :  { %2753 = vmatprep.subr.bf16.mxu1 %v3039_v22  ;;  %v3107_v22 = vld [vmem:[%s3935_s1 + $0x4c8] sm:$0xff]  }
  0x4f   :  { %2732 = vmatpush3.bf16.msra.mxu0 %v3038_v21  ;;  %v3106_v21 = vld [vmem:[%s3935_s1 + $0x408] sm:$0xff]  }
  0x50   :  { %2733 = vmatprep.subr.bf16.mxu0 %v3041_v24  ;;  %v3109_v24 = vld [vmem:[%s3935_s1 + $0x450] sm:$0xff]  }
  0x51   :  { %2754 = vmatpush3.bf16.msra.mxu1 %v3040_v23  ;;  %v3108_v23 = vld [vmem:[%s3935_s1 + $0x488] sm:$0xff]  }
  0x52   :  { %2755 = vmatprep.subr.bf16.mxu1 %v3043_v26  ;;  %v3111_v26 = vld [vmem:[%s3935_s1 + $0x4d0] sm:$0xff]  }
  0x53   :  { %2734 = vmatpush3.bf16.msra.mxu0 %v3042_v25  ;;  %v3110_v25 = vld [vmem:[%s3935_s1 + $0x410] sm:$0xff]  }
  0x54   :  { %2735 = vmatprep.subr.bf16.mxu0 %v3045_v28  ;;  %v3113_v28 = vld [vmem:[%s3935_s1 + $0x458] sm:$0xff]  }
  0x55   :  { %2756 = vmatpush3.bf16.msra.mxu1 %v3044_v27  ;;  %v3112_v27 = vld [vmem:[%s3935_s1 + $0x490] sm:$0xff]  }
  0x56   :  { %2757 = vmatprep.subr.bf16.mxu1 %v3047_v30  ;;  %v3115_v30 = vld [vmem:[%s3935_s1 + $0x4d8] sm:$0xff]  }
  0x57   :  { %2736 = vmatpush3.bf16.msra.mxu0 %v3046_v29  ;;  %v3114_v29 = vld [vmem:[%s3935_s1 + $0x418] sm:$0xff]  }
  0x58   :  { %2737 = vmatprep.subr.bf16.mxu0 %v3049_v32  ;;  %v3117_v32 = vld [vmem:[%s3935_s1 + $0x460] sm:$0xff]  }
  0x59   :  { %2758 = vmatpush3.bf16.msra.mxu1 %v3048_v31  ;;  %v3116_v31 = vld [vmem:[%s3935_s1 + $0x498] sm:$0xff]  }
  0x5a   :  { %2759 = vmatprep.subr.bf16.mxu1 %v3051_v34  ;;  %v3119_v34 = vld [vmem:[%s3935_s1 + $0x4e0] sm:$0xff]  }
  0x5b   :  { %2738 = vmatpush3.bf16.msra.mxu0 %v3050_v33  ;;  %v3118_v33 = vld [vmem:[%s3935_s1 + $0x420] sm:$0xff]  }
  0x5c   :  { %2739 = vmatprep.subr.bf16.mxu0 %v3053_v36  ;;  %v3121_v36 = vld [vmem:[%s3935_s1 + $0x468] sm:$0xff]  }
  0x5d   :  { %2760 = vmatpush3.bf16.msra.mxu1 %v3052_v35  ;;  %v3120_v35 = vld [vmem:[%s3935_s1 + $0x4a0] sm:$0xff]  }
  0x5e   :  { %2761 = vmatprep.subr.bf16.mxu1 %v3055_v38  ;;  %v3123_v38 = vld [vmem:[%s3935_s1 + $0x4e8] sm:$0xff]  }
  0x5f   :  { %2740 = vmatpush3.bf16.msra.mxu0 %v3054_v37  ;;  %v3122_v37 = vld [vmem:[%s3935_s1 + $0x428] sm:$0xff]  }
  0x60   :  { %2769 = vmatprep.subr.bf16.mxu0 %v3060_v42  ;;  %v3127_v42 = vld [vmem:[%s3935_s1 + $0x4f0] sm:$0xff]  }
  0x61   :  { %2762 = vmatpush3.bf16.msra.mxu1 %v3059_v41  ;;  %v3126_v41 = vld [vmem:[%s3935_s1 + $0x430] sm:$0xff]  }
  0x62   :  { %1948 = vmatmul.mubr.bf16.vlgmr.msra.gmra.mrb[8].mxu0 %v3056_v39  ;;  %2791 = vmatprep.subr.bf16.mxu1 %v3065_v46  ;;  %v3124_v39 = vld [vmem:[%s3935_s1 + $0x4a8] sm:$0xff]   ;;  %v3131_v46 = vld [vmem:[%s3935_s1 + $0x4f8] sm:$0xff]  }
  0x63   :  { %2770 = vmatpush3.bf16.msra.mxu0 %v3064_v45  ;;  %2029 = vmatprep.mubr.bf16.mxu0 %v3096_v12  ;;  %v3130_v45 = vld [vmem:[%s3935_s1 + $0x438] sm:$0xff]   ;;  %v3163_v12 = vld [vmem:[%s3935_s1 + $0x570] sm:$0xff]  }
  0x64   :  { %1989 = vmatmul.mubr.bf16.vlgmr.msra.gmra.mrb[8].mxu1 %v3061_v43  ;;  %2771 = vmatprep.subr.bf16.mxu0 %v3067_v48  ;;  %v3128_v43 = vld [vmem:[%s3935_s1 + $0x4b0] sm:$0xff]   ;;  %v3134_v48 = vld [vmem:[%s3936_s0 + $0x44] ss:$100 sps:$4 sm:$0xff]  }
  0x65   :  { %2792 = vmatpush3.bf16.msra.mxu1 %v3066_v47  ;;  %2070 = vmatprep.mubr.bf16.mxu1 %v3101_v16  ;;  %v3132_v47 = vld [vmem:[%s3936_s0 + $0x40] ss:$100 sps:$4 sm:$0xff]   ;;  %v3167_v16 = vld [vmem:[%s3935_s1 + $0x578] sm:$0xff]  }
  0x66   :  { %2793 = vmatprep.subr.bf16.mxu1 %v3069_v50  ;;  %v3136_v50 = vld [vmem:[%s3935_s1 + $0x540] sm:$0xff]  }
  0x67   :  { %2772 = vmatpush3.bf16.msra.mxu0 %v3068_v49  ;;  %v3135_v49 = vld [vmem:[%s3935_s1 + $0x4b8] sm:$0xff]  }
  0x68   :  { %2773 = vmatprep.subr.bf16.mxu0 %v3071_v52  ;;  %v3139_v52 = vld [vmem:[%s3936_s0 + $0x4c] ss:$100 sps:$4 sm:$0xff]  }
  0x69   :  { %2794 = vmatpush3.bf16.msra.mxu1 %v3070_v51  ;;  %v3137_v51 = vld [vmem:[%s3936_s0 + $0x48] ss:$100 sps:$4 sm:$0xff]  }
  0x6a   :  { %2795 = vmatprep.subr.bf16.mxu1 %v3073_v54  ;;  %v3141_v54 = vld [vmem:[%s3935_s1 + $0x5c0] sm:$0xff]  }
  0x6b   :  { %2774 = vmatpush3.bf16.msra.mxu0 %v3072_v53  ;;  %v3140_v53 = vld [vmem:[%s3935_s1 + $0x500] sm:$0xff]  }
  0x6c   :  { %2775 = vmatprep.subr.bf16.mxu0 %v3075_v56  ;;  %v3143_v56 = vld [vmem:[%s3935_s1 + $0x548] sm:$0xff]  }
  0x6d   :  { %2796 = vmatpush3.bf16.msra.mxu1 %v3074_v55  ;;  %v3142_v55 = vld [vmem:[%s3935_s1 + $0x580] sm:$0xff]  }
  0x6e   :  { %2797 = vmatprep.subr.bf16.mxu1 %v3077_v58  ;;  %v3145_v58 = vld [vmem:[%s3935_s1 + $0x5c8] sm:$0xff]  }
  0x6f   :  { %2776 = vmatpush3.bf16.msra.mxu0 %v3076_v57  ;;  %v3144_v57 = vld [vmem:[%s3935_s1 + $0x508] sm:$0xff]  }
  0x70   :  { %2777 = vmatprep.subr.bf16.mxu0 %v3079_v60  ;;  %v3147_v60 = vld [vmem:[%s3935_s1 + $0x550] sm:$0xff]  }
  0x71   :  { %2798 = vmatpush3.bf16.msra.mxu1 %v3078_v59  ;;  %v3146_v59 = vld [vmem:[%s3935_s1 + $0x588] sm:$0xff]  }
  0x72   :  { %2799 = vmatprep.subr.bf16.mxu1 %v3081_v62  ;;  %v3149_v62 = vld [vmem:[%s3935_s1 + $0x5d0] sm:$0xff]  }
  0x73   :  { %2778 = vmatpush3.bf16.msra.mxu0 %v3080_v61  ;;  %v3148_v61 = vld [vmem:[%s3935_s1 + $0x510] sm:$0xff]  }
  0x74   :  { %2779 = vmatprep.subr.bf16.mxu0 %v3083_v0  ;;  %v3151_v0 = vld [vmem:[%s3935_s1 + $0x558] sm:$0xff]  }
  0x75   :  { %2800 = vmatpush3.bf16.msra.mxu1 %v3082_v63  ;;  %v3150_v63 = vld [vmem:[%s3935_s1 + $0x590] sm:$0xff]  }
  0x76   :  { %2801 = vmatprep.subr.bf16.mxu1 %v3085_v2  ;;  %v3153_v2 = vld [vmem:[%s3935_s1 + $0x5d8] sm:$0xff]  }
  0x77   :  { %2780 = vmatpush3.bf16.msra.mxu0 %v3084_v1  ;;  %v3152_v1 = vld [vmem:[%s3935_s1 + $0x518] sm:$0xff]  }
  0x78   :  { %2781 = vmatprep.subr.bf16.mxu0 %v3087_v4  ;;  %v3155_v4 = vld [vmem:[%s3935_s1 + $0x560] sm:$0xff]  }
  0x79   :  { %2802 = vmatpush3.bf16.msra.mxu1 %v3086_v3  ;;  %v3154_v3 = vld [vmem:[%s3935_s1 + $0x598] sm:$0xff]  }
  0x7a   :  { %2803 = vmatprep.subr.bf16.mxu1 %v3089_v6  ;;  %v3157_v6 = vld [vmem:[%s3935_s1 + $0x5e0] sm:$0xff]  }
  0x7b   :  { %2782 = vmatpush3.bf16.msra.mxu0 %v3088_v5  ;;  %v3156_v5 = vld [vmem:[%s3935_s1 + $0x520] sm:$0xff]  }
  0x7c   :  { %2783 = vmatprep.subr.bf16.mxu0 %v3091_v8  ;;  %v3159_v8 = vld [vmem:[%s3935_s1 + $0x568] sm:$0xff]  }
  0x7d   :  { %2804 = vmatpush3.bf16.msra.mxu1 %v3090_v7  ;;  %v3158_v7 = vld [vmem:[%s3935_s1 + $0x5a0] sm:$0xff]  }
  0x7e   :  { %2805 = vmatprep.subr.bf16.mxu1 %v3093_v10  ;;  %v3161_v10 = vld [vmem:[%s3935_s1 + $0x5e8] sm:$0xff]  }
  0x7f   :  { %2784 = vmatpush3.bf16.msra.mxu0 %v3092_v9  ;;  %v3160_v9 = vld [vmem:[%s3935_s1 + $0x528] sm:$0xff]  }
  0x80   :  { %2813 = vmatprep.subr.bf16.mxu0 %v3098_v14  ;;  %v3165_v14 = vld [vmem:[%s3935_s1 + $0x5f0] sm:$0xff]  }
  0x81   :  { %2806 = vmatpush3.bf16.msra.mxu1 %v3097_v13  ;;  %v3164_v13 = vld [vmem:[%s3935_s1 + $0x530] sm:$0xff]  }
  0x82   :  { %2030 = vmatmul.mubr.bf16.vlgmr.msra.gmra.mrb[12].mxu0 %v3094_v11  ;;  %2835 = vmatprep.subr.bf16.mxu1 %v3103_v18  ;;  %v3162_v11 = vld [vmem:[%s3935_s1 + $0x5a8] sm:$0xff]   ;;  %v3169_v18 = vld [vmem:[%s3935_s1 + $0x5f8] sm:$0xff]  }
  0x83   :  { %2814 = vmatpush3.bf16.msra.mxu0 %v3102_v17  ;;  %2111 = vmatprep.mubr.bf16.mxu0 %v3134_v48  ;;  %v3168_v17 = vld [vmem:[%s3935_s1 + $0x538] sm:$0xff]   ;;  %v3183_v48 = vld [vmem:[%s3938_s3 + $0x8] sm:$0xff]  }
  0x84   :  { %2071 = vmatmul.mubr.bf16.vlgmr.msra.gmra.mrb[12].mxu1 %v3099_v15  ;;  %2815 = vmatprep.subr.bf16.mxu0 %v3105_v20  ;;  %v3166_v15 = vld [vmem:[%s3935_s1 + $0x5b0] sm:$0xff]  }
  0x85   :  { %2836 = vmatpush3.bf16.msra.mxu1 %v3104_v19  ;;  %2152 = vmatprep.mubr.bf16.mxu1 %v3139_v52  ;;  %v3170_v19 = vld [vmem:[%s3936_s0 + $0x50] ss:$100 sps:$4 sm:$0xff]  }
  0x86   :  { %2837 = vmatprep.subr.bf16.mxu1 %v3107_v22  ;;  %v3172_v20 = vld [vmem:[%s3936_s0 + $0x54] ss:$100 sps:$4 sm:$0xff]   ;;  %v3190_v22 = vmov 0.0  }
  0x87   :  { %2816 = vmatpush3.bf16.msra.mxu0 %v3106_v21  ;;  %v3173_v21 = vld [vmem:[%s3935_s1 + $0x5b8] sm:$0xff]  }
  0x88   :  { %2817 = vmatprep.subr.bf16.mxu0 %v3109_v24  ;;  %v3176_v24 = vld [vmem:[%s3936_s0 + $0x5c] ss:$100 sps:$4 sm:$0xff]  }
  0x89   :  { %2838 = vmatpush3.bf16.msra.mxu1 %v3108_v23  ;;  %v3174_v23 = vld [vmem:[%s3936_s0 + $0x58] ss:$100 sps:$4 sm:$0xff]  }
  0x8a   :  { %2839 = vmatprep.subr.bf16.mxu1 %v3111_v26  ;;  %v3178_v26 = vld [vmem:[%s3935_s1 + $0x608] sm:$0xff]  }
  0x8b   :  { %2818 = vmatpush3.bf16.msra.mxu0 %v3110_v25  ;;  %v3177_v25 = vld [vmem:[%s3935_s1 + $0x600] sm:$0xff]  }
  0x8c   :  { %2819 = vmatprep.subr.bf16.mxu0 %v3113_v28  ;;  %v3180_v28 = vld [vmem:[%s3935_s1 + $0x618] sm:$0xff]  }
  0x8d   :  { %2840 = vmatpush3.bf16.msra.mxu1 %v3112_v27  ;;  %v3179_v27 = vld [vmem:[%s3935_s1 + $0x610] sm:$0xff]  }
  0x8e   :  { %2841 = vmatprep.subr.bf16.mxu1 %v3115_v30 }
  0x8f   :  { %2820 = vmatpush3.bf16.msra.mxu0 %v3114_v29  ;;  %v3181_v29 = vld [vmem:[%s3936_s0 + $0x60] ss:$100 sps:$4 sm:$0xff]  }
  0x90   :  { %2821 = vmatprep.subr.bf16.mxu0 %v3117_v32 }
  0x91   :  { %2842 = vmatpush3.bf16.msra.mxu1 %v3116_v31  ;;  %v2405_v31 = vld [vmem:[%s3937_s2] ss:$0 sm:$0xff] }
  0x92   :  { %2843 = vmatprep.subr.bf16.mxu1 %v3119_v34 }
  0x93   :  { %2822 = vmatpush3.bf16.msra.mxu0 %v3118_v33 }
  0x94   :  { %2823 = vmatprep.subr.bf16.mxu0 %v3121_v36 }
  0x95   :  { %2844 = vmatpush3.bf16.msra.mxu1 %v3120_v35 }
  0x96   :  { %2845 = vmatprep.subr.bf16.mxu1 %v3123_v38 }
  0x97   :  { %2824 = vmatpush3.bf16.msra.mxu0 %v3122_v37 }
  0x98   :  { %2825 = vmatprep.subr.bf16.mxu0 %v3125_v40 }
  0x99   :  { %2846 = vmatpush3.bf16.msra.mxu1 %v3124_v39 }
  0x9a   :  { %2847 = vmatprep.subr.bf16.mxu1 %v3127_v42 }
  0x9b   :  { %2826 = vmatpush3.bf16.msra.mxu0 %v3126_v41 }
  0x9c   :  { %2827 = vmatprep.subr.bf16.mxu0 %v3129_v44 }
  0x9d   :  { %2848 = vmatpush3.bf16.msra.mxu1 %v3128_v43 }
  0x9e   :  { %2849 = vmatprep.subr.bf16.mxu1 %v3131_v46 }
  0x9f   :  { %2828 = vmatpush3.bf16.msra.mxu0 %v3130_v45 }
  0xa0   :  { %2857 = vmatprep.subr.bf16.mxu0 %v3136_v50 }
  0xa1   :  { %2850 = vmatpush3.bf16.msra.mxu1 %v3135_v49 }
  0xa2   :  { %2112 = vmatmul.mubr.bf16.vlgmr.msra.gmra.mrb[16].mxu0 %v3132_v47  ;;  %2879 = vmatprep.subr.bf16.mxu1 %v3141_v54  ;;  %v3182_v47 = vld [vmem:[%s3938_s3] sm:$0xff]  }
  0xa3   :  { %2858 = vmatpush3.bf16.msra.mxu0 %v3140_v53  ;;  %2193 = vmatprep.mubr.bf16.mxu0 %v3172_v20 }
  0xa4   :  { %2153 = vmatmul.mubr.bf16.vlgmr.msra.gmra.mrb[16].mxu1 %v3137_v51  ;;  %2859 = vmatprep.subr.bf16.mxu0 %v3143_v56 }
  0xa5   :  { %2880 = vmatpush3.bf16.msra.mxu1 %v3142_v55  ;;  %2234 = vmatprep.mubr.bf16.mxu1 %v3176_v24 }
  0xa6   :  { %2881 = vmatprep.subr.bf16.mxu1 %v3145_v58 }
  0xa7   :  { %2860 = vmatpush3.bf16.msra.mxu0 %v3144_v57 }
  0xa8   :  { %2861 = vmatprep.subr.bf16.mxu0 %v3147_v60 }
  0xa9   :  { %2882 = vmatpush3.bf16.msra.mxu1 %v3146_v59 }
  0xaa   :  { %2883 = vmatprep.subr.bf16.mxu1 %v3149_v62 }
  0xab   :  { %2862 = vmatpush3.bf16.msra.mxu0 %v3148_v61 }
  0xac   :  { %2863 = vmatprep.subr.bf16.mxu0 %v3151_v0 }
  0xad   :  { %2884 = vmatpush3.bf16.msra.mxu1 %v3150_v63 }
  0xae   :  { %2885 = vmatprep.subr.bf16.mxu1 %v3153_v2  ;;  %v3185_v2 = vld [vmem:[%s3938_s3 + $0x18] sm:$0xff]  }
  0xaf   :  { %2864 = vmatpush3.bf16.msra.mxu0 %v3152_v1  ;;  %v3184_v1 = vld [vmem:[%s3938_s3 + $0x10] sm:$0xff]  }
  0xb0   :  { %2865 = vmatprep.subr.bf16.mxu0 %v3155_v4  ;;  %v3187_v4 = vld [vmem:[%s3938_s3 + $0x28] sm:$0xff]  }
  0xb1   :  { %2886 = vmatpush3.bf16.msra.mxu1 %v3154_v3  ;;  %v3186_v3 = vld [vmem:[%s3938_s3 + $0x20] sm:$0xff]  }
  0xb2   :  { %2887 = vmatprep.subr.bf16.mxu1 %v3157_v6  ;;  %v3189_v6 = vld [vmem:[%s3938_s3 + $0x38] sm:$0xff]  }
  0xb3   :  { %2866 = vmatpush3.bf16.msra.mxu0 %v3156_v5  ;;  %v3188_v5 = vld [vmem:[%s3938_s3 + $0x30] sm:$0xff]  }
  0xb4   :  { %2867 = vmatprep.subr.bf16.mxu0 %v3159_v8 }
  0xb5   :  { %2888 = vmatpush3.bf16.msra.mxu1 %v3158_v7 }
  0xb6   :  { %2889 = vmatprep.subr.bf16.mxu1 %v3161_v10 }
  0xb7   :  { %2868 = vmatpush3.bf16.msra.mxu0 %v3160_v9 }
  0xb8   :  { %2869 = vmatprep.subr.bf16.mxu0 %v3163_v12 }
  0xb9   :  { %2890 = vmatpush3.bf16.msra.mxu1 %v3162_v11 }
  0xba   :  { %2891 = vmatprep.subr.bf16.mxu1 %v3165_v14 }
  0xbb   :  { %2870 = vmatpush3.bf16.msra.mxu0 %v3164_v13 }
  0xbc   :  { %2871 = vmatprep.subr.bf16.mxu0 %v3167_v16 }
  0xbd   :  { %2892 = vmatpush3.bf16.msra.mxu1 %v3166_v15 }
  0xbe   :  { %2893 = vmatprep.subr.bf16.mxu1 %v3169_v18 }
  0xbf   :  { %2872 = vmatpush3.bf16.msra.mxu0 %v3168_v17 }
  0xc0   :  { %2915 = vmatprep.subr.bf16.mxu0 %v3190_v22 }
  0xc1   :  { %2894 = vmatpush3.bf16.msra.mxu1 %v3173_v21 }
  0xc2   :  { %2194 = vmatmul.mubr.bf16.vlgmr.msra.gmra.mrb[20].mxu0 %v3170_v19  ;;  %2927 = vmatprep.subr.bf16.mxu1 %v3190_v22 }
  0xc3   :  { %2923 = vmatprep.mubr.msk.bf16.mxu0 %vm3191_vm0, %v3190_v22  ;;  %2916 = vmatpush3.bf16.msra.mxu0 %v3177_v25 }
  0xc4   :  { %2235 = vmatmul.mubr.bf16.vlgmr.msra.gmra.mrb[20].mxu1 %v3174_v23  ;;  %2917 = vmatprep.subr.bf16.mxu0 %v3190_v22 }
  0xc5   :  { %2943 = vmatprep.mubr.msk.bf16.mxu1 %vm3191_vm0, %v3190_v22  ;;  %2928 = vmatpush3.bf16.msra.mxu1 %v3182_v47 }
  0xc6   :  { %2929 = vmatprep.subr.bf16.mxu1 %v3190_v22 }
  0xc7   :  { %2918 = vmatpush3.bf16.msra.mxu0 %v3178_v26 }
  0xc8   :  { %2919 = vmatprep.subr.bf16.mxu0 %v3190_v22 }
  0xc9   :  { %2930 = vmatpush3.bf16.msra.mxu1 %v3183_v48 }
  0xca   :  { %2931 = vmatprep.subr.bf16.mxu1 %v3190_v22 }
  0xcb   :  { %2920 = vmatpush3.bf16.msra.mxu0 %v3179_v27 }
  0xcc   :  { %2921 = vmatprep.subr.bf16.mxu0 %v3190_v22 }
  0xcd   :  { %2932 = vmatpush3.bf16.msra.mxu1 %v3184_v1 }
  0xce   :  { %2933 = vmatprep.subr.bf16.mxu1 %v3190_v22 }
  0xcf   :  { %2922 = vmatpush3.bf16.msra.mxu0 %v3180_v28 }
  0xd1   :  { %2934 = vmatpush3.bf16.msra.mxu1 %v3185_v2 }
  0xd2   :  { %2924 = vmatmul.mubr.msk.bf16.vlgmr.msra.gmra.mrb[24].mxu0 %vm1747_vm1, %v3181_v29  ;;  %2935 = vmatprep.subr.bf16.mxu1 %v3190_v22 }
  0xd5   :  { %2936 = vmatpush3.bf16.msra.mxu1 %v3186_v3 }
  0xd6   :  { %2937 = vmatprep.subr.bf16.mxu1 %v3190_v22 }
  0xd9   :  { %2938 = vmatpush3.bf16.msra.mxu1 %v3187_v4 }
  0xda   :  { %2939 = vmatprep.subr.bf16.mxu1 %v3190_v22 }
  0xdd   :  { %2940 = vmatpush3.bf16.msra.mxu1 %v3188_v5 }
  0xde   :  { %2941 = vmatprep.subr.bf16.mxu1 %v3190_v22 }
  0xe1   :  { %2942 = vmatpush3.bf16.msra.mxu1 %v3189_v6 }
  0xf5   :  { %v2653_v30 = vpop.f32.mrb[0].mxu0 }
  0xf6   :  { %v2654_v32 = vpop.f32.mrb[1].mxu0 }
  0xf7   :  { %v2655_v33 = vadd.f32 %v2654_v32, %v2653_v30  ;;  %v2656_v34 = vpop.f32.mrb[2].mxu0  ;;  %v2675_v35 = vpop.f32.mrb[0].mxu1 }
  0xf8   :  { %v2657_v36 = vpop.f32.mrb[3].mxu0  ;;  %v2676_v39 = vpop.f32.mrb[1].mxu1 }
  0xf9   :  { %v1786_v37 = vadd.f32 %v2655_v33, %v2405_v31  ;;  %v2658_v38 = vadd.f32 %v2657_v36, %v2656_v34  ;;  %v2677_v40 = vadd.f32 %v2676_v39, %v2675_v35  ;;  %v2678_v41 = vpop.f32.mrb[2].mxu1 }
  0xfa   :  { %v2679_v43 = vpop.f32.mrb[3].mxu1 }
  0xfb   :  { %v1789_v42 = vadd.f32 %v2658_v38, %v2405_v31  ;;  %v1827_v44 = vadd.f32 %v2677_v40, %v1786_v37  ;;  %v2680_v45 = vadd.f32 %v2679_v43, %v2678_v41 }
  0xfd   :  { %v1830_v46 = vadd.f32 %v2680_v45, %v1789_v42 }
 0x115   :  { %v2697_v49 = vpop.f32.mrb[4].mxu0 }
 0x116   :  { %v2698_v50 = vpop.f32.mrb[5].mxu0 }
 0x117   :  { %v2699_v51 = vadd.f32 %v2698_v50, %v2697_v49  ;;  %v2700_v52 = vpop.f32.mrb[6].mxu0  ;;  %v2719_v55 = vpop.f32.mrb[4].mxu1 }
 0x118   :  { %v2701_v53 = vpop.f32.mrb[7].mxu0  ;;  %v2720_v57 = vpop.f32.mrb[5].mxu1 }
 0x119   :  { %v1868_v54 = vadd.f32 %v2699_v51, %v1827_v44  ;;  %v2702_v56 = vadd.f32 %v2701_v53, %v2700_v52  ;;  %v2721_v59 = vadd.f32 %v2720_v57, %v2719_v55  ;;  %v2722_v60 = vpop.f32.mrb[6].mxu1 }
 0x11a   :  { %v2723_v61 = vpop.f32.mrb[7].mxu1 }
 0x11b   :  { %v1871_v58 = vadd.f32 %v2702_v56, %v1830_v46  ;;  %v1909_v62 = vadd.f32 %v2721_v59, %v1868_v54  ;;  %v2724_v63 = vadd.f32 %v2723_v61, %v2722_v60 }
 0x11d   :  { %v1912_v0 = vadd.f32 %v2724_v63, %v1871_v58 }
 0x135   :  { %v2741_v7 = vpop.f32.mrb[8].mxu0 }
 0x136   :  { %v2742_v8 = vpop.f32.mrb[9].mxu0 }
 0x137   :  { %v2743_v9 = vadd.f32 %v2742_v8, %v2741_v7  ;;  %v2744_v10 = vpop.f32.mrb[10].mxu0  ;;  %v2763_v11 = vpop.f32.mrb[8].mxu1 }
 0x138   :  { %v2745_v12 = vpop.f32.mrb[11].mxu0  ;;  %v2764_v15 = vpop.f32.mrb[9].mxu1 }
 0x139   :  { %v1950_v13 = vadd.f32 %v2743_v9, %v1909_v62  ;;  %v2746_v14 = vadd.f32 %v2745_v12, %v2744_v10  ;;  %v2765_v16 = vadd.f32 %v2764_v15, %v2763_v11  ;;  %v2766_v17 = vpop.f32.mrb[10].mxu1 }
 0x13a   :  { %v2767_v19 = vpop.f32.mrb[11].mxu1 }
 0x13b   :  { %v1953_v18 = vadd.f32 %v2746_v14, %v1912_v0  ;;  %v1991_v20 = vadd.f32 %v2765_v16, %v1950_v13  ;;  %v2768_v21 = vadd.f32 %v2767_v19, %v2766_v17  ;;  %v2628_v16 = vld [vmem:[%s3939_s4] ss:$0 sm:$0xff] }
 0x13d   :  { %v1994_v22 = vadd.f32 %v2768_v21, %v1953_v18 }
 0x155   :  { %v2785_v23 = vpop.f32.mrb[12].mxu0 }
 0x156   :  { %v2786_v24 = vpop.f32.mrb[13].mxu0 }
 0x157   :  { %v2787_v25 = vadd.f32 %v2786_v24, %v2785_v23  ;;  %v2788_v26 = vpop.f32.mrb[14].mxu0  ;;  %v2807_v27 = vpop.f32.mrb[12].mxu1 }
 0x158   :  { %v2789_v28 = vpop.f32.mrb[15].mxu0  ;;  %v2808_v31 = vpop.f32.mrb[13].mxu1 }
 0x159   :  { %v2032_v29 = vadd.f32 %v2787_v25, %v1991_v20  ;;  %v2790_v30 = vadd.f32 %v2789_v28, %v2788_v26  ;;  %v2809_v32 = vadd.f32 %v2808_v31, %v2807_v27  ;;  %v2810_v33 = vpop.f32.mrb[14].mxu1 }
 0x15a   :  { %v2811_v35 = vpop.f32.mrb[15].mxu1 }
 0x15b   :  { %v2035_v34 = vadd.f32 %v2790_v30, %v1994_v22  ;;  %v2073_v36 = vadd.f32 %v2809_v32, %v2032_v29  ;;  %v2812_v37 = vadd.f32 %v2811_v35, %v2810_v33 }
 0x15d   :  { %v2076_v38 = vadd.f32 %v2812_v37, %v2035_v34 }
 0x175   :  { %v2829_v39 = vpop.f32.mrb[16].mxu0 }
 0x176   :  { %v2830_v40 = vpop.f32.mrb[17].mxu0 }
 0x177   :  { %v2831_v41 = vadd.f32 %v2830_v40, %v2829_v39  ;;  %v2832_v42 = vpop.f32.mrb[18].mxu0  ;;  %v2851_v45 = vpop.f32.mrb[16].mxu1 }
 0x178   :  { %v2833_v43 = vpop.f32.mrb[19].mxu0  ;;  %v2852_v47 = vpop.f32.mrb[17].mxu1 }
 0x179   :  { %v2114_v44 = vadd.f32 %v2831_v41, %v2073_v36  ;;  %v2834_v46 = vadd.f32 %v2833_v43, %v2832_v42  ;;  %v2853_v49 = vadd.f32 %v2852_v47, %v2851_v45  ;;  %v2854_v50 = vpop.f32.mrb[18].mxu1 }
 0x17a   :  { %v2855_v51 = vpop.f32.mrb[19].mxu1 }
 0x17b   :  { %v2117_v48 = vadd.f32 %v2834_v46, %v2076_v38  ;;  %v2155_v52 = vadd.f32 %v2853_v49, %v2114_v44  ;;  %v2856_v53 = vadd.f32 %v2855_v51, %v2854_v50 }
 0x17d   :  { %v2158_v54 = vadd.f32 %v2856_v53, %v2117_v48 }
 0x195   :  { %v2873_v55 = vpop.f32.mrb[20].mxu0 }
 0x196   :  { %v2874_v56 = vpop.f32.mrb[21].mxu0 }
 0x197   :  { %v2875_v57 = vadd.f32 %v2874_v56, %v2873_v55  ;;  %v2876_v58 = vpop.f32.mrb[22].mxu0  ;;  %v2895_v59 = vpop.f32.mrb[20].mxu1 }
 0x198   :  { %v2877_v60 = vpop.f32.mrb[23].mxu0  ;;  %v2896_v63 = vpop.f32.mrb[21].mxu1 }
 0x199   :  { %v2196_v61 = vadd.f32 %v2875_v57, %v2155_v52  ;;  %v2878_v62 = vadd.f32 %v2877_v60, %v2876_v58  ;;  %v2897_v0 = vadd.f32 %v2896_v63, %v2895_v59  ;;  %v2898_v1 = vpop.f32.mrb[22].mxu1 }
 0x19a   :  { %v2899_v3 = vpop.f32.mrb[23].mxu1 }
 0x19b   :  { %v2199_v2 = vadd.f32 %v2878_v62, %v2158_v54  ;;  %v2900_v4 = vadd.f32 %v2899_v3, %v2898_v1  ;;  %v2237_v5 = vadd.f32 %v2897_v0, %v2196_v61 }
 0x19d   :  { %v2240_v6 = vadd.f32 %v2900_v4, %v2199_v2 }
 0x1a5   :  { %v2277_v7 = vpop.f32.mrb[24].mxu0 }
 0x1a6   :  { %v2278_v8 = vadd.f32 %v2277_v7, %v2237_v5  ;;  %v2925_v9 = vpop.f32.mrb[25].mxu0 }
 0x1a7   :  { %v2280_v10 = vpop.f32.mrb[26].mxu0 }
 0x1a8   :  { %v2281_v11 = vadd.f32 %v2280_v10, %v2240_v6  ;;  %v2926_v12 = vpop.f32.mrb[27].mxu0  ;;  %v2284_v13 = vmax.f32 %v2278_v8, 0.0 }
 0x1aa   :  { %v2285_v14 = vmax.f32 %v2281_v11, 0.0 }
 0x1ac   :  { %v2286_v15 = vpack.c.bf16 %v2285_v14, %v2284_v13 }
 0x1ae   :  { %2944 = vmatmul.mubr.bf16.vlgmr.msra.gmra.mrb[24].mxu1 %v2286_v15 }
 0x281   :  { %v2392_v17 = vpop.f32.mrb[24].mxu1 }
 0x282   :  { %v2393_v18 = vadd.f32 %v2628_v16, %v2392_v17  ;;  %v2945_v19 = vpop.f32.mrb[25].mxu1 }
 0x283   :  { %v2395_v20 = vpop.f32.mrb[26].mxu1 }
 0x284   :  { %2399 = vst [vmem:[%s3940_s5] sm:$0xff] %v2393_v18  ;;  %v2396_v21 = vadd.f32 %v2628_v16, %v2395_v20  ;;  %v2946_v22 = vpop.f32.mrb[27].mxu1 }
 0x286   :  { %2400 = vst [vmem:[%s3940_s5 + $0x8] sm:$0xff] %v2396_v21 }

</bundles_post_ra>
